<compile_context>
chip_gen: v5e
topology: v5e:2x2
jax: 0.10.0
libtpu: 0.0.40
codegen_flags: <defaults>
</compile_context>

<pallas_src>
import math
import functools

import jax
import jax.numpy as jnp
from jax.experimental import pallas as pl
from jax.experimental.pallas import tpu as pltpu


# --------------------------------------------------------------------------
# Fused Pallas kernel: stem (at layer 0) + one encoder layer per grid step
# --------------------------------------------------------------------------

def _vit_fused_kernel(patches_ref, stem_w_ref, stem_b_ref, pos_ref,
                      g1_ref, bt1_ref,
                      wq_ref, wk_ref, wv_ref, bq_ref, bk_ref, bv_ref,
                      wo_ref, bo_ref,
                      g2_ref, bt2_ref,
                      wm1_ref, bm1_ref, wm2_ref, bm2_ref,
                      out_ref, acc_ref, *, n_heads, batch):
    """Grid = (n_layers,).  Tokens (T = B*N rows) stay resident in the f32 VMEM
    scratch `acc_ref` across the layer axis; per-layer weights stream in."""
    eps = 1e-5
    l = pl.program_id(0)
    T, D = acc_ref.shape
    N = T // batch
    hd = D // n_heads
    scale = 1.0 / math.sqrt(hd)

    # ---- Stem (first grid step only): linear patch embed + sin-cos pos emb ----
    @pl.when(l == 0)
    def _():
        proj = jnp.dot(patches_ref[...], stem_w_ref[...],
                       preferred_element_type=jnp.float32)          # bf16 x bf16 -> f32
        acc_ref[...] = proj + stem_b_ref[...] + pos_ref[...]

    x = acc_ref[...]                                                 # (T, D) f32

    # ---- LayerNorm 1 (f32 statistics) ----
    mu = jnp.mean(x, axis=-1, keepdims=True)
    var = jnp.mean(jnp.square(x - mu), axis=-1, keepdims=True)
    xn = (x - mu) * jax.lax.rsqrt(var + eps) * g1_ref[0] + bt1_ref[0]
    xn_b = xn.astype(jnp.bfloat16)

    # ---- QKV projections: bf16 operands, f32 accumulation, no lane slicing ----
    q = jnp.dot(xn_b, wq_ref[0], preferred_element_type=jnp.float32) + bq_ref[0]
    k = jnp.dot(xn_b, wk_ref[0], preferred_element_type=jnp.float32) + bk_ref[0]
    v = jnp.dot(xn_b, wv_ref[0], preferred_element_type=jnp.float32) + bv_ref[0]

    # ---- Per-image multi-head self-attention (attention never mixes images) ----
    # TODO(synk): for large N use flash-style key tiling; for large B/T add a
    # token-block grid axis instead of this small static batch loop.
    ctx_parts = []
    for b in range(batch):
        r0 = b * N
        qb = q[r0:r0 + N].reshape(N, n_heads, hd)
        kb = k[r0:r0 + N].reshape(N, n_heads, hd)
        vb = v[r0:r0 + N].reshape(N, n_heads, hd)
        logits = jnp.einsum('nhd,mhd->hnm', qb, kb,
                            preferred_element_type=jnp.float32) * scale
        logits = logits - jnp.max(logits, axis=-1, keepdims=True)
        p = jnp.exp(logits)
        attn = p * pl.reciprocal(jnp.sum(p, axis=-1, keepdims=True), approx=True)
        ctx_b = jnp.einsum('hnm,mhd->nhd', attn, vb,
                           preferred_element_type=jnp.float32)
        ctx_parts.append(ctx_b.reshape(N, D))
    ctx = jnp.concatenate(ctx_parts, axis=0)                         # (T, D) f32

    attn_out = jnp.dot(ctx.astype(jnp.bfloat16), wo_ref[0],
                       preferred_element_type=jnp.float32) + bo_ref[0]
    x = x + attn_out

    # ---- LayerNorm 2 + MLP (exact erf GELU) ----
    mu2 = jnp.mean(x, axis=-1, keepdims=True)
    var2 = jnp.mean(jnp.square(x - mu2), axis=-1, keepdims=True)
    xn2 = (x - mu2) * jax.lax.rsqrt(var2 + eps) * g2_ref[0] + bt2_ref[0]

    h = jnp.dot(xn2.astype(jnp.bfloat16), wm1_ref[0],
                preferred_element_type=jnp.float32) + bm1_ref[0]
    h = 0.5 * h * (1.0 + jax.lax.erf(h * (1.0 / math.sqrt(2.0))))
    h = jnp.dot(h.astype(jnp.bfloat16), wm2_ref[0],
                preferred_element_type=jnp.float32) + bm2_ref[0]

    acc_ref[...] = x + h

    @pl.when(l == pl.num_programs(0) - 1)
    def _():
        out_ref[...] = acc_ref[...].astype(out_ref.dtype)


# --------------------------------------------------------------------------
# pallas_call wrapper
# --------------------------------------------------------------------------

def _const_spec(shape):
    """Full-array block, constant across the layer grid axis (fetched once)."""
    zeros = (0,) * len(shape)
    return pl.BlockSpec(shape, lambda l, _z=zeros: _z)


def _layer_spec(*tail):
    """Per-layer stacked tensor (L, *tail); block selected by layer index."""
    zeros = (0,) * len(tail)
    return pl.BlockSpec((1,) + tuple(tail), lambda l, _z=zeros: (l,) + _z)


def vit_pallas(patches, pos, params, *, n_heads, batch):
    T, P = patches.shape
    D = params['stem_w'].shape[1]
    Hd = params['w_m1'].shape[2]
    L = params['w_q'].shape[0]
    kernel = functools.partial(_vit_fused_kernel, n_heads=n_heads, batch=batch)
    return pl.pallas_call(
        kernel,
        out_shape=jax.ShapeDtypeStruct((T, D), jnp.float32),
        grid_spec=pltpu.PrefetchScalarGridSpec(
            num_scalar_prefetch=0,
            grid=(L,),
            in_specs=[
                _const_spec((T, P)),        # patches (bf16)
                _const_spec((P, D)),        # stem_w  (bf16)
                _const_spec((1, D)),        # stem_b
                _const_spec((T, D)),        # pos (tiled over batch)
                _layer_spec(1, D),          # ln1 gamma
                _layer_spec(1, D),          # ln1 beta
                _layer_spec(D, D),          # w_q (bf16)
                _layer_spec(D, D),          # w_k (bf16)
                _layer_spec(D, D),          # w_v (bf16)
                _layer_spec(1, D),          # b_q
                _layer_spec(1, D),          # b_k
                _layer_spec(1, D),          # b_v
                _layer_spec(D, D),          # w_out (bf16)
                _layer_spec(1, D),          # b_out
                _layer_spec(1, D),          # ln2 gamma
                _layer_spec(1, D),          # ln2 beta
                _layer_spec(D, Hd),         # w_mlp1 (bf16)
                _layer_spec(1, Hd),         # b_mlp1
                _layer_spec(Hd, D),         # w_mlp2 (bf16)
                _layer_spec(1, D),          # b_mlp2
            ],
            out_specs=pl.BlockSpec((T, D), lambda l: (0, 0)),
            scratch_shapes=[pltpu.VMEM((T, D), jnp.float32)],
        ),
        compiler_params=pltpu.CompilerParams(
            dimension_semantics=("arbitrary",),
            vmem_limit_bytes=32 * 1024 * 1024,
        ),
    )(patches, params['stem_w'], params['stem_b'], pos,
      params['ln1_g'], params['ln1_b'],
      params['w_q'], params['w_k'], params['w_v'],
      params['b_q'], params['b_k'], params['b_v'],
      params['w_o'], params['b_o'],
      params['ln2_g'], params['ln2_b'],
      params['w_m1'], params['b_m1'], params['w_m2'], params['b_m2'])


# --------------------------------------------------------------------------
# Model glue (patchify, pos-emb, params)
# --------------------------------------------------------------------------

def sincos_2d_posemb(hp, wp, dim):
    assert dim % 4 == 0
    quarter = dim // 4
    omega = jnp.arange(quarter, dtype=jnp.float32) / quarter
    omega = 1.0 / (10000.0 ** omega)
    gy, gx = jnp.meshgrid(jnp.arange(hp, dtype=jnp.float32),
                          jnp.arange(wp, dtype=jnp.float32), indexing='ij')
    oy = gy.reshape(-1)[:, None] * omega[None, :]
    ox = gx.reshape(-1)[:, None] * omega[None, :]
    return jnp.concatenate(
        [jnp.sin(ox), jnp.cos(ox), jnp.sin(oy), jnp.cos(oy)], axis=1)  # (hp*wp, dim)


def init_params(key, in_channels, patch_size, emb_dim, mlp_hidden_ratio, n_layers):
    P = in_channels * patch_size * patch_size
    D = emb_dim
    Hd = int(emb_dim * mlp_hidden_ratio)
    keys = jax.random.split(key, 1 + 6 * n_layers)

    def w(k, shape):  # bf16 weights (matmul operands), f32 accumulation in-kernel
        return (0.02 * jax.random.normal(k, shape, jnp.float32)).astype(jnp.bfloat16)

    params = {
        'stem_w': w(keys[0], (P, D)),
        'stem_b': jnp.zeros((1, D), jnp.float32),
        'ln1_g': jnp.ones((n_layers, 1, D), jnp.float32),
        'ln1_b': jnp.zeros((n_layers, 1, D), jnp.float32),
        'b_q': jnp.zeros((n_layers, 1, D), jnp.float32),
        'b_k': jnp.zeros((n_layers, 1, D), jnp.float32),
        'b_v': jnp.zeros((n_layers, 1, D), jnp.float32),
        'b_o': jnp.zeros((n_layers, 1, D), jnp.float32),
        'ln2_g': jnp.ones((n_layers, 1, D), jnp.float32),
        'ln2_b': jnp.zeros((n_layers, 1, D), jnp.float32),
        'b_m1': jnp.zeros((n_layers, 1, Hd), jnp.float32),
        'b_m2': jnp.zeros((n_layers, 1, D), jnp.float32),
    }
    wq, wk, wv, wo, wm1, wm2 = [], [], [], [], [], []
    for i in range(n_layers):
        ks = keys[1 + 6 * i: 1 + 6 * (i + 1)]
        wq.append(w(ks[0], (D, D)))
        wk.append(w(ks[1], (D, D)))
        wv.append(w(ks[2], (D, D)))
        wo.append(w(ks[3], (D, D)))
        wm1.append(w(ks[4], (D, Hd)))
        wm2.append(w(ks[5], (Hd, D)))
    params['w_q'] = jnp.stack(wq)
    params['w_k'] = jnp.stack(wk)
    params['w_v'] = jnp.stack(wv)
    params['w_o'] = jnp.stack(wo)
    params['w_m1'] = jnp.stack(wm1)
    params['w_m2'] = jnp.stack(wm2)
    return params


def vit_forward(x_nchw, params, patch_size, n_heads):
    """Returns (x, cp) like the PyTorch module: x is (B, H/p, W/p, D)."""
    B, C, H, W = x_nchw.shape
    p = patch_size
    Hp, Wp = H // p, W // p
    N = Hp * Wp
    D = params['stem_w'].shape[1]

    # b c (h p1) (w p2) -> (b h w) (c p1 p2)   [patchify, stride-p conv equiv.]
    xp = x_nchw.reshape(B, C, Hp, p, Wp, p)
    xp = xp.transpose(0, 2, 4, 1, 3, 5).reshape(B * N, C * p * p)
    xp = xp.astype(jnp.bfloat16)

    pos = sincos_2d_posemb(Hp, Wp, D)                 # (N, D)
    pos_full = jnp.tile(pos, (B, 1))                  # (B*N, D)

    tokens = vit_pallas(xp, pos_full, params, n_heads=n_heads, batch=B)  # (B*N, D)

    # unpack 'b * d' -> (B, Hp, Wp, D)
    x_out = tokens.reshape(B, Hp, Wp, D)
    cp = (Hp, Wp)
    return x_out, cp


# --------------------------------------------------------------------------
# Main
# --------------------------------------------------------------------------

if __name__ == "__main__":
    in_channels = 4
    in_size = 16
    patch_size = 2
    emb_dim = 32
    mlp_hidden_ratio = 4.0
    n_heads = 4
    n_layers = 2

    key = jax.random.PRNGKey(0)
    kx, kp = jax.random.split(key)
    x = jax.random.normal(kx, (2, in_channels, in_size, in_size), jnp.float32)

    params = init_params(kp, in_channels, patch_size, emb_dim,
                         mlp_hidden_ratio, n_layers)

    y, cp = vit_forward(x, params, patch_size, n_heads)
    jax.block_until_ready(y)

    assert y.shape == (2, in_size // patch_size, in_size // patch_size, emb_dim)
    assert cp == (in_size // patch_size, in_size // patch_size)
    assert bool(jnp.all(jnp.isfinite(y)))
    print("KERNEL_OK")
</pallas_src>

<mosaic_0001>
module attributes {stable_mosaic.version = 11 : i64} {
  func.func @_vit_fused_kernel(%arg0: i32, %arg1: memref<128x16xbf16, #tpu.memory_space<vmem>>, %arg2: memref<16x32xbf16, #tpu.memory_space<vmem>>, %arg3: memref<1x32xf32, #tpu.memory_space<vmem>>, %arg4: memref<128x32xf32, #tpu.memory_space<vmem>>, %arg5: memref<1x1x32xf32, #tpu.memory_space<vmem>>, %arg6: memref<1x1x32xf32, #tpu.memory_space<vmem>>, %arg7: memref<1x32x32xbf16, #tpu.memory_space<vmem>>, %arg8: memref<1x32x32xbf16, #tpu.memory_space<vmem>>, %arg9: memref<1x32x32xbf16, #tpu.memory_space<vmem>>, %arg10: memref<1x1x32xf32, #tpu.memory_space<vmem>>, %arg11: memref<1x1x32xf32, #tpu.memory_space<vmem>>, %arg12: memref<1x1x32xf32, #tpu.memory_space<vmem>>, %arg13: memref<1x32x32xbf16, #tpu.memory_space<vmem>>, %arg14: memref<1x1x32xf32, #tpu.memory_space<vmem>>, %arg15: memref<1x1x32xf32, #tpu.memory_space<vmem>>, %arg16: memref<1x1x32xf32, #tpu.memory_space<vmem>>, %arg17: memref<1x32x128xbf16, #tpu.memory_space<vmem>>, %arg18: memref<1x1x128xf32, #tpu.memory_space<vmem>>, %arg19: memref<1x128x32xbf16, #tpu.memory_space<vmem>>, %arg20: memref<1x1x32xf32, #tpu.memory_space<vmem>>, %arg21: memref<128x32xf32, #tpu.memory_space<vmem>>, %arg22: memref<128x32xf32, #tpu.memory_space<vmem>>) attributes {dimension_semantics = [#tpu.dimension_semantics<arbitrary>], iteration_bounds = array<i64: 2>, scalar_prefetch = 0 : i64, scratch_operands = 1 : i64, tpu.core_type = #tpu.core_type<tc>, window_params = [{pipeline_mode = #tpu.pipeline_mode<synchronous>, transform_indices = @transform_0, window_bounds = array<i64: 128, 16>}, {pipeline_mode = #tpu.pipeline_mode<synchronous>, transform_indices = @transform_1, window_bounds = array<i64: 16, 32>}, {pipeline_mode = #tpu.pipeline_mode<synchronous>, transform_indices = @transform_2, window_bounds = array<i64: 1, 32>}, {pipeline_mode = #tpu.pipeline_mode<synchronous>, transform_indices = @transform_3, window_bounds = array<i64: 128, 32>}, {transform_indices = @transform_4, window_bounds = array<i64: 1, 1, 32>}, {transform_indices = @transform_5, window_bounds = array<i64: 1, 1, 32>}, {transform_indices = @transform_6, window_bounds = array<i64: 1, 32, 32>}, {transform_indices = @transform_7, window_bounds = array<i64: 1, 32, 32>}, {transform_indices = @transform_8, window_bounds = array<i64: 1, 32, 32>}, {transform_indices = @transform_9, window_bounds = array<i64: 1, 1, 32>}, {transform_indices = @transform_10, window_bounds = array<i64: 1, 1, 32>}, {transform_indices = @transform_11, window_bounds = array<i64: 1, 1, 32>}, {transform_indices = @transform_12, window_bounds = array<i64: 1, 32, 32>}, {transform_indices = @transform_13, window_bounds = array<i64: 1, 1, 32>}, {transform_indices = @transform_14, window_bounds = array<i64: 1, 1, 32>}, {transform_indices = @transform_15, window_bounds = array<i64: 1, 1, 32>}, {transform_indices = @transform_16, window_bounds = array<i64: 1, 32, 128>}, {transform_indices = @transform_17, window_bounds = array<i64: 1, 1, 128>}, {transform_indices = @transform_18, window_bounds = array<i64: 1, 128, 32>}, {transform_indices = @transform_19, window_bounds = array<i64: 1, 1, 32>}, {pipeline_mode = #tpu.pipeline_mode<synchronous>, transform_indices = @transform_20, window_bounds = array<i64: 128, 32>}]} {
    %c0_i32 = arith.constant 0 : i32
    %0 = arith.cmpi eq, %arg0, %c0_i32 : i32
    %1 = arith.extui %0 : i1 to i32
    %c0_i32_0 = arith.constant 0 : i32
    %2 = arith.cmpi ne, %1, %c0_i32_0 : i32
    scf.if %2 {
      %c0_81 = arith.constant 0 : index
      %c0_82 = arith.constant 0 : index
      %161 = vector.load %arg1[%c0_81, %c0_82] : memref<128x16xbf16, #tpu.memory_space<vmem>>, vector<128x16xbf16>
      %c0_83 = arith.constant 0 : index
      %c0_84 = arith.constant 0 : index
      %162 = vector.load %arg2[%c0_83, %c0_84] : memref<16x32xbf16, #tpu.memory_space<vmem>>, vector<16x32xbf16>
      %cst_85 = arith.constant dense<0.000000e+00> : vector<128x32xf32>
      %163 = tpu.matmul %161, %162, %cst_85 {dimension_numbers = #tpu.dot_dimension_numbers<[1], [0], [0], [1], [0, 0, 1, 1], [], []>} : vector<128x16xbf16>, vector<16x32xbf16>, vector<128x32xf32> -> vector<128x32xf32>
      %c0_86 = arith.constant 0 : index
      %c0_87 = arith.constant 0 : index
      %164 = vector.load %arg3[%c0_86, %c0_87] : memref<1x32xf32, #tpu.memory_space<vmem>>, vector<1x32xf32>
      %165 = vector.broadcast %164 : vector<1x32xf32> to vector<128x32xf32>
      %166 = arith.addf %163, %165 : vector<128x32xf32>
      %c0_88 = arith.constant 0 : index
      %c0_89 = arith.constant 0 : index
      %167 = vector.load %arg4[%c0_88, %c0_89] : memref<128x32xf32, #tpu.memory_space<vmem>>, vector<128x32xf32>
      %168 = arith.addf %166, %167 : vector<128x32xf32>
      %c0_90 = arith.constant 0 : index
      %c0_91 = arith.constant 0 : index
      %169 = vector.load %arg22[%c0_90, %c0_91] : memref<128x32xf32, #tpu.memory_space<vmem>>, vector<128x32xf32>
      tpu.vector_store %arg22[%c0_90, %c0_91], %168 {strides = array<i32>} : memref<128x32xf32, #tpu.memory_space<vmem>>, vector<128x32xf32>,
    } else {
    }
    %c0 = arith.constant 0 : index
    %c0_1 = arith.constant 0 : index
    %3 = vector.load %arg22[%c0, %c0_1] : memref<128x32xf32, #tpu.memory_space<vmem>>, vector<128x32xf32>
    %cst = arith.constant dense<0.000000e+00> : vector<128xf32>
    %4 = vector.multi_reduction <add>, %3, %cst [1] : vector<128x32xf32> to vector<128xf32>
    %5 = vector.shape_cast %4 : vector<128xf32> to vector<128x1xf32>
    %cst_2 = arith.constant 3.200000e+01 : f32
    %6 = vector.broadcast %cst_2 : f32 to vector<128x1xf32>
    %7 = arith.divf %5, %6 : vector<128x1xf32>
    %8 = vector.broadcast %7 : vector<128x1xf32> to vector<128x32xf32>
    %9 = arith.subf %3, %8 : vector<128x32xf32>
    %10 = arith.mulf %9, %9 : vector<128x32xf32>
    %cst_3 = arith.constant dense<0.000000e+00> : vector<128xf32>
    %11 = vector.multi_reduction <add>, %10, %cst_3 [1] : vector<128x32xf32> to vector<128xf32>
    %12 = vector.shape_cast %11 : vector<128xf32> to vector<128x1xf32>
    %cst_4 = arith.constant 3.200000e+01 : f32
    %13 = vector.broadcast %cst_4 : f32 to vector<128x1xf32>
    %14 = arith.divf %12, %13 : vector<128x1xf32>
    %15 = vector.broadcast %7 : vector<128x1xf32> to vector<128x32xf32>
    %16 = arith.subf %3, %15 : vector<128x32xf32>
    %cst_5 = arith.constant 9.99999974E-6 : f32
    %17 = vector.broadcast %cst_5 : f32 to vector<128x1xf32>
    %18 = arith.addf %14, %17 : vector<128x1xf32>
    %19 = math.rsqrt %18 : vector<128x1xf32>
    %20 = vector.broadcast %19 : vector<128x1xf32> to vector<128x32xf32>
    %21 = arith.mulf %16, %20 : vector<128x32xf32>
    %c0_6 = arith.constant 0 : index
    %c0_7 = arith.constant 0 : index
    %c0_8 = arith.constant 0 : index
    %22 = vector.load %arg5[%c0_6, %c0_7, %c0_8] : memref<1x1x32xf32, #tpu.memory_space<vmem>>, vector<1x1x32xf32>
    %23 = vector.shape_cast %22 : vector<1x1x32xf32> to vector<1x32xf32>
    %24 = vector.broadcast %23 : vector<1x32xf32> to vector<128x32xf32>
    %25 = arith.mulf %21, %24 : vector<128x32xf32>
    %c0_9 = arith.constant 0 : index
    %c0_10 = arith.constant 0 : index
    %c0_11 = arith.constant 0 : index
    %26 = vector.load %arg6[%c0_9, %c0_10, %c0_11] : memref<1x1x32xf32, #tpu.memory_space<vmem>>, vector<1x1x32xf32>
    %27 = vector.shape_cast %26 : vector<1x1x32xf32> to vector<1x32xf32>
    %28 = vector.broadcast %27 : vector<1x32xf32> to vector<128x32xf32>
    %29 = arith.addf %25, %28 : vector<128x32xf32>
    %30 = arith.truncf %29 : vector<128x32xf32> to vector<128x32xbf16>
    %c0_12 = arith.constant 0 : index
    %c0_13 = arith.constant 0 : index
    %c0_14 = arith.constant 0 : index
    %31 = vector.load %arg7[%c0_12, %c0_13, %c0_14] : memref<1x32x32xbf16, #tpu.memory_space<vmem>>, vector<1x32x32xbf16>
    %32 = vector.shape_cast %31 : vector<1x32x32xbf16> to vector<32x32xbf16>
    %cst_15 = arith.constant dense<0.000000e+00> : vector<128x32xf32>
    %33 = tpu.matmul %30, %32, %cst_15 {dimension_numbers = #tpu.dot_dimension_numbers<[1], [0], [0], [1], [0, 0, 1, 1], [], []>} : vector<128x32xbf16>, vector<32x32xbf16>, vector<128x32xf32> -> vector<128x32xf32>
    %c0_16 = arith.constant 0 : index
    %c0_17 = arith.constant 0 : index
    %c0_18 = arith.constant 0 : index
    %34 = vector.load %arg10[%c0_16, %c0_17, %c0_18] : memref<1x1x32xf32, #tpu.memory_space<vmem>>, vector<1x1x32xf32>
    %35 = vector.shape_cast %34 : vector<1x1x32xf32> to vector<1x32xf32>
    %36 = vector.broadcast %35 : vector<1x32xf32> to vector<128x32xf32>
    %37 = arith.addf %33, %36 : vector<128x32xf32>
    %c0_19 = arith.constant 0 : index
    %c0_20 = arith.constant 0 : index
    %c0_21 = arith.constant 0 : index
    %38 = vector.load %arg8[%c0_19, %c0_20, %c0_21] : memref<1x32x32xbf16, #tpu.memory_space<vmem>>, vector<1x32x32xbf16>
    %39 = vector.shape_cast %38 : vector<1x32x32xbf16> to vector<32x32xbf16>
    %cst_22 = arith.constant dense<0.000000e+00> : vector<128x32xf32>
    %40 = tpu.matmul %30, %39, %cst_22 {dimension_numbers = #tpu.dot_dimension_numbers<[1], [0], [0], [1], [0, 0, 1, 1], [], []>} : vector<128x32xbf16>, vector<32x32xbf16>, vector<128x32xf32> -> vector<128x32xf32>
    %c0_23 = arith.constant 0 : index
    %c0_24 = arith.constant 0 : index
    %c0_25 = arith.constant 0 : index
    %41 = vector.load %arg11[%c0_23, %c0_24, %c0_25] : memref<1x1x32xf32, #tpu.memory_space<vmem>>, vector<1x1x32xf32>
    %42 = vector.shape_cast %41 : vector<1x1x32xf32> to vector<1x32xf32>
    %43 = vector.broadcast %42 : vector<1x32xf32> to vector<128x32xf32>
    %44 = arith.addf %40, %43 : vector<128x32xf32>
    %c0_26 = arith.constant 0 : index
    %c0_27 = arith.constant 0 : index
    %c0_28 = arith.constant 0 : index
    %45 = vector.load %arg9[%c0_26, %c0_27, %c0_28] : memref<1x32x32xbf16, #tpu.memory_space<vmem>>, vector<1x32x32xbf16>
    %46 = vector.shape_cast %45 : vector<1x32x32xbf16> to vector<32x32xbf16>
    %cst_29 = arith.constant dense<0.000000e+00> : vector<128x32xf32>
    %47 = tpu.matmul %30, %46, %cst_29 {dimension_numbers = #tpu.dot_dimension_numbers<[1], [0], [0], [1], [0, 0, 1, 1], [], []>} : vector<128x32xbf16>, vector<32x32xbf16>, vector<128x32xf32> -> vector<128x32xf32>
    %c0_30 = arith.constant 0 : index
    %c0_31 = arith.constant 0 : index
    %c0_32 = arith.constant 0 : index
    %48 = vector.load %arg12[%c0_30, %c0_31, %c0_32] : memref<1x1x32xf32, #tpu.memory_space<vmem>>, vector<1x1x32xf32>
    %49 = vector.shape_cast %48 : vector<1x1x32xf32> to vector<1x32xf32>
    %50 = vector.broadcast %49 : vector<1x32xf32> to vector<128x32xf32>
    %51 = arith.addf %47, %50 : vector<128x32xf32>
    %52 = vector.extract_strided_slice %37 {offsets = [0, 0], sizes = [64, 32], strides = [1, 1]} : vector<128x32xf32> to vector<64x32xf32>
    %53 = vector.shape_cast %52 : vector<64x32xf32> to vector<64x4x8xf32>
    %54 = vector.extract_strided_slice %44 {offsets = [0, 0], sizes = [64, 32], strides = [1, 1]} : vector<128x32xf32> to vector<64x32xf32>
    %55 = vector.shape_cast %54 : vector<64x32xf32> to vector<64x4x8xf32>
    %56 = vector.extract_strided_slice %51 {offsets = [0, 0], sizes = [64, 32], strides = [1, 1]} : vector<128x32xf32> to vector<64x32xf32>
    %57 = vector.shape_cast %56 : vector<64x32xf32> to vector<64x4x8xf32>
    "tpu.trace_start"() <{level = 10 : i32, message = "nhd,mhd->hnm"}> : () -> ()
    %cst_33 = arith.constant dense<0.000000e+00> : vector<4x64x64xf32>
    %58 = tpu.matmul %53, %55, %cst_33 {dimension_numbers = #tpu.dot_dimension_numbers<[2], [2], [0], [0], [0, 1, 0, 0, 1, 0], [1], [1]>} : vector<64x4x8xf32>, vector<64x4x8xf32>, vector<4x64x64xf32> -> vector<4x64x64xf32>
    "tpu.trace_stop"() : () -> ()
    %cst_34 = arith.constant 0.353553385 : f32
    %59 = vector.broadcast %cst_34 : f32 to vector<4x64x64xf32>
    %60 = arith.mulf %58, %59 : vector<4x64x64xf32>
    %cst_35 = arith.constant dense<0xFF800000> : vector<4x64xf32>
    %61 = vector.multi_reduction <maximumf>, %60, %cst_35 [2] : vector<4x64x64xf32> to vector<4x64xf32>
    %62 = vector.shape_cast %61 : vector<4x64xf32> to vector<4x64x1xf32>
    %63 = vector.broadcast %62 : vector<4x64x1xf32> to vector<4x64x64xf32>
    %64 = arith.subf %60, %63 : vector<4x64x64xf32>
    %65 = math.exp %64 : vector<4x64x64xf32>
    %cst_36 = arith.constant dense<0.000000e+00> : vector<4x64xf32>
    %66 = vector.multi_reduction <add>, %65, %cst_36 [2] : vector<4x64x64xf32> to vector<4x64xf32>
    %67 = vector.shape_cast %66 : vector<4x64xf32> to vector<4x64x1xf32>
    %68 = tpu.reciprocal %67 {approx = true} : vector<4x64x1xf32> -> vector<4x64x1xf32>
    %69 = vector.broadcast %68 : vector<4x64x1xf32> to vector<4x64x64xf32>
    %70 = arith.mulf %65, %69 : vector<4x64x64xf32>
    "tpu.trace_start"() <{level = 10 : i32, message = "hnm,mhd->nhd"}> : () -> ()
    %cst_37 = arith.constant dense<0.000000e+00> : vector<4x8x64xf32>
    %71 = tpu.matmul %57, %70, %cst_37 {dimension_numbers = #tpu.dot_dimension_numbers<[0], [2], [2], [1], [0, 1, 0, 2, 1, 1], [1], [0]>} : vector<64x4x8xf32>, vector<4x64x64xf32>, vector<4x8x64xf32> -> vector<4x8x64xf32>
    %72 = tpu.transpose %71, [2, 0, 1] : vector<4x8x64xf32> -> vector<64x4x8xf32>
    "tpu.trace_stop"() : () -> ()
    %73 = vector.shape_cast %72 : vector<64x4x8xf32> to vector<64x32xf32>
    %74 = vector.extract_strided_slice %37 {offsets = [64, 0], sizes = [64, 32], strides = [1, 1]} : vector<128x32xf32> to vector<64x32xf32>
    %75 = vector.shape_cast %74 : vector<64x32xf32> to vector<64x4x8xf32>
    %76 = vector.extract_strided_slice %44 {offsets = [64, 0], sizes = [64, 32], strides = [1, 1]} : vector<128x32xf32> to vector<64x32xf32>
    %77 = vector.shape_cast %76 : vector<64x32xf32> to vector<64x4x8xf32>
    %78 = vector.extract_strided_slice %51 {offsets = [64, 0], sizes = [64, 32], strides = [1, 1]} : vector<128x32xf32> to vector<64x32xf32>
    %79 = vector.shape_cast %78 : vector<64x32xf32> to vector<64x4x8xf32>
    "tpu.trace_start"() <{level = 10 : i32, message = "nhd,mhd->hnm"}> : () -> ()
    %cst_38 = arith.constant dense<0.000000e+00> : vector<4x64x64xf32>
    %80 = tpu.matmul %75, %77, %cst_38 {dimension_numbers = #tpu.dot_dimension_numbers<[2], [2], [0], [0], [0, 1, 0, 0, 1, 0], [1], [1]>} : vector<64x4x8xf32>, vector<64x4x8xf32>, vector<4x64x64xf32> -> vector<4x64x64xf32>
    "tpu.trace_stop"() : () -> ()
    %cst_39 = arith.constant 0.353553385 : f32
    %81 = vector.broadcast %cst_39 : f32 to vector<4x64x64xf32>
    %82 = arith.mulf %80, %81 : vector<4x64x64xf32>
    %cst_40 = arith.constant dense<0xFF800000> : vector<4x64xf32>
    %83 = vector.multi_reduction <maximumf>, %82, %cst_40 [2] : vector<4x64x64xf32> to vector<4x64xf32>
    %84 = vector.shape_cast %83 : vector<4x64xf32> to vector<4x64x1xf32>
    %85 = vector.broadcast %84 : vector<4x64x1xf32> to vector<4x64x64xf32>
    %86 = arith.subf %82, %85 : vector<4x64x64xf32>
    %87 = math.exp %86 : vector<4x64x64xf32>
    %cst_41 = arith.constant dense<0.000000e+00> : vector<4x64xf32>
    %88 = vector.multi_reduction <add>, %87, %cst_41 [2] : vector<4x64x64xf32> to vector<4x64xf32>
    %89 = vector.shape_cast %88 : vector<4x64xf32> to vector<4x64x1xf32>
    %90 = tpu.reciprocal %89 {approx = true} : vector<4x64x1xf32> -> vector<4x64x1xf32>
    %91 = vector.broadcast %90 : vector<4x64x1xf32> to vector<4x64x64xf32>
    %92 = arith.mulf %87, %91 : vector<4x64x64xf32>
    "tpu.trace_start"() <{level = 10 : i32, message = "hnm,mhd->nhd"}> : () -> ()
    %cst_42 = arith.constant dense<0.000000e+00> : vector<4x8x64xf32>
    %93 = tpu.matmul %79, %92, %cst_42 {dimension_numbers = #tpu.dot_dimension_numbers<[0], [2], [2], [1], [0, 1, 0, 2, 1, 1], [1], [0]>} : vector<64x4x8xf32>, vector<4x64x64xf32>, vector<4x8x64xf32> -> vector<4x8x64xf32>
    %94 = tpu.transpose %93, [2, 0, 1] : vector<4x8x64xf32> -> vector<64x4x8xf32>
    "tpu.trace_stop"() : () -> ()
    %95 = vector.shape_cast %94 : vector<64x4x8xf32> to vector<64x32xf32>
    %96 = tpu.concatenate %73, %95 in 0 : vector<64x32xf32>, vector<64x32xf32> -> vector<128x32xf32>
    %97 = arith.truncf %96 : vector<128x32xf32> to vector<128x32xbf16>
    %c0_43 = arith.constant 0 : index
    %c0_44 = arith.constant 0 : index
    %c0_45 = arith.constant 0 : index
    %98 = vector.load %arg13[%c0_43, %c0_44, %c0_45] : memref<1x32x32xbf16, #tpu.memory_space<vmem>>, vector<1x32x32xbf16>
    %99 = vector.shape_cast %98 : vector<1x32x32xbf16> to vector<32x32xbf16>
    %cst_46 = arith.constant dense<0.000000e+00> : vector<128x32xf32>
    %100 = tpu.matmul %97, %99, %cst_46 {dimension_numbers = #tpu.dot_dimension_numbers<[1], [0], [0], [1], [0, 0, 1, 1], [], []>} : vector<128x32xbf16>, vector<32x32xbf16>, vector<128x32xf32> -> vector<128x32xf32>
    %c0_47 = arith.constant 0 : index
    %c0_48 = arith.constant 0 : index
    %c0_49 = arith.constant 0 : index
    %101 = vector.load %arg14[%c0_47, %c0_48, %c0_49] : memref<1x1x32xf32, #tpu.memory_space<vmem>>, vector<1x1x32xf32>
    %102 = vector.shape_cast %101 : vector<1x1x32xf32> to vector<1x32xf32>
    %103 = vector.broadcast %102 : vector<1x32xf32> to vector<128x32xf32>
    %104 = arith.addf %100, %103 : vector<128x32xf32>
    %105 = arith.addf %3, %104 : vector<128x32xf32>
    %cst_50 = arith.constant dense<0.000000e+00> : vector<128xf32>
    %106 = vector.multi_reduction <add>, %105, %cst_50 [1] : vector<128x32xf32> to vector<128xf32>
    %107 = vector.shape_cast %106 : vector<128xf32> to vector<128x1xf32>
    %cst_51 = arith.constant 3.200000e+01 : f32
    %108 = vector.broadcast %cst_51 : f32 to vector<128x1xf32>
    %109 = arith.divf %107, %108 : vector<128x1xf32>
    %110 = vector.broadcast %109 : vector<128x1xf32> to vector<128x32xf32>
    %111 = arith.subf %105, %110 : vector<128x32xf32>
    %112 = arith.mulf %111, %111 : vector<128x32xf32>
    %cst_52 = arith.constant dense<0.000000e+00> : vector<128xf32>
    %113 = vector.multi_reduction <add>, %112, %cst_52 [1] : vector<128x32xf32> to vector<128xf32>
    %114 = vector.shape_cast %113 : vector<128xf32> to vector<128x1xf32>
    %cst_53 = arith.constant 3.200000e+01 : f32
    %115 = vector.broadcast %cst_53 : f32 to vector<128x1xf32>
    %116 = arith.divf %114, %115 : vector<128x1xf32>
    %117 = vector.broadcast %109 : vector<128x1xf32> to vector<128x32xf32>
    %118 = arith.subf %105, %117 : vector<128x32xf32>
    %cst_54 = arith.constant 9.99999974E-6 : f32
    %119 = vector.broadcast %cst_54 : f32 to vector<128x1xf32>
    %120 = arith.addf %116, %119 : vector<128x1xf32>
    %121 = math.rsqrt %120 : vector<128x1xf32>
    %122 = vector.broadcast %121 : vector<128x1xf32> to vector<128x32xf32>
    %123 = arith.mulf %118, %122 : vector<128x32xf32>
    %c0_55 = arith.constant 0 : index
    %c0_56 = arith.constant 0 : index
    %c0_57 = arith.constant 0 : index
    %124 = vector.load %arg15[%c0_55, %c0_56, %c0_57] : memref<1x1x32xf32, #tpu.memory_space<vmem>>, vector<1x1x32xf32>
    %125 = vector.shape_cast %124 : vector<1x1x32xf32> to vector<1x32xf32>
    %126 = vector.broadcast %125 : vector<1x32xf32> to vector<128x32xf32>
    %127 = arith.mulf %123, %126 : vector<128x32xf32>
    %c0_58 = arith.constant 0 : index
    %c0_59 = arith.constant 0 : index
    %c0_60 = arith.constant 0 : index
    %128 = vector.load %arg16[%c0_58, %c0_59, %c0_60] : memref<1x1x32xf32, #tpu.memory_space<vmem>>, vector<1x1x32xf32>
    %129 = vector.shape_cast %128 : vector<1x1x32xf32> to vector<1x32xf32>
    %130 = vector.broadcast %129 : vector<1x32xf32> to vector<128x32xf32>
    %131 = arith.addf %127, %130 : vector<128x32xf32>
    %132 = arith.truncf %131 : vector<128x32xf32> to vector<128x32xbf16>
    %c0_61 = arith.constant 0 : index
    %c0_62 = arith.constant 0 : index
    %c0_63 = arith.constant 0 : index
    %133 = vector.load %arg17[%c0_61, %c0_62, %c0_63] : memref<1x32x128xbf16, #tpu.memory_space<vmem>>, vector<1x32x128xbf16>
    %134 = vector.shape_cast %133 : vector<1x32x128xbf16> to vector<32x128xbf16>
    %cst_64 = arith.constant dense<0.000000e+00> : vector<128x128xf32>
    %135 = tpu.matmul %132, %134, %cst_64 {dimension_numbers = #tpu.dot_dimension_numbers<[1], [0], [0], [1], [0, 0, 1, 1], [], []>} : vector<128x32xbf16>, vector<32x128xbf16>, vector<128x128xf32> -> vector<128x128xf32>
    %c0_65 = arith.constant 0 : index
    %c0_66 = arith.constant 0 : index
    %c0_67 = arith.constant 0 : index
    %136 = vector.load %arg18[%c0_65, %c0_66, %c0_67] : memref<1x1x128xf32, #tpu.memory_space<vmem>>, vector<1x1x128xf32>
    %137 = vector.shape_cast %136 : vector<1x1x128xf32> to vector<1x128xf32>
    %138 = vector.broadcast %137 : vector<1x128xf32> to vector<128x128xf32>
    %139 = arith.addf %135, %138 : vector<128x128xf32>
    %cst_68 = arith.constant 5.000000e-01 : f32
    %140 = vector.broadcast %cst_68 : f32 to vector<128x128xf32>
    %141 = arith.mulf %140, %139 : vector<128x128xf32>
    %cst_69 = arith.constant 0.707106769 : f32
    %142 = vector.broadcast %cst_69 : f32 to vector<128x128xf32>
    %143 = arith.mulf %139, %142 : vector<128x128xf32>
    %144 = math.erf %143 : vector<128x128xf32>
    %cst_70 = arith.constant 1.000000e+00 : f32
    %145 = vector.broadcast %cst_70 : f32 to vector<128x128xf32>
    %146 = arith.addf %145, %144 : vector<128x128xf32>
    %147 = arith.mulf %141, %146 : vector<128x128xf32>
    %148 = arith.truncf %147 : vector<128x128xf32> to vector<128x128xbf16>
    %c0_71 = arith.constant 0 : index
    %c0_72 = arith.constant 0 : index
    %c0_73 = arith.constant 0 : index
    %149 = vector.load %arg19[%c0_71, %c0_72, %c0_73] : memref<1x128x32xbf16, #tpu.memory_space<vmem>>, vector<1x128x32xbf16>
    %150 = vector.shape_cast %149 : vector<1x128x32xbf16> to vector<128x32xbf16>
    %cst_74 = arith.constant dense<0.000000e+00> : vector<128x32xf32>
    %151 = tpu.matmul %148, %150, %cst_74 {dimension_numbers = #tpu.dot_dimension_numbers<[1], [0], [0], [1], [0, 0, 1, 1], [], []>} : vector<128x128xbf16>, vector<128x32xbf16>, vector<128x32xf32> -> vector<128x32xf32>
    %c0_75 = arith.constant 0 : index
    %c0_76 = arith.constant 0 : index
    %c0_77 = arith.constant 0 : index
    %152 = vector.load %arg20[%c0_75, %c0_76, %c0_77] : memref<1x1x32xf32, #tpu.memory_space<vmem>>, vector<1x1x32xf32>
    %153 = vector.shape_cast %152 : vector<1x1x32xf32> to vector<1x32xf32>
    %154 = vector.broadcast %153 : vector<1x32xf32> to vector<128x32xf32>
    %155 = arith.addf %151, %154 : vector<128x32xf32>
    %156 = arith.addf %105, %155 : vector<128x32xf32>
    %c0_78 = arith.constant 0 : index
    %c0_79 = arith.constant 0 : index
    %157 = vector.load %arg22[%c0_78, %c0_79] : memref<128x32xf32, #tpu.memory_space<vmem>>, vector<128x32xf32>
    tpu.vector_store %arg22[%c0_78, %c0_79], %156 {strides = array<i32>} : memref<128x32xf32, #tpu.memory_space<vmem>>, vector<128x32xf32>,
    %c1_i32 = arith.constant 1 : i32
    %158 = arith.cmpi eq, %arg0, %c1_i32 : i32
    %159 = arith.extui %158 : i1 to i32
    %c0_i32_80 = arith.constant 0 : i32
    %160 = arith.cmpi ne, %159, %c0_i32_80 : i32
    scf.if %160 {
      %c0_81 = arith.constant 0 : index
      %c0_82 = arith.constant 0 : index
      %161 = vector.load %arg22[%c0_81, %c0_82] : memref<128x32xf32, #tpu.memory_space<vmem>>, vector<128x32xf32>
      %c0_83 = arith.constant 0 : index
      %c0_84 = arith.constant 0 : index
      %162 = vector.load %arg21[%c0_83, %c0_84] : memref<128x32xf32, #tpu.memory_space<vmem>>, vector<128x32xf32>
      tpu.vector_store %arg21[%c0_83, %c0_84], %161 {strides = array<i32>} : memref<128x32xf32, #tpu.memory_space<vmem>>, vector<128x32xf32>,
    } else {
    }
    return
  }
  func.func @transform_0(%arg0: i32) -> (i32, i32) {
    %c0_i32 = arith.constant 0 : i32
    %c0_i32_0 = arith.constant 0 : i32
    %c0_i32_1 = arith.constant 0 : i32
    return %c0_i32, %c0_i32_0 : i32, i32
  }
  func.func @transform_1(%arg0: i32) -> (i32, i32) {
    %c0_i32 = arith.constant 0 : i32
    %c0_i32_0 = arith.constant 0 : i32
    %c0_i32_1 = arith.constant 0 : i32
    return %c0_i32, %c0_i32_0 : i32, i32
  }
  func.func @transform_2(%arg0: i32) -> (i32, i32) {
    %c0_i32 = arith.constant 0 : i32
    %c0_i32_0 = arith.constant 0 : i32
    %c0_i32_1 = arith.constant 0 : i32
    return %c0_i32, %c0_i32_0 : i32, i32
  }
  func.func @transform_3(%arg0: i32) -> (i32, i32) {
    %c0_i32 = arith.constant 0 : i32
    %c0_i32_0 = arith.constant 0 : i32
    %c0_i32_1 = arith.constant 0 : i32
    return %c0_i32, %c0_i32_0 : i32, i32
  }
  func.func @transform_4(%arg0: i32) -> (i32, i32, i32) {
    %c0_i32 = arith.constant 0 : i32
    %c0_i32_0 = arith.constant 0 : i32
    %c0_i32_1 = arith.constant 0 : i32
    return %arg0, %c0_i32, %c0_i32_0 : i32, i32, i32
  }
  func.func @transform_5(%arg0: i32) -> (i32, i32, i32) {
    %c0_i32 = arith.constant 0 : i32
    %c0_i32_0 = arith.constant 0 : i32
    %c0_i32_1 = arith.constant 0 : i32
    return %arg0, %c0_i32, %c0_i32_0 : i32, i32, i32
  }
  func.func @transform_6(%arg0: i32) -> (i32, i32, i32) {
    %c0_i32 = arith.constant 0 : i32
    %c0_i32_0 = arith.constant 0 : i32
    %c0_i32_1 = arith.constant 0 : i32
    return %arg0, %c0_i32, %c0_i32_0 : i32, i32, i32
  }
  func.func @transform_7(%arg0: i32) -> (i32, i32, i32) {
    %c0_i32 = arith.constant 0 : i32
    %c0_i32_0 = arith.constant 0 : i32
    %c0_i32_1 = arith.constant 0 : i32
    return %arg0, %c0_i32, %c0_i32_0 : i32, i32, i32
  }
  func.func @transform_8(%arg0: i32) -> (i32, i32, i32) {
    %c0_i32 = arith.constant 0 : i32
    %c0_i32_0 = arith.constant 0 : i32
    %c0_i32_1 = arith.constant 0 : i32
    return %arg0, %c0_i32, %c0_i32_0 : i32, i32, i32
  }
  func.func @transform_9(%arg0: i32) -> (i32, i32, i32) {
    %c0_i32 = arith.constant 0 : i32
    %c0_i32_0 = arith.constant 0 : i32
    %c0_i32_1 = arith.constant 0 : i32
    return %arg0, %c0_i32, %c0_i32_0 : i32, i32, i32
  }
  func.func @transform_10(%arg0: i32) -> (i32, i32, i32) {
    %c0_i32 = arith.constant 0 : i32
    %c0_i32_0 = arith.constant 0 : i32
    %c0_i32_1 = arith.constant 0 : i32
    return %arg0, %c0_i32, %c0_i32_0 : i32, i32, i32
  }
  func.func @transform_11(%arg0: i32) -> (i32, i32, i32) {
    %c0_i32 = arith.constant 0 : i32
    %c0_i32_0 = arith.constant 0 : i32
    %c0_i32_1 = arith.constant 0 : i32
    return %arg0, %c0_i32, %c0_i32_0 : i32, i32, i32
  }
  func.func @transform_12(%arg0: i32) -> (i32, i32, i32) {
    %c0_i32 = arith.constant 0 : i32
    %c0_i32_0 = arith.constant 0 : i32
    %c0_i32_1 = arith.constant 0 : i32
    return %arg0, %c0_i32, %c0_i32_0 : i32, i32, i32
  }
  func.func @transform_13(%arg0: i32) -> (i32, i32, i32) {
    %c0_i32 = arith.constant 0 : i32
    %c0_i32_0 = arith.constant 0 : i32
    %c0_i32_1 = arith.constant 0 : i32
    return %arg0, %c0_i32, %c0_i32_0 : i32, i32, i32
  }
  func.func @transform_14(%arg0: i32) -> (i32, i32, i32) {
    %c0_i32 = arith.constant 0 : i32
    %c0_i32_0 = arith.constant 0 : i32
    %c0_i32_1 = arith.constant 0 : i32
    return %arg0, %c0_i32, %c0_i32_0 : i32, i32, i32
  }
  func.func @transform_15(%arg0: i32) -> (i32, i32, i32) {
    %c0_i32 = arith.constant 0 : i32
    %c0_i32_0 = arith.constant 0 : i32
    %c0_i32_1 = arith.constant 0 : i32
    return %arg0, %c0_i32, %c0_i32_0 : i32, i32, i32
  }
  func.func @transform_16(%arg0: i32) -> (i32, i32, i32) {
    %c0_i32 = arith.constant 0 : i32
    %c0_i32_0 = arith.constant 0 : i32
    %c0_i32_1 = arith.constant 0 : i32
    return %arg0, %c0_i32, %c0_i32_0 : i32, i32, i32
  }
  func.func @transform_17(%arg0: i32) -> (i32, i32, i32) {
    %c0_i32 = arith.constant 0 : i32
    %c0_i32_0 = arith.constant 0 : i32
    %c0_i32_1 = arith.constant 0 : i32
    return %arg0, %c0_i32, %c0_i32_0 : i32, i32, i32
  }
  func.func @transform_18(%arg0: i32) -> (i32, i32, i32) {
    %c0_i32 = arith.constant 0 : i32
    %c0_i32_0 = arith.constant 0 : i32
    %c0_i32_1 = arith.constant 0 : i32
    return %arg0, %c0_i32, %c0_i32_0 : i32, i32, i32
  }
  func.func @transform_19(%arg0: i32) -> (i32, i32, i32) {
    %c0_i32 = arith.constant 0 : i32
    %c0_i32_0 = arith.constant 0 : i32
    %c0_i32_1 = arith.constant 0 : i32
    return %arg0, %c0_i32, %c0_i32_0 : i32, i32, i32
  }
  func.func @transform_20(%arg0: i32) -> (i32, i32) {
    %c0_i32 = arith.constant 0 : i32
    %c0_i32_0 = arith.constant 0 : i32
    %c0_i32_1 = arith.constant 0 : i32
    return %c0_i32, %c0_i32_0 : i32, i32
  }
}

</mosaic_0001>

<bundles_post_ra>
// kernel: tpu_custom_call.1
= control target key start
LH: loop header
LB: loop body
LE: loop exit
PB: predicated region body
PF: predicated region fallthrough
CT: control target
= control target key end

     0   :  { %s14725_s0 = inlined_call_operand.vmem [shape: bf16[128,16], index: 0, kind: input, shape index: {}]   ;;  %s14726_s1 = inlined_call_operand.vmem [shape: bf16[16,32], index: 1, kind: input, shape index: {}]   ;;  %s14727_s2 = inlined_call_operand.vmem [shape: f32[1,32], index: 2, kind: input, shape index: {}]   ;;  %s14728_s3 = inlined_call_operand.vmem [shape: f32[128,32], index: 3, kind: input, shape index: {}]   ;;  %s14729_s4 = inlined_call_operand.vmem [shape: f32[2,1,32], index: 4, kind: input, shape index: {}]   ;;  %s14730_s5 = inlined_call_operand.vmem [shape: f32[2,1,32], index: 5, kind: input, shape index: {}]   ;;  %s14731_s6 = inlined_call_operand.vmem [shape: bf16[2,32,32], index: 6, kind: input, shape index: {}]   ;;  %s14732_s7 = inlined_call_operand.vmem [shape: bf16[2,32,32], index: 7, kind: input, shape index: {}]   ;;  %s14733_s8 = inlined_call_operand.vmem [shape: bf16[2,32,32], index: 8, kind: input, shape index: {}]   ;;  %s14734_s9 = inlined_call_operand.vmem [shape: f32[2,1,32], index: 9, kind: input, shape index: {}]   ;;  %s14735_s10 = inlined_call_operand.vmem [shape: f32[2,1,32], index: 10, kind: input, shape index: {}]   ;;  %s14736_s11 = inlined_call_operand.vmem [shape: f32[2,1,32], index: 11, kind: input, shape index: {}]   ;;  %s14737_s12 = inlined_call_operand.vmem [shape: bf16[2,32,32], index: 12, kind: input, shape index: {}]   ;;  %s14738_s13 = inlined_call_operand.vmem [shape: f32[2,1,32], index: 13, kind: input, shape index: {}]   ;;  %s14739_s14 = inlined_call_operand.vmem [shape: f32[2,1,32], index: 14, kind: input, shape index: {}]   ;;  %s14740_s15 = inlined_call_operand.vmem [shape: f32[2,1,32], index: 15, kind: input, shape index: {}]   ;;  %s14741_s16 = inlined_call_operand.vmem [shape: bf16[2,32,128], index: 16, kind: input, shape index: {}]   ;;  %s14742_s17 = inlined_call_operand.vmem [shape: f32[2,1,128], index: 17, kind: input, shape index: {}]   ;;  %s14743_s18 = inlined_call_operand.vmem [shape: bf16[2,128,32], index: 18, kind: input, shape index: {}]   ;;  %s14744_s19 = inlined_call_operand.vmem [shape: f32[2,1,32], index: 19, kind: input, shape index: {}]   ;;  %s14745_s20 = inlined_call_operand.vmem [shape: f32[128,32], index: 20, kind: output, shape index: {}]  }
   0x1   :  { %14785 = sst [smem:[#allocation41_spill]] %s14725_s0 }
   0x2   :  { %14786 = sst [smem:[#allocation42_spill]] %s14726_s1  ;;  %s9581_s1 = smov 0  }
   0x3   :  { %14787 = sst [smem:[#allocation43_spill]] %s14727_s2 }
   0x4   :  { %14788 = sst [smem:[#allocation44_spill]] %s14728_s3 }
   0x5   :  { %14789 = sst [smem:[#allocation45_spill]] %s14729_s4 }
   0x6   :  { %14790 = sst [smem:[#allocation46_spill]] %s14730_s5 }
   0x7   :  { %14791 = sst [smem:[#allocation47_spill]] %s14731_s6 }
   0x8   :  { %14792 = sst [smem:[#allocation48_spill]] %s14732_s7 }
   0x9   :  { %14793 = sst [smem:[#allocation49_spill]] %s14733_s8 }
   0xa   :  { %14794 = sst [smem:[#allocation50_spill]] %s14734_s9 }
   0xb   :  { %14795 = sst [smem:[#allocation51_spill]] %s14736_s11 }
   0xc   :  { %14796 = sst [smem:[#allocation52_spill]] %s14737_s12 }
   0xd   :  { %14797 = sst [smem:[#allocation53_spill]] %s14738_s13 }
   0xe   :  { %14798 = sst [smem:[#allocation54_spill]] %s14739_s14 }
   0xf   :  { %14799 = sst [smem:[#allocation55_spill]] %s14740_s15 }
  0x10   :  { %14800 = sst [smem:[#allocation56_spill]] %s14741_s16 }
  0x11   :  { %14801 = sst [smem:[#allocation57_spill]] %s14742_s17 }
  0x12   :  { %14802 = sst [smem:[#allocation58_spill]] %s14745_s20 }
  0x13 LB: > { %14803 = sst [smem:[#allocation3_spill]] %s9465_s1  ;;  %s9587_s22 = sadd.s32 4294967295, %s9465_s1   ;;  %s9465_s1 = sphi %s9581_s1, %s30_s1  }
  0x14   : > { %p8199_p0 = scmp.ge.s32.totalorder %s9465_s1, 1  ;;  %p687_p1 = scmp.lt.s32.totalorder %s9465_s1, 3 }
  0x16   : > { %p688_p2 = pnand %p8199_p0, %p687_p1 }
  0x18   : > { %691 = sbr.rel (%p688_p2) target bundleno = 5096 (0x13e8), region = 100 }
  0x1d   : > { %p795_p3 = scmp.lt.s32.totalorder %s9587_s22, 1  ;;  %s14806_s9 = sld [smem:[#allocation50_spill]] }
  0x1e   : > { %s14807_s6 = sld [smem:[#allocation47_spill]]  ;;  %p8212_p4 = scmp.ne.s32.totalorder %s9587_s22, 0 }
  0x1f   : > { %s9593_s23 = scalar_select %p795_p3, %s9587_s22, 1 }
  0x20   : > { %s14808_s7 = sld [smem:[#allocation48_spill]] }
  0x21   : > { %s8524_s4 = sshll.u32 %s9593_s23, 4  ;;  %s14809_s8 = sld [smem:[#allocation49_spill]] }
  0x22   : > { %s14810_s11 = sld [smem:[#allocation51_spill]]  ;;  %s8529_s1 = sshll.u32 %s9593_s23, 6 }
  0x23   : > { %s9608_s0 = scalar_lea.vmem %s14806_s9, %s9593_s23  ;;  %s14811_s12 = sld [smem:[#allocation52_spill]] }
  0x24   : > { %s9613_s2 = scalar_lea.vmem %s14807_s6, %s8524_s4  ;;  %s14812_s13 = sld [smem:[#allocation53_spill]] }
  0x25   : > { %s14813_s14 = sld [smem:[#allocation54_spill]]  ;;  %s9673_s26 = scalar_lea.vmem %s14743_s18, %s8529_s1 }
  0x26   : > { %s9618_s25 = scalar_lea.vmem %s14808_s7, %s8524_s4  ;;  %s14814_s15 = sld [smem:[#allocation55_spill]] }
  0x27   : > { %s9623_s27 = scalar_lea.vmem %s14809_s8, %s8524_s4  ;;  %s14815_s16 = sld [smem:[#allocation56_spill]] }
  0x28   : > { %s9633_s21 = scalar_lea.vmem %s14810_s11, %s9593_s23  ;;  %s14816_s17 = sld [smem:[#allocation57_spill]] }
  0x29   : > { %s9638_s20 = scalar_lea.vmem %s14811_s12, %s8524_s4  ;;  %s854_s28 = scalar_lea.vmem %s14744_s19, %s9593_s23 }
  0x2a   : > { %s9644_s3 = scalar_lea.vmem %s14812_s13, %s9593_s23  ;;  %859 = sbr.rel (%p8212_p4) target bundleno = 216 (0xd8), region = 104 }
  0x2b   : > { %s9650_s5 = scalar_lea.vmem %s14813_s14, %s9593_s23  ;;  %s14817_s30 = sld [smem:[#allocation42_spill]] (!%p8212_p4) }
  0x2c   : > { %s9656_s9 = scalar_lea.vmem %s14814_s15, %s9593_s23  ;;  %s14818_s15 = sld [smem:[#allocation41_spill]] (!%p8212_p4) }
  0x2d   : > { %s9661_s6 = scalar_lea.vmem %s14815_s16, %s8524_s4  ;;  %s14819_s1 = sld [smem:[#allocation43_spill]] (!%p8212_p4) }
  0x2e   : > { %s9667_s7 = scalar_lea.vmem %s14816_s17, %s9593_s23  ;;  %s14820_s17 = sld [smem:[#allocation44_spill]] (!%p8212_p4) }
  0x2f   : > { %vm928_vm0 = vcmask 130048   ;;  %vm1034_vm1 = vcmask 261120  }
  0x31   : > { %v8538_v0 = vld [vmem:[%s14817_s30] sm:$0xff] }
  0x32   : > { %v8530_v1 = vld [vmem:[%s14818_s15] sm:$0xff]  ;;  %v8532_v2 = vld [vmem:[%s14818_s15 + $0x10] sm:$0xff]  ;;  %960 = vmatpush.bf16.msra.mxu0 %v8538_v0  ;;  %8557 = vmatpush.bf16.msra.mxu1 %v8538_v0  ;;  %v8531_v5 = vld [vmem:[%s14818_s15 + $0x8] sm:$0xff] }
  0x33   : > { %v8534_v3 = vld [vmem:[%s14818_s15 + $0x20] sm:$0xff]  ;;  %v8536_v4 = vld [vmem:[%s14818_s15 + $0x30] sm:$0xff]  ;;  %8558 = vmatpush.bf16.msra.mxu2 %v8538_v0  ;;  %8559 = vmatpush.bf16.msra.mxu3 %v8538_v0  ;;  %v8533_v6 = vld [vmem:[%s14818_s15 + $0x18] sm:$0xff] }
  0x34   : > { %v8535_v7 = vld [vmem:[%s14818_s15 + $0x28] sm:$0xff]  ;;  %v8537_v8 = vld [vmem:[%s14818_s15 + $0x38] sm:$0xff]  ;;  %v9718_v9 = vld [vmem:[%s14819_s1] ss:$0 sm:$0xff] }
  0x35   : > { %8249 = vmatmul.msk.bf16.vlgmr.msra.gmra.mxu0 %vm928_vm0, %v8530_v1  ;;  %8251 = vmatmul.msk.bf16.vlgmr.msra.gmra.mxu1 %vm928_vm0, %v8532_v2  ;;  %v1002_v11 = vld [vmem:[%s14820_s17] sm:$0xff]  ;;  %v1003_v25 = vld [vmem:[%s14820_s17 + $0x8] sm:$0xff]  ;;  %v1004_v41 = vld [vmem:[%s14820_s17 + $0x10] sm:$0xff] }
  0x36   : > { %8253 = vmatmul.msk.bf16.vlgmr.msra.gmra.mxu2 %vm928_vm0, %v8534_v3  ;;  %8255 = vmatmul.msk.bf16.vlgmr.msra.gmra.mxu3 %vm928_vm0, %v8536_v4  ;;  %v1006_v13 = vld [vmem:[%s14820_s17 + $0x20] sm:$0xff]  ;;  %v1007_v27 = vld [vmem:[%s14820_s17 + $0x28] sm:$0xff]  ;;  %v1008_v43 = vld [vmem:[%s14820_s17 + $0x30] sm:$0xff] }
  0x37   : > { %v1010_v19 = vld [vmem:[%s14820_s17 + $0x40] sm:$0xff]  ;;  %v1011_v35 = vld [vmem:[%s14820_s17 + $0x48] sm:$0xff]  ;;  %v1012_v51 = vld [vmem:[%s14820_s17 + $0x50] sm:$0xff] }
  0x38   : > { %v1014_v21 = vld [vmem:[%s14820_s17 + $0x60] sm:$0xff]  ;;  %v1015_v37 = vld [vmem:[%s14820_s17 + $0x68] sm:$0xff]  ;;  %v1016_v53 = vld [vmem:[%s14820_s17 + $0x70] sm:$0xff] }
  0x39   : > { %v1005_v57 = vld [vmem:[%s14820_s17 + $0x18] sm:$0xff] }
  0x3a   : > { %v1009_v59 = vld [vmem:[%s14820_s17 + $0x38] sm:$0xff] }
  0x3b   : > { %v1013_v3 = vld [vmem:[%s14820_s17 + $0x58] sm:$0xff] }
  0x45   : > { %8250 = vmatmul.msk.bf16.gmra.mxu0 %vm928_vm0, %v8531_v5  ;;  %8252 = vmatmul.msk.bf16.gmra.mxu1 %vm928_vm0, %v8533_v6  ;;  %v1017_v5 = vld [vmem:[%s14820_s17 + $0x78] sm:$0xff] }
  0x46   : > { %8254 = vmatmul.msk.bf16.gmra.mxu2 %vm928_vm0, %v8535_v7  ;;  %8256 = vmatmul.msk.bf16.gmra.mxu3 %vm928_vm0, %v8537_v8 }
  0xb2   : > { %v962_v10 = vpop.f32.mrf.mxu0  ;;  %v972_v12 = vpop.f32.mrf.mxu1 }
  0xb3   : > { %v963_v14 = vadd.f32 %v9718_v9, %v962_v10  ;;  %v973_v15 = vadd.f32 %v9718_v9, %v972_v12 }
  0xb5   : > { %v1018_v16 = vadd.f32 %v1002_v11, %v963_v14  ;;  %v1022_v17 = vadd.f32 %v1006_v13, %v973_v15 }
  0xb7   : > { %1035 = vst.msk [vmem:[#allocation2] sm:$0xff] %vm1034_vm1, %v1018_v16 }
  0xb8   : > { %1039 = vst.msk [vmem:[#allocation2 + $0x20] sm:$0xff] %vm1034_vm1, %v1022_v17 }
  0xb9   : > { %v982_v18 = vpop.f32.mrf.mxu2  ;;  %v992_v20 = vpop.f32.mrf.mxu3 }
  0xba   : > { %v983_v22 = vadd.f32 %v9718_v9, %v982_v18  ;;  %v993_v23 = vadd.f32 %v9718_v9, %v992_v20  ;;  %v964_v24 = vpop.f32.mrf.mxu0  ;;  %v974_v26 = vpop.f32.mrf.mxu1 }
  0xbb   : > { %v965_v28 = vadd.f32 %v9718_v9, %v964_v24  ;;  %v975_v29 = vadd.f32 %v9718_v9, %v974_v26 }
  0xbc   : > { %v1026_v30 = vadd.f32 %v1010_v19, %v983_v22  ;;  %v1030_v31 = vadd.f32 %v1014_v21, %v993_v23 }
  0xbd   : > { %v1019_v32 = vadd.f32 %v1003_v25, %v965_v28  ;;  %v1023_v33 = vadd.f32 %v1007_v27, %v975_v29 }
  0xbe   : > { %1043 = vst.msk [vmem:[#allocation2 + $0x40] sm:$0xff] %vm1034_vm1, %v1026_v30 }
  0xbf   : > { %1047 = vst.msk [vmem:[#allocation2 + $0x60] sm:$0xff] %vm1034_vm1, %v1030_v31 }
  0xc0   : > { %1036 = vst.msk [vmem:[#allocation2 + $0x8] sm:$0xff] %vm1034_vm1, %v1019_v32 }
  0xc1   : > { %1040 = vst.msk [vmem:[#allocation2 + $0x28] sm:$0xff] %vm1034_vm1, %v1023_v33  ;;  %v984_v34 = vpop.f32.mrf.mxu2  ;;  %v994_v36 = vpop.f32.mrf.mxu3 }
  0xc2   : > { %v985_v38 = vadd.f32 %v9718_v9, %v984_v34  ;;  %v995_v39 = vadd.f32 %v9718_v9, %v994_v36  ;;  %v967_v40 = vpop.f32.mrf.mxu0  ;;  %v977_v42 = vpop.f32.mrf.mxu1 }
  0xc3   : > { %v968_v44 = vadd.f32 %v9718_v9, %v967_v40  ;;  %v978_v45 = vadd.f32 %v9718_v9, %v977_v42 }
  0xc4   : > { %v1027_v46 = vadd.f32 %v1011_v35, %v985_v38  ;;  %v1031_v47 = vadd.f32 %v1015_v37, %v995_v39 }
  0xc5   : > { %v1020_v48 = vadd.f32 %v1004_v41, %v968_v44  ;;  %v1024_v49 = vadd.f32 %v1008_v43, %v978_v45 }
  0xc6   : > { %1044 = vst.msk [vmem:[#allocation2 + $0x48] sm:$0xff] %vm1034_vm1, %v1027_v46 }
  0xc7   : > { %1048 = vst.msk [vmem:[#allocation2 + $0x68] sm:$0xff] %vm1034_vm1, %v1031_v47 }
  0xc8   : > { %1037 = vst.msk [vmem:[#allocation2 + $0x10] sm:$0xff] %vm1034_vm1, %v1020_v48 }
  0xc9   : > { %1041 = vst.msk [vmem:[#allocation2 + $0x30] sm:$0xff] %vm1034_vm1, %v1024_v49  ;;  %v987_v50 = vpop.f32.mrf.mxu2  ;;  %v997_v52 = vpop.f32.mrf.mxu3 }
  0xca   : > { %v988_v54 = vadd.f32 %v9718_v9, %v987_v50  ;;  %v998_v55 = vadd.f32 %v9718_v9, %v997_v52  ;;  %v969_v56 = vpop.f32.mrf.mxu0  ;;  %v979_v58 = vpop.f32.mrf.mxu1 }
  0xcb   : > { %v970_v60 = vadd.f32 %v9718_v9, %v969_v56  ;;  %v980_v61 = vadd.f32 %v9718_v9, %v979_v58 }
  0xcc   : > { %v1028_v62 = vadd.f32 %v1012_v51, %v988_v54  ;;  %v1032_v63 = vadd.f32 %v1016_v53, %v998_v55 }
  0xcd   : > { %v1021_v0 = vadd.f32 %v1005_v57, %v970_v60  ;;  %v1025_v1 = vadd.f32 %v1009_v59, %v980_v61 }
  0xce   : > { %1045 = vst.msk [vmem:[#allocation2 + $0x50] sm:$0xff] %vm1034_vm1, %v1028_v62 }
  0xcf   : > { %1049 = vst.msk [vmem:[#allocation2 + $0x70] sm:$0xff] %vm1034_vm1, %v1032_v63 }
  0xd0   : > { %1038 = vst.msk [vmem:[#allocation2 + $0x18] sm:$0xff] %vm1034_vm1, %v1021_v0 }
  0xd1   : > { %1042 = vst.msk [vmem:[#allocation2 + $0x38] sm:$0xff] %vm1034_vm1, %v1025_v1  ;;  %v989_v2 = vpop.f32.mrf.mxu2  ;;  %v999_v4 = vpop.f32.mrf.mxu3 }
  0xd2   : > { %v990_v6 = vadd.f32 %v9718_v9, %v989_v2  ;;  %v1000_v7 = vadd.f32 %v9718_v9, %v999_v4 }
  0xd4   : > { %v1029_v8 = vadd.f32 %v1013_v3, %v990_v6  ;;  %v1033_v10 = vadd.f32 %v1017_v5, %v1000_v7 }
  0xd6   : > { %1046 = vst.msk [vmem:[#allocation2 + $0x58] sm:$0xff] %vm1034_vm1, %v1029_v8 }
  0xd7   : > { %1050 = vst.msk [vmem:[#allocation2 + $0x78] sm:$0xff] %vm1034_vm1, %v1033_v10 }
  0xd8 PF: > { %v9800_v11 = vld [vmem:[#allocation2 + $0x20] sm:$0xff]  ;;  %vm1067_vm2 = vcmask 261120   ;;  %v9802_v12 = vld [vmem:[#allocation2 + $0x10] sm:$0xff]  ;;  %v9809_v16 = vld [vmem:[#allocation2 + $0x28] sm:$0xff]  ;;  %v9467_v42 = vmov 32.0   ;;  %s14832_s29 = sld [smem:[#allocation46_spill]]  ;;  %s14855_s14 = scalar_lea.vmem %s14735_s10, %s9593_s23 }
  0xd9   : > { %v1051_v13 = vld [vmem:[#allocation2] sm:$0xff]  ;;  %v1080_v14 = vsel %vm1067_vm2, %v9800_v11, 0.0  ;;  %v1074_v15 = vsel %vm1067_vm2, %v9802_v12, 0.0  ;;  %v9811_v17 = vld [vmem:[#allocation2 + $0x18] sm:$0xff]  ;;  %v9813_v18 = vld [vmem:[#allocation2 + $0x8] sm:$0xff]  ;;  %v1083_v19 = vsel %vm1067_vm2, %v9809_v16, 0.0  ;;  %9083 = vrcp.f32 %v9467_v42 }
  0xda   : > { %v1068_v9 = vsel %vm1067_vm2, %v1051_v13, 0.0  ;;  %1081 = vadd.xlane.f32.xlu2 %v1080_v14  ;;  %1075 = vadd.xlane.f32.xlu1 %v1074_v15  ;;  %v1077_v20 = vsel %vm1067_vm2, %v9811_v17, 0.0  ;;  %v1071_v21 = vsel %vm1067_vm2, %v9813_v18, 0.0  ;;  %v9821_v22 = vld [vmem:[#allocation2 + $0x40] sm:$0xff]  ;;  %v9823_v23 = vld [vmem:[#allocation2 + $0x38] sm:$0xff]  ;;  %v9825_v24 = vld [vmem:[#allocation2 + $0x30] sm:$0xff] }
  0xdb   : > { %1069 = vadd.xlane.f32.xlu0 %v1068_v9  ;;  %v1092_v25 = vsel %vm1067_vm2, %v9821_v22, 0.0  ;;  %v1089_v26 = vsel %vm1067_vm2, %v9823_v23, 0.0  ;;  %v1086_v27 = vsel %vm1067_vm2, %v9825_v24, 0.0  ;;  %v9833_v28 = vld [vmem:[#allocation2 + $0x48] sm:$0xff]  ;;  %v9837_v30 = vld [vmem:[#allocation2 + $0x50] sm:$0xff]  ;;  %v9845_v34 = vld [vmem:[#allocation2 + $0x60] sm:$0xff] }
  0xdc   : > { %v1095_v31 = vsel %vm1067_vm2, %v9833_v28, 0.0  ;;  %v1098_v33 = vsel %vm1067_vm2, %v9837_v30, 0.0  ;;  %v9849_v36 = vld [vmem:[#allocation2 + $0x70] sm:$0xff]  ;;  %v1104_v37 = vsel %vm1067_vm2, %v9845_v34, 0.0  ;;  %v9857_v40 = vld [vmem:[#allocation2 + $0x68] sm:$0xff]  ;;  %s9468_s4 = smov 104  }
  0xdd   : > { %v9835_v29 = vld [vmem:[#allocation2 + $0x58] sm:$0xff]  ;;  %v1110_v39 = vsel %vm1067_vm2, %v9849_v36, 0.0  ;;  %v1107_v41 = vsel %vm1067_vm2, %v9857_v40, 0.0  ;;  %s9469_s30 = smov 120   ;;  %s9470_s12 = smov 112  }
  0xde   : > { %v1101_v32 = vsel %vm1067_vm2, %v9835_v29, 0.0  ;;  %v9847_v35 = vld [vmem:[#allocation2 + $0x78] sm:$0xff]  ;;  %s14833_s11 = scalar_lea.vmem %s14832_s29, %s9593_s23  ;;  %p8521_p5 = scmp.ne.s32.totalorder %s9587_s22, 1 }
  0xdf   : > { %v1113_v38 = vsel %vm1067_vm2, %v9847_v35, 0.0  ;;  %v9084_v43 = vpop.eup %9083 }
  0xe0   : > { %v1117_v44 = vmul.f32 32.0, %v9084_v43  ;;  %vm1121_vm3 = vweird.f32 %v9084_v43 }
  0xe2   : > { %1084 = vadd.xlane.f32.xlu2 %v1083_v19  ;;  %1078 = vadd.xlane.f32.xlu1 %v1077_v20  ;;  %v1118_v45 = vsub.f32 1.0, %v1117_v44 }
  0xe3   : > { %1072 = vadd.xlane.f32.xlu0 %v1071_v21 }
  0xe4   : > { %v1119_v46 = vmul.f32 %v9084_v43, %v1118_v45 }
  0xe6   : > { %v1120_v47 = vadd.f32 %v9084_v43, %v1119_v46 }
  0xe8   : > { %v9861_v48 = vsel %vm1121_vm3, %v9084_v43, %v1120_v47 }
  0xe9   : > { %14821 = vst [vmem:[#allocation4_spill] sm:$0xff] %v9861_v48 }
  0xea   : > { %1093 = vadd.xlane.f32.xlu2 %v1092_v25  ;;  %1090 = vadd.xlane.f32.xlu1 %v1089_v26 }
  0xeb   : > { %1087 = vadd.xlane.f32.xlu0 %v1086_v27 }
  0xf2   : > { %1096 = vadd.xlane.f32.xlu2 %v1095_v31  ;;  %1102 = vadd.xlane.f32.xlu1 %v1101_v32 }
  0xf3   : > { %1099 = vadd.xlane.f32.xlu0 %v1098_v33 }
  0xfa   : > { %1105 = vadd.xlane.f32.xlu2 %v1104_v37  ;;  %1114 = vadd.xlane.f32.xlu1 %v1113_v38 }
  0xfb   : > { %1111 = vadd.xlane.f32.xlu0 %v1110_v39 }
 0x102   : > { %1108 = vadd.xlane.f32.xlu2 %v1107_v41 }
 0x14d   : > { %v1082_v49 = vpop.xlane.xlu2 %1081  ;;  %v1076_v50 = vpop.xlane.xlu1 %1075 }
 0x14e   : > { %v1127_v51 = vmul.f32 %v9861_v48, %v1082_v49  ;;  %v1070_v52 = vpop.xlane.xlu0 %1069  ;;  %v1125_v53 = vmul.f32 %v9861_v48, %v1076_v50 }
 0x14f   : > { %v1123_v54 = vmul.f32 %v9861_v48, %v1070_v52 }
 0x150   : > { %v9867_v55 = vsub.f32 %v9800_v11, %v1127_v51  ;;  %v9874_v58 = vsub.f32 %v9802_v12, %v1125_v53 }
 0x151   : > { %v9869_v56 = vsub.f32 %v1051_v13, %v1123_v54 }
 0x152   : > { %v1159_v57 = vmul.f32 %v9867_v55, %v9867_v55  ;;  %v1157_v4 = vmul.f32 %v9874_v58, %v9874_v58 }
 0x153   : > { %v1155_v59 = vmul.f32 %v9869_v56, %v9869_v56 }
 0x154   : > { %v1183_v60 = vsel %vm1067_vm2, %v1159_v57, 0.0  ;;  %v1177_v8 = vsel %vm1067_vm2, %v1157_v4, 0.0 }
 0x155   : > { %1184 = vadd.xlane.f32.xlu2 %v1183_v60  ;;  %v1085_v61 = vpop.xlane.xlu2 %1084  ;;  %v1079_v62 = vpop.xlane.xlu1 %1078  ;;  %v1171_v63 = vsel %vm1067_vm2, %v1155_v59, 0.0 }
 0x156   : > { %1172 = vadd.xlane.f32.xlu0 %v1171_v63  ;;  %v1073_v0 = vpop.xlane.xlu0 %1072  ;;  %v1128_v1 = vmul.f32 %v9861_v48, %v1085_v61  ;;  %v1126_v2 = vmul.f32 %v9861_v48, %v1079_v62 }
 0x157   : > { %v1124_v3 = vmul.f32 %v9861_v48, %v1073_v0 }
 0x158   : > { %v9889_v6 = vsub.f32 %v9809_v16, %v1128_v1  ;;  %v9892_v7 = vsub.f32 %v9811_v17, %v1126_v2 }
 0x159   : > { %v9886_v5 = vsub.f32 %v9813_v18, %v1124_v3 }
 0x15a   : > { %v1160_v17 = vmul.f32 %v9889_v6, %v9889_v6  ;;  %v1158_v18 = vmul.f32 %v9892_v7, %v9892_v7 }
 0x15b   : > { %v1156_v10 = vmul.f32 %v9886_v5, %v9886_v5 }
 0x15c   : > { %v1186_v26 = vsel %vm1067_vm2, %v1160_v17, 0.0  ;;  %v1180_v27 = vsel %vm1067_vm2, %v1158_v18, 0.0  ;;  %v8541_v17 = vld [vmem:[%s9618_s25] sm:$0xff] }
 0x15d   : > { %v1094_v11 = vpop.xlane.xlu2 %1093  ;;  %v1091_v12 = vpop.xlane.xlu1 %1090  ;;  %v1174_v13 = vsel %vm1067_vm2, %v1156_v10, 0.0 }
 0x15e   : > { %v1131_v14 = vmul.f32 %v9861_v48, %v1094_v11  ;;  %v1130_v15 = vmul.f32 %v9861_v48, %v1091_v12  ;;  %1178 = vadd.xlane.f32.xlu0 %v1177_v8  ;;  %1175 = vadd.xlane.f32.xlu1 %v1174_v13  ;;  %v1088_v9 = vpop.xlane.xlu0 %1087  ;;  %v8540_v13 = vld [vmem:[%s9613_s2 + $0x8] sm:$0xff] }
 0x15f   : > { %v1129_v16 = vmul.f32 %v9861_v48, %v1088_v9  ;;  %1525 = vmatpush.bf16.msra.mxu0 %v8540_v13 }
 0x160   : > { %v9906_v19 = vsub.f32 %v9823_v23, %v1130_v15  ;;  %v9909_v20 = vsub.f32 %v9821_v22, %v1131_v14  ;;  %v8542_v14 = vld [vmem:[%s9618_s25 + $0x8] sm:$0xff] }
 0x161   : > { %v9914_v25 = vsub.f32 %v9825_v24, %v1129_v16  ;;  %1594 = vmatpush.bf16.msra.mxu1 %v8542_v14  ;;  %v8539_v16 = vld [vmem:[%s9613_s2] sm:$0xff]  ;;  %s9475_s2 = smov 8  }
 0x162   : > { %v1162_v21 = vmul.f32 %v9906_v19, %v9906_v19  ;;  %v1163_v22 = vmul.f32 %v9909_v20, %v9909_v20 }
 0x163   : > { %v1161_v39 = vmul.f32 %v9914_v25, %v9914_v25  ;;  %1526 = vmatpush.bf16.msra.mxu0 %v8539_v16 }
 0x164   : > { %v1192_v31 = vsel %vm1067_vm2, %v1162_v21, 0.0  ;;  %v1195_v42 = vsel %vm1067_vm2, %v1163_v22, 0.0  ;;  %v8544_v22 = vld [vmem:[%s9623_s27 + $0x8] sm:$0xff] }
 0x165   : > { %v1097_v32 = vpop.xlane.xlu2 %1096  ;;  %1193 = vadd.xlane.f32.xlu2 %v1192_v31  ;;  %v1103_v33 = vpop.xlane.xlu1 %1102  ;;  %v1189_v45 = vsel %vm1067_vm2, %v1161_v39, 0.0  ;;  %1595 = vmatpush.bf16.msra.mxu1 %v8541_v17 }
 0x166   : > { %1187 = vadd.xlane.f32.xlu0 %v1186_v26  ;;  %1181 = vadd.xlane.f32.xlu1 %v1180_v27  ;;  %v1100_v23 = vpop.xlane.xlu0 %1099  ;;  %v1132_v37 = vmul.f32 %v9861_v48, %v1097_v32  ;;  %v1134_v38 = vmul.f32 %v9861_v48, %v1103_v33 }
 0x167   : > { %v1133_v24 = vmul.f32 %v9861_v48, %v1100_v23  ;;  %8560 = vmatpush.bf16.msra.mxu2 %v8544_v22  ;;  %1663 = vmatpush.bf16.msrb.mxu0 %v8544_v22 }
 0x168   : > { %v9931_v43 = vsub.f32 %v9833_v28, %v1132_v37  ;;  %v9934_v44 = vsub.f32 %v9835_v29, %v1134_v38 }
 0x169   : > { %v9927_v41 = vsub.f32 %v9837_v30, %v1133_v24 }
 0x16a   : > { %v1166_v28 = vmul.f32 %v9934_v44, %v9934_v44  ;;  %v1164_v29 = vmul.f32 %v9931_v43, %v9931_v43 }
 0x16b   : > { %v1165_v46 = vmul.f32 %v9927_v41, %v9927_v41 }
 0x16c   : > { %v1204_v53 = vsel %vm1067_vm2, %v1166_v28, 0.0  ;;  %v1198_v54 = vsel %vm1067_vm2, %v1164_v29, 0.0 }
 0x16d   : > { %v1106_v47 = vpop.xlane.xlu2 %1105  ;;  %v1201_v49 = vsel %vm1067_vm2, %v1165_v46, 0.0  ;;  %v1115_v59 = vpop.xlane.xlu1 %1114  ;;  %v8543_v46 = vld [vmem:[%s9623_s27] sm:$0xff]  ;;  %s14828_s27 = sld [smem:[#allocation45_spill]] }
 0x16e   : > { %1196 = vadd.xlane.f32.xlu0 %v1195_v42  ;;  %1190 = vadd.xlane.f32.xlu1 %v1189_v45  ;;  %v1112_v30 = vpop.xlane.xlu0 %1111  ;;  %v1135_v50 = vmul.f32 %v9861_v48, %v1106_v47  ;;  %v1138_v62 = vmul.f32 %v9861_v48, %v1115_v59 }
 0x16f   : > { %1202 = vadd.xlane.f32.xlu2 %v1201_v49  ;;  %v1137_v51 = vmul.f32 %v9861_v48, %v1112_v30  ;;  %8561 = vmatpush.bf16.msra.mxu2 %v8543_v46 }
 0x170   : > { %v9947_v52 = vsub.f32 %v9845_v34, %v1135_v50  ;;  %v9966_v1 = vsub.f32 %v9847_v35, %v1138_v62  ;;  %1664 = vmatpush.bf16.msrb.mxu0 %v8543_v46 }
 0x171   : > { %v9952_v57 = vsub.f32 %v9849_v36, %v1137_v51 }
 0x172   : > { %v1167_v63 = vmul.f32 %v9947_v52, %v9947_v52 }
 0x173   : > { %v1169_v34 = vmul.f32 %v9952_v57, %v9952_v57  ;;  %s14829_s1 = scalar_lea.vmem %s14828_s27, %s9593_s23 }
 0x174   : > { %v1207_v2 = vsel %vm1067_vm2, %v1167_v63, 0.0 }
 0x175   : > { %v1109_v60 = vpop.xlane.xlu2 %1108  ;;  %v1213_v3 = vsel %vm1067_vm2, %v1169_v34, 0.0 }
 0x176   : > { %v1136_v61 = vmul.f32 %v9861_v48, %v1109_v60  ;;  %1205 = vadd.xlane.f32.xlu0 %v1204_v53  ;;  %1199 = vadd.xlane.f32.xlu1 %v1198_v54 }
 0x178   : > { %v9961_v0 = vsub.f32 %v9857_v40, %v1136_v61  ;;  %v1170_v40 = vmul.f32 %v9966_v1, %v9966_v1 }
 0x17a   : > { %v1168_v36 = vmul.f32 %v9961_v0, %v9961_v0  ;;  %v1216_v8 = vsel %vm1067_vm2, %v1170_v40, 0.0 }
 0x17c   : > { %v1210_v4 = vsel %vm1067_vm2, %v1168_v36, 0.0 }
 0x17d   : > { %1211 = vadd.xlane.f32.xlu2 %v1210_v4 }
 0x17e   : > { %1208 = vadd.xlane.f32.xlu1 %v1207_v2  ;;  %1214 = vadd.xlane.f32.xlu0 %v1213_v3 }
 0x186   : > { %1217 = vadd.xlane.f32.xlu1 %v1216_v8 }
 0x1c8   : > { %v1185_v10 = vpop.xlane.xlu2 %1184 }
 0x1c9   : > { %v1223_v35 = vmul.f32 %v1185_v10, %v9861_v48  ;;  %v1173_v11 = vpop.xlane.xlu0 %1172 }
 0x1ca   : > { %v1219_v12 = vmul.f32 %v1173_v11, %v9861_v48 }
 0x1cb   : > { %v9978_v15 = vadd.f32 1e-05, %v1223_v35 }
 0x1cc   : > { %v9980_v9 = vadd.f32 1e-05, %v1219_v12 }
 0x1cd   : > { %vm1297_vm9 = vweird.f32 %v9978_v15 }
 0x1ce   : > { %9085 = vrsqrt.f32 %v9980_v9  ;;  %vm1257_vm5 = vweird.f32 %v9980_v9 }
 0x1cf   : > { %9087 = vrsqrt.f32 %v9978_v15 }
 0x1d1   : > { %v1176_v18 = vpop.xlane.xlu1 %1175  ;;  %v1179_v21 = vpop.xlane.xlu0 %1178 }
 0x1d2   : > { %v1220_v26 = vmul.f32 %v1176_v18, %v9861_v48  ;;  %v1221_v27 = vmul.f32 %v1179_v21, %v9861_v48 }
 0x1d4   : > { %v9988_v31 = vpop.eup %9085  ;;  %v1236_v32 = vadd.f32 1e-05, %v1220_v26  ;;  %v9990_v33 = vadd.f32 1e-05, %v1221_v27 }
 0x1d5   : > { %v1252_v23 = vmul.f32 %v9988_v31, %v9980_v9  ;;  %v9995_v37 = vpop.eup %9087  ;;  %vm1258_vm4 = vweird.f32 %v9988_v31 }
 0x1d6   : > { %9089 = vrsqrt.f32 %v1236_v32  ;;  %v1292_v39 = vmul.f32 %v9995_v37, %v9978_v15  ;;  %vm10034_vm7 = vmor %vm1257_vm5, %vm1258_vm4  ;;  %vm1267_vm8 = vweird.f32 %v1236_v32  ;;  %vm1298_vm10 = vweird.f32 %v9995_v37 }
 0x1d7   : > { %v1253_v24 = vmul.f32 %v9988_v31, %v1252_v23  ;;  %9091 = vrsqrt.f32 %v9990_v33  ;;  %vm10059_vm12 = vmor %vm1297_vm9, %vm1298_vm10  ;;  %vm1277_vm14 = vweird.f32 %v9990_v33 }
 0x1d8   : > { %v1194_v38 = vpop.xlane.xlu2 %1193  ;;  %v1293_v53 = vmul.f32 %v9995_v37, %v1292_v39 }
 0x1d9   : > { %v1182_v42 = vpop.xlane.xlu1 %1181  ;;  %v1188_v45 = vpop.xlane.xlu0 %1187  ;;  %v1254_v30 = vmul.f32 0.5, %v1253_v24  ;;  %v1226_v62 = vmul.f32 %v1194_v38, %v9861_v48 }
 0x1da   : > { %v1222_v47 = vmul.f32 %v1182_v42, %v9861_v48  ;;  %v1224_v49 = vmul.f32 %v1188_v45, %v9861_v48  ;;  %v1294_v34 = vmul.f32 0.5, %v1293_v53 }
 0x1db   : > { %v1255_v60 = vsub.f32 1.5, %v1254_v30  ;;  %v10021_v10 = vadd.f32 1e-05, %v1226_v62 }
 0x1dc   : > { %v9090_v50 = vpop.eup %9089  ;;  %v10004_v28 = vadd.f32 1e-05, %v1222_v47  ;;  %v10006_v29 = vadd.f32 1e-05, %v1224_v49  ;;  %v1295_v13 = vsub.f32 1.5, %v1294_v34 }
 0x1dd   : > { %v10008_v51 = vpop.eup %9091  ;;  %v1262_v54 = vmul.f32 %v9090_v50, %v1236_v32  ;;  %v1256_v40 = vmul.f32 %v9988_v31, %v1255_v60  ;;  %vm1268_vm6 = vweird.f32 %v9090_v50  ;;  %v10069_v47 = vld [vmem:[%s14829_s1] ss:$0 sm:$0xff] }
 0x1de   : > { %v1272_v59 = vmul.f32 %v10008_v51, %v9990_v33  ;;  %9093 = vrsqrt.f32 %v10004_v28  ;;  %vm10045_vm11 = vmor %vm1267_vm8, %vm1268_vm6  ;;  %v1296_v15 = vmul.f32 %v9995_v37, %v1295_v13  ;;  %vm1278_vm13 = vweird.f32 %v10008_v51 }
 0x1df   : > { %v1263_v61 = vmul.f32 %v9090_v50, %v1262_v54  ;;  %9095 = vrsqrt.f32 %v10006_v29  ;;  %v1260_v26 = vsel %vm10034_vm7, %v9988_v31, %v1256_v40  ;;  %vm10086_vm0 = vmor %vm1277_vm14, %vm1278_vm13  ;;  %vm1287_vm1 = vweird.f32 %v10004_v28 }
 0x1e0   : > { %v1273_v63 = vmul.f32 %v10008_v51, %v1272_v59  ;;  %9097 = vrsqrt.f32 %v10021_v10  ;;  %v1411_v46 = vmul.f32 %v1260_v26, %v9869_v56  ;;  %v1300_v54 = vsel %vm10059_vm12, %v9995_v37, %v1296_v15  ;;  %v10099_v37 = vld [vmem:[%s14833_s11] ss:$0 sm:$0xff] }
 0x1e1   : > { %v1264_v36 = vmul.f32 0.5, %v1263_v61  ;;  %v1191_v2 = vpop.xlane.xlu1 %1190  ;;  %v10017_v3 = vpop.xlane.xlu0 %1196  ;;  %v1415_v13 = vmul.f32 %v1300_v54, %v9867_v55  ;;  %vm1307_vm4 = vweird.f32 %v10006_v29  ;;  %vm1327_vm14 = vweird.f32 %v10021_v10 }
 0x1e2   : > { %v1203_v4 = vpop.xlane.xlu2 %1202  ;;  %v1274_v11 = vmul.f32 0.5, %v1273_v63  ;;  %v1225_v16 = vmul.f32 %v1191_v2, %v9861_v48  ;;  %v1431_v61 = vmul.f32 %v10069_v47, %v1411_v46 }
 0x1e3   : > { %v1265_v8 = vsub.f32 1.5, %v1264_v36  ;;  %v1229_v35 = vmul.f32 %v1203_v4, %v9861_v48 }
 0x1e4   : > { %v10025_v12 = vpop.eup %9093  ;;  %v1275_v23 = vsub.f32 1.5, %v1274_v11  ;;  %v10056_v38 = vadd.f32 1e-05, %v1225_v16 }
 0x1e5   : > { %v1266_v14 = vmul.f32 %v9090_v50, %v1265_v8  ;;  %v10028_v17 = vadd.f32 1e-05, %v1229_v35  ;;  %v10030_v18 = vpop.eup %9095  ;;  %v1282_v9 = vmul.f32 %v10025_v12, %v10004_v28  ;;  %vm1288_vm15 = vweird.f32 %v10025_v12 }
 0x1e6   : > { %v1302_v24 = vmul.f32 %v10030_v18, %v10006_v29  ;;  %v10077_v56 = vpop.eup %9097  ;;  %vm10103_vm3 = vmor %vm1287_vm1, %vm1288_vm15  ;;  %vm1308_vm5 = vweird.f32 %v10030_v18  ;;  %vm1317_vm13 = vweird.f32 %v10056_v38 }
 0x1e7   : > { %v1270_v32 = vsel %vm10045_vm11, %v9090_v50, %v1266_v14  ;;  %v1283_v22 = vmul.f32 %v10025_v12, %v1282_v9  ;;  %9099 = vrsqrt.f32 %v10028_v17  ;;  %v1276_v50 = vmul.f32 %v10008_v51, %v1275_v23  ;;  %vm10166_vm7 = vmor %vm1307_vm4, %vm1308_vm5 }
 0x1e8   : > { %v1412_v30 = vmul.f32 %v1270_v32, %v9886_v5  ;;  %v1303_v59 = vmul.f32 %v10030_v18, %v1302_v24  ;;  %9101 = vrsqrt.f32 %v10056_v38  ;;  %v1322_v36 = vmul.f32 %v10077_v56, %v10021_v10 }
 0x1e9   : > { %v1200_v31 = vpop.xlane.xlu1 %1199  ;;  %v1206_v39 = vpop.xlane.xlu0 %1205  ;;  %v1284_v45 = vmul.f32 0.5, %v1283_v22  ;;  %v1280_v28 = vsel %vm10086_vm0, %v10008_v51, %v1276_v50  ;;  %v1451_v14 = vadd.f32 %v10099_v37, %v1431_v61  ;;  %v1227_v23 = vmul.f32 %v10017_v3, %v9861_v48 }
 0x1ea   : > { %v1230_v49 = vmul.f32 %v1206_v39, %v9861_v48  ;;  %v1432_v62 = vmul.f32 %v10069_v47, %v1412_v30  ;;  %v1304_v8 = vmul.f32 0.5, %v1303_v59  ;;  %v1413_v27 = vmul.f32 %v1280_v28, %v9874_v58 }
 0x1eb   : > { %v1285_v53 = vsub.f32 1.5, %v1284_v45  ;;  %v1323_v55 = vmul.f32 %v10077_v56, %v1322_v36  ;;  %vm1357_vm6 = vweird.f32 %v10028_v17  ;;  %vm1328_vm15 = vweird.f32 %v10077_v56 }
 0x1ec   : > { %v10084_v60 = vadd.f32 1e-05, %v1230_v49  ;;  %v1452_v16 = vadd.f32 %v10099_v37, %v1432_v62  ;;  %v1305_v24 = vsub.f32 1.5, %v1304_v8  ;;  %v1433_v46 = vmul.f32 %v10069_v47, %v1413_v27 }
 0x1ed   : > { %v1286_v33 = vmul.f32 %v10025_v12, %v1285_v53  ;;  %v10101_v63 = vpop.eup %9099  ;;  %v10154_v30 = vmul.f32 0.5, %v1323_v55  ;;  %v1435_v53 = vmul.f32 %v10069_v47, %v1415_v13 }
 0x1ee   : > { %v1352_v4 = vmul.f32 %v10101_v63, %v10028_v17  ;;  %9103 = vrsqrt.f32 %v10084_v60  ;;  %v10132_v22 = vpack.c.bf16 %v1452_v16, %v1451_v14  ;;  %v1306_v54 = vmul.f32 %v10030_v18, %v1305_v24 }
 0x1ef   : > { %v1290_v2 = vsel %vm10103_vm3, %v10025_v12, %v1286_v33  ;;  %v10123_v12 = vpop.eup %9101  ;;  %vm1358_vm8 = vweird.f32 %v10101_v63  ;;  %v1453_v28 = vadd.f32 %v10099_v37, %v1433_v46  ;;  %vm1367_vm9 = vweird.f32 %v10084_v60 }
 0x1f0   : > { %v1212_v40 = vpop.xlane.xlu2 %1211  ;;  %v1353_v51 = vmul.f32 %v10101_v63, %v1352_v4  ;;  %v1414_v32 = vmul.f32 %v1290_v2, %v9892_v7  ;;  %v1312_v58 = vmul.f32 %v10123_v12, %v10056_v38  ;;  %v1228_v7 = vmul.f32 %v1200_v31, %v9861_v48  ;;  %8265 = vmatmul.msk.bf16.vlgmr.msra.gmra.mxu0 %vm1067_vm2, %v10132_v22  ;;  %vm10192_vm11 = vmor %vm1357_vm6, %vm1358_vm8 }
 0x1f1   : > { %v1209_v35 = vpop.xlane.xlu1 %1208  ;;  %v1215_v11 = vpop.xlane.xlu0 %1214  ;;  %v1232_v9 = vmul.f32 %v1212_v40, %v9861_v48  ;;  %8281 = vmatmul.msk.bf16.vlgmr.msra.gmra.mxu1 %vm1067_vm2, %v10132_v22  ;;  %v10156_v31 = vadd.f32 1e-05, %v1227_v23  ;;  %v1310_v40 = vsel %vm10166_vm7, %v10030_v18, %v1306_v54  ;;  %v1325_v18 = vsub.f32 1.5, %v10154_v30 }
 0x1f2   : > { %v1231_v21 = vmul.f32 %v1209_v35, %v9861_v48  ;;  %v1233_v26 = vmul.f32 %v1215_v11, %v9861_v48  ;;  %v1354_v39 = vmul.f32 0.5, %v1353_v51  ;;  %v1434_v49 = vmul.f32 %v10069_v47, %v1414_v32 }
 0x1f3   : > { %v10136_v42 = vadd.f32 1e-05, %v1232_v9  ;;  %v1313_v61 = vmul.f32 %v10123_v12, %v1312_v58  ;;  %v10171_v62 = vadd.f32 1e-05, %v1228_v7  ;;  %v1416_v32 = vmul.f32 %v1310_v40, %v9889_v6 }
 0x1f4   : > { %v10134_v15 = vadd.f32 1e-05, %v1231_v21  ;;  %v10146_v3 = vadd.f32 1e-05, %v1233_v26  ;;  %v10148_v45 = vpop.eup %9103  ;;  %v1355_v59 = vsub.f32 1.5, %v1354_v39  ;;  %v1454_v36 = vadd.f32 %v10099_v37, %v1434_v49 }
 0x1f5   : > { %v1362_v50 = vmul.f32 %v10148_v45, %v10084_v60  ;;  %vm1368_vm10 = vweird.f32 %v10148_v45  ;;  %v1314_v16 = vmul.f32 0.5, %v1313_v61  ;;  %v1455_v24 = vadd.f32 %v10099_v37, %v1435_v53 }
 0x1f6   : > { %9105 = vrsqrt.f32 %v10134_v15  ;;  %v1356_v8 = vmul.f32 %v10101_v63, %v1355_v59  ;;  %v1468_v35 = vpack.c.bf16 %v1454_v36, %v1453_v28  ;;  %vm10202_vm12 = vmor %vm1367_vm9, %vm1368_vm10  ;;  %vm1377_vm0 = vweird.f32 %v10134_v15 }
 0x1f7   : > { %9107 = vrsqrt.f32 %v10136_v42  ;;  %v1363_v34 = vmul.f32 %v10148_v45, %v1362_v50  ;;  %v1315_v46 = vsub.f32 1.5, %v1314_v16  ;;  %vm1387_vm3 = vweird.f32 %v10136_v42 }
 0x1f8   : > { %9109 = vrsqrt.f32 %v10146_v3  ;;  %8298 = vmatmul.msk.bf16.vlgmr.msra.gmra.mxu2 %vm1067_vm2, %v1468_v35  ;;  %v1360_v55 = vsel %vm10192_vm11, %v10101_v63, %v1356_v8  ;;  %vm1397_vm4 = vweird.f32 %v10146_v3  ;;  %vm1318_vm8 = vweird.f32 %v10123_v12 }
 0x1f9   : > { %v1218_v5 = vpop.xlane.xlu1 %1217  ;;  %9111 = vrsqrt.f32 %v10156_v31  ;;  %v1364_v2 = vmul.f32 0.5, %v1363_v34  ;;  %v1421_v33 = vmul.f32 %v1360_v55, %v9927_v41 }
 0x1fa   : > { %v1234_v29 = vmul.f32 %v1218_v5, %v9861_v48  ;;  %9113 = vrsqrt.f32 %v10171_v62 }
 0x1fb   : > { %v1365_v60 = vsub.f32 1.5, %v1364_v2 }
 0x1fc   : > { %v10182_v4 = vpop.eup %9105  ;;  %v10188_v11 = vadd.f32 1e-05, %v1234_v29 }
 0x1fd   : > { %v1372_v51 = vmul.f32 %v10182_v4, %v10134_v15  ;;  %v10199_v14 = vpop.eup %9107  ;;  %v1366_v9 = vmul.f32 %v10148_v45, %v1365_v60  ;;  %vm1378_vm1 = vweird.f32 %v10182_v4  ;;  %v1316_v15 = vmul.f32 %v10123_v12, %v1315_v46 }
 0x1fe   : > { %9115 = vrsqrt.f32 %v10188_v11  ;;  %v10208_v17 = vpop.eup %9109  ;;  %v1382_v27 = vmul.f32 %v10199_v14, %v10136_v42  ;;  %vm1388_vm5 = vweird.f32 %v10199_v14  ;;  %vm10241_vm6 = vmor %vm1377_vm0, %vm1378_vm1  ;;  %vm1407_vm10 = vweird.f32 %v10188_v11 }
 0x1ff   : > { %v1373_v26 = vmul.f32 %v10182_v4, %v1372_v51  ;;  %v1392_v23 = vmul.f32 %v10208_v17, %v10146_v3  ;;  %v10225_v39 = vpop.eup %9111  ;;  %v1370_v6 = vsel %vm10202_vm12, %v10148_v45, %v1366_v9  ;;  %v1436_v45 = vmul.f32 %v10069_v47, %v1416_v32  ;;  %vm10260_vm9 = vmor %vm1387_vm3, %vm1388_vm5  ;;  %v10410_v9 = vld [vmem:[%s14855_s14] ss:$0 sm:$0xff] }
 0x200   : > { %v1383_v7 = vmul.f32 %v10199_v14, %v1382_v27  ;;  %v10235_v49 = vpop.eup %9113  ;;  %vm1398_vm7 = vweird.f32 %v10208_v17  ;;  %v1422_v61 = vmul.f32 %v1370_v6, %v9934_v44  ;;  %8266 = vmatmul.msk.bf16.gmra.mxu0 %vm1067_vm2, %v1468_v35  ;;  %vm10290_vm0 = vmor %vm1317_vm13, %vm1318_vm8  ;;  %v1326_v32 = vmul.f32 %v10077_v56, %v1325_v18 }
 0x201   : > { %v1374_v58 = vmul.f32 0.5, %v1373_v26  ;;  %v1393_v63 = vmul.f32 %v10208_v17, %v1392_v23  ;;  %8282 = vmatmul.msk.bf16.gmra.mxu1 %vm1067_vm2, %v1468_v35  ;;  %v1342_v29 = vmul.f32 %v10235_v49, %v10171_v62  ;;  %vm10273_vm11 = vmor %vm1397_vm4, %vm1398_vm7  ;;  %v1441_v35 = vmul.f32 %v10069_v47, %v1421_v33 }
 0x202   : > { %v1384_v53 = vmul.f32 0.5, %v1383_v7  ;;  %v1456_v60 = vadd.f32 %v10099_v37, %v1436_v45  ;;  %v1442_v51 = vmul.f32 %v10069_v47, %v1422_v61  ;;  %vm10307_vm13 = vmor %vm1327_vm14, %vm1328_vm15  ;;  %vm1347_vm14 = vweird.f32 %v10171_v62 }
 0x203   : > { %v1375_v50 = vsub.f32 1.5, %v1374_v58  ;;  %v1394_v5 = vmul.f32 0.5, %v1393_v63  ;;  %v1461_v21 = vadd.f32 %v10099_v37, %v1441_v35  ;;  %v1320_v58 = vsel %vm10290_vm0, %v10123_v12, %v1316_v15 }
 0x204   : > { %v9116_v54 = vpop.eup %9115  ;;  %v1385_v28 = vsub.f32 1.5, %v1384_v53  ;;  %v1462_v26 = vadd.f32 %v10099_v37, %v1442_v51  ;;  %v1469_v18 = vpack.c.bf16 %v1456_v60, %v1455_v24  ;;  %v1343_v7 = vmul.f32 %v10235_v49, %v1342_v29  ;;  %v10391_v60 = vld [vmem:[%s9633_s21] ss:$0 sm:$0xff] }
 0x205   : > { %v1376_v34 = vmul.f32 %v10182_v4, %v1375_v50  ;;  %v1402_v36 = vmul.f32 %v9116_v54, %v10188_v11  ;;  %v1395_v44 = vsub.f32 1.5, %v1394_v5  ;;  %vm1408_vm12 = vweird.f32 %v9116_v54 }
 0x206   : > { %v1386_v40 = vmul.f32 %v10199_v14, %v1385_v28  ;;  %vm10316_vm1 = vmor %vm1407_vm10, %vm1408_vm12  ;;  %v1472_v23 = vpack.c.bf16 %v1462_v26, %v1461_v21  ;;  %v1330_v24 = vsel %vm10307_vm13, %v10077_v56, %v1326_v32  ;;  %v1417_v53 = vmul.f32 %v1320_v58, %v9914_v25 }
 0x207   : > { %v1380_v2 = vsel %vm10241_vm6, %v10182_v4, %v1376_v34  ;;  %v1403_v42 = vmul.f32 %v9116_v54, %v1402_v36  ;;  %v1396_v13 = vmul.f32 %v10208_v17, %v1395_v44  ;;  %v1344_v5 = vmul.f32 0.5, %v1343_v7 }
 0x208   : > { %v1423_v4 = vmul.f32 %v1380_v2, %v9947_v52  ;;  %v1390_v16 = vsel %vm10260_vm9, %v10199_v14, %v1386_v40  ;;  %8299 = vmatmul.msk.bf16.gmra.mxu2 %vm1067_vm2, %v1469_v18  ;;  %v1418_v33 = vmul.f32 %v1330_v24, %v9906_v19  ;;  %v1437_v56 = vmul.f32 %v10069_v47, %v1417_v53 }
 0x209   : > { %v1404_v3 = vmul.f32 0.5, %v1403_v42  ;;  %v1400_v52 = vsel %vm10273_vm11, %v10208_v17, %v1396_v13  ;;  %v1424_v14 = vmul.f32 %v1390_v16, %v9961_v0  ;;  %v1332_v17 = vmul.f32 %v10225_v39, %v10156_v31 }
 0x20a   : > { %v1443_v27 = vmul.f32 %v10069_v47, %v1423_v4  ;;  %v1425_v0 = vmul.f32 %v1400_v52, %v9952_v57  ;;  %v1345_v36 = vsub.f32 1.5, %v1344_v5  ;;  %v1438_v25 = vmul.f32 %v10069_v47, %v1418_v33 }
 0x20b   : > { %v1405_v55 = vsub.f32 1.5, %v1404_v3  ;;  %v1444_v10 = vmul.f32 %v10069_v47, %v1424_v14  ;;  %v1333_v63 = vmul.f32 %v10225_v39, %v1332_v17  ;;  %vm1348_vm15 = vweird.f32 %v10235_v49 }
 0x20c   : > { %v1463_v6 = vadd.f32 %v10099_v37, %v1443_v27  ;;  %v1445_v57 = vmul.f32 %v10069_v47, %v1425_v0  ;;  %v1457_v19 = vadd.f32 %v10099_v37, %v1437_v56  ;;  %vm1337_vm3 = vweird.f32 %v10156_v31  ;;  %vm1349_vm5 = vmor %vm1347_vm14, %vm1348_vm15 }
 0x20d   : > { %v1406_v46 = vmul.f32 %v9116_v54, %v1405_v55  ;;  %v1464_v11 = vadd.f32 %v10099_v37, %v1444_v10  ;;  %v1334_v34 = vmul.f32 0.5, %v1333_v63  ;;  %vm1338_vm4 = vweird.f32 %v10225_v39 }
 0x20e   : > { %v1465_v12 = vadd.f32 %v10099_v37, %v1445_v57  ;;  %v1458_v29 = vadd.f32 %v10099_v37, %v1438_v25  ;;  %vm1339_vm6 = vmor %vm1337_vm3, %vm1338_vm4  ;;  %vm2050_vm7 = vcmask 64512   ;;  %vm2311_vm8 = vcmask 523264  }
 0x20f   : > { %v1410_v50 = vsel %vm10316_vm1, %v9116_v54, %v1406_v46  ;;  %v1473_v45 = vpack.c.bf16 %v1464_v11, %v1463_v6  ;;  %v1335_v15 = vsub.f32 1.5, %v1334_v34  ;;  %vm3109_vm9 = vcmask 1047556  }
 0x210   : > { %v1426_v59 = vmul.f32 %v1410_v50, %v9966_v1  ;;  %8267 = vmatmul.msk.bf16.gmra.mxu0 %vm1067_vm2, %v1469_v18  ;;  %v1346_v1 = vmul.f32 %v10235_v49, %v1345_v36  ;;  %v1470_v44 = vpack.c.bf16 %v1458_v29, %v1457_v19  ;;  %vm4093_vm10 = vcmask 130048  }
 0x211   : > { %8283 = vmatmul.msk.bf16.gmra.mxu1 %vm1067_vm2, %v1469_v18  ;;  %v1336_v41 = vmul.f32 %v10225_v39, %v1335_v15  ;;  %vm4102_vm11 = vcmask 195584  }
 0x212   : > { %v1446_v61 = vmul.f32 %v10069_v47, %v1426_v59  ;;  %v1350_v2 = vsel %vm1349_vm5, %v10235_v49, %v1346_v1 }
 0x213   : > { %v1340_v62 = vsel %vm1339_vm6, %v10225_v39, %v1336_v41  ;;  %v1420_v40 = vmul.f32 %v1350_v2, %v9931_v43 }
 0x214   : > { %v1466_v28 = vadd.f32 %v10099_v37, %v1446_v61  ;;  %v1419_v31 = vmul.f32 %v1340_v62, %v9909_v20  ;;  %v10377_v20 = vld [vmem:[%s9608_s0] ss:$0 sm:$0xff] }
 0x215   : > { %v1440_v8 = vmul.f32 %v10069_v47, %v1420_v40  ;;  %14854 = vst [vmem:[#allocation5_spill] sm:$0xff] %v10377_v20 }
 0x216   : > { %v1474_v54 = vpack.c.bf16 %v1466_v28, %v1465_v12  ;;  %v1439_v42 = vmul.f32 %v10069_v47, %v1419_v31 }
 0x217   : > { %v1460_v35 = vadd.f32 %v10099_v37, %v1440_v8 }
 0x218   : > { %8300 = vmatmul.msk.bf16.gmra.mxu2 %vm1067_vm2, %v1470_v44  ;;  %v1459_v49 = vadd.f32 %v10099_v37, %v1439_v42 }
 0x21a   : > { %v1471_v13 = vpack.c.bf16 %v1460_v35, %v1459_v49 }
 0x220   : > { %8268 = vmatmul.msk.bf16.gmra.mxu0 %vm1067_vm2, %v1470_v44 }
 0x221   : > { %8284 = vmatmul.msk.bf16.gmra.mxu1 %vm1067_vm2, %v1470_v44 }
 0x228   : > { %8301 = vmatmul.msk.bf16.gmra.mxu2 %vm1067_vm2, %v1471_v13 }
 0x230   : > { %8269 = vmatmul.msk.bf16.gmra.mxu0 %vm1067_vm2, %v1471_v13 }
 0x231   : > { %8285 = vmatmul.msk.bf16.gmra.mxu1 %vm1067_vm2, %v1471_v13 }
 0x238   : > { %8302 = vmatmul.msk.bf16.gmra.mxu2 %vm1067_vm2, %v1472_v23 }
 0x240   : > { %8270 = vmatmul.msk.bf16.gmra.mxu0 %vm1067_vm2, %v1472_v23 }
 0x241   : > { %8286 = vmatmul.msk.bf16.gmra.mxu1 %vm1067_vm2, %v1472_v23 }
 0x248   : > { %8303 = vmatmul.msk.bf16.gmra.mxu2 %vm1067_vm2, %v1473_v45 }
 0x250   : > { %8271 = vmatmul.msk.bf16.gmra.mxu0 %vm1067_vm2, %v1473_v45 }
 0x251   : > { %8287 = vmatmul.msk.bf16.gmra.mxu1 %vm1067_vm2, %v1473_v45 }
 0x258   : > { %8304 = vmatmul.msk.bf16.gmra.mxu2 %vm1067_vm2, %v1474_v54 }
 0x260   : > { %8272 = vmatmul.msk.bf16.gmra.mxu0 %vm1067_vm2, %v1474_v54 }
 0x261   : > { %8288 = vmatmul.msk.bf16.gmra.mxu1 %vm1067_vm2, %v1474_v54 }
 0x26d   : > { %v1528_v43 = vpop.f32.mrf.mxu0 }
 0x26e   : > { %v10380_v47 = vadd.f32 %v10377_v20, %v1528_v43  ;;  %v1597_v37 = vpop.f32.mrf.mxu1 }
 0x26f   : > { %v10422_v26 = vadd.f32 %v10410_v9, %v1597_v37 }
 0x270   : > { %1746 = vrot.lane.b32.xlu0 %v10380_v47, %s9468_s4  ;;  %1714 = vrot.lane.b32.xlu2 %v10380_v47, %s9469_s30 }
 0x271   : > { %8297 = vmatmul.msk.bf16.vlgmr.msrb.gmra.mxu0 %vm1067_vm2, %v10132_v22 }
 0x275   : > { %v1530_v39 = vpop.f32.mrf.mxu0 }
 0x276   : > { %v1599_v51 = vpop.f32.mrf.mxu1  ;;  %v10403_v21 = vadd.f32 %v10377_v20, %v1530_v39 }
 0x277   : > { %v10419_v52 = vadd.f32 %v10410_v9, %v1599_v51 }
 0x278   : > { %1730 = vrot.lane.b32.xlu2 %v10380_v47, %s9470_s12 }
 0x279   : > { %v8581_v27 = vpack.i.bf16 %v10419_v52, %v10422_v26 }
 0x27b   : > { %v1671_v4 = vpop.f32.mrf.mxu2 }
 0x27c   : > { %v10394_v16 = vadd.f32 %v10391_v60, %v1671_v4 }
 0x27d   : > { %v1533_v22 = vpop.f32.mrf.mxu0 }
 0x27e   : > { %1902 = vrot.lane.b32.xlu1 %v10394_v16, %s9468_s4  ;;  %1878 = vrot.lane.b32.xlu0 %v10394_v16, %s9470_s12  ;;  %v1602_v3 = vpop.f32.mrf.mxu1  ;;  %v10439_v18 = vadd.f32 %v10377_v20, %v1533_v22 }
 0x27f   : > { %v10471_v11 = vadd.f32 %v10410_v9, %v1602_v3 }
 0x280   : > { %1854 = vrot.lane.b32.xlu2 %v10394_v16, %s9469_s30 }
 0x283   : > { %v1673_v38 = vpop.f32.mrf.mxu2 }
 0x284   : > { %v10430_v17 = vadd.f32 %v10391_v60, %v1673_v38 }
 0x285   : > { %v1535_v14 = vpop.f32.mrf.mxu0 }
 0x286   : > { %1732 = vrot.lane.b32.xlu1 %v10403_v21, %s9470_s12  ;;  %1716 = vrot.lane.b32.xlu0 %v10403_v21, %s9469_s30  ;;  %v1604_v32 = vpop.f32.mrf.mxu1  ;;  %v10451_v58 = vadd.f32 %v10377_v20, %v1535_v14 }
 0x287   : > { %v10468_v57 = vadd.f32 %v10410_v9, %v1604_v32 }
 0x288   : > { %1748 = vrot.lane.b32.xlu2 %v10403_v21, %s9468_s4 }
 0x289   : > { %v8606_v63 = vpack.i.bf16 %v10468_v57, %v10471_v11 }
 0x28b   : > { %v1676_v30 = vpop.f32.mrf.mxu2 }
 0x28c   : > { %v10442_v23 = vadd.f32 %v10391_v60, %v1676_v30 }
 0x28d   : > { %v1538_v55 = vpop.f32.mrf.mxu0 }
 0x28e   : > { %8582 = vrot.lane.b32.xlu1 %v8581_v27, %s9469_s30  ;;  %8587 = vrot.lane.b32.xlu0 %v8581_v27, %s9470_s12  ;;  %v1607_v0 = vpop.f32.mrf.mxu1  ;;  %v10492_v5 = vadd.f32 %v10377_v20, %v1538_v55 }
 0x28f   : > { %v10532_v29 = vadd.f32 %v10410_v9, %v1607_v0 }
 0x290   : > { %8592 = vrot.lane.b32.xlu2 %v8581_v27, %s9468_s4 }
 0x293   : > { %v1678_v12 = vpop.f32.mrf.mxu2 }
 0x294   : > { %v10479_v53 = vadd.f32 %v10391_v60, %v1678_v12 }
 0x295   : > { %v1540_v10 = vpop.f32.mrf.mxu0 }
 0x296   : > { %1856 = vrot.lane.b32.xlu1 %v10430_v17, %s9469_s30  ;;  %1904 = vrot.lane.b32.xlu0 %v10430_v17, %s9468_s4  ;;  %v1609_v6 = vpop.f32.mrf.mxu1  ;;  %v10518_v15 = vadd.f32 %v10377_v20, %v1540_v10 }
 0x297   : > { %v10527_v19 = vadd.f32 %v10410_v9, %v1609_v6 }
 0x298   : > { %1880 = vrot.lane.b32.xlu2 %v10430_v17, %s9470_s12 }
 0x299   : > { %v8616_v44 = vpack.i.bf16 %v10527_v19, %v10532_v29 }
 0x29b   : > { %v1681_v61 = vpop.f32.mrf.mxu2 }
 0x29c   : > { %v10505_v28 = vadd.f32 %v10391_v60, %v1681_v61 }
 0x29d   : > { %v1543_v7 = vpop.f32.mrf.mxu0 }
 0x29e   : > { %1734 = vrot.lane.b32.xlu0 %v10439_v18, %s9470_s12  ;;  %1718 = vrot.lane.b32.xlu1 %v10439_v18, %s9469_s30  ;;  %v10459_v46 = vpop.f32.mrf.mxu1  ;;  %v10559_v13 = vadd.f32 %v10377_v20, %v1543_v7 }
 0x29f   : > { %v10595_v38 = vadd.f32 %v10410_v9, %v10459_v46 }
 0x2a0   : > { %1906 = vrot.lane.b32.xlu2 %v10442_v23, %s9468_s4 }
 0x2a3   : > { %v1683_v62 = vpop.f32.mrf.mxu2 }
 0x2a4   : > { %v10544_v31 = vadd.f32 %v10391_v60, %v1683_v62 }
 0x2a5   : > { %v1545_v24 = vpop.f32.mrf.mxu0 }
 0x2a6   : > { %1750 = vrot.lane.b32.xlu1 %v10439_v18, %s9468_s4  ;;  %1858 = vrot.lane.b32.xlu0 %v10442_v23, %s9469_s30  ;;  %v1614_v50 = vpop.f32.mrf.mxu1  ;;  %v10576_v22 = vadd.f32 %v10377_v20, %v1545_v24 }
 0x2a7   : > { %v10585_v3 = vadd.f32 %v10410_v9, %v1614_v50 }
 0x2a8   : > { %1720 = vrot.lane.b32.xlu2 %v10451_v58, %s9469_s30 }
 0x2a9   : > { %v8626_v30 = vpack.i.bf16 %v10585_v3, %v10595_v38 }
 0x2ad   : > { %v10481_v45 = vpop.f32.mrf.mxu0 }
 0x2ae   : > { %1882 = vrot.lane.b32.xlu1 %v10442_v23, %s9470_s12  ;;  %1752 = vrot.lane.b32.xlu0 %v10451_v58, %s9468_s4  ;;  %v10487_v59 = vpop.f32.mrf.mxu1  ;;  %v10625_v12 = vadd.f32 %v10377_v20, %v10481_v45 }
 0x2af   : > { %v10621_v50 = vadd.f32 %v10410_v9, %v10487_v59 }
 0x2b0   : > { %1736 = vrot.lane.b32.xlu2 %v10451_v58, %s9470_s12  ;;  %14867 = vst [vmem:[#allocation17_spill] sm:$0xff] %v10625_v12 }
 0x2b1   : > { %14866 = vst [vmem:[#allocation16_spill] sm:$0xff] %v10621_v50 }
 0x2b5   : > { %v10498_v33 = vpop.f32.mrf.mxu0 }
 0x2b6   : > { %8607 = vrot.lane.b32.xlu1 %v8606_v63, %s9468_s4  ;;  %8597 = vrot.lane.b32.xlu0 %v8606_v63, %s9469_s30  ;;  %v1619_v34 = vpop.f32.mrf.mxu1 }
 0x2b7   : > { %v10612_v46 = vadd.f32 %v10410_v9, %v1619_v34 }
 0x2b8   : > { %8602 = vrot.lane.b32.xlu2 %v8606_v63, %s9470_s12 }
 0x2b9   : > { %14864 = vst [vmem:[#allocation14_spill] sm:$0xff] %v10612_v46 }
 0x2bd   : > { %v10513_v36 = vpop.f32.mrf.mxu0 }
 0x2be   : > { %1908 = vrot.lane.b32.xlu1 %v10479_v53, %s9468_s4  ;;  %1884 = vrot.lane.b32.xlu0 %v10479_v53, %s9470_s12  ;;  %14856 = vst [vmem:[#allocation6_spill] sm:$0xff] %v10513_v36  ;;  %v1622_v54 = vpop.f32.mrf.mxu1 }
 0x2bf   : > { %v10617_v63 = vadd.f32 %v10410_v9, %v1622_v54 }
 0x2c0   : > { %1860 = vrot.lane.b32.xlu2 %v10479_v53, %s9469_s30 }
 0x2c1   : > { %14865 = vst [vmem:[#allocation15_spill] sm:$0xff] %v10617_v63 }
 0x2c5   : > { %v10534_v41 = vpop.f32.mrf.mxu0 }
 0x2c6   : > { %1738 = vrot.lane.b32.xlu1 %v10492_v5, %s9470_s12  ;;  %1722 = vrot.lane.b32.xlu0 %v10492_v5, %s9469_s30  ;;  %v1624_v2 = vpop.f32.mrf.mxu1 }
 0x2c7   : > { %v10605_v10 = vadd.f32 %v10410_v9, %v1624_v2  ;;  %v8646_v2 = vpack.i.bf16 %v10612_v46, %v10621_v50 }
 0x2c8   : > { %1754 = vrot.lane.b32.xlu2 %v10492_v5, %s9468_s4 }
 0x2c9   : > { %14863 = vst [vmem:[#allocation13_spill] sm:$0xff] %v10605_v10  ;;  %v8656_v61 = vpack.i.bf16 %v10605_v10, %v10617_v63 }
 0x2ca   : > { %v10502_v56 = vpop.permute.xlu2 %1714 }
 0x2cd   : > { %v10546_v8 = vpop.f32.mrf.mxu0 }
 0x2ce   : > { %1862 = vrot.lane.b32.xlu1 %v10505_v28, %s9469_s30  ;;  %1910 = vrot.lane.b32.xlu0 %v10505_v28, %s9468_s4  ;;  %14858 = vst [vmem:[#allocation8_spill] sm:$0xff] %v10546_v8  ;;  %v1627_v42 = vpop.f32.mrf.mxu1 }
 0x2d0   : > { %1886 = vrot.lane.b32.xlu2 %v10505_v28, %s9470_s12 }
 0x2d2   : > { %v10515_v25 = vpop.permute.xlu2 %1730 }
 0x2d5   : > { %v10565_v43 = vpop.f32.mrf.mxu0 }
 0x2d6   : > { %1756 = vrot.lane.b32.xlu1 %v10518_v15, %s9468_s4  ;;  %1740 = vrot.lane.b32.xlu0 %v10518_v15, %s9470_s12  ;;  %14859 = vst [vmem:[#allocation9_spill] sm:$0xff] %v10565_v43  ;;  %v1629_v51 = vpop.f32.mrf.mxu1 }
 0x2d7   : > { %v10645_v62 = vadd.f32 %v10410_v9, %v1629_v51 }
 0x2d8   : > { %1724 = vrot.lane.b32.xlu2 %v10518_v15, %s9469_s30 }
 0x2d9   : > { %14871 = vst [vmem:[#allocation21_spill] sm:$0xff] %v10645_v62 }
 0x2da   : > { %v10529_v1 = vpop.permute.xlu2 %1854 }
 0x2db   : > { %14857 = vst [vmem:[#allocation7_spill] sm:$0xff] %v10529_v1 }
 0x2dd   : > { %v10597_v55 = vpop.f32.mrf.mxu0 }
 0x2de   : > { %8617 = vrot.lane.b32.xlu1 %v8616_v44, %s9470_s12  ;;  %8622 = vrot.lane.b32.xlu0 %v8616_v44, %s9468_s4  ;;  %14862 = vst [vmem:[#allocation12_spill] sm:$0xff] %v10597_v55  ;;  %v1632_v0 = vpop.f32.mrf.mxu1 }
 0x2df   : > { %v10650_v48 = vadd.f32 %v10410_v9, %v1632_v0 }
 0x2e0   : > { %8612 = vrot.lane.b32.xlu2 %v8616_v44, %s9469_s30 }
 0x2e1   : > { %14872 = vst [vmem:[#allocation22_spill] sm:$0xff] %v10650_v48 }
 0x2e2   : > { %v10541_v40 = vpop.permute.xlu2 %1748  ;;  %v10554_v35 = vpop.permute.xlu0 %1746 }
 0x2e5   : > { %v10629_v44 = vpop.f32.mrf.mxu0 }
 0x2e6   : > { %1888 = vrot.lane.b32.xlu1 %v10544_v31, %s9470_s12  ;;  %1864 = vrot.lane.b32.xlu0 %v10544_v31, %s9469_s30  ;;  %14868 = vst [vmem:[#allocation18_spill] sm:$0xff] %v10629_v44  ;;  %v1634_v34 = vpop.f32.mrf.mxu1  ;;  %v10653_v44 = vadd.f32 %v10410_v9, %v1627_v42 }
 0x2e7   : > { %v10638_v59 = vadd.f32 %v10410_v9, %v1634_v34 }
 0x2e8   : > { %1912 = vrot.lane.b32.xlu2 %v10544_v31, %s9468_s4  ;;  %14873 = vst [vmem:[#allocation23_spill] sm:$0xff] %v10653_v44  ;;  %v10659_v34 = vpack.i.bf16 %v10645_v62, %v10653_v44  ;;  %v10683_v44 = vadd.f32 %v10377_v20, %v10498_v33 }
 0x2e9   : > { %14869 = vst [vmem:[#allocation19_spill] sm:$0xff] %v10638_v59  ;;  %v8681_v55 = vpack.i.bf16 %v10638_v59, %v10650_v48 }
 0x2ea   : > { %v10556_v49 = vpop.permute.xlu2 %8592  ;;  %14874 = vst [vmem:[#allocation24_spill] sm:$0xff] %v10659_v34 }
 0x2eb   : > { %14876 = vst [vmem:[#allocation26_spill] sm:$0xff] %v10683_v44 }
 0x2ee   : > { %1726 = vrot.lane.b32.xlu1 %v10559_v13, %s9469_s30  ;;  %1758 = vrot.lane.b32.xlu0 %v10559_v13, %s9468_s4  ;;  %v1666_v51 = vpop.f32.mrf.mxu0 }
 0x2ef   : > { %v10670_v42 = vadd.f32 %v10391_v60, %v1666_v51 }
 0x2f0   : > { %1742 = vrot.lane.b32.xlu2 %v10559_v13, %s9470_s12  ;;  %v10569_v37 = vpop.permute.xlu1 %1902  ;;  %v10571_v39 = vpop.permute.xlu0 %1878 }
 0x2f1   : > { %14860 = vst [vmem:[#allocation10_spill] sm:$0xff] %v10571_v39 }
 0x2f2   : > { %v10573_v4 = vpop.permute.xlu2 %1880 }
 0x2f3   : > { %14861 = vst [vmem:[#allocation11_spill] sm:$0xff] %v10573_v4 }
 0x2f6   : > { %1744 = vrot.lane.b32.xlu1 %v10576_v22, %s9470_s12  ;;  %1728 = vrot.lane.b32.xlu0 %v10576_v22, %s9469_s30  ;;  %v1668_v62 = vpop.f32.mrf.mxu0 }
 0x2f7   : > { %v10686_v51 = vadd.f32 %v10391_v60, %v1668_v62 }
 0x2f8   : > { %1760 = vrot.lane.b32.xlu2 %v10576_v22, %s9468_s4  ;;  %v10587_v14 = vpop.permute.xlu1 %1732  ;;  %v10589_v27 = vpop.permute.xlu0 %1716 }
 0x2fa   : > { %v10591_v32 = vpop.permute.xlu2 %1906 }
 0x2fe   : > { %8627 = vrot.lane.b32.xlu1 %v8626_v30, %s9469_s30  ;;  %8632 = vrot.lane.b32.xlu0 %v8626_v30, %s9470_s12 }
 0x300   : > { %8637 = vrot.lane.b32.xlu2 %v8626_v30, %s9468_s4  ;;  %v10607_v6 = vpop.permute.xlu1 %8582  ;;  %v10609_v7 = vpop.permute.xlu0 %8587 }
 0x302   : > { %v10614_v24 = vpop.permute.xlu2 %1720 }
 0x306   : > { %4151 = vrot.lane.b32.xlu1 %v10625_v12, %s9468_s4  ;;  %8657 = vrot.lane.b32.xlu0 %v8656_v61, %s9470_s12  ;;  %v10717_v12 = vadd.f32 %v10377_v20, %v10534_v41  ;;  %v8590_v41 = vunpack.i.h.bf16 %v10609_v7 }
 0x308   : > { %8647 = vrot.lane.b32.xlu2 %v8646_v2, %s9469_s30  ;;  %v10640_v45 = vpop.permute.xlu1 %1856  ;;  %v10642_v54 = vpop.permute.xlu0 %1904  ;;  %14883 = vst [vmem:[#allocation33_spill] sm:$0xff] %v10717_v12 }
 0x309   : > { %14870 = vst [vmem:[#allocation20_spill] sm:$0xff] %v10640_v45 }
 0x30a   : > { %v10647_v30 = vpop.permute.xlu2 %1736 }
 0x30e   : > { %8642 = vrot.lane.b32.xlu1 %v8646_v2, %s9470_s12  ;;  %8682 = vrot.lane.b32.xlu0 %v8681_v55, %s9470_s12 }
 0x310   : > { %8672 = vrot.lane.b32.xlu2 %v10659_v34, %s9470_s12  ;;  %v10665_v0 = vpop.permute.xlu1 %1718  ;;  %v10667_v10 = vpop.permute.xlu0 %1734 }
 0x312   : > { %v8603_v9 = vpop.permute.xlu2 %8602 }
 0x313   : > { %v8605_v39 = vunpack.i.h.bf16 %v8603_v9 }
 0x316   : > { %8652 = vrot.lane.b32.xlu1 %v8646_v2, %s9468_s4  ;;  %1898 = vrot.lane.b32.xlu0 %v10670_v42, %s9468_s4 }
 0x318   : > { %8677 = vrot.lane.b32.xlu2 %v10659_v34, %s9469_s30  ;;  %v10677_v59 = vpop.permute.xlu1 %1750  ;;  %v10679_v48 = vpop.permute.xlu0 %1858 }
 0x319   : > { %14875 = vst [vmem:[#allocation25_spill] sm:$0xff] %v10679_v48 }
 0x31a   : > { %v10688_v63 = vpop.permute.xlu2 %1860 }
 0x31b   : > { %14877 = vst [vmem:[#allocation27_spill] sm:$0xff] %v10688_v63 }
 0x31e   : > { %4137 = vrot.lane.b32.xlu1 %v10683_v44, %s9470_s12  ;;  %1852 = vrot.lane.b32.xlu0 %v10686_v51, %s9469_s30 }
 0x320   : > { %8687 = vrot.lane.b32.xlu2 %v8681_v55, %s9469_s30  ;;  %v10695_v2 = vpop.permute.xlu1 %1882  ;;  %v10697_v46 = vpop.permute.xlu0 %1752 }
 0x321   : > { %14878 = vst [vmem:[#allocation28_spill] sm:$0xff] %v10695_v2  ;;  %v8594_v2 = vunpack.i.l.bf16 %v10556_v49 }
 0x322   : > { %14879 = vst [vmem:[#allocation29_spill] sm:$0xff] %v10697_v46  ;;  %v10700_v33 = vpop.permute.xlu2 %1754 }
 0x323   : > { %14880 = vst [vmem:[#allocation30_spill] sm:$0xff] %v10700_v33 }
 0x326   : > { %8662 = vrot.lane.b32.xlu1 %v8656_v61, %s9469_s30 }
 0x328   : > { %1874 = vrot.lane.b32.xlu2 %v10670_v42, %s9470_s12  ;;  %v8608_v60 = vpop.permute.xlu1 %8607  ;;  %v10704_v62 = vpop.permute.xlu0 %8597 }
 0x32a   : > { %v10713_v44 = vpop.permute.xlu2 %1886 }
 0x32b   : > { %14882 = vst [vmem:[#allocation32_spill] sm:$0xff] %v10713_v44 }
 0x32e   : > { %8667 = vrot.lane.b32.xlu1 %v8656_v61, %s9468_s4  ;;  %v8589_v61 = vunpack.i.l.bf16 %v10609_v7 }
 0x330   : > { %1900 = vrot.lane.b32.xlu2 %v10686_v51, %s9468_s4  ;;  %v10709_v50 = vpop.permute.xlu1 %1908  ;;  %v10711_v36 = vpop.permute.xlu0 %1884  ;;  %v8717_v44 = vpack.i.bf16 %v8594_v2, %v8589_v61  ;;  %v8604_v2 = vunpack.i.l.bf16 %v8603_v9 }
 0x331   : > { %14881 = vst [vmem:[#allocation31_spill] sm:$0xff] %v10711_v36 }
 0x332   : > { %v10726_v8 = vpop.permute.xlu2 %1724 }
 0x336   : > { %4125 = vrot.lane.b32.xlu1 %v10717_v12, %s9469_s30  ;;  %v8595_v12 = vunpack.i.h.bf16 %v10556_v49 }
 0x338   : > { %v10721_v34 = vpop.permute.xlu0 %1722  ;;  %v10723_v43 = vpop.permute.xlu1 %1738  ;;  %v8719_v4 = vpack.i.bf16 %v8595_v12, %v8590_v41 }
 0x339   : > { %14884 = vst [vmem:[#allocation34_spill] sm:$0xff] %v10723_v43 }
 0x33a   : > { %v10736_v63 = vpop.permute.xlu2 %8612 }
 0x33e   : > { %8692 = vrot.lane.b32.xlu1 %v8681_v55, %s9468_s4  ;;  %v8609_v55 = vunpack.i.l.bf16 %v8608_v60 }
 0x340   : > { %v10730_v36 = vpop.permute.xlu0 %1910  ;;  %8718 = vxpose.xlu0.b32.start [1/8] (short) (narrow) %v8717_v44, 8  ;;  %v10733_v20 = vpop.permute.xlu1 %1862  ;;  %v8721_v7 = vpack.i.bf16 %v8609_v55, %v8604_v2 }
 0x341   : > { %14885 = vst [vmem:[#allocation35_spill] sm:$0xff] %v10733_v20  ;;  %v8610_v20 = vunpack.i.h.bf16 %v8608_v60 }
 0x342   : > { %v10746_v44 = vpop.permute.xlu2 %1912 }
 0x343   : > { %v8723_v45 = vpack.i.bf16 %v8610_v20, %v8605_v39 }
 0x346   : > { %1850 = vrot.lane.b32.xlu1 %v10670_v42, %s9469_s30 }
 0x348   : > { %v10740_v48 = vpop.permute.xlu0 %1740  ;;  %8720 = vxpose.xlu0.b32.cont [2/8] (short) (narrow) %v8719_v4, 8  ;;  %v10742_v61 = vpop.permute.xlu1 %1756 }
 0x349   : > { %14886 = vst [vmem:[#allocation36_spill] sm:$0xff] %v10740_v48 }
 0x34a   : > { %14887 = vst [vmem:[#allocation37_spill] sm:$0xff] %v10742_v61  ;;  %v10750_v4 = vpop.permute.xlu2 %1742 }
 0x34b   : > { %14889 = vst [vmem:[#allocation39_spill] sm:$0xff] %v10750_v4 }
 0x34e   : > { %1876 = vrot.lane.b32.xlu1 %v10686_v51, %s9470_s12 }
 0x350   : > { %v8623_v49 = vpop.permute.xlu0 %8622  ;;  %8722 = vxpose.xlu0.b32.cont [3/8] (short) (narrow) %v8721_v7, 8  ;;  %v8618_v1 = vpop.permute.xlu1 %8617 }
 0x351   : > { %v8619_v41 = vunpack.i.l.bf16 %v8618_v1  ;;  %v8624_v48 = vunpack.i.l.bf16 %v8623_v49  ;;  %v8620_v55 = vunpack.i.h.bf16 %v8618_v1  ;;  %v8625_v2 = vunpack.i.h.bf16 %v8623_v49 }
 0x352   : > { %v10754_v43 = vpop.permute.xlu2 %1760  ;;  %v8584_v1 = vunpack.i.l.bf16 %v10607_v6  ;;  %v8585_v49 = vunpack.i.h.bf16 %v10607_v6 }
 0x353   : > { %v8725_v61 = vpack.i.bf16 %v8624_v48, %v8619_v41  ;;  %v8727_v7 = vpack.i.bf16 %v8625_v2, %v8620_v55 }
 0x354   : > { %v8698_v2 = vpack.i.bf16 %v8585_v49, %v10419_v52  ;;  %v8614_v52 = vunpack.i.l.bf16 %v10736_v63 }
 0x358   : > { %v10748_v12 = vpop.permute.xlu0 %1864  ;;  %8724 = vxpose.xlu0.b32.cont [4/8] (short) (narrow) %v8723_v45, 8  ;;  %v10758_v41 = vpop.permute.xlu1 %1888 }
 0x359   : > { %14888 = vst [vmem:[#allocation38_spill] sm:$0xff] %v10748_v12 }
 0x35a   : > { %v8638_v20 = vpop.permute.xlu2 %8637 }
 0x35b   : > { %v8639_v9 = vunpack.i.l.bf16 %v8638_v20  ;;  %v8640_v46 = vunpack.i.h.bf16 %v8638_v20 }
 0x360   : > { %v10752_v33 = vpop.permute.xlu0 %1758  ;;  %8726 = vxpose.xlu0.b32.cont [5/8] (short) (narrow) %v8725_v61, 8  ;;  %v8696_v61 = vpack.i.bf16 %v8584_v1, %v10422_v26  ;;  %v10764_v55 = vpop.permute.xlu1 %1726  ;;  %v8600_v26 = vunpack.i.h.bf16 %v10704_v62 }
 0x362   : > { %v8648_v6 = vpop.permute.xlu2 %8647 }
 0x368   : > { %v10756_v60 = vpop.permute.xlu0 %1728  ;;  %8728 = vxpose.xlu0.b32.cont [6/8] (short) (narrow) %v8727_v7, 8 }
 0x36a   : > { %v8673_v20 = vpop.permute.xlu2 %8672 }
 0x370   : > { %v8633_v39 = vpop.permute.xlu0 %8632 }
 0x371   : > { %v8634_v45 = vunpack.i.l.bf16 %v8633_v39  ;;  %v8635_v4 = vunpack.i.h.bf16 %v8633_v39 }
 0x373   : > { %v8729_v12 = vpack.i.bf16 %v8639_v9, %v8634_v45  ;;  %v8731_v48 = vpack.i.bf16 %v8640_v46, %v8635_v4  ;;  %v10769_v46 = vpop.permute.xlu1 %1744 }
 0x375   : > { %8730 = vxpose.xlu0.b32.cont [7/8] (short) (narrow) %v8729_v12, 8  ;;  %v8599_v12 = vunpack.i.l.bf16 %v10704_v62 }
 0x377   : > { %v8700_v4 = vpack.i.bf16 %v8599_v12, %v10471_v11  ;;  %v8615_v11 = vunpack.i.h.bf16 %v10736_v63  ;;  %v8650_v12 = vunpack.i.h.bf16 %v8648_v6 }
 0x378   : > { %v8658_v9 = vpop.permute.xlu0 %8657 }
 0x37b   : > { %v8628_v7 = vpop.permute.xlu1 %8627 }
 0x37c   : > { %v8629_v62 = vunpack.i.l.bf16 %v8628_v7 }
 0x37d   : > { %8732 = vxpose.xlu0.b32.end [8/8] (short) (narrow) %v8731_v48, 8 }
 0x380   : > { %v8683_v1 = vpop.permute.xlu0 %8682 }
 0x383   : > { %8697 = vxpose.xlu1.b32.start [1/8] (short) (narrow) %v8696_v61, 8  ;;  %v10778_v39 = vpop.permute.xlu1 %4151 }
 0x385   : > { %2664 = vxpose.xlu0.b32.start [1/8] (short) (narrow) %v10670_v42, 8  ;;  %v8702_v42 = vpack.i.bf16 %v8600_v26, %v10468_v57  ;;  %v8678_v57 = vpop.permute.xlu2 %8677 }
 0x388   : > { %v1899_v49 = vpop.permute.xlu0 %1898 }
 0x38b   : > { %8699 = vxpose.xlu1.b32.cont [2/8] (short) (narrow) %v8698_v2, 8  ;;  %v8643_v45 = vpop.permute.xlu1 %8642 }
 0x38d   : > { %2665 = vxpose.xlu0.b32.cont [2/8] (short) (narrow) %v10686_v51, 8  ;;  %v8704_v51 = vpack.i.bf16 %v8614_v52, %v10532_v29  ;;  %v8630_v29 = vunpack.i.h.bf16 %v8628_v7  ;;  %v8688_v48 = vpop.permute.xlu2 %8687  ;;  %v8659_v7 = vunpack.i.l.bf16 %v8658_v9 }
 0x393   : > { %8701 = vxpose.xlu1.b32.cont [3/8] (short) (narrow) %v8700_v4, 8  ;;  %v10786_v63 = vpop.permute.xlu1 %8652 }
 0x395   : > { %2666 = vxpose.xlu0.b32.cont [3/8] (short) (narrow) %v10394_v16, 8  ;;  %v8706_v16 = vpack.i.bf16 %v8615_v11, %v10527_v19  ;;  %v8644_v19 = vunpack.i.l.bf16 %v8643_v45  ;;  %v10790_v61 = vpop.permute.xlu2 %1874 }
 0x39b   : > { %8703 = vxpose.xlu1.b32.cont [4/8] (short) (narrow) %v8702_v42, 8  ;;  %v10792_v2 = vpop.permute.xlu1 %4137 }
 0x39d   : > { %2667 = vxpose.xlu0.b32.cont [4/8] (short) (narrow) %v10430_v17, 8  ;;  %v8708_v17 = vpack.i.bf16 %v8629_v62, %v10595_v38  ;;  %v1901_v4 = vpop.permute.xlu2 %1900  ;;  %v8674_v62 = vunpack.i.l.bf16 %v8673_v20 }
 0x3a3   : > { %8705 = vxpose.xlu1.b32.cont [5/8] (short) (narrow) %v8704_v51, 8  ;;  %v8663_v42 = vpop.permute.xlu1 %8662  ;;  %v8660_v51 = vunpack.i.h.bf16 %v8658_v9 }
 0x3a4   : > { %v8665_v52 = vunpack.i.h.bf16 %v8663_v42 }
 0x3a5   : > { %2668 = vxpose.xlu0.b32.cont [5/8] (short) (narrow) %v10442_v23, 8  ;;  %v8710_v23 = vpack.i.bf16 %v8630_v29, %v10585_v3  ;;  %v8664_v3 = vunpack.i.l.bf16 %v8663_v42 }
 0x3a6   : > { %v8744_v11 = vpack.i.bf16 %v8665_v52, %v8660_v51  ;;  %v14898_v52 = vld [vmem:[#allocation20_spill] sm:$0xff]  ;;  %v14899_v51 = vld [vmem:[#allocation10_spill] sm:$0xff] }
 0x3ab   : > { %8707 = vxpose.xlu1.b32.cont [6/8] (short) (narrow) %v8706_v16, 8  ;;  %v8679_v16 = vunpack.i.l.bf16 %v8678_v57 }
 0x3ad   : > { %2669 = vxpose.xlu0.b32.cont [6/8] (short) (narrow) %v10479_v53, 8  ;;  %v8649_v53 = vunpack.i.l.bf16 %v8648_v6  ;;  %v8746_v6 = vpack.i.bf16 %v8679_v16, %v8674_v62 }
 0x3af   : > { %v8738_v38 = vpack.i.bf16 %v8649_v53, %v8644_v19  ;;  %v10799_v19 = vpop.permute.xlu1 %8667  ;;  %v8690_v53 = vunpack.i.h.bf16 %v8688_v48 }
 0x3b3   : > { %8709 = vxpose.xlu1.b32.cont [7/8] (short) (narrow) %v8708_v17, 8  ;;  %v8675_v17 = vunpack.i.h.bf16 %v8673_v20 }
 0x3b5   : > { %2670 = vxpose.xlu0.b32.cont [7/8] (short) (narrow) %v10505_v28, 8  ;;  %v8645_v28 = vunpack.i.h.bf16 %v8643_v45  ;;  %v8680_v45 = vunpack.i.h.bf16 %v8678_v57 }
 0x3b7   : > { %v8740_v26 = vpack.i.bf16 %v8650_v12, %v8645_v28  ;;  %v8748_v29 = vpack.i.bf16 %v8680_v45, %v8675_v17  ;;  %v10802_v57 = vpop.permute.xlu1 %4125  ;;  %v14900_v17 = vld [vmem:[#allocation25_spill] sm:$0xff] }
 0x3b8   : > { %14890 = vst [vmem:[#allocation40_spill] sm:$0xff] %v10802_v57 }
 0x3bb   : > { %8711 = vxpose.xlu1.b32.end [8/8] (short) (narrow) %v8710_v23, 8  ;;  %v8689_v23 = vunpack.i.l.bf16 %v8688_v48 }
 0x3bd   : > { %2671 = vxpose.xlu0.b32.end [8/8] (short) (narrow) %v10544_v31, 8  ;;  %v8742_v31 = vpack.i.bf16 %v8664_v3, %v8659_v7  ;;  %v14897_v7 = vld [vmem:[#allocation7_spill] sm:$0xff] }
 0x3bf   : > { %v10804_v20 = vpop.permute.xlu1 %8692 }
 0x3c3   : > { %2760 = vxpose.xlu1.b32.start [1/8] (short) (narrow) %v1899_v49, 8 }
 0x3c5   : > { %8739 = vxpose.xlu0.b32.start [1/8] (short) (narrow) %v8738_v38, 8 }
 0x3cb   : > { %2761 = vxpose.xlu1.b32.cont [2/8] (short) (narrow) %v1901_v4, 8 }
 0x3cd   : > { %8741 = vxpose.xlu0.b32.cont [2/8] (short) (narrow) %v8740_v26, 8 }
 0x3d3   : > { %2762 = vxpose.xlu1.b32.cont [3/8] (short) (narrow) %v10569_v37, 8  ;;  %v8684_v37 = vunpack.i.l.bf16 %v8683_v1 }
 0x3d5   : > { %8743 = vxpose.xlu0.b32.cont [3/8] (short) (narrow) %v8742_v31, 8  ;;  %v8750_v9 = vpack.i.bf16 %v8689_v23, %v8684_v37 }
 0x3db   : > { %2763 = vxpose.xlu1.b32.cont [4/8] (short) (narrow) %v10642_v54, 8  ;;  %v8685_v54 = vunpack.i.h.bf16 %v8683_v1 }
 0x3dd   : > { %8745 = vxpose.xlu0.b32.cont [4/8] (short) (narrow) %v8744_v11, 8 }
 0x3e3   : > { %2764 = vxpose.xlu1.b32.cont [5/8] (short) (narrow) %v10591_v32, 8  ;;  %v8752_v32 = vpack.i.bf16 %v8690_v53, %v8685_v54  ;;  %v14902_v53 = vld [vmem:[#allocation27_spill] sm:$0xff] }
 0x3e5   : > { %8747 = vxpose.xlu0.b32.cont [5/8] (short) (narrow) %v8746_v6, 8 }
 0x3eb   : > { %2765 = vxpose.xlu1.b32.cont [6/8] (short) (narrow) %v10709_v50, 8  ;;  %v10806_v50 = vpop.permute.xlu1 %1850 }
 0x3ed   : > { %8749 = vxpose.xlu0.b32.cont [6/8] (short) (narrow) %v8748_v29, 8  ;;  %v14901_v29 = vld [vmem:[#allocation11_spill] sm:$0xff] }
 0x3f3   : > { %2766 = vxpose.xlu1.b32.cont [7/8] (short) (narrow) %v10730_v36, 8  ;;  %v10808_v49 = vpop.permute.xlu1 %1876 }
 0x3f5   : > { %8751 = vxpose.xlu0.b32.cont [7/8] (short) (narrow) %v8750_v9, 8 }
 0x3fb   : > { %2767 = vxpose.xlu1.b32.end [8/8] (short) (narrow) %v10746_v44, 8  ;;  %v10818_v44 = vpop.permute.xlu0 %1852 }
 0x3fd   : > { %8753 = vxpose.xlu0.b32.end [8/8] (short) (narrow) %v8752_v32, 8  ;;  %v14903_v32 = vld [vmem:[#allocation28_spill] sm:$0xff] }
 0x427   : > { %v8712_v38 = vpop.trf.xlu1 }
 0x428   : > { %v8713_v36 = vunpack.i.l.bf16 %v8712_v38  ;;  %v8716_v28 = vunpack.i.h.bf16 %v8712_v38 }
 0x42a   : > { %2082 = vmatpush.msra.mxu0 %v8713_v36  ;;  %2139 = vmatpush.msra.mxu3 %v8716_v28  ;;  %v14904_v28 = vld [vmem:[#allocation35_spill] sm:$0xff] }
 0x42b   : > { %8305 = vmatmul.msk.f32.vlgmr.msra.gmra.mxu0 %vm2050_vm7, %v10380_v47  ;;  %8313 = vmatmul.msk.f32.vlgmr.msra.gmra.mxu3 %vm2050_vm7, %v10502_v56  ;;  %v8733_v47 = vpop.trf.xlu0 }
 0x42c   : > { %v8734_v56 = vunpack.i.l.bf16 %v8733_v47 }
 0x42e   : > { %2196 = vmatpush.msrb.mxu3 %v8734_v56 }
 0x433   : > { %8306 = vmatmul.msk.f32.gmra.mxu0 %vm2050_vm7, %v10403_v21  ;;  %8314 = vmatmul.msk.f32.gmra.mxu3 %vm2050_vm7, %v10589_v27  ;;  %v8737_v21 = vunpack.i.h.bf16 %v8733_v47  ;;  %v10920_v54 = vpop.trf.xlu0 }
 0x435   : > { %2253 = vmatpush.msrb.mxu0 %v8737_v21  ;;  %v14906_v21 = vld [vmem:[#allocation38_spill] sm:$0xff] }
 0x43b   : > { %8307 = vmatmul.msk.f32.gmra.mxu0 %vm2050_vm7, %v10439_v18  ;;  %8315 = vmatmul.msk.f32.gmra.mxu3 %vm2050_vm7, %v10665_v0  ;;  %v14891_v18 = vld [vmem:[#allocation29_spill] sm:$0xff] }
 0x443   : > { %8308 = vmatmul.msk.f32.gmra.mxu0 %vm2050_vm7, %v10451_v58  ;;  %8316 = vmatmul.msk.f32.gmra.mxu3 %vm2050_vm7, %v10614_v24  ;;  %v14892_v58 = vld [vmem:[#allocation34_spill] sm:$0xff] }
 0x44b   : > { %8309 = vmatmul.msk.f32.gmra.mxu0 %vm2050_vm7, %v10492_v5  ;;  %8317 = vmatmul.msk.f32.gmra.mxu3 %vm2050_vm7, %v10721_v34  ;;  %v14893_v5 = vld [vmem:[#allocation30_spill] sm:$0xff] }
 0x453   : > { %8310 = vmatmul.msk.f32.gmra.mxu0 %vm2050_vm7, %v10518_v15  ;;  %8318 = vmatmul.msk.f32.gmra.mxu3 %vm2050_vm7, %v10726_v8  ;;  %v14895_v15 = vld [vmem:[#allocation37_spill] sm:$0xff] }
 0x45b   : > { %8311 = vmatmul.msk.f32.gmra.mxu0 %vm2050_vm7, %v10559_v13  ;;  %8319 = vmatmul.msk.f32.gmra.mxu3 %vm2050_vm7, %v10764_v55 }
 0x463   : > { %8312 = vmatmul.msk.f32.gmra.mxu0 %vm2050_vm7, %v10576_v22  ;;  %8320 = vmatmul.msk.f32.gmra.mxu3 %vm2050_vm7, %v10756_v60 }
 0x469   : > { %v10928_v36 = vpop.trf.xlu0 }
 0x46b   : > { %8321 = vmatmul.msk.f32.vlgmr.msrb.gmra.mxu3 %vm2050_vm7, %v10515_v25  ;;  %8329 = vmatmul.msk.f32.vlgmr.msrb.gmra.mxu0 %vm2050_vm7, %v10554_v35  ;;  %v14894_v25 = vld [vmem:[#allocation36_spill] sm:$0xff] }
 0x473   : > { %8322 = vmatmul.msk.f32.gmra.mxu3 %vm2050_vm7, %v10587_v14  ;;  %8330 = vmatmul.msk.f32.gmra.mxu0 %vm2050_vm7, %v10541_v40  ;;  %v14896_v40 = vld [vmem:[#allocation39_spill] sm:$0xff] }
 0x47b   : > { %8323 = vmatmul.msk.f32.gmra.mxu3 %vm2050_vm7, %v10667_v10  ;;  %8331 = vmatmul.msk.f32.gmra.mxu0 %vm2050_vm7, %v10677_v59 }
 0x483   : > { %8324 = vmatmul.msk.f32.gmra.mxu3 %vm2050_vm7, %v10647_v30  ;;  %8332 = vmatmul.msk.f32.gmra.mxu0 %vm2050_vm7, %v14891_v18  ;;  %v14907_v18 = vld [vmem:[#allocation32_spill] sm:$0xff] }
 0x48b   : > { %8325 = vmatmul.msk.f32.gmra.mxu3 %vm2050_vm7, %v14892_v58  ;;  %8333 = vmatmul.msk.f32.gmra.mxu0 %vm2050_vm7, %v14893_v5  ;;  %v14908_v58 = vld [vmem:[#allocation8_spill] sm:$0xff]  ;;  %v14909_v5 = vld [vmem:[#allocation5_spill] sm:$0xff] }
 0x493   : > { %8326 = vmatmul.msk.f32.gmra.mxu3 %vm2050_vm7, %v14894_v25  ;;  %8334 = vmatmul.msk.f32.gmra.mxu0 %vm2050_vm7, %v14895_v15  ;;  %v10941_v25 = vadd.f32 %v14909_v5, %v14908_v58  ;;  %v14911_v15 = vld [vmem:[#allocation33_spill] sm:$0xff] }
 0x495   : > { %14910 = vst [vmem:[#allocation29_spill] sm:$0xff] %v10941_v25 }
 0x49b   : > { %8327 = vmatmul.msk.f32.gmra.mxu3 %vm2050_vm7, %v14896_v40  ;;  %8335 = vmatmul.msk.f32.gmra.mxu0 %vm2050_vm7, %v10752_v33  ;;  %v14912_v40 = vld [vmem:[#allocation9_spill] sm:$0xff] }
 0x4a3   : > { %8328 = vmatmul.msk.f32.gmra.mxu3 %vm2050_vm7, %v10769_v46  ;;  %8336 = vmatmul.msk.f32.gmra.mxu0 %vm2050_vm7, %v10754_v43 }
 0x4a8   : > { %v2084_v8 = vpop.f32.mrf.mxu0 }
 0x4a9   : > { %v2279_v35 = vmul.f32 0.35355338, %v2084_v8  ;;  %v10949_v8 = vadd.f32 %v14909_v5, %v14912_v40  ;;  %v8654_v40 = vunpack.i.l.bf16 %v10786_v63 }
 0x4ab   : > { %v2312_v13 = vsel %vm2311_vm8, %v2279_v35, -inf }
 0x4ac   : > { %2313 = vmax.xlane.f32.xlu2 %v2312_v13 }
 0x4ae   : > { %v2141_v16 = vpop.f32.mrf.mxu3 }
 0x4b0   : > { %v2087_v22 = vpop.f32.mrf.mxu0 }
 0x4b1   : > { %v10877_v14 = vmul.f32 0.35355338, %v2087_v22 }
 0x4b3   : > { %v2315_v27 = vsel %vm2311_vm8, %v10877_v14, -inf }
 0x4b4   : > { %2316 = vmax.xlane.f32.xlu2 %v2315_v27 }
 0x4b6   : > { %v2144_v37 = vpop.f32.mrf.mxu3 }
 0x4b8   : > { %v2090_v10 = vpop.f32.mrf.mxu0 }
 0x4b9   : > { %v10881_v24 = vmul.f32 0.35355338, %v2090_v10 }
 0x4bb   : > { %v2318_v59 = vsel %vm2311_vm8, %v10881_v24, -inf }
 0x4bc   : > { %2319 = vmax.xlane.f32.xlu2 %v2318_v59 }
 0x4be   : > { %v2147_v38 = vpop.f32.mrf.mxu3 }
 0x4bf   : > { %v10932_v47 = vmul.f32 0.35355338, %v2147_v38  ;;  %v14916_v38 = vld [vmem:[#allocation6_spill] sm:$0xff] }
 0x4c0   : > { %v2093_v43 = vpop.f32.mrf.mxu0 }
 0x4c1   : > { %v10885_v30 = vmul.f32 0.35355338, %v2093_v43  ;;  %v2342_v56 = vsel %vm2311_vm8, %v10932_v47, -inf }
 0x4c3   : > { %v2321_v34 = vsel %vm2311_vm8, %v10885_v30, -inf }
 0x4c4   : > { %2322 = vmax.xlane.f32.xlu2 %v2321_v34 }
 0x4c8   : > { %v2096_v0 = vpop.f32.mrf.mxu0 }
 0x4c9   : > { %v10889_v33 = vmul.f32 0.35355338, %v2096_v0 }
 0x4cb   : > { %v2324_v60 = vsel %vm2311_vm8, %v10889_v33, -inf }
 0x4cc   : > { %2325 = vmax.xlane.f32.xlu2 %v2324_v60 }
 0x4d0   : > { %v2099_v55 = vpop.f32.mrf.mxu0 }
 0x4d1   : > { %v10893_v46 = vmul.f32 0.35355338, %v2099_v55 }
 0x4d3   : > { %v2327_v48 = vsel %vm2311_vm8, %v10893_v46, -inf }
 0x4d4   : > { %2328 = vmax.xlane.f32.xlu2 %v2327_v48 }
 0x4d8   : > { %v2102_v1 = vpop.f32.mrf.mxu0 }
 0x4d9   : > { %v10897_v12 = vmul.f32 0.35355338, %v2102_v1 }
 0x4db   : > { %v2330_v4 = vsel %vm2311_vm8, %v10897_v12, -inf }
 0x4dc   : > { %2331 = vmax.xlane.f32.xlu2 %v2330_v4 }
 0x4e0   : > { %v2105_v26 = vpop.f32.mrf.mxu0 }
 0x4e1   : > { %v10901_v42 = vmul.f32 0.35355338, %v2105_v26 }
 0x4e3   : > { %v2333_v3 = vsel %vm2311_vm8, %v10901_v42, -inf }
 0x4e4   : > { %2334 = vmax.xlane.f32.xlu0 %v2333_v3 }
 0x4e8   : > { %v10910_v31 = vpop.f32.mrf.mxu0 }
 0x4f0   : > { %v2258_v6 = vpop.f32.mrf.mxu0 }
 0x4f8   : > { %v2261_v9 = vpop.f32.mrf.mxu0 }
 0x500   : > { %v10961_v10 = vpop.f32.mrf.mxu0 }
 0x505   : > { %2696 = vxpose.xlu2.b32.start [1/8] (short) (narrow) %v10806_v50, 8  ;;  %v10924_v50 = vmul.f32 0.35355338, %v2261_v9  ;;  %v14914_v9 = vld [vmem:[#allocation17_spill] sm:$0xff] }
 0x508   : > { %v10966_v0 = vpop.f32.mrf.mxu0 }
 0x50d   : > { %2697 = vxpose.xlu2.b32.cont [2/8] (short) (narrow) %v10818_v44, 8  ;;  %2728 = vxpose.xlu0.b32.start [1/8] (short) (narrow) %v10790_v61, 8  ;;  %v14905_v44 = vld [vmem:[#allocation31_spill] sm:$0xff] }
 0x510   : > { %v2270_v1 = vpop.f32.mrf.mxu0 }
 0x511   : > { %v10976_v26 = vmul.f32 0.35355338, %v2270_v1 }
 0x515   : > { %2698 = vxpose.xlu2.b32.cont [3/8] (short) (narrow) %v14897_v7, 8  ;;  %2729 = vxpose.xlu0.b32.cont [2/8] (short) (narrow) %v10808_v49, 8  ;;  %v2390_v49 = vsel %vm2311_vm8, %v10924_v50, -inf }
 0x51d   : > { %2699 = vxpose.xlu2.b32.cont [4/8] (short) (narrow) %v14898_v52, 8  ;;  %2730 = vxpose.xlu0.b32.cont [3/8] (short) (narrow) %v14899_v51, 8  ;;  %v10984_v52 = vmul.f32 0.35355338, %v2141_v16  ;;  %v11000_v16 = vmul.f32 0.35355338, %v2144_v37 }
 0x51e   : > { %v11017_v37 = vld [vmem:[%s9608_s0] ss:$0 sm:$0xff]  ;;  %s9473_s0 = smov 24  }
 0x51f   : > { %v2314_v11 = vpop.xlane.xlu2 %2313  ;;  %v2336_v51 = vsel %vm2311_vm8, %v10984_v52, -inf }
 0x520   : > { %v2408_v62 = vsub.f32 %v2279_v35, %v2314_v11 }
 0x522   : > { %v2440_v45 = vmul.f32 1.442695, %v2408_v62  ;;  %v10992_v62 = vmul.f32 0.35355338, %v2258_v6  ;;  %v2339_v6 = vsel %vm2311_vm8, %v11000_v16, -inf }
 0x524   : > { %9117 = vpow2.f32 %v2440_v45  ;;  %v14913_v45 = vld [vmem:[#allocation24_spill] sm:$0xff] }
 0x525   : > { %2700 = vxpose.xlu2.b32.cont [5/8] (short) (narrow) %v14900_v17, 8  ;;  %2731 = vxpose.xlu0.b32.cont [4/8] (short) (narrow) %v14901_v29, 8  ;;  %v2387_v17 = vsel %vm2311_vm8, %v10992_v62, -inf }
 0x527   : > { %v10953_v35 = vpop.xlane.xlu2 %2316 }
 0x52a   : > { %v10916_v61 = vpop.eup %9117 }
 0x52b   : > { %v2504_v23 = vsel %vm2311_vm8, %v10916_v61, 0.0 }
 0x52c   : > { %2505 = vadd.xlane.f32.xlu1 %v2504_v23 }
 0x52d   : > { %2701 = vxpose.xlu2.b32.cont [6/8] (short) (narrow) %v14902_v53, 8  ;;  %2732 = vxpose.xlu0.b32.cont [5/8] (short) (narrow) %v14903_v32, 8  ;;  %v14915_v32 = vld [vmem:[#allocation26_spill] sm:$0xff] }
 0x52f   : > { %v10957_v13 = vpop.xlane.xlu2 %2319 }
 0x534   : > { %2391 = vmax.xlane.f32.xlu1 %v2390_v49 }
 0x535   : > { %2702 = vxpose.xlu2.b32.cont [7/8] (short) (narrow) %v14904_v28, 8  ;;  %2733 = vxpose.xlu0.b32.cont [6/8] (short) (narrow) %v14905_v44, 8  ;;  %v11021_v28 = vadd.f32 %v11017_v37, %v14916_v38  ;;  %v8669_v38 = vunpack.i.l.bf16 %v10799_v19 }
 0x537   : > { %v2323_v27 = vpop.xlane.xlu2 %2322  ;;  %14917 = vst [vmem:[#allocation34_spill] sm:$0xff] %v11021_v28 }
 0x538   : > { %v2411_v59 = vsub.f32 %v10885_v30, %v2323_v27  ;;  %v2399_v30 = vsel %vm2311_vm8, %v10976_v26, -inf }
 0x53a   : > { %v2446_v34 = vmul.f32 1.442695, %v2411_v59 }
 0x53c   : > { %2343 = vmax.xlane.f32.xlu1 %v2342_v56  ;;  %9119 = vpow2.f32 %v2446_v34 }
 0x53d   : > { %2703 = vxpose.xlu2.b32.end [8/8] (short) (narrow) %v14906_v21, 8  ;;  %2734 = vxpose.xlu0.b32.cont [7/8] (short) (narrow) %v14907_v18, 8 }
 0x53f   : > { %v11002_v29 = vpop.xlane.xlu2 %2325 }
 0x542   : > { %v10970_v55 = vpop.eup %9119 }
 0x543   : > { %v2513_v48 = vsel %vm2311_vm8, %v10970_v55, 0.0 }
 0x545   : > { %2735 = vxpose.xlu0.b32.end [8/8] (short) (narrow) %v10758_v41, 8  ;;  %v10955_v41 = vpop.f32.mrf.mxu3 }
 0x547   : > { %v11010_v53 = vpop.xlane.xlu2 %2328 }
 0x548   : > { %v2413_v57 = vsub.f32 %v10893_v46, %v11010_v53 }
 0x54d   : > { %v10959_v22 = vpop.f32.mrf.mxu3 }
 0x54f   : > { %v2332_v44 = vpop.xlane.xlu2 %2331 }
 0x550   : > { %v2414_v21 = vsub.f32 %v10897_v12, %v2332_v44  ;;  %v8655_v12 = vunpack.i.h.bf16 %v10786_v63  ;;  %v8670_v63 = vunpack.i.h.bf16 %v10799_v19 }
 0x552   : > { %v2452_v18 = vmul.f32 1.442695, %v2414_v21  ;;  %v14920_v21 = vld [vmem:[#allocation15_spill] sm:$0xff] }
 0x554   : > { %9121 = vpow2.f32 %v2452_v18  ;;  %v8768_v18 = vpack.i.bf16 %v8669_v38, %v14920_v21  ;;  %v14924_v38 = vld [vmem:[#allocation21_spill] sm:$0xff] }
 0x555   : > { %4127 = vrot.lane.b32.xlu1 %v10941_v25, %s9469_s30  ;;  %v10964_v43 = vpop.f32.mrf.mxu3 }
 0x55a   : > { %v11030_v5 = vpop.eup %9121 }
 0x55b   : > { %v2522_v27 = vsel %vm2311_vm8, %v11030_v5, 0.0 }
 0x55d   : > { %4157 = vrot.lane.b32.xlu1 %v14911_v15, %s9468_s4  ;;  %v10968_v60 = vpop.f32.mrf.mxu3 }
 0x565   : > { %4145 = vrot.lane.b32.xlu1 %v10949_v8, %s9470_s12  ;;  %v10974_v4 = vpop.f32.mrf.mxu3 }
 0x56d   : > { %v10980_v3 = vpop.f32.mrf.mxu3 }
 0x575   : > { %v10982_v7 = vpop.f32.mrf.mxu3 }
 0x57d   : > { %v10988_v11 = vpop.f32.mrf.mxu3 }
 0x585   : > { %v11004_v23 = vpop.f32.mrf.mxu3 }
 0x58d   : > { %v11014_v49 = vpop.f32.mrf.mxu3 }
 0x58f   : > { %2514 = vadd.xlane.f32.xlu1 %v2513_v48  ;;  %v14918_v48 = vld [vmem:[#allocation16_spill] sm:$0xff] }
 0x590   : > { %v8764_v1 = vpack.i.bf16 %v8654_v40, %v14918_v48  ;;  %v14921_v40 = vld [vmem:[#allocation13_spill] sm:$0xff] }
 0x595   : > { %v11025_v56 = vpop.f32.mrf.mxu3 }
 0x597   : > { %2400 = vmax.xlane.f32.xlu1 %v2399_v30 }
 0x59d   : > { %v11028_v58 = vpop.f32.mrf.mxu3 }
 0x5a5   : > { %v2219_v59 = vpop.f32.mrf.mxu3 }
 0x5a6   : > { %v11035_v34 = vmul.f32 0.35355338, %v2219_v59  ;;  %v2335_v59 = vpop.xlane.xlu0 %2334 }
 0x5a8   : > { %v2381_v30 = vsel %vm2311_vm8, %v11035_v34, -inf }
 0x5ae   : > { %2337 = vmax.xlane.f32.xlu2 %v2336_v51  ;;  %v14919_v51 = vld [vmem:[#allocation14_spill] sm:$0xff] }
 0x5b0   : > { %4129 = vrot.lane.b32.xlu1 %v10949_v8, %s9469_s30 }
 0x5b1   : > { %v11051_v48 = vpop.trf.xlu0 }
 0x5b2   : > { %14922 = vst [vmem:[#allocation30_spill] sm:$0xff] %v11051_v48 }
 0x5b3   : > { %8760 = vrot.lane.b32.xlu0 %v14913_v45, %s9468_s4  ;;  %v8766_v45 = vpack.i.bf16 %v8655_v12, %v14919_v51  ;;  %v14923_v51 = vld [vmem:[#allocation23_spill] sm:$0xff] }
 0x5b6   : > { %2388 = vmax.xlane.f32.xlu2 %v2387_v17  ;;  %v8755_v17 = vunpack.i.l.bf16 %v10928_v36 }
 0x5b8   : > { %4159 = vrot.lane.b32.xlu1 %v10941_v25, %s9468_s4  ;;  %4600 = vmatpush.msra.mxu3 %v8755_v17 }
 0x5bb   : > { %4119 = vrot.lane.b32.xlu0 %v14914_v9, %s9469_s30 }
 0x5be   : > { %2340 = vmax.xlane.f32.xlu2 %v2339_v6  ;;  %v2303_v6 = vmul.f32 0.35355338, %v10910_v31  ;;  %v2409_v31 = vsub.f32 %v10877_v14, %v10953_v35  ;;  %v11063_v14 = vmul.f32 0.35355338, %v10961_v10  ;;  %v14925_v35 = vld [vmem:[#allocation22_spill] sm:$0xff] }
 0x5c0   : > { %v2384_v44 = vsel %vm2311_vm8, %v2303_v6, -inf }
 0x5c3   : > { %4121 = vrot.lane.b32.xlu0 %v14915_v32, %s9469_s30 }
 0x5cb   : > { %4139 = vrot.lane.b32.xlu0 %v11021_v28, %s9470_s12 }
 0x5e2   : > { %2523 = vadd.xlane.f32.xlu1 %v2522_v27  ;;  %v8770_v27 = vpack.i.bf16 %v8670_v63, %v14921_v40  ;;  %v2393_v40 = vsel %vm2311_vm8, %v11063_v14, -inf }
 0x5e7   : > { %8765 = vxpose.xlu2.b32.start [1/8] (short) (narrow) %v8764_v1, 8  ;;  %v2442_v1 = vmul.f32 1.442695, %v2409_v31  ;;  %v14926_v31 = vld [vmem:[#allocation19_spill] sm:$0xff] }
 0x5e9   : > { %9123 = vpow2.f32 %v2442_v1 }
 0x5ea   : > { %2382 = vmax.xlane.f32.xlu1 %v2381_v30 }
 0x5ef   : > { %8767 = vxpose.xlu2.b32.cont [2/8] (short) (narrow) %v8766_v45, 8  ;;  %v11056_v17 = vpop.eup %9123 }
 0x5f0   : > { %v2507_v21 = vsel %vm2311_vm8, %v11056_v17, 0.0 }
 0x5f5   : > { %2385 = vmax.xlane.f32.xlu0 %v2384_v44 }
 0x5f7   : > { %8769 = vxpose.xlu2.b32.cont [3/8] (short) (narrow) %v8768_v18, 8  ;;  %v8694_v18 = vunpack.i.l.bf16 %v10804_v20 }
 0x5f9   : > { %v8776_v63 = vpack.i.bf16 %v8694_v18, %v14925_v35 }
 0x5ff   : > { %8771 = vxpose.xlu2.b32.cont [4/8] (short) (narrow) %v8770_v27, 8  ;;  %v8695_v27 = vunpack.i.h.bf16 %v10804_v20  ;;  %v2412_v20 = vsub.f32 %v10889_v33, %v11002_v29  ;;  %v2415_v33 = vsub.f32 %v10901_v42, %v2335_v59 }
 0x601   : > { %v8778_v1 = vpack.i.bf16 %v8695_v27, %v14926_v31  ;;  %v2448_v35 = vmul.f32 1.442695, %v2412_v20 }
 0x609   : > { %4123 = vrot.lane.b32.xlu0 %v11021_v28, %s9469_s30 }
 0x625   : > { %v8761_v12 = vpop.permute.xlu0 %8760 }
 0x626   : > { %v8762_v30 = vunpack.i.l.bf16 %v8761_v12  ;;  %v8763_v19 = vunpack.i.h.bf16 %v8761_v12  ;;  %v11070_v12 = vpop.trf.xlu2 }
 0x628   : > { %v8772_v45 = vpack.i.bf16 %v8762_v30, %v14923_v51  ;;  %v8774_v44 = vpack.i.bf16 %v8763_v19, %v14924_v38  ;;  %v11082_v38 = vpop.trf.xlu1 }
 0x629   : > { %14929 = vst [vmem:[#allocation39_spill] sm:$0xff] %v11082_v38  ;;  %v2450_v38 = vmul.f32 1.442695, %v2413_v57 }
 0x62a   : > { %8773 = vxpose.xlu2.b32.cont [5/8] (short) (narrow) %v8772_v45, 8 }
 0x62d   : > { %v11072_v30 = vpop.permute.xlu0 %4119 }
 0x62e   : > { %14927 = vst [vmem:[#allocation36_spill] sm:$0xff] %v11072_v30  ;;  %v11076_v10 = vpop.xlane.xlu2 %2337 }
 0x630   : > { %v11087_v31 = vpop.xlane.xlu1 %2505 }
 0x632   : > { %8775 = vxpose.xlu2.b32.cont [6/8] (short) (narrow) %v8774_v44, 8 }
 0x633   : > { %2508 = vadd.xlane.f32.xlu0 %v2507_v21 }
 0x635   : > { %v11078_v51 = vpop.permute.xlu0 %4121 }
 0x636   : > { %14928 = vst [vmem:[#allocation37_spill] sm:$0xff] %v11078_v51  ;;  %v2389_v45 = vpop.xlane.xlu2 %2388 }
 0x638   : > { %v11100_v20 = vpop.xlane.xlu1 %2391 }
 0x63a   : > { %8777 = vxpose.xlu2.b32.cont [7/8] (short) (narrow) %v8776_v63, 8 }
 0x63b   : > { %2394 = vmax.xlane.f32.xlu0 %v2393_v40 }
 0x63d   : > { %v11080_v19 = vpop.permute.xlu0 %4139 }
 0x63e   : > { %v2341_v44 = vpop.xlane.xlu2 %2340 }
 0x63f   : > { %v2417_v63 = vsub.f32 %v11000_v16, %v2341_v44  ;;  %v2454_v44 = vmul.f32 1.442695, %v2415_v33 }
 0x641   : > { %v2458_v27 = vmul.f32 1.442695, %v2417_v63 }
 0x642   : > { %8779 = vxpose.xlu2.b32.end [8/8] (short) (narrow) %v8778_v1, 8 }
 0x64f   : > { %4153 = vrot.lane.b32.xlu0 %v14915_v32, %s9468_s4 }
 0x668   : > { %v2386_v21 = vpop.xlane.xlu0 %2385 }
 0x669   : > { %v2432_v18 = vsub.f32 %v2303_v6, %v2386_v21  ;;  %v2273_v6 = vpop.f32.mrf.mxu0 }
 0x66a   : > { %v11102_v21 = vmul.f32 0.35355338, %v2273_v6 }
 0x66b   : > { %v2488_v40 = vmul.f32 1.442695, %v2432_v18 }
 0x66c   : > { %v2402_v42 = vsel %vm2311_vm8, %v11102_v21, -inf }
 0x66d   : > { %9125 = vpow2.f32 %v2488_v40 }
 0x66e   : > { %9127 = vpow2.f32 %v2448_v35  ;;  %v2344_v35 = vpop.xlane.xlu1 %2343 }
 0x66f   : > { %9129 = vpow2.f32 %v2458_v27  ;;  %v2418_v40 = vsub.f32 %v10932_v47, %v2344_v35 }
 0x670   : > { %9131 = vpow2.f32 %v2454_v44 }
 0x671   : > { %v2460_v33 = vmul.f32 1.442695, %v2418_v40 }
 0x673   : > { %v11089_v1 = vpop.eup %9125 }
 0x674   : > { %v2576_v32 = vsel %vm2311_vm8, %v11089_v1, 0.0  ;;  %v11093_v48 = vpop.eup %9127 }
 0x675   : > { %2577 = vadd.xlane.f32.xlu1 %v2576_v32  ;;  %v2516_v16 = vsel %vm2311_vm8, %v11093_v48, 0.0  ;;  %v11098_v29 = vpop.eup %9129  ;;  %v2433_v32 = vsub.f32 %v10992_v62, %v2389_v45 }
 0x676   : > { %v2531_v18 = vsel %vm2311_vm8, %v11098_v29, 0.0  ;;  %v9132_v63 = vpop.eup %9131  ;;  %v11134_v40 = vpop.permute.xlu1 %4127 }
 0x677   : > { %v2490_v59 = vmul.f32 1.442695, %v2433_v32  ;;  %v2525_v27 = vsel %vm2311_vm8, %v9132_v63, 0.0  ;;  %14931 = vst [vmem:[#allocation20_spill] sm:$0xff] %v11134_v40 }
 0x679   : > { %2517 = vadd.xlane.f32.xlu0 %v2516_v16  ;;  %9133 = vpow2.f32 %v2490_v59 }
 0x67a   : > { %9135 = vpow2.f32 %v2460_v33 }
 0x67b   : > { %v11119_v44 = vpop.permute.xlu0 %4123 }
 0x67c   : > { %14930 = vst [vmem:[#allocation7_spill] sm:$0xff] %v11119_v44 }
 0x67d   : > { %2532 = vadd.xlane.f32.xlu1 %v2531_v18 }
 0x67f   : > { %v11111_v16 = vpop.eup %9133 }
 0x680   : > { %v2579_v62 = vsel %vm2311_vm8, %v11111_v16, 0.0  ;;  %v11115_v45 = vpop.eup %9135 }
 0x681   : > { %2403 = vmax.xlane.f32.xlu0 %v2402_v42  ;;  %v2534_v6 = vsel %vm2311_vm8, %v11115_v45, 0.0 }
 0x689   : > { %2526 = vadd.xlane.f32.xlu0 %v2525_v27 }
 0x691   : > { %2580 = vadd.xlane.f32.xlu0 %v2579_v62  ;;  %v2410_v62 = vsub.f32 %v10881_v24, %v10957_v13  ;;  %v11159_v24 = vmul.f32 0.35355338, %v10955_v41  ;;  %v11173_v41 = vmul.f32 0.35355338, %v10959_v22 }
 0x693   : > { %v2345_v13 = vsel %vm2311_vm8, %v11159_v24, -inf  ;;  %v2348_v44 = vsel %vm2311_vm8, %v11173_v41, -inf }
 0x699   : > { %2535 = vadd.xlane.f32.xlu0 %v2534_v6  ;;  %v2444_v6 = vmul.f32 1.442695, %v2410_v62 }
 0x6a6   : > { %v11121_v47 = vpop.xlane.xlu0 %2508 }
 0x6ab   : > { %4135 = vrot.lane.b32.xlu2 %v14914_v9, %s9470_s12  ;;  %v11168_v9 = vmul.f32 0.35355338, %v10966_v0 }
 0x6ae   : > { %v2395_v18 = vpop.xlane.xlu0 %2394 }
 0x6af   : > { %v2435_v32 = vsub.f32 %v11063_v14, %v2395_v18  ;;  %v11138_v14 = vpop.permute.xlu1 %4157 }
 0x6b1   : > { %v2494_v42 = vmul.f32 1.442695, %v2435_v32 }
 0x6b3   : > { %9137 = vpow2.f32 %v2494_v42  ;;  %4141 = vrot.lane.b32.xlu2 %v14911_v15, %s9470_s12  ;;  %v11148_v42 = vpop.trf.xlu2 }
 0x6b4   : > { %9139 = vpow2.f32 %v2444_v6 }
 0x6b7   : > { %v4146_v27 = vpop.permute.xlu1 %4145 }
 0x6b9   : > { %v11128_v59 = vpop.eup %9137 }
 0x6ba   : > { %v2585_v35 = vsel %vm2311_vm8, %v11128_v59, 0.0 }
 0x6bb   : > { %4155 = vrot.lane.b32.xlu2 %v11021_v28, %s9468_s4  ;;  %2586 = vadd.xlane.f32.xlu1 %v2585_v35  ;;  %v11150_v35 = vpop.eup %9139 }
 0x6bf   : > { %v11140_v33 = vpop.xlane.xlu1 %2514 }
 0x6c1   : > { %v11146_v32 = vpop.permute.xlu0 %4153 }
 0x6c3   : > { %4143 = vrot.lane.b32.xlu2 %v10941_v25, %s9470_s12  ;;  %v2510_v25 = vsel %vm2311_vm8, %v11150_v35, 0.0 }
 0x6c7   : > { %v11144_v18 = vpop.xlane.xlu1 %2400 }
 0x6cf   : > { %v11152_v15 = vpop.permute.xlu1 %4129 }
 0x6d0   : > { %14932 = vst [vmem:[#allocation10_spill] sm:$0xff] %v11152_v15  ;;  %v2396_v15 = vsel %vm2311_vm8, %v11168_v9, -inf }
 0x6d7   : > { %v11163_v62 = vpop.permute.xlu1 %4159 }
 0x6ec   : > { %2511 = vadd.xlane.f32.xlu2 %v2510_v25  ;;  %v11156_v28 = vpop.xlane.xlu0 %2517  ;;  %v2524_v25 = vpop.xlane.xlu1 %2523 }
 0x6f4   : > { %2346 = vmax.xlane.f32.xlu2 %v2345_v13  ;;  %v11165_v6 = vpop.xlane.xlu0 %2403 }
 0x6fc   : > { %2397 = vmax.xlane.f32.xlu2 %v2396_v15  ;;  %v2527_v40 = vpop.xlane.xlu0 %2526  ;;  %v11182_v15 = vmul.f32 0.35355338, %v10964_v43  ;;  %v11197_v43 = vmul.f32 0.35355338, %v10968_v60  ;;  %v11210_v60 = vmul.f32 0.35355338, %v10974_v4 }
 0x6fd   : > { %9141 = vrcp.f32 %v2527_v40  ;;  %v11216_v40 = vmul.f32 0.35355338, %v10980_v3  ;;  %v11231_v3 = vmul.f32 0.35355338, %v11004_v23 }
 0x6fe   : > { %9143 = vrcp.f32 %v2524_v25  ;;  %v2351_v46 = vsel %vm2311_vm8, %v11182_v15, -inf }
 0x6ff   : > { %9145 = vpow2.f32 %v2450_v38  ;;  %v2276_v38 = vpop.f32.mrf.mxu0  ;;  %v2360_v25 = vsel %vm2311_vm8, %v11216_v40, -inf }
 0x703   : > { %v9142_v13 = vpop.eup %9141 }
 0x704   : > { %v2639_v0 = vmul.f32 %v9142_v13, %v9132_v63  ;;  %2349 = vmax.xlane.f32.xlu2 %v2348_v44  ;;  %v9144_v51 = vpop.eup %9143  ;;  %v11221_v13 = vmul.f32 0.35355338, %v10982_v7  ;;  %v11236_v7 = vmul.f32 0.35355338, %v11014_v49 }
 0x705   : > { %v4136_v30 = vpop.permute.xlu2 %4135  ;;  %v2638_v22 = vmul.f32 %v9144_v51, %v11030_v5  ;;  %v11190_v57 = vpop.eup %9145  ;;  %v2354_v51 = vsel %vm2311_vm8, %v11197_v43, -inf }
 0x706   : > { %8337 = vmatpush.xpose.msk.msra.mxu0 %vm2311_vm8, %v2639_v0  ;;  %8389 = vmatmul.msk.f32.vlgmr.msra.gmra.mxu3 %vm2050_vm7, %v4136_v30  ;;  %v2519_v30 = vsel %vm2311_vm8, %v11190_v57, 0.0  ;;  %v2363_v4 = vsel %vm2311_vm8, %v11221_v13, -inf  ;;  %v11226_v0 = vmul.f32 0.35355338, %v10988_v11  ;;  %v11241_v11 = vmul.f32 0.35355338, %v11025_v56 }
 0x708   : > { %v2375_v23 = vsel %vm2311_vm8, %v11241_v11, -inf }
 0x70a   : > { %8338 = vmatpush.xpose.msk.msra.mxu0 %vm2311_vm8, %v2638_v22  ;;  %v2369_v22 = vsel %vm2311_vm8, %v11231_v3, -inf }
 0x70c   : > { %2352 = vmax.xlane.f32.xlu2 %v2351_v46  ;;  %v2372_v46 = vsel %vm2311_vm8, %v11236_v7, -inf }
 0x70d   : > { %v4142_v53 = vpop.permute.xlu2 %4141 }
 0x70e   : > { %8390 = vmatmul.msk.f32.gmra.mxu3 %vm2050_vm7, %v10792_v2  ;;  %v11204_v2 = vmul.f32 0.35355338, %v2276_v38  ;;  %v2434_v38 = vsub.f32 %v10924_v50, %v11100_v20  ;;  %v2437_v20 = vsub.f32 %v10976_v26, %v11144_v18 }
 0x710   : > { %v2405_v63 = vsel %vm2311_vm8, %v11204_v2, -inf }
 0x714   : > { %2520 = vadd.xlane.f32.xlu2 %v2519_v30 }
 0x715   : > { %v11199_v5 = vpop.permute.xlu2 %4155 }
 0x716   : > { %8391 = vmatmul.msk.f32.gmra.mxu3 %vm2050_vm7, %v11080_v19  ;;  %v2357_v19 = vsel %vm2311_vm8, %v11210_v60, -inf }
 0x71c   : > { %2355 = vmax.xlane.f32.xlu2 %v2354_v51  ;;  %v11248_v51 = vmul.f32 0.35355338, %v11028_v58 }
 0x71d   : > { %v4144_v44 = vpop.permute.xlu2 %4143 }
 0x71e   : > { %8392 = vmatmul.msk.f32.gmra.mxu3 %vm2050_vm7, %v4142_v53  ;;  %v2416_v53 = vsub.f32 %v10984_v52, %v11076_v10  ;;  %v2378_v56 = vsel %vm2311_vm8, %v11248_v51, -inf }
 0x720   : > { %v2456_v30 = vmul.f32 1.442695, %v2416_v53 }
 0x722   : > { %9147 = vpow2.f32 %v2456_v30 }
 0x724   : > { %2406 = vmax.xlane.f32.xlu2 %v2405_v63  ;;  %v2492_v63 = vmul.f32 1.442695, %v2434_v38 }
 0x726   : > { %8393 = vmatmul.msk.f32.gmra.mxu3 %vm2050_vm7, %v4144_v44  ;;  %9149 = vpow2.f32 %v2492_v63 }
 0x728   : > { %v11256_v10 = vpop.eup %9147 }
 0x729   : > { %v2528_v58 = vsel %vm2311_vm8, %v11256_v10, 0.0 }
 0x72c   : > { %2358 = vmax.xlane.f32.xlu2 %v2357_v19 }
 0x72e   : > { %8394 = vmatmul.msk.f32.gmra.mxu3 %vm2050_vm7, %v4146_v27  ;;  %v2366_v27 = vsel %vm2311_vm8, %v11226_v0, -inf }
 0x734   : > { %2361 = vmax.xlane.f32.xlu2 %v2360_v25 }
 0x73c   : > { %2364 = vmax.xlane.f32.xlu2 %v2363_v4  ;;  %v11261_v4 = vpop.eup %9149 }
 0x744   : > { %2367 = vmax.xlane.f32.xlu2 %v2366_v27  ;;  %v2438_v27 = vsub.f32 %v11102_v21, %v11165_v6 }
 0x746   : > { %v2500_v53 = vmul.f32 1.442695, %v2438_v27 }
 0x74c   : > { %2370 = vmax.xlane.f32.xlu2 %v2369_v22 }
 0x754   : > { %2373 = vmax.xlane.f32.xlu2 %v2372_v46  ;;  %v2498_v46 = vmul.f32 1.442695, %v2437_v20 }
 0x75c   : > { %2376 = vmax.xlane.f32.xlu2 %v2375_v23 }
 0x75f   : > { %v11250_v49 = vpop.xlane.xlu2 %2511 }
 0x764   : > { %2379 = vmax.xlane.f32.xlu2 %v2378_v56 }
 0x767   : > { %v2347_v52 = vpop.xlane.xlu2 %2346 }
 0x768   : > { %v2419_v44 = vsub.f32 %v11159_v24, %v2347_v52  ;;  %v2582_v24 = vsel %vm2311_vm8, %v11261_v4, 0.0 }
 0x76a   : > { %v2462_v19 = vmul.f32 1.442695, %v2419_v44 }
 0x76c   : > { %2529 = vadd.xlane.f32.xlu2 %v2528_v58  ;;  %9151 = vpow2.f32 %v2462_v19 }
 0x76f   : > { %v2398_v25 = vpop.xlane.xlu2 %2397 }
 0x770   : > { %v2436_v50 = vsub.f32 %v11168_v9, %v2398_v25 }
 0x772   : > { %v2496_v22 = vmul.f32 1.442695, %v2436_v50  ;;  %v11270_v30 = vpop.eup %9151 }
 0x773   : > { %v2537_v18 = vsel %vm2311_vm8, %v11270_v30, 0.0 }
 0x774   : > { %9153 = vpow2.f32 %v2496_v22  ;;  %2583 = vadd.xlane.f32.xlu2 %v2582_v24 }
 0x775   : > { %9155 = vpow2.f32 %v2498_v46 }
 0x776   : > { %9157 = vpow2.f32 %v2500_v53 }
 0x777   : > { %v2350_v23 = vpop.xlane.xlu2 %2349 }
 0x778   : > { %v2420_v9 = vsub.f32 %v11173_v41, %v2350_v23 }
 0x77a   : > { %v11273_v38 = vpop.eup %9153  ;;  %v2464_v26 = vmul.f32 1.442695, %v2420_v9 }
 0x77b   : > { %v2588_v21 = vsel %vm2311_vm8, %v11273_v38, 0.0  ;;  %v11279_v6 = vpop.eup %9155 }
 0x77c   : > { %9159 = vpow2.f32 %v2464_v26  ;;  %2589 = vadd.xlane.f32.xlu0 %v2588_v21  ;;  %2538 = vadd.xlane.f32.xlu2 %v2537_v18  ;;  %v11281_v63 = vpop.eup %9157  ;;  %v2591_v58 = vsel %vm2311_vm8, %v11279_v6, 0.0 }
 0x77d   : > { %v2594_v19 = vsel %vm2311_vm8, %v11281_v63, 0.0 }
 0x77f   : > { %v2353_v56 = vpop.xlane.xlu2 %2352 }
 0x780   : > { %v2421_v41 = vsub.f32 %v11182_v15, %v2353_v56 }
 0x782   : > { %v11284_v52 = vpop.eup %9159  ;;  %v2466_v44 = vmul.f32 1.442695, %v2421_v41 }
 0x783   : > { %v2540_v25 = vsel %vm2311_vm8, %v11284_v52, 0.0 }
 0x784   : > { %9161 = vpow2.f32 %v2466_v44  ;;  %2592 = vadd.xlane.f32.xlu0 %v2591_v58  ;;  %2595 = vadd.xlane.f32.xlu2 %v2594_v19  ;;  %v8784_v19 = vunpack.i.h.bf16 %v11148_v42 }
 0x785   : > { %2541 = vadd.xlane.f32.xlu1 %v2540_v25 }
 0x787   : > { %v2521_v50 = vpop.xlane.xlu2 %2520 }
 0x788   : > { %9163 = vrcp.f32 %v2521_v50 }
 0x789   : > { %9165 = vrcp.f32 %v11156_v28 }
 0x78a   : > { %v11292_v20 = vpop.eup %9161  ;;  %9167 = vrcp.f32 %v11140_v33 }
 0x78b   : > { %v2543_v15 = vsel %vm2311_vm8, %v11292_v20, 0.0  ;;  %9169 = vrcp.f32 %v11250_v49 }
 0x78c   : > { %2544 = vadd.xlane.f32.xlu0 %v2543_v15 }
 0x78e   : > { %v9164_v27 = vpop.eup %9163 }
 0x78f   : > { %v2356_v22 = vpop.xlane.xlu2 %2355  ;;  %v2637_v24 = vmul.f32 %v9164_v27, %v11190_v57  ;;  %v9166_v46 = vpop.eup %9165 }
 0x790   : > { %v2422_v53 = vsub.f32 %v11197_v43, %v2356_v22  ;;  %v2636_v28 = vmul.f32 %v9166_v46, %v11093_v48  ;;  %v9168_v9 = vpop.eup %9167 }
 0x791   : > { %8339 = vmatpush.xpose.msk.msra.mxu0 %vm2311_vm8, %v2637_v24  ;;  %v2635_v26 = vmul.f32 %v9168_v9, %v10970_v55  ;;  %v9170_v57 = vpop.eup %9169 }
 0x792   : > { %v2468_v23 = vmul.f32 1.442695, %v2422_v53  ;;  %v2634_v18 = vmul.f32 %v9170_v57, %v11150_v35 }
 0x794   : > { %9171 = vpow2.f32 %v2468_v23 }
 0x795   : > { %8340 = vmatpush.xpose.msk.msra.mxu0 %vm2311_vm8, %v2636_v28  ;;  %9173 = vrcp.f32 %v11121_v47 }
 0x796   : > { %9175 = vrcp.f32 %v11087_v31 }
 0x797   : > { %v2407_v33 = vpop.xlane.xlu2 %2406 }
 0x798   : > { %v2439_v21 = vsub.f32 %v11204_v2, %v2407_v33 }
 0x799   : > { %8341 = vmatpush.xpose.msk.msra.mxu0 %vm2311_vm8, %v2635_v26 }
 0x79a   : > { %v11308_v43 = vpop.eup %9171  ;;  %v2502_v49 = vmul.f32 1.442695, %v2439_v21 }
 0x79b   : > { %v2546_v48 = vsel %vm2311_vm8, %v11308_v43, 0.0  ;;  %v9174_v56 = vpop.eup %9173 }
 0x79c   : > { %9177 = vpow2.f32 %v2502_v49  ;;  %2547 = vadd.xlane.f32.xlu2 %v2546_v48  ;;  %v2633_v47 = vmul.f32 %v9174_v56, %v11056_v17  ;;  %v9176_v2 = vpop.eup %9175  ;;  %v14933_v48 = vld [vmem:[#allocation12_spill] sm:$0xff] }
 0x79d   : > { %8342 = vmatpush.xpose.msk.msra.mxu0 %vm2311_vm8, %v2634_v18  ;;  %v2632_v35 = vmul.f32 %v9176_v2, %v10916_v61  ;;  %v11370_v18 = vadd.f32 %v11017_v37, %v14933_v48  ;;  %v14934_v2 = vld [vmem:[#allocation18_spill] sm:$0xff] }
 0x79f   : > { %v2359_v55 = vpop.xlane.xlu2 %2358 }
 0x7a0   : > { %v2423_v41 = vsub.f32 %v11210_v60, %v2359_v55  ;;  %v11378_v55 = vpop.f32.mrf.mxu2 }
 0x7a1   : > { %8343 = vmatpush.xpose.msk.msra.mxu0 %vm2311_vm8, %v2633_v47 }
 0x7a2   : > { %v11318_v31 = vpop.eup %9177  ;;  %v2470_v44 = vmul.f32 1.442695, %v2423_v41  ;;  %v11386_v41 = vadd.f32 %v11017_v37, %v14934_v2 }
 0x7a3   : > { %v2597_v58 = vsel %vm2311_vm8, %v11318_v31, 0.0 }
 0x7a4   : > { %9179 = vpow2.f32 %v2470_v44  ;;  %2598 = vadd.xlane.f32.xlu0 %v2597_v58 }
 0x7a5   : > { %8344 = vmatpush.xpose.msk.msra.mxu0 %vm2311_vm8, %v2632_v35 }
 0x7a7   : > { %v2362_v17 = vpop.xlane.xlu2 %2361 }
 0x7a8   : > { %v2424_v60 = vsub.f32 %v11216_v40, %v2362_v17  ;;  %8345 = vmatmul.msk.f32.vlgmr.msra.gmra.mxu0 %vm2311_vm8, %v10920_v54  ;;  %v1688_v58 = vpop.f32.mrf.mxu2 }
 0x7a9   : > { %4657 = vmatpush.msrb.mxu0 %v8784_v19  ;;  %v11393_v19 = vld [vmem:[%s9633_s21] ss:$0 sm:$0xff]  ;;  %s9474_s21 = smov 16  }
 0x7aa   : > { %v11328_v25 = vpop.eup %9179  ;;  %v2472_v50 = vmul.f32 1.442695, %v2424_v60  ;;  %v11396_v17 = vadd.f32 %v11393_v19, %v1688_v58  ;;  %v2383_v60 = vpop.xlane.xlu1 %2382 }
 0x7ab   : > { %v2549_v15 = vsel %vm2311_vm8, %v11328_v25, 0.0 }
 0x7ac   : > { %9181 = vpow2.f32 %v2472_v50  ;;  %2550 = vadd.xlane.f32.xlu1 %v2549_v15  ;;  %14935 = vst [vmem:[#allocation25_spill] sm:$0xff] %v11396_v17 }
 0x7af   : > { %v2365_v61 = vpop.xlane.xlu2 %2364 }
 0x7b0   : > { %v2425_v27 = vsub.f32 %v11221_v13, %v2365_v61  ;;  %8397 = vmatmul.msk.f32.vlgmr.msrb.gmra.mxu0 %vm2050_vm7, %v10778_v39 }
 0x7b2   : > { %v11335_v22 = vpop.eup %9181  ;;  %v2474_v40 = vmul.f32 1.442695, %v2425_v27  ;;  %v11405_v27 = vpop.xlane.xlu1 %2577 }
 0x7b3   : > { %v2552_v54 = vsel %vm2311_vm8, %v11335_v22, 0.0 }
 0x7b4   : > { %9183 = vpow2.f32 %v2474_v40  ;;  %2553 = vadd.xlane.f32.xlu0 %v2552_v54  ;;  %v11407_v40 = vpop.xlane.xlu0 %2580 }
 0x7b7   : > { %v2368_v24 = vpop.xlane.xlu2 %2367 }
 0x7b8   : > { %v2426_v46 = vsub.f32 %v11226_v0, %v2368_v24  ;;  %8398 = vmatmul.msk.f32.gmra.mxu0 %vm2050_vm7, %v11146_v32 }
 0x7ba   : > { %v11342_v53 = vpop.eup %9183  ;;  %v2476_v13 = vmul.f32 1.442695, %v2426_v46 }
 0x7bb   : > { %v2555_v39 = vsel %vm2311_vm8, %v11342_v53, 0.0 }
 0x7bc   : > { %9185 = vpow2.f32 %v2476_v13  ;;  %2556 = vadd.xlane.f32.xlu2 %v2555_v39  ;;  %v2536_v13 = vpop.xlane.xlu0 %2535 }
 0x7bf   : > { %v2371_v23 = vpop.xlane.xlu2 %2370 }
 0x7c0   : > { %v2427_v28 = vsub.f32 %v11231_v3, %v2371_v23  ;;  %8399 = vmatmul.msk.f32.gmra.mxu0 %vm2050_vm7, %v11199_v5 }
 0x7c2   : > { %v11349_v9 = vpop.eup %9185  ;;  %v2478_v0 = vmul.f32 1.442695, %v2427_v28  ;;  %v2431_v28 = vsub.f32 %v11035_v34, %v2383_v60 }
 0x7c3   : > { %v2558_v32 = vsel %vm2311_vm8, %v11349_v9, 0.0 }
 0x7c4   : > { %9187 = vpow2.f32 %v2478_v0  ;;  %2559 = vadd.xlane.f32.xlu1 %v2558_v32 }
 0x7c7   : > { %v2374_v33 = vpop.xlane.xlu2 %2373 }
 0x7c8   : > { %v2428_v26 = vsub.f32 %v11236_v7, %v2374_v33  ;;  %8400 = vmatmul.msk.f32.gmra.mxu0 %vm2050_vm7, %v11138_v14  ;;  %v4602_v7 = vpop.f32.mrf.mxu3  ;;  %v2486_v33 = vmul.f32 1.442695, %v2431_v28 }
 0x7c9   : > { %v11366_v14 = vmul.f32 0.35355338, %v4602_v7 }
 0x7ca   : > { %v11356_v57 = vpop.eup %9187  ;;  %v2480_v3 = vmul.f32 1.442695, %v2428_v26 }
 0x7cb   : > { %v2561_v5 = vsel %vm2311_vm8, %v11356_v57, 0.0  ;;  %v4763_v56 = vsel %vm2311_vm8, %v11366_v14, -inf }
 0x7cc   : > { %9189 = vpow2.f32 %v2480_v3  ;;  %2562 = vadd.xlane.f32.xlu0 %v2561_v5 }
 0x7cf   : > { %v11380_v47 = vpop.xlane.xlu2 %2376 }
 0x7d0   : > { %8401 = vmatmul.msk.f32.gmra.mxu0 %vm2050_vm7, %v11163_v62  ;;  %v4605_v62 = vpop.f32.mrf.mxu3 }
 0x7d2   : > { %v11362_v21 = vpop.eup %9189 }
 0x7d3   : > { %v2564_v49 = vsel %vm2311_vm8, %v11362_v21, 0.0 }
 0x7d4   : > { %2565 = vadd.xlane.f32.xlu2 %v2564_v49 }
 0x7d7   : > { %v2380_v35 = vpop.xlane.xlu2 %2379 }
 0x7d8   : > { %v11388_v44 = vpop.f32.mrf.mxu3  ;;  %v2430_v50 = vsub.f32 %v11248_v51, %v2380_v35  ;;  %v2533_v51 = vpop.xlane.xlu1 %2532  ;;  %v11438_v35 = vmul.f32 0.35355338, %v4605_v62 }
 0x7da   : > { %v2484_v61 = vmul.f32 1.442695, %v2430_v50 }
 0x7dc   : > { %4764 = vmax.xlane.f32.xlu2 %v4763_v56  ;;  %9191 = vpow2.f32 %v2484_v61 }
 0x7dd   : > { %4131 = vrot.lane.b32.xlu1 %v11370_v18, %s9469_s30  ;;  %9193 = vpow2.f32 %v2486_v33 }
 0x7df   : > { %v11403_v15 = vpop.xlane.xlu2 %2529 }
 0x7e0   : > { %4147 = vrot.lane.b32.xlu0 %v11370_v18, %s9470_s12  ;;  %v4611_v37 = vpop.f32.mrf.mxu3  ;;  %v11424_v26 = vpop.xlane.xlu1 %2586 }
 0x7e1   : > { %v11430_v49 = vmul.f32 0.35355338, %v4611_v37  ;;  %v4766_v37 = vsel %vm2311_vm8, %v11438_v35, -inf }
 0x7e2   : > { %v11417_v46 = vpop.eup %9191 }
 0x7e3   : > { %v2570_v39 = vsel %vm2311_vm8, %v11417_v46, 0.0  ;;  %v11432_v56 = vpop.eup %9193  ;;  %v4772_v2 = vsel %vm2311_vm8, %v11430_v49, -inf }
 0x7e4   : > { %v2573_v58 = vsel %vm2311_vm8, %v11432_v56, 0.0 }
 0x7e5   : > { %4161 = vrot.lane.b32.xlu1 %v10949_v8, %s9468_s4 }
 0x7e7   : > { %v11413_v24 = vpop.xlane.xlu2 %2583 }
 0x7e8   : > { %v11411_v54 = vpop.f32.mrf.mxu3 }
 0x7ed   : > { %4149 = vrot.lane.b32.xlu1 %v11386_v41, %s9470_s12 }
 0x7ef   : > { %v2539_v32 = vpop.xlane.xlu2 %2538  ;;  %v11426_v3 = vpop.xlane.xlu0 %2589 }
 0x7f0   : > { %v4617_v23 = vpop.f32.mrf.mxu3 }
 0x7f1   : > { %v11422_v0 = vmul.f32 0.35355338, %v4617_v23 }
 0x7f3   : > { %v4778_v5 = vsel %vm2311_vm8, %v11422_v0, -inf }
 0x7f4   : > { %4281 = vrot.lane.b32.xlu2 %v11396_v17, %s9470_s12 }
 0x7f5   : > { %4133 = vrot.lane.b32.xlu1 %v11386_v41, %s9469_s30 }
 0x7f7   : > { %v2596_v7 = vpop.xlane.xlu2 %2595  ;;  %v2593_v34 = vpop.xlane.xlu0 %2592 }
 0x7f8   : > { %v2542_v48 = vpop.xlane.xlu1 %2541 }
 0x7fd   : > { %4163 = vrot.lane.b32.xlu1 %v11370_v18, %s9468_s4 }
 0x7ff   : > { %v2545_v61 = vpop.xlane.xlu0 %2544 }
 0x805   : > { %4165 = vrot.lane.b32.xlu1 %v11386_v41, %s9468_s4 }
 0x80a   : > { %2571 = vadd.xlane.f32.xlu0 %v2570_v39 }
 0x80f   : > { %v2548_v60 = vpop.xlane.xlu2 %2547 }
 0x812   : > { %4779 = vmax.xlane.f32.xlu0 %v4778_v5 }
 0x81a   : > { %4773 = vmax.xlane.f32.xlu0 %v4772_v2 }
 0x81d   : > { %2574 = vadd.xlane.f32.xlu2 %v2573_v58 }
 0x81f   : > { %v2551_v50 = vpop.xlane.xlu1 %2550 }
 0x820   : > { %9195 = vrcp.f32 %v2551_v50 }
 0x821   : > { %9197 = vrcp.f32 %v2548_v60 }
 0x822   : > { %4767 = vmax.xlane.f32.xlu0 %v4766_v37  ;;  %9199 = vrcp.f32 %v2545_v61 }
 0x823   : > { %9201 = vrcp.f32 %v2542_v48  ;;  %v11453_v48 = vadd.f32 %v11393_v19, %v11378_v55 }
 0x824   : > { %9203 = vrcp.f32 %v2539_v32 }
 0x825   : > { %v11446_v5 = vpop.f32.mrf.mxu0  ;;  %9205 = vrcp.f32 %v2536_v13  ;;  %14936 = vst [vmem:[#allocation11_spill] sm:$0xff] %v11453_v48  ;;  %v2599_v13 = vpop.xlane.xlu0 %2598 }
 0x826   : > { %v9196_v39 = vpop.eup %9195  ;;  %9207 = vrcp.f32 %v2533_v51 }
 0x827   : > { %v2647_v23 = vmul.f32 %v9196_v39, %v11328_v25  ;;  %v9198_v28 = vpop.eup %9197  ;;  %9209 = vrcp.f32 %v11403_v15 }
 0x828   : > { %v2646_v62 = vmul.f32 %v9198_v28, %v11308_v43  ;;  %v9200_v33 = vpop.eup %9199  ;;  %9211 = vrcp.f32 %v2599_v13 }
 0x829   : > { %8346 = vmatpush.xpose.msk.msrb.mxu2 %vm2311_vm8, %v2647_v23  ;;  %v2645_v2 = vmul.f32 %v9200_v33, %v11292_v20  ;;  %v9202_v58 = vpop.eup %9201  ;;  %9213 = vrcp.f32 %v2596_v7 }
 0x82a   : > { %v2644_v25 = vmul.f32 %v9202_v58, %v11284_v52  ;;  %v9204_v60 = vpop.eup %9203  ;;  %v1691_v52 = vpop.f32.mrf.mxu2  ;;  %9215 = vrcp.f32 %v2593_v34 }
 0x82b   : > { %v2643_v20 = vmul.f32 %v9204_v60, %v11270_v30  ;;  %v9206_v43 = vpop.eup %9205  ;;  %v11465_v37 = vadd.f32 %v11393_v19, %v1691_v52  ;;  %9217 = vrcp.f32 %v11426_v3  ;;  %v14938_v52 = vld [vmem:[#allocation39_spill] sm:$0xff] }
 0x82c   : > { %v2642_v55 = vmul.f32 %v9206_v43, %v11115_v45  ;;  %v9208_v50 = vpop.eup %9207  ;;  %9219 = vrcp.f32 %v11424_v26 }
 0x82d   : > { %8347 = vmatpush.xpose.msk.msrb.mxu2 %vm2311_vm8, %v2646_v62  ;;  %v4659_v32 = vpop.f32.mrf.mxu0  ;;  %14937 = vst [vmem:[#allocation27_spill] sm:$0xff] %v11465_v37  ;;  %v2641_v30 = vmul.f32 %v9208_v50, %v11098_v29  ;;  %v9210_v51 = vpop.eup %9209  ;;  %9221 = vrcp.f32 %v11413_v24 }
 0x82e   : > { %v9212_v61 = vpop.eup %9211  ;;  %v11472_v15 = vpop.xlane.xlu0 %2553  ;;  %v2640_v45 = vmul.f32 %v9210_v51, %v11256_v10  ;;  %9223 = vrcp.f32 %v11407_v40  ;;  %v11506_v60 = vmul.f32 0.35355338, %v4659_v32  ;;  %v8758_v32 = vunpack.i.h.bf16 %v10928_v36  ;;  %v14939_v36 = vld [vmem:[#allocation36_spill] sm:$0xff] }
 0x82f   : > { %v2663_v23 = vmul.f32 %v9212_v61, %v11318_v31  ;;  %v9214_v28 = vpop.eup %9213  ;;  %9225 = vrcp.f32 %v11405_v27 }
 0x830   : > { %v2662_v7 = vmul.f32 %v9214_v28, %v11281_v63  ;;  %v9216_v62 = vpop.eup %9215 }
 0x831   : > { %8348 = vmatpush.xpose.msk.msrb.mxu2 %vm2311_vm8, %v2645_v2  ;;  %v2661_v31 = vmul.f32 %v9216_v62, %v11279_v6  ;;  %v9218_v33 = vpop.eup %9217  ;;  %v14942_v62 = vld [vmem:[#allocation7_spill] sm:$0xff] }
 0x832   : > { %v9220_v63 = vpop.eup %9219 }
 0x833   : > { %v2659_v26 = vmul.f32 %v9220_v63, %v11128_v59  ;;  %v9222_v6 = vpop.eup %9221  ;;  %v4787_v59 = vsel %vm2311_vm8, %v11506_v60, -inf  ;;  %v14944_v63 = vld [vmem:[#allocation40_spill] sm:$0xff] }
 0x835   : > { %4257 = vrot.lane.b32.xlu2 %v11396_v17, %s9469_s30  ;;  %8349 = vmatpush.xpose.msk.msrb.mxu2 %vm2311_vm8, %v2644_v25  ;;  %v11474_v39 = vpop.f32.mrf.mxu0  ;;  %v9224_v25 = vpop.eup %9223 }
 0x836   : > { %4279 = vrot.lane.b32.xlu0 %v11453_v48, %s9470_s12  ;;  %v2657_v40 = vmul.f32 %v9224_v25, %v11111_v16 }
 0x837   : > { %v11481_v29 = vpop.xlane.xlu1 %2559 }
 0x839   : > { %8350 = vmatpush.xpose.msk.msrb.mxu2 %vm2311_vm8, %v2643_v20  ;;  %v9226_v20 = vpop.eup %9225 }
 0x83d   : > { %8351 = vmatpush.xpose.msk.msrb.mxu2 %vm2311_vm8, %v2642_v55  ;;  %v11490_v10 = vpop.f32.mrf.mxu0 }
 0x83e   : > { %4283 = vrot.lane.b32.xlu0 %v11465_v37, %s9470_s12 }
 0x83f   : > { %v11486_v34 = vpop.xlane.xlu0 %2562 }
 0x841   : > { %8352 = vmatpush.xpose.msk.msrb.mxu2 %vm2311_vm8, %v2641_v30  ;;  %v11527_v30 = vpop.xlane.xlu2 %2556 }
 0x845   : > { %8353 = vmatpush.xpose.msk.msrb.mxu2 %vm2311_vm8, %v2640_v45  ;;  %v4668_v58 = vpop.f32.mrf.mxu0  ;;  %v1693_v45 = vpop.f32.mrf.mxu2 }
 0x846   : > { %v11515_v13 = vmul.f32 0.35355338, %v4668_v58 }
 0x848   : > { %8354 = vmatmul.msk.f32.vlgmr.msrb.gmra.mxu2 %vm2311_vm8, %v11070_v12  ;;  %v2660_v12 = vmul.f32 %v9218_v33, %v11273_v38  ;;  %v2658_v38 = vmul.f32 %v9222_v6, %v11261_v4  ;;  %v2656_v4 = vmul.f32 %v9226_v20, %v11089_v1  ;;  %v4796_v55 = vsel %vm2311_vm8, %v11515_v13, -inf }
 0x849   : > { %8364 = vmatpush.xpose.msk.msra.mxu2 %vm2311_vm8, %v2663_v23  ;;  %v11532_v61 = vpop.xlane.xlu2 %2565  ;;  %v14940_v23 = vld [vmem:[#allocation37_spill] sm:$0xff] }
 0x84d   : > { %8365 = vmatpush.xpose.msk.msra.mxu2 %vm2311_vm8, %v2662_v7  ;;  %v4671_v43 = vpop.f32.mrf.mxu0  ;;  %v11538_v7 = vadd.f32 %v11393_v19, %v1693_v45  ;;  %v1696_v33 = vpop.f32.mrf.mxu2 }
 0x84e   : > { %v11519_v16 = vmul.f32 0.35355338, %v4671_v43 }
 0x84f   : > { %v11495_v3 = vpop.permute.xlu1 %4131  ;;  %14941 = vst [vmem:[#allocation28_spill] sm:$0xff] %v11538_v7 }
 0x850   : > { %v4799_v1 = vsel %vm2311_vm8, %v11519_v16, -inf }
 0x851   : > { %8366 = vmatpush.xpose.msk.msra.mxu2 %vm2311_vm8, %v2661_v31  ;;  %v11544_v31 = vpop.xlane.xlu2 %4764 }
 0x852   : > { %v4148_v2 = vpop.permute.xlu0 %4147 }
 0x853   : > { %8395 = vmatmul.msk.f32.gmra.mxu3 %vm2050_vm7, %v4148_v2 }
 0x855   : > { %8367 = vmatpush.xpose.msk.msra.mxu2 %vm2311_vm8, %v2660_v12  ;;  %v11549_v12 = vadd.f32 %v11393_v19, %v1696_v33  ;;  %v11592_v33 = vmul.f32 0.35355338, %v11411_v54 }
 0x857   : > { %v4162_v24 = vpop.permute.xlu1 %4161  ;;  %14943 = vst [vmem:[#allocation35_spill] sm:$0xff] %v11549_v12 }
 0x858   : > { %8402 = vmatmul.msk.f32.gmra.mxu0 %vm2050_vm7, %v4162_v24  ;;  %v14946_v24 = vld [vmem:[#allocation10_spill] sm:$0xff] }
 0x859   : > { %8368 = vmatpush.xpose.msk.msra.mxu2 %vm2311_vm8, %v2659_v26  ;;  %v11555_v2 = vpop.permute.xlu2 %4281  ;;  %v14945_v26 = vld [vmem:[#allocation20_spill] sm:$0xff] }
 0x85d   : > { %8369 = vmatpush.xpose.msk.msra.mxu2 %vm2311_vm8, %v2658_v38 }
 0x85e   : > { %4788 = vmax.xlane.f32.xlu2 %v4787_v59  ;;  %v11570_v59 = vpop.f32.mrf.mxu2 }
 0x85f   : > { %v4150_v27 = vpop.permute.xlu1 %4149 }
 0x860   : > { %8396 = vmatmul.msk.f32.gmra.mxu3 %vm2050_vm7, %v4150_v27 }
 0x861   : > { %8370 = vmatpush.xpose.msk.msra.mxu2 %vm2311_vm8, %v2657_v40 }
 0x865   : > { %8371 = vmatpush.xpose.msk.msra.mxu2 %vm2311_vm8, %v2656_v4 }
 0x866   : > { %4797 = vmax.xlane.f32.xlu2 %v4796_v55  ;;  %v11572_v27 = vpop.f32.mrf.mxu2 }
 0x867   : > { %v4134_v50 = vpop.permute.xlu1 %4133 }
 0x868   : > { %8372 = vmatmul.msk.f32.vlgmr.msra.gmra.mxu2 %vm2311_vm8, %v14938_v52  ;;  %4800 = vmax.xlane.f32.xlu0 %v4799_v1 }
 0x869   : > { %4543 = vmatpush.msrb.mxu2 %v8758_v32 }
 0x86e   : > { %v11574_v43 = vpop.f32.mrf.mxu2 }
 0x86f   : > { %v4164_v51 = vpop.permute.xlu1 %4163 }
 0x870   : > { %8381 = vmatmul.msk.f32.vlgmr.msrb.gmra.mxu2 %vm2050_vm7, %v14939_v36  ;;  %8403 = vmatmul.msk.f32.gmra.mxu0 %vm2050_vm7, %v4164_v51 }
 0x877   : > { %v4166_v28 = vpop.permute.xlu1 %4165 }
 0x878   : > { %8382 = vmatmul.msk.f32.gmra.mxu2 %vm2050_vm7, %v14940_v23  ;;  %8404 = vmatmul.msk.f32.gmra.mxu0 %vm2050_vm7, %v4166_v28 }
 0x87c   : > { %4285 = vrot.lane.b32.xlu0 %v11538_v7, %s9470_s12 }
 0x87d   : > { %v2572_v6 = vpop.xlane.xlu0 %2571 }
 0x87e   : > { %4259 = vrot.lane.b32.xlu2 %v11465_v37, %s9469_s30 }
 0x880   : > { %8383 = vmatmul.msk.f32.gmra.mxu2 %vm2050_vm7, %v14942_v62 }
 0x884   : > { %4287 = vrot.lane.b32.xlu0 %v11549_v12, %s9470_s12 }
 0x888   : > { %8384 = vmatmul.msk.f32.gmra.mxu2 %vm2050_vm7, %v14944_v63 }
 0x88c   : > { %4261 = vrot.lane.b32.xlu0 %v11538_v7, %s9469_s30 }
 0x890   : > { %8385 = vmatmul.msk.f32.gmra.mxu2 %vm2050_vm7, %v14945_v26  ;;  %v2575_v58 = vpop.xlane.xlu2 %2574  ;;  %v4775_v26 = vsel %vm2311_vm8, %v11592_v33, -inf }
 0x891   : > { %9227 = vrcp.f32 %v2575_v58  ;;  %v11601_v58 = vmul.f32 0.35355338, %v11388_v44 }
 0x892   : > { %9229 = vrcp.f32 %v2572_v6 }
 0x897   : > { %v9228_v38 = vpop.eup %9227 }
 0x898   : > { %8386 = vmatmul.msk.f32.gmra.mxu2 %vm2050_vm7, %v14946_v24  ;;  %v2655_v25 = vmul.f32 %v9228_v38, %v11432_v56  ;;  %v9230_v40 = vpop.eup %9229  ;;  %v4769_v24 = vsel %vm2311_vm8, %v11601_v58, -inf }
 0x899   : > { %v2654_v20 = vmul.f32 %v9230_v40, %v11417_v46  ;;  %v2429_v46 = vsub.f32 %v11241_v11, %v11380_v47 }
 0x89a   : > { %8355 = vmatpush.xpose.msk.msrb.mxu1 %vm2311_vm8, %v2655_v25 }
 0x89e   : > { %8356 = vmatpush.xpose.msk.msrb.mxu1 %vm2311_vm8, %v2654_v20 }
 0x8a0   : > { %8387 = vmatmul.msk.f32.gmra.mxu2 %vm2050_vm7, %v11495_v3 }
 0x8a8   : > { %8388 = vmatmul.msk.f32.gmra.mxu2 %vm2050_vm7, %v4134_v50  ;;  %v2482_v50 = vmul.f32 1.442695, %v2429_v46 }
 0x8aa   : > { %9231 = vpow2.f32 %v2482_v50 }
 0x8b0   : > { %v9232_v23 = vpop.eup %9231 }
 0x8b1   : > { %v2567_v11 = vsel %vm2311_vm8, %v9232_v23, 0.0 }
 0x8cb   : > { %v11576_v56 = vpop.f32.mrf.mxu2 }
 0x8d6   : > { %v4620_v4 = vpop.f32.mrf.mxu3 }
 0x8d7   : > { %v4705_v1 = vmul.f32 0.35355338, %v4620_v4 }
 0x8d9   : > { %v4781_v36 = vsel %vm2311_vm8, %v4705_v1, -inf }
 0x8e3   : > { %v4623_v32 = vpop.f32.mrf.mxu3 }
 0x8e4   : > { %v4706_v52 = vmul.f32 0.35355338, %v4623_v32 }
 0x8e6   : > { %v4784_v3 = vsel %vm2311_vm8, %v4706_v52, -inf }
 0x8e7   : > { %4785 = vmax.xlane.f32.xlu1 %v4784_v3  ;;  %v4780_v3 = vpop.xlane.xlu0 %4779 }
 0x8eb   : > { %v11581_v55 = vpop.f32.mrf.mxu2 }
 0x8ef   : > { %4782 = vmax.xlane.f32.xlu1 %v4781_v36 }
 0x8f3   : > { %v4545_v51 = vpop.f32.mrf.mxu2 }
 0x8f4   : > { %v11584_v45 = vmul.f32 0.35355338, %v4545_v51  ;;  %v4832_v51 = vsub.f32 %v11422_v0, %v4780_v3 }
 0x8f6   : > { %v4739_v28 = vsel %vm2311_vm8, %v11584_v45, -inf }
 0x8f7   : > { %4740 = vmax.xlane.f32.xlu2 %v4739_v28  ;;  %2568 = vadd.xlane.f32.xlu1 %v2567_v11 }
 0x8fb   : > { %v4548_v47 = vpop.f32.mrf.mxu2 }
 0x8fc   : > { %v11589_v62 = vmul.f32 0.35355338, %v4548_v47 }
 0x8fe   : > { %v4742_v63 = vsel %vm2311_vm8, %v11589_v62, -inf }
 0x8ff   : > { %4743 = vmax.xlane.f32.xlu0 %v4742_v63  ;;  %4776 = vmax.xlane.f32.xlu1 %v4775_v26 }
 0x903   : > { %v11598_v6 = vpop.f32.mrf.mxu2 }
 0x907   : > { %4770 = vmax.xlane.f32.xlu1 %v4769_v24 }
 0x90b   : > { %v4554_v38 = vpop.f32.mrf.mxu2 }
 0x90c   : > { %v11605_v54 = vmul.f32 0.35355338, %v4554_v38 }
 0x90e   : > { %v4748_v25 = vsel %vm2311_vm8, %v11605_v54, -inf }
 0x90f   : > { %4749 = vmax.xlane.f32.xlu2 %v4748_v25 }
 0x920   : > { %4255 = vrot.lane.b32.xlu1 %v11453_v48, %s9469_s30 }
 0x95a   : > { %v4786_v40 = vpop.xlane.xlu1 %4785 }
 0x95b   : > { %v4834_v32 = vsub.f32 %v4706_v52, %v4786_v40  ;;  %v4885_v52 = vmul.f32 1.442695, %v4832_v51  ;;  %v8781_v40 = vunpack.i.l.bf16 %v11148_v42  ;;  %v14952_v42 = vld [vmem:[#allocation29_spill] sm:$0xff] }
 0x95d   : > { %v4889_v46 = vmul.f32 1.442695, %v4834_v32 }
 0x962   : > { %v4783_v20 = vpop.xlane.xlu1 %4782 }
 0x963   : > { %v4833_v4 = vsub.f32 %v4705_v1, %v4783_v20  ;;  %v14950_v20 = vld [vmem:[#allocation34_spill] sm:$0xff] }
 0x965   : > { %v4887_v44 = vmul.f32 1.442695, %v4833_v4  ;;  %v11658_v4 = vmul.f32 0.35355338, %v11474_v39 }
 0x967   : > { %9233 = vpow2.f32 %v4887_v44  ;;  %v4790_v32 = vsel %vm2311_vm8, %v11658_v4, -inf  ;;  %v11665_v44 = vmul.f32 0.35355338, %v11490_v10 }
 0x96a   : > { %v2569_v50 = vpop.xlane.xlu1 %2568 }
 0x96b   : > { %9235 = vrcp.f32 %v2569_v50  ;;  %v4793_v50 = vsel %vm2311_vm8, %v11665_v44, -inf }
 0x96c   : > { %9237 = vrcp.f32 %v11532_v61 }
 0x96d   : > { %v11612_v36 = vpop.eup %9233  ;;  %9239 = vpow2.f32 %v4889_v46  ;;  %v4674_v46 = vpop.f32.mrf.mxu0 }
 0x96e   : > { %v4973_v28 = vsel %vm2311_vm8, %v11612_v36, 0.0  ;;  %9241 = vrcp.f32 %v11486_v34 }
 0x96f   : > { %4974 = vadd.xlane.f32.xlu1 %v4973_v28  ;;  %9243 = vrcp.f32 %v11481_v29 }
 0x970   : > { %9245 = vpow2.f32 %v4885_v52 }
 0x971   : > { %v9236_v11 = vpop.eup %9235  ;;  %9247 = vrcp.f32 %v11527_v30 }
 0x972   : > { %v9238_v1 = vpop.eup %9237  ;;  %v2653_v47 = vmul.f32 %v9236_v11, %v9232_v23  ;;  %9249 = vrcp.f32 %v11472_v15  ;;  %v14947_v15 = vld [vmem:[#allocation30_spill] sm:$0xff]  ;;  %v4777_v3 = vpop.xlane.xlu1 %4776 }
 0x973   : > { %v11618_v63 = vpop.eup %9239  ;;  %v2652_v61 = vmul.f32 %v9238_v1, %v11362_v21  ;;  %v4831_v10 = vsub.f32 %v11592_v33, %v4777_v3 }
 0x974   : > { %8357 = vmatpush.xpose.msk.msrb.mxu1 %vm2311_vm8, %v2653_v47  ;;  %v4976_v0 = vsel %vm2311_vm8, %v11618_v63, 0.0  ;;  %v9242_v26 = vpop.eup %9241 }
 0x975   : > { %v9244_v34 = vpop.eup %9243  ;;  %v2651_v23 = vmul.f32 %v9242_v26, %v11356_v57  ;;  %v4677_v39 = vpop.f32.mrf.mxu0  ;;  %v4883_v47 = vmul.f32 1.442695, %v4831_v10 }
 0x976   : > { %v11628_v24 = vpop.eup %9245  ;;  %v2650_v21 = vmul.f32 %v9244_v34, %v11349_v9  ;;  %v14948_v9 = vld [vmem:[#allocation17_spill] sm:$0xff] }
 0x977   : > { %4977 = vadd.xlane.f32.xlu1 %v4976_v0  ;;  %v4970_v29 = vsel %vm2311_vm8, %v11628_v24, 0.0  ;;  %v9248_v38 = vpop.eup %9247  ;;  %9251 = vpow2.f32 %v4883_v47 }
 0x978   : > { %8358 = vmatpush.xpose.msk.msrb.mxu1 %vm2311_vm8, %v2652_v61  ;;  %v2649_v30 = vmul.f32 %v9248_v38, %v11342_v53  ;;  %v9250_v25 = vpop.eup %9249  ;;  %v14949_v53 = vld [vmem:[#allocation26_spill] sm:$0xff] }
 0x979   : > { %v2648_v57 = vmul.f32 %v9250_v25, %v11335_v22  ;;  %v14951_v22 = vld [vmem:[#allocation33_spill] sm:$0xff] }
 0x97a   : > { %v11672_v28 = vpop.xlane.xlu1 %4770 }
 0x97c   : > { %8359 = vmatpush.xpose.msk.msrb.mxu1 %vm2311_vm8, %v2651_v23 }
 0x97d   : > { %v4680_v52 = vpop.f32.mrf.mxu0  ;;  %v9252_v26 = vpop.eup %9251 }
 0x97e   : > { %v11678_v0 = vmul.f32 0.35355338, %v4680_v52  ;;  %v4967_v34 = vsel %vm2311_vm8, %v9252_v26, 0.0 }
 0x97f   : > { %4971 = vadd.xlane.f32.xlu1 %v4970_v29 }
 0x980   : > { %8360 = vmatpush.xpose.msk.msrb.mxu1 %vm2311_vm8, %v2650_v21 }
 0x984   : > { %8361 = vmatpush.xpose.msk.msrb.mxu1 %vm2311_vm8, %v2649_v30 }
 0x988   : > { %8362 = vmatpush.xpose.msk.msrb.mxu1 %vm2311_vm8, %v2648_v57 }
 0x98b   : > { %8363 = vmatmul.msk.f32.vlgmr.msrb.gmra.mxu1 %vm2311_vm8, %v14947_v15 }
 0x98c   : > { %4486 = vmatpush.msra.mxu1 %v8781_v40  ;;  %v4774_v40 = vpop.xlane.xlu0 %4773 }
 0x992   : > { %v11676_v1 = vpop.permute.xlu1 %4255 }
 0x993   : > { %8373 = vmatmul.msk.f32.vlgmr.msra.gmra.mxu1 %vm2050_vm7, %v14948_v9 }
 0x998   : > { %4303 = vrot.lane.b32.xlu1 %v11453_v48, %s9468_s4 }
 0x99b   : > { %8374 = vmatmul.msk.f32.gmra.mxu1 %vm2050_vm7, %v14949_v53 }
 0x9a3   : > { %8375 = vmatmul.msk.f32.gmra.mxu1 %vm2050_vm7, %v14950_v20  ;;  %v4557_v20 = vpop.f32.mrf.mxu2 }
 0x9ab   : > { %8376 = vmatmul.msk.f32.gmra.mxu1 %vm2050_vm7, %v14951_v22 }
 0x9b3   : > { %8377 = vmatmul.msk.f32.gmra.mxu1 %vm2050_vm7, %v14952_v42 }
 0x9bb   : > { %8378 = vmatmul.msk.f32.gmra.mxu1 %vm2050_vm7, %v10949_v8  ;;  %v4712_v8 = vmul.f32 0.35355338, %v4674_v46 }
 0x9bd   : > { %v4802_v51 = vsel %vm2311_vm8, %v4712_v8, -inf }
 0x9c2   : > { %4791 = vmax.xlane.f32.xlu1 %v4790_v32  ;;  %v4560_v32 = vpop.f32.mrf.mxu2 }
 0x9c3   : > { %8379 = vmatmul.msk.f32.gmra.mxu1 %vm2050_vm7, %v11370_v18  ;;  %v4713_v18 = vmul.f32 0.35355338, %v4677_v39 }
 0x9c5   : > { %v4805_v11 = vsel %vm2311_vm8, %v4713_v18, -inf }
 0x9ca   : > { %4794 = vmax.xlane.f32.xlu1 %v4793_v50  ;;  %v11711_v50 = vmul.f32 0.35355338, %v4560_v32  ;;  %v4563_v39 = vpop.f32.mrf.mxu2 }
 0x9cb   : > { %8380 = vmatmul.msk.f32.gmra.mxu1 %vm2050_vm7, %v11386_v41  ;;  %v4808_v41 = vsel %vm2311_vm8, %v11678_v0, -inf }
 0x9d2   : > { %4803 = vmax.xlane.f32.xlu1 %v4802_v51 }
 0x9da   : > { %4806 = vmax.xlane.f32.xlu1 %v4805_v11  ;;  %v11715_v11 = vmul.f32 0.35355338, %v4563_v39 }
 0x9dc   : > { %v4757_v47 = vsel %vm2311_vm8, %v11715_v11, -inf }
 0x9e2   : > { %4809 = vmax.xlane.f32.xlu1 %v4808_v41  ;;  %v4975_v61 = vpop.xlane.xlu1 %4974 }
 0x9ea   : > { %4968 = vadd.xlane.f32.xlu1 %v4967_v34  ;;  %v4978_v33 = vpop.xlane.xlu1 %4977 }
 0x9eb   : > { %9253 = vrcp.f32 %v4978_v33 }
 0x9ec   : > { %9255 = vrcp.f32 %v4975_v61 }
 0x9f1   : > { %v9254_v23 = vpop.eup %9253 }
 0x9f2   : > { %v5058_v29 = vmul.f32 %v9254_v23, %v11618_v63  ;;  %v4972_v21 = vpop.xlane.xlu1 %4971  ;;  %v9256_v38 = vpop.eup %9255  ;;  %v4830_v63 = vsub.f32 %v11430_v49, %v4774_v40  ;;  %v11705_v49 = vmul.f32 0.35355338, %v4557_v20 }
 0x9f3   : > { %9257 = vrcp.f32 %v4972_v21  ;;  %v5057_v30 = vmul.f32 %v9256_v38, %v11612_v36 }
 0x9f4   : > { %8423 = vmatpush.xpose.msk.msrb.mxu3 %vm2311_vm8, %v5058_v29  ;;  %v4881_v15 = vmul.f32 1.442695, %v4830_v63  ;;  %v4751_v46 = vsel %vm2311_vm8, %v11705_v49, -inf }
 0x9f6   : > { %9259 = vpow2.f32 %v4881_v15 }
 0x9f8   : > { %8424 = vmatpush.xpose.msk.msrb.mxu3 %vm2311_vm8, %v5057_v30 }
 0x9f9   : > { %v9258_v25 = vpop.eup %9257 }
 0x9fa   : > { %v5056_v57 = vmul.f32 %v9258_v25, %v11628_v24  ;;  %v11699_v24 = vmul.f32 0.35355338, %v11598_v6  ;;  %v4754_v6 = vsel %vm2311_vm8, %v11711_v50, -inf  ;;  %v11727_v25 = vpop.xlane.xlu0 %4767 }
 0x9fc   : > { %8425 = vmatpush.xpose.msk.msrb.mxu3 %vm2311_vm8, %v5056_v57  ;;  %v11692_v9 = vpop.eup %9259  ;;  %v4745_v22 = vsel %vm2311_vm8, %v11699_v24, -inf  ;;  %v11734_v57 = vadd.f32 %v11393_v19, %v11570_v59  ;;  %v4829_v59 = vsub.f32 %v11601_v58, %v11672_v28 }
 0x9fd   : > { %v4964_v36 = vsel %vm2311_vm8, %v11692_v9, 0.0 }
 0x9fe   : > { %14954 = vst [vmem:[#allocation38_spill] sm:$0xff] %v11734_v57 }
 0xa02   : > { %v11740_v63 = vpop.permute.xlu0 %4279 }
 0xa03   : > { %4305 = vrot.lane.b32.xlu1 %v11396_v17, %s9468_s4 }
 0xa08   : > { %v11736_v40 = vpop.f32.mrf.mxu1 }
 0xa0a   : > { %v11696_v53 = vpop.permute.xlu1 %4303  ;;  %v11744_v15 = vpop.permute.xlu0 %4283 }
 0xa0b   : > { %14953 = vst [vmem:[#allocation31_spill] sm:$0xff] %v11696_v53 }
 0xa2d   : > { %4965 = vadd.xlane.f32.xlu1 %v4964_v36  ;;  %v4801_v36 = vpop.xlane.xlu0 %4800 }
 0xa35   : > { %4746 = vmax.xlane.f32.xlu1 %v4745_v22  ;;  %v11703_v42 = vpop.xlane.xlu1 %4791  ;;  %v4839_v22 = vsub.f32 %v11519_v16, %v4801_v36 }
 0xa37   : > { %v4899_v32 = vmul.f32 1.442695, %v4839_v22 }
 0xa3d   : > { %4752 = vmax.xlane.f32.xlu1 %v4751_v46  ;;  %v11709_v3 = vpop.xlane.xlu1 %4794 }
 0xa45   : > { %4755 = vmax.xlane.f32.xlu1 %v4754_v6  ;;  %v4804_v51 = vpop.xlane.xlu1 %4803  ;;  %v4879_v6 = vmul.f32 1.442695, %v4829_v59 }
 0xa46   : > { %v4840_v10 = vsub.f32 %v4712_v8, %v4804_v51 }
 0xa48   : > { %v4901_v52 = vmul.f32 1.442695, %v4840_v10 }
 0xa4a   : > { %9261 = vpow2.f32 %v4901_v52 }
 0xa4d   : > { %4758 = vmax.xlane.f32.xlu1 %v4757_v47  ;;  %v4807_v41 = vpop.xlane.xlu1 %4806 }
 0xa4e   : > { %v4841_v61 = vsub.f32 %v4713_v18, %v4807_v41  ;;  %v4566_v41 = vpop.f32.mrf.mxu2 }
 0xa4f   : > { %v11760_v28 = vmul.f32 0.35355338, %v4566_v41 }
 0xa50   : > { %v11719_v34 = vpop.eup %9261  ;;  %v4903_v33 = vmul.f32 1.442695, %v4841_v61 }
 0xa51   : > { %v4994_v23 = vsel %vm2311_vm8, %v11719_v34, 0.0 }
 0xa52   : > { %9263 = vpow2.f32 %v4903_v33  ;;  %4995 = vadd.xlane.f32.xlu2 %v4994_v23  ;;  %v4760_v33 = vsel %vm2311_vm8, %v11760_v28, -inf }
 0xa55   : > { %v4810_v29 = vpop.xlane.xlu1 %4809 }
 0xa56   : > { %v4842_v51 = vsub.f32 %v11678_v0, %v4810_v29 }
 0xa58   : > { %v11723_v8 = vpop.eup %9263  ;;  %v4905_v47 = vmul.f32 1.442695, %v4842_v51 }
 0xa59   : > { %v4997_v21 = vsel %vm2311_vm8, %v11723_v8, 0.0 }
 0xa5a   : > { %4998 = vadd.xlane.f32.xlu0 %v4997_v21 }
 0xa5d   : > { %v4969_v38 = vpop.xlane.xlu1 %4968 }
 0xa5e   : > { %9265 = vrcp.f32 %v4969_v38 }
 0xa5f   : > { %9267 = vpow2.f32 %v4899_v32 }
 0xa60   : > { %9269 = vpow2.f32 %v4879_v6 }
 0xa61   : > { %9271 = vpow2.f32 %v4905_v47 }
 0xa64   : > { %v9266_v30 = vpop.eup %9265 }
 0xa65   : > { %v5055_v18 = vmul.f32 %v9266_v30, %v9252_v26  ;;  %v4488_v26 = vpop.f32.mrf.mxu1  ;;  %v11752_v10 = vpop.eup %9267 }
 0xa66   : > { %4307 = vrot.lane.b32.xlu1 %v11465_v37, %s9468_s4  ;;  %v4991_v16 = vsel %vm2311_vm8, %v11752_v10, 0.0  ;;  %v11758_v58 = vpop.eup %9269  ;;  %v11772_v38 = vmul.f32 0.35355338, %v4488_v26 }
 0xa67   : > { %8426 = vmatpush.xpose.msk.msrb.mxu3 %vm2311_vm8, %v5055_v18  ;;  %v4961_v0 = vsel %vm2311_vm8, %v11758_v58, 0.0  ;;  %v11768_v23 = vpop.eup %9271 }
 0xa68   : > { %v5000_v29 = vsel %vm2311_vm8, %v11768_v23, 0.0  ;;  %v4715_v18 = vsel %vm2311_vm8, %v11772_v38, -inf }
 0xa6a   : > { %4289 = vrot.lane.b32.xlu2 %v11734_v57, %s9470_s12 }
 0xa6d   : > { %v4491_v20 = vpop.f32.mrf.mxu1 }
 0xa6e   : > { %4263 = vrot.lane.b32.xlu0 %v11549_v12, %s9469_s30  ;;  %v11780_v22 = vmul.f32 0.35355338, %v4491_v20 }
 0xa70   : > { %v4718_v59 = vsel %vm2311_vm8, %v11780_v22, -inf }
 0xa75   : > { %v4494_v46 = vpop.f32.mrf.mxu1  ;;  %v11764_v61 = vpop.permute.xlu1 %4305 }
 0xa76   : > { %v11749_v39 = vmul.f32 0.35355338, %v4494_v46  ;;  %14955 = vst [vmem:[#allocation32_spill] sm:$0xff] %v11764_v61  ;;  %v11786_v46 = vpop.permute.xlu2 %4257 }
 0xa78   : > { %v4721_v52 = vsel %vm2311_vm8, %v11749_v39, -inf }
 0xa7d   : > { %v4497_v32 = vpop.f32.mrf.mxu1 }
 0xa7e   : > { %v11792_v51 = vpop.xlane.xlu2 %4788 }
 0xa85   : > { %v4500_v26 = vpop.f32.mrf.mxu1 }
 0xa8d   : > { %v4503_v6 = vpop.f32.mrf.mxu1 }
 0xa90   : > { %4722 = vmax.xlane.f32.xlu1 %v4721_v52  ;;  %v4828_v52 = vsub.f32 %v11438_v35, %v11727_v25 }
 0xa92   : > { %v4877_v47 = vmul.f32 1.442695, %v4828_v52 }
 0xa93   : > { %4992 = vadd.xlane.f32.xlu2 %v4991_v16  ;;  %v4798_v16 = vpop.xlane.xlu2 %4797 }
 0xa95   : > { %v4506_v20 = vpop.f32.mrf.mxu1 }
 0xa96   : > { %v11800_v41 = vmul.f32 0.35355338, %v4506_v20 }
 0xa98   : > { %4962 = vadd.xlane.f32.xlu0 %v4961_v0  ;;  %v4838_v0 = vsub.f32 %v11515_v13, %v4798_v16 }
 0xa9b   : > { %4761 = vmax.xlane.f32.xlu2 %v4760_v33  ;;  %v11827_v16 = vpop.permute.xlu2 %4259 }
 0xa9d   : > { %v4509_v33 = vpop.f32.mrf.mxu1 }
 0xaa0   : > { %5001 = vadd.xlane.f32.xlu0 %v5000_v29  ;;  %v4966_v21 = vpop.xlane.xlu1 %4965  ;;  %v4897_v29 = vmul.f32 1.442695, %v4838_v0  ;;  %v11829_v0 = vmul.f32 0.35355338, %v4500_v26 }
 0xaa1   : > { %9273 = vrcp.f32 %v4966_v21  ;;  %v11805_v21 = vmul.f32 0.35355338, %v4509_v33 }
 0xaa2   : > { %9275 = vpow2.f32 %v4877_v47 }
 0xaa3   : > { %9277 = vpow2.f32 %v4897_v29  ;;  %v4736_v25 = vsel %vm2311_vm8, %v11805_v21, -inf  ;;  %v11835_v33 = vpop.xlane.xlu2 %4740  ;;  %v11837_v29 = vmul.f32 0.35355338, %v4503_v6  ;;  %v11847_v6 = vadd.f32 %v11393_v19, %v11574_v43 }
 0xaa5   : > { %14959 = vst [vmem:[#allocation24_spill] sm:$0xff] %v11847_v6 }
 0xaa7   : > { %v9274_v30 = vpop.eup %9273 }
 0xaa8   : > { %4716 = vmax.xlane.f32.xlu0 %v4715_v18  ;;  %v5054_v36 = vmul.f32 %v9274_v30, %v11692_v9  ;;  %v11790_v9 = vadd.f32 %v11393_v19, %v11572_v27  ;;  %v4733_v27 = vsel %vm2311_vm8, %v11800_v41, -inf  ;;  %v11807_v30 = vpop.permute.xlu0 %4285  ;;  %v11809_v35 = vpop.eup %9275 }
 0xaa9   : > { %4309 = vrot.lane.b32.xlu1 %v11538_v7, %s9468_s4  ;;  %14957 = vst [vmem:[#allocation5_spill] sm:$0xff] %v11807_v30  ;;  %v4958_v13 = vsel %vm2311_vm8, %v11809_v35, 0.0  ;;  %v11815_v18 = vpop.eup %9277 }
 0xaaa   : > { %8427 = vmatpush.xpose.msk.msrb.mxu3 %vm2311_vm8, %v5054_v36  ;;  %14956 = vst [vmem:[#allocation8_spill] sm:$0xff] %v11790_v9  ;;  %v11817_v36 = vmul.f32 0.35355338, %v4497_v32  ;;  %v4988_v20 = vsel %vm2311_vm8, %v11815_v18, 0.0  ;;  %v4727_v32 = vsel %vm2311_vm8, %v11829_v0, -inf }
 0xaab   : > { %v4750_v26 = vpop.xlane.xlu2 %4749 }
 0xaac   : > { %v4724_v52 = vsel %vm2311_vm8, %v11817_v36, -inf  ;;  %v4822_v37 = vsub.f32 %v11605_v54, %v4750_v26 }
 0xab0   : > { %4719 = vmax.xlane.f32.xlu0 %v4718_v59  ;;  %v11819_v59 = vpop.permute.xlu0 %4287 }
 0xab1   : > { %14958 = vst [vmem:[#allocation9_spill] sm:$0xff] %v11819_v59 }
 0xab3   : > { %4265 = vrot.lane.b32.xlu2 %v11734_v57, %s9469_s30 }
 0xab8   : > { %v11825_v47 = vpop.permute.xlu0 %4261 }
 0xac4   : > { %4291 = vrot.lane.b32.xlu0 %v11790_v9, %s9470_s12 }
 0xacc   : > { %4311 = vrot.lane.b32.xlu0 %v11549_v12, %s9468_s4  ;;  %v4996_v12 = vpop.xlane.xlu2 %4995 }
 0xad3   : > { %4734 = vmax.xlane.f32.xlu1 %v4733_v27  ;;  %v11831_v27 = vpop.xlane.xlu0 %4743 }
 0xad4   : > { %v11852_v53 = vpop.permute.xlu2 %4289 }
 0xadb   : > { %4737 = vmax.xlane.f32.xlu1 %v4736_v25  ;;  %v4999_v25 = vpop.xlane.xlu0 %4998 }
 0xadc   : > { %4959 = vadd.xlane.f32.xlu2 %v4958_v13  ;;  %v4730_v13 = vsel %vm2311_vm8, %v11837_v29, -inf }
 0xae3   : > { %4989 = vadd.xlane.f32.xlu1 %v4988_v20  ;;  %v4747_v20 = vpop.xlane.xlu1 %4746 }
 0xae4   : > { %4725 = vmax.xlane.f32.xlu2 %v4724_v52  ;;  %v11843_v52 = vpop.permute.xlu0 %4263 }
 0xaeb   : > { %v4753_v61 = vpop.xlane.xlu1 %4752 }
 0xaf3   : > { %v4756_v48 = vpop.xlane.xlu1 %4755 }
 0xaf4   : > { %v4824_v19 = vsub.f32 %v11711_v50, %v4756_v48 }
 0xaf6   : > { %4728 = vmax.xlane.f32.xlu0 %v4727_v32  ;;  %v4869_v26 = vmul.f32 1.442695, %v4824_v19 }
 0xafc   : > { %4267 = vrot.lane.b32.xlu2 %v11790_v9, %s9469_s30 }
 0xafe   : > { %4731 = vmax.xlane.f32.xlu0 %v4730_v13 }
 0xb06   : > { %v4993_v43 = vpop.xlane.xlu2 %4992 }
 0xb0b   : > { %v4963_v7 = vpop.xlane.xlu0 %4962 }
 0xb0c   : > { %9279 = vrcp.f32 %v4963_v7  ;;  %v4865_v7 = vmul.f32 1.442695, %v4822_v37 }
 0xb12   : > { %v9280_v32 = vpop.eup %9279  ;;  %4293 = vrot.lane.b32.xlu0 %v11847_v6, %s9470_s12 }
 0xb13   : > { %v5002_v13 = vpop.xlane.xlu0 %5001  ;;  %v5053_v17 = vmul.f32 %v9280_v32, %v11758_v58 }
 0xb14   : > { %9281 = vrcp.f32 %v5002_v13 }
 0xb15   : > { %8428 = vmatpush.xpose.msk.msrb.mxu3 %vm2311_vm8, %v5053_v17  ;;  %9283 = vrcp.f32 %v4999_v25  ;;  %v4759_v17 = vpop.xlane.xlu1 %4758  ;;  %v4821_v25 = vsub.f32 %v11699_v24, %v4747_v20 }
 0xb16   : > { %9285 = vrcp.f32 %v4996_v12  ;;  %v4825_v37 = vsub.f32 %v11715_v11, %v4759_v17 }
 0xb17   : > { %9287 = vpow2.f32 %v4865_v7  ;;  %v4863_v7 = vmul.f32 1.442695, %v4821_v25 }
 0xb18   : > { %9289 = vrcp.f32 %v4993_v43 }
 0xb19   : > { %9291 = vpow2.f32 %v4869_v26 }
 0xb1a   : > { %v9282_v59 = vpop.eup %9281 }
 0xb1b   : > { %v5066_v30 = vmul.f32 %v9282_v59, %v11768_v23  ;;  %v9284_v54 = vpop.eup %9283  ;;  %v4871_v23 = vmul.f32 1.442695, %v4825_v37 }
 0xb1c   : > { %v5065_v58 = vmul.f32 %v9284_v54, %v11723_v8  ;;  %v9286_v32 = vpop.eup %9285 }
 0xb1d   : > { %8432 = vmatpush.xpose.msk.msra.mxu0 %vm2311_vm8, %v5066_v30  ;;  %v11860_v13 = vpop.eup %9287  ;;  %v5064_v48 = vmul.f32 %v9286_v32, %v11719_v34  ;;  %v4762_v30 = vpop.xlane.xlu2 %4761  ;;  %9293 = vpow2.f32 %v4871_v23 }
 0xb1e   : > { %v9290_v12 = vpop.eup %9289  ;;  %v4940_v50 = vsel %vm2311_vm8, %v11860_v13, 0.0  ;;  %v4826_v11 = vsub.f32 %v11760_v28, %v4762_v30  ;;  %v11876_v19 = vpop.permute.xlu1 %4307  ;;  %9295 = vpow2.f32 %v4863_v7 }
 0xb1f   : > { %v5063_v8 = vmul.f32 %v9290_v12, %v11752_v10  ;;  %v11869_v59 = vpop.eup %9291  ;;  %v4823_v10 = vsub.f32 %v11705_v49, %v4753_v61 }
 0xb20   : > { %v4946_v34 = vsel %vm2311_vm8, %v11869_v59, 0.0  ;;  %v4873_v43 = vmul.f32 1.442695, %v4826_v11 }
 0xb21   : > { %8433 = vmatpush.xpose.msk.msra.mxu0 %vm2311_vm8, %v5065_v58  ;;  %v4867_v20 = vmul.f32 1.442695, %v4823_v10 }
 0xb22   : > { %9297 = vpow2.f32 %v4873_v43 }
 0xb23   : > { %v11878_v54 = vpop.eup %9293  ;;  %9299 = vpow2.f32 %v4867_v20 }
 0xb24   : > { %v4949_v24 = vsel %vm2311_vm8, %v11878_v54, 0.0  ;;  %v11883_v26 = vpop.eup %9295 }
 0xb25   : > { %4941 = vadd.xlane.f32.xlu2 %v4940_v50  ;;  %8434 = vmatpush.xpose.msk.msra.mxu0 %vm2311_vm8, %v5064_v48  ;;  %v4937_v32 = vsel %vm2311_vm8, %v11883_v26, 0.0  ;;  %v11897_v48 = vpop.xlane.xlu0 %4716  ;;  %v11899_v50 = vpop.permute.xlu2 %4265 }
 0xb26   : > { %v4723_v28 = vpop.xlane.xlu1 %4722 }
 0xb27   : > { %v4813_v43 = vsub.f32 %v11749_v39, %v4723_v28  ;;  %v4837_v39 = vsub.f32 %v11665_v44, %v11709_v3 }
 0xb28   : > { %v11885_v58 = vpop.eup %9297 }
 0xb29   : > { %8435 = vmatpush.xpose.msk.msra.mxu0 %vm2311_vm8, %v5063_v8  ;;  %v4952_v17 = vsel %vm2311_vm8, %v11885_v58, 0.0  ;;  %v11893_v61 = vpop.eup %9299 }
 0xb2a   : > { %v4943_v37 = vsel %vm2311_vm8, %v11893_v61, 0.0 }
 0xb2d   : > { %4947 = vadd.xlane.f32.xlu2 %v4946_v34  ;;  %v11902_v25 = vpop.xlane.xlu0 %4719 }
 0xb2e   : > { %v11891_v49 = vpop.permute.xlu1 %4309 }
 0xb35   : > { %4950 = vadd.xlane.f32.xlu2 %v4949_v24 }
 0xb3c   : > { %4938 = vadd.xlane.f32.xlu0 %v4937_v32 }
 0xb3d   : > { %4953 = vadd.xlane.f32.xlu2 %v4952_v17  ;;  %v11910_v17 = vpop.permute.xlu0 %4291 }
 0xb44   : > { %4944 = vadd.xlane.f32.xlu0 %v4943_v37 }
 0xb46   : > { %v4735_v12 = vpop.xlane.xlu1 %4734 }
 0xb47   : > { %v4817_v23 = vsub.f32 %v11800_v41, %v4735_v12  ;;  %v4847_v41 = vmul.f32 1.442695, %v4813_v43 }
 0xb49   : > { %v4855_v8 = vmul.f32 1.442695, %v4817_v23 }
 0xb4b   : > { %9301 = vpow2.f32 %v4855_v8 }
 0xb4e   : > { %v4738_v30 = vpop.xlane.xlu1 %4737 }
 0xb4f   : > { %v4818_v11 = vsub.f32 %v11805_v21, %v4738_v30  ;;  %v4960_v34 = vpop.xlane.xlu2 %4959 }
 0xb50   : > { %9303 = vrcp.f32 %v4960_v34 }
 0xb51   : > { %v11905_v7 = vpop.eup %9301  ;;  %v4857_v10 = vmul.f32 1.442695, %v4818_v11  ;;  %v4895_v11 = vmul.f32 1.442695, %v4837_v39 }
 0xb52   : > { %v4925_v24 = vsel %vm2311_vm8, %v11905_v7, 0.0 }
 0xb53   : > { %9305 = vpow2.f32 %v4857_v10  ;;  %4926 = vadd.xlane.f32.xlu0 %v4925_v24 }
 0xb56   : > { %v9304_v20 = vpop.eup %9303  ;;  %v4990_v32 = vpop.xlane.xlu1 %4989 }
 0xb57   : > { %9307 = vrcp.f32 %v4990_v32  ;;  %v4726_v37 = vpop.xlane.xlu2 %4725  ;;  %v5052_v21 = vmul.f32 %v9304_v20, %v11809_v35 }
 0xb58   : > { %v4814_v12 = vsub.f32 %v11817_v36, %v4726_v37  ;;  %9309 = vpow2.f32 %v4847_v41  ;;  %v11925_v36 = vpop.permute.xlu0 %4311 }
 0xb59   : > { %v11914_v23 = vpop.eup %9305  ;;  %8429 = vmatpush.xpose.msk.msrb.mxu3 %vm2311_vm8, %v5052_v21  ;;  %14960 = vst [vmem:[#allocation6_spill] sm:$0xff] %v11925_v36 }
 0xb5a   : > { %v4849_v28 = vmul.f32 1.442695, %v4814_v12  ;;  %v4928_v8 = vsel %vm2311_vm8, %v11914_v23, 0.0  ;;  %v4820_v12 = vsub.f32 %v11589_v62, %v11831_v27 }
 0xb5b   : > { %4929 = vadd.xlane.f32.xlu0 %v4928_v8 }
 0xb5c   : > { %9311 = vpow2.f32 %v4849_v28 }
 0xb5d   : > { %v9308_v30 = vpop.eup %9307  ;;  %9313 = vpow2.f32 %v4895_v11 }
 0xb5e   : > { %v5062_v35 = vmul.f32 %v9308_v30, %v11815_v18  ;;  %v11922_v34 = vpop.eup %9309 }
 0xb5f   : > { %v4913_v3 = vsel %vm2311_vm8, %v11922_v34, 0.0  ;;  %v11959_v27 = vpop.permute.xlu2 %4267 }
 0xb60   : > { %8436 = vmatpush.xpose.msk.msra.mxu0 %vm2311_vm8, %v5062_v35 }
 0xb62   : > { %v11927_v44 = vpop.eup %9311 }
 0xb63   : > { %4914 = vadd.xlane.f32.xlu0 %v4913_v3  ;;  %v4916_v43 = vsel %vm2311_vm8, %v11927_v44, 0.0  ;;  %v11933_v10 = vpop.eup %9313  ;;  %v4827_v3 = vsub.f32 %v11366_v14, %v11544_v31  ;;  %v4819_v14 = vsub.f32 %v11584_v45, %v11835_v33 }
 0xb64   : > { %4917 = vadd.xlane.f32.xlu1 %v4916_v43  ;;  %v4985_v41 = vsel %vm2311_vm8, %v11933_v10, 0.0 }
 0xb69   : > { %v4729_v18 = vpop.xlane.xlu0 %4728 }
 0xb6a   : > { %v4815_v24 = vsub.f32 %v11829_v0, %v4729_v18  ;;  %v4861_v0 = vmul.f32 1.442695, %v4820_v12 }
 0xb6b   : > { %4986 = vadd.xlane.f32.xlu0 %v4985_v41  ;;  %v4812_v41 = vsub.f32 %v11780_v22, %v11902_v25 }
 0xb6c   : > { %v4851_v20 = vmul.f32 1.442695, %v4815_v24  ;;  %v4875_v24 = vmul.f32 1.442695, %v4827_v3 }
 0xb6e   : > { %9315 = vpow2.f32 %v4851_v20 }
 0xb71   : > { %v4732_v32 = vpop.xlane.xlu0 %4731 }
 0xb72   : > { %v4816_v37 = vsub.f32 %v11837_v29, %v4732_v32 }
 0xb74   : > { %v11939_v21 = vpop.eup %9315  ;;  %v4853_v39 = vmul.f32 1.442695, %v4816_v37  ;;  %v4845_v37 = vmul.f32 1.442695, %v4812_v41 }
 0xb75   : > { %v4919_v28 = vsel %vm2311_vm8, %v11939_v21, 0.0 }
 0xb76   : > { %9317 = vpow2.f32 %v4853_v39  ;;  %4920 = vadd.xlane.f32.xlu1 %v4919_v28  ;;  %v4811_v39 = vsub.f32 %v11772_v38, %v11897_v48 }
 0xb77   : > { %9319 = vpow2.f32 %v4861_v0 }
 0xb78   : > { %9321 = vpow2.f32 %v4875_v24 }
 0xb7c   : > { %v11945_v8 = vpop.eup %9317 }
 0xb7d   : > { %v4922_v30 = vsel %vm2311_vm8, %v11945_v8, 0.0  ;;  %v11951_v29 = vpop.eup %9319 }
 0xb7e   : > { %4923 = vadd.xlane.f32.xlu2 %v4922_v30  ;;  %v4934_v62 = vsel %vm2311_vm8, %v11951_v29, 0.0  ;;  %v11969_v12 = vpop.eup %9321  ;;  %v4843_v30 = vmul.f32 1.442695, %v4811_v39 }
 0xb7f   : > { %4315 = vrot.lane.b32.xlu0 %v11790_v9, %s9468_s4  ;;  %v4955_v25 = vsel %vm2311_vm8, %v11969_v12, 0.0 }
 0xb84   : > { %v11965_v43 = vpop.permute.xlu0 %4293 }
 0xb86   : > { %4935 = vadd.xlane.f32.xlu2 %v4934_v62  ;;  %v4859_v62 = vmul.f32 1.442695, %v4819_v14 }
 0xb87   : > { %4317 = vrot.lane.b32.xlu0 %v11847_v6, %s9468_s4 }
 0xb8f   : > { %4313 = vrot.lane.b32.xlu1 %v11734_v57, %s9468_s4 }
 0xb98   : > { %v4942_v11 = vpop.xlane.xlu2 %4941 }
 0xb9e   : > { %4269 = vrot.lane.b32.xlu2 %v11847_v6, %s9469_s30 }
 0xba0   : > { %v4948_v35 = vpop.xlane.xlu2 %4947 }
 0xba8   : > { %v4951_v18 = vpop.xlane.xlu2 %4950 }
 0xbaf   : > { %v4939_v20 = vpop.xlane.xlu0 %4938 }
 0xbb0   : > { %v4954_v32 = vpop.xlane.xlu2 %4953 }
 0xbb1   : > { %9323 = vrcp.f32 %v4954_v32 }
 0xbb2   : > { %9325 = vrcp.f32 %v4951_v18 }
 0xbb3   : > { %9327 = vpow2.f32 %v4845_v37 }
 0xbb4   : > { %9329 = vrcp.f32 %v4948_v35 }
 0xbb7   : > { %v9324_v31 = vpop.eup %9323  ;;  %v4945_v22 = vpop.xlane.xlu0 %4944 }
 0xbb8   : > { %v5050_v28 = vmul.f32 %v9324_v31, %v11885_v58  ;;  %v9326_v0 = vpop.eup %9325  ;;  %9331 = vrcp.f32 %v4945_v22  ;;  %v4836_v58 = vsub.f32 %v11658_v4, %v11703_v42  ;;  %v4835_v4 = vsub.f32 %v11506_v60, %v11792_v51 }
 0xbb9   : > { %4956 = vadd.xlane.f32.xlu1 %v4955_v25  ;;  %v11979_v38 = vpop.eup %9327  ;;  %v5049_v45 = vmul.f32 %v9326_v0, %v11878_v54  ;;  %9333 = vpow2.f32 %v4843_v30 }
 0xbba   : > { %8414 = vmatpush.xpose.msk.msra.mxu2 %vm2311_vm8, %v5050_v28  ;;  %v9330_v33 = vpop.eup %9329  ;;  %9335 = vpow2.f32 %v4859_v62  ;;  %v4910_v48 = vsel %vm2311_vm8, %v11979_v38, 0.0  ;;  %v4893_v54 = vmul.f32 1.442695, %v4836_v58 }
 0xbbb   : > { %9337 = vrcp.f32 %v4942_v11  ;;  %v5048_v35 = vmul.f32 %v9330_v33, %v11869_v59 }
 0xbbc   : > { %9339 = vrcp.f32 %v4939_v20 }
 0xbbd   : > { %9341 = vpow2.f32 %v4893_v54 }
 0xbbe   : > { %8415 = vmatpush.xpose.msk.msra.mxu2 %vm2311_vm8, %v5049_v45  ;;  %v9332_v3 = vpop.eup %9331 }
 0xbbf   : > { %v11989_v18 = vpop.eup %9333  ;;  %v5047_v41 = vmul.f32 %v9332_v3, %v11893_v61  ;;  %v4891_v61 = vmul.f32 1.442695, %v4835_v4 }
 0xbc0   : > { %v11991_v24 = vpop.eup %9335  ;;  %v4907_v59 = vsel %vm2311_vm8, %v11989_v18, 0.0 }
 0xbc1   : > { %4911 = vadd.xlane.f32.xlu1 %v4910_v48  ;;  %v9338_v32 = vpop.eup %9337  ;;  %v4931_v11 = vsel %vm2311_vm8, %v11991_v24, 0.0  ;;  %9343 = vpow2.f32 %v4891_v61 }
 0xbc2   : > { %8416 = vmatpush.xpose.msk.msra.mxu2 %vm2311_vm8, %v5048_v35  ;;  %v5046_v20 = vmul.f32 %v9338_v32, %v11860_v13  ;;  %v9340_v37 = vpop.eup %9339 }
 0xbc3   : > { %v5045_v60 = vmul.f32 %v9340_v37, %v11883_v26  ;;  %v12004_v51 = vpop.eup %9341 }
 0xbc4   : > { %v4982_v14 = vsel %vm2311_vm8, %v12004_v51, 0.0 }
 0xbc6   : > { %8417 = vmatpush.xpose.msk.msra.mxu2 %vm2311_vm8, %v5047_v41  ;;  %v4927_v42 = vpop.xlane.xlu0 %4926 }
 0xbc7   : > { %4908 = vadd.xlane.f32.xlu2 %v4907_v59  ;;  %v12009_v13 = vpop.eup %9343 }
 0xbc8   : > { %v4979_v26 = vsel %vm2311_vm8, %v12009_v13, 0.0 }
 0xbc9   : > { %4932 = vadd.xlane.f32.xlu1 %v4931_v11 }
 0xbca   : > { %8418 = vmatpush.xpose.msk.msra.mxu2 %vm2311_vm8, %v5046_v20 }
 0xbce   : > { %8419 = vmatpush.xpose.msk.msra.mxu2 %vm2311_vm8, %v5045_v60  ;;  %v4930_v39 = vpop.xlane.xlu0 %4929 }
 0xbcf   : > { %9345 = vrcp.f32 %v4930_v39 }
 0xbd0   : > { %9347 = vrcp.f32 %v4927_v42 }
 0xbd1   : > { %4983 = vadd.xlane.f32.xlu1 %v4982_v14 }
 0xbd5   : > { %v9346_v31 = vpop.eup %9345 }
 0xbd6   : > { %v5042_v28 = vmul.f32 %v9346_v31, %v11914_v23  ;;  %v4915_v22 = vpop.xlane.xlu0 %4914  ;;  %v9348_v25 = vpop.eup %9347 }
 0xbd7   : > { %v5041_v0 = vmul.f32 %v9348_v25, %v11905_v7  ;;  %v4918_v23 = vpop.xlane.xlu1 %4917 }
 0xbd8   : > { %8405 = vmatpush.xpose.msk.msrb.mxu1 %vm2311_vm8, %v5042_v28 }
 0xbd9   : > { %4980 = vadd.xlane.f32.xlu1 %v4979_v26 }
 0xbdc   : > { %8406 = vmatpush.xpose.msk.msrb.mxu1 %vm2311_vm8, %v5041_v0  ;;  %v9471_v0 = vmov 1983009808  }
 0xbde   : > { %v4987_v30 = vpop.xlane.xlu0 %4986 }
 0xbdf   : > { %9349 = vrcp.f32 %v4987_v30 }
 0xbe5   : > { %v9350_v62 = vpop.eup %9349 }
 0xbe6   : > { %v5061_v45 = vmul.f32 %v9350_v62, %v11933_v10 }
 0xbe8   : > { %8437 = vmatpush.xpose.msk.msra.mxu0 %vm2311_vm8, %v5061_v45 }
 0xbe9   : > { %v4921_v33 = vpop.xlane.xlu1 %4920 }
 0xbf1   : > { %v4924_v58 = vpop.xlane.xlu2 %4923 }
 0xbf2   : > { %9351 = vrcp.f32 %v4924_v58 }
 0xbf3   : > { %9353 = vrcp.f32 %v4921_v33 }
 0xbf4   : > { %9355 = vrcp.f32 %v4918_v23 }
 0xbf8   : > { %v9352_v48 = vpop.eup %9351 }
 0xbf9   : > { %v4936_v35 = vpop.xlane.xlu2 %4935  ;;  %v5040_v3 = vmul.f32 %v9352_v48, %v11945_v8  ;;  %v9354_v7 = vpop.eup %9353 }
 0xbfa   : > { %9357 = vrcp.f32 %v4936_v35  ;;  %v5039_v54 = vmul.f32 %v9354_v7, %v11939_v21  ;;  %v9356_v10 = vpop.eup %9355 }
 0xbfb   : > { %8407 = vmatpush.xpose.msk.msrb.mxu1 %vm2311_vm8, %v5040_v3  ;;  %9359 = vrcp.f32 %v4915_v22  ;;  %v5038_v32 = vmul.f32 %v9356_v10, %v11927_v44 }
 0xbff   : > { %8408 = vmatpush.xpose.msk.msrb.mxu1 %vm2311_vm8, %v5039_v54 }
 0xc00   : > { %v9358_v41 = vpop.eup %9357 }
 0xc01   : > { %v5044_v4 = vmul.f32 %v9358_v41, %v11951_v29  ;;  %v9360_v42 = vpop.eup %9359  ;;  %v12032_v21 = vpop.permute.xlu1 %4313 }
 0xc02   : > { %v5037_v8 = vmul.f32 %v9360_v42, %v11922_v34  ;;  %14961 = vst [vmem:[#allocation16_spill] sm:$0xff] %v12032_v21  ;;  %v4270_v29 = vpop.permute.xlu2 %4269 }
 0xc03   : > { %8409 = vmatpush.xpose.msk.msrb.mxu1 %vm2311_vm8, %v5038_v32  ;;  %8420 = vmatpush.xpose.msk.msra.mxu2 %vm2311_vm8, %v5044_v4 }
 0xc07   : > { %8410 = vmatpush.xpose.msk.msrb.mxu1 %vm2311_vm8, %v5037_v8 }
 0xc13   : > { %5099 = vxpose.xlu1.b32.start [1/8] (short) (narrow) %v11676_v1, 8 }
 0xc1b   : > { %5100 = vxpose.xlu1.b32.cont [2/8] (short) (narrow) %v11786_v46, 8 }
 0xc23   : > { %5101 = vxpose.xlu1.b32.cont [3/8] (short) (narrow) %v11827_v16, 8 }
 0xc2b   : > { %5102 = vxpose.xlu1.b32.cont [4/8] (short) (narrow) %v11825_v47, 8 }
 0xc2c   : > { %v4957_v44 = vpop.xlane.xlu1 %4956 }
 0xc2d   : > { %9361 = vrcp.f32 %v4957_v44 }
 0xc33   : > { %v9362_v59 = vpop.eup %9361  ;;  %5103 = vxpose.xlu1.b32.cont [5/8] (short) (narrow) %v11843_v52, 8 }
 0xc34   : > { %v4912_v11 = vpop.xlane.xlu1 %4911  ;;  %v5051_v34 = vmul.f32 %v9362_v59, %v11969_v12 }
 0xc35   : > { %9363 = vrcp.f32 %v4912_v11 }
 0xc36   : > { %8430 = vmatpush.xpose.msk.msrb.mxu3 %vm2311_vm8, %v5051_v34 }
 0xc3a   : > { %v4909_v1 = vpop.xlane.xlu2 %4908 }
 0xc3b   : > { %v9364_v46 = vpop.eup %9363  ;;  %9365 = vrcp.f32 %v4909_v1  ;;  %5104 = vxpose.xlu1.b32.cont [6/8] (short) (narrow) %v11899_v50, 8 }
 0xc3c   : > { %v4933_v16 = vpop.xlane.xlu1 %4932  ;;  %v5036_v47 = vmul.f32 %v9364_v46, %v11979_v38 }
 0xc3d   : > { %9367 = vrcp.f32 %v4933_v16 }
 0xc3e   : > { %8411 = vmatpush.xpose.msk.msrb.mxu1 %vm2311_vm8, %v5036_v47 }
 0xc41   : > { %v9366_v20 = vpop.eup %9365 }
 0xc42   : > { %v5035_v52 = vmul.f32 %v9366_v20, %v11989_v18  ;;  %v8785_v18 = vpack.i.bf16 %v11446_v5, %v11736_v40 }
 0xc43   : > { %v9368_v37 = vpop.eup %9367  ;;  %5105 = vxpose.xlu1.b32.cont [7/8] (short) (narrow) %v11959_v27, 8 }
 0xc44   : > { %8412 = vmatpush.xpose.msk.msrb.mxu1 %vm2311_vm8, %v5035_v52  ;;  %v4984_v12 = vpop.xlane.xlu1 %4983  ;;  %v5043_v61 = vmul.f32 %v9368_v37, %v11991_v24  ;;  %v8827_v24 = vpack.i.bf16 %v11576_v56, %v11581_v55 }
 0xc45   : > { %9369 = vrcp.f32 %v4984_v12 }
 0xc46   : > { %8421 = vmatpush.xpose.msk.msra.mxu2 %vm2311_vm8, %v5043_v61 }
 0xc4b   : > { %v9370_v50 = vpop.eup %9369  ;;  %5106 = vxpose.xlu1.b32.end [8/8] (short) (narrow) %v4270_v29, 8 }
 0xc4c   : > { %v4981_v38 = vpop.xlane.xlu1 %4980  ;;  %v5060_v60 = vmul.f32 %v9370_v50, %v12004_v51 }
 0xc4d   : > { %9371 = vrcp.f32 %v4981_v38 }
 0xc4e   : > { %8438 = vmatpush.xpose.msk.msra.mxu0 %vm2311_vm8, %v5060_v60 }
 0xc53   : > { %v9372_v27 = vpop.eup %9371  ;;  %8786 = vxpose.xlu1.b32.start.end [1/1] (short) (narrow) %v8785_v18, 64 }
 0xc54   : > { %v5059_v39 = vmul.f32 %v9372_v27, %v12009_v13  ;;  %v3114_v13 = vunpack.c.l.s4 %v9471_v0 }
 0xc56   : > { %8439 = vmatpush.xpose.msk.msra.mxu0 %vm2311_vm8, %v5059_v39  ;;  %v12057_v23 = vunpack.c.0.s8 %v3114_v13 }
 0xc93   : > { %8828 = vxpose.xlu1.b32.start.end [1/1] (short) (narrow) %v8827_v24, 64 }
 0xcb7   : > { %v5115_v14 = vpop.trf.xlu1 }
 0xcb8   : > { %8422 = vmatmul.msk.f32.vlgmr.msra.gmra.mxu2 %vm2311_vm8, %v5115_v14 }
 0xcf7   : > { %v8787_v51 = vpop.trf.xlu1 }
 0xcf8   : > { %v8791_v26 = vunpack.i.h.bf16 %v8787_v51  ;;  %v8788_v5 = vunpack.i.l.bf16 %v8787_v51 }
 0xcfa   : > { %v3111_v30 = vrot.slane %v8791_v26, 4  ;;  %v3108_v62 = vrot.slane %v8788_v5, 4 }
 0xcfc   : > { %v3110_v33 = vsel %vm3109_vm9, %v3108_v62, %v8791_v26  ;;  %v3112_v58 = vsel %vm3109_vm9, %v8788_v5, %v3111_v30 }
 0xcfd   : > { %v12062_v42 = vperm.slane %v3110_v33, %v12057_v23  ;;  %v12065_v8 = vperm.slane %v3112_v58, %v12057_v23 }
 0xcff   : > { %v8792_v31 = vpop.trf.xlu1  ;;  %v3135_v52 = vrot.slane %v12062_v42, 4  ;;  %v3147_v5 = vrot.slane %v12065_v8, 4 }
 0xd00   : > { %v8793_v45 = vunpack.i.l.bf16 %v8792_v31  ;;  %v8796_v56 = vunpack.i.h.bf16 %v8792_v31 }
 0xd02   : > { %v3165_v35 = vrot.slane %v8793_v45, 4  ;;  %v3167_v7 = vrot.slane %v8796_v56, 4 }
 0xd04   : > { %v3166_v44 = vsel %vm3109_vm9, %v3165_v35, %v8796_v56  ;;  %v3168_v59 = vsel %vm3109_vm9, %v8793_v45, %v3167_v7  ;;  %v9472_v56 = vmov 1934713408  }
 0xd05   : > { %v12074_v37 = vperm.slane %v3166_v44, %v12057_v23  ;;  %v12077_v38 = vperm.slane %v3168_v59, %v12057_v23 }
 0xd07   : > { %v8797_v28 = vpop.trf.xlu1  ;;  %v3203_v0 = vrot.slane %v12077_v38, 4 }
 0xd08   : > { %v8798_v55 = vunpack.i.l.bf16 %v8797_v28  ;;  %v8801_v3 = vunpack.i.h.bf16 %v8797_v28 }
 0xd0a   : > { %v3221_v54 = vrot.slane %v8798_v55, 4  ;;  %v3223_v29 = vrot.slane %v8801_v3, 4 }
 0xd0c   : > { %v3222_v11 = vsel %vm3109_vm9, %v3221_v54, %v8801_v3  ;;  %v3224_v60 = vsel %vm3109_vm9, %v8798_v55, %v3223_v29  ;;  %v3138_v55 = vunpack.c.l.s4 %v9472_v56 }
 0xd0d   : > { %v12081_v18 = vperm.slane %v3222_v11, %v12057_v23  ;;  %v12091_v13 = vperm.slane %v3224_v60, %v12057_v23 }
 0xd0f   : > { %v8802_v22 = vpop.trf.xlu1  ;;  %v3247_v30 = vrot.slane %v12081_v18, 4  ;;  %v3259_v44 = vrot.slane %v12091_v13, 4 }
 0xd10   : > { %v8806_v10 = vunpack.i.h.bf16 %v8802_v22  ;;  %v8803_v41 = vunpack.i.l.bf16 %v8802_v22 }
 0xd12   : > { %v3279_v34 = vrot.slane %v8806_v10, 4  ;;  %v3277_v1 = vrot.slane %v8803_v41, 4 }
 0xd14   : > { %v3278_v27 = vsel %vm3109_vm9, %v3277_v1, %v8806_v10  ;;  %v3280_v39 = vsel %vm3109_vm9, %v8803_v41, %v3279_v34 }
 0xd15   : > { %v12095_v62 = vperm.slane %v3278_v27, %v12057_v23  ;;  %v12098_v45 = vperm.slane %v3280_v39, %v12057_v23 }
 0xd17   : > { %v8807_v25 = vpop.trf.xlu1  ;;  %v3303_v29 = vrot.slane %v12095_v62, 4 }
 0xd18   : > { %v8811_v32 = vunpack.i.h.bf16 %v8807_v25  ;;  %v8808_v4 = vunpack.i.l.bf16 %v8807_v25 }
 0xd1a   : > { %v3335_v46 = vrot.slane %v8811_v32, 4  ;;  %v3333_v16 = vrot.slane %v8808_v4, 4 }
 0xd1c   : > { %v3334_v24 = vsel %vm3109_vm9, %v3333_v16, %v8811_v32  ;;  %v3336_v14 = vsel %vm3109_vm9, %v8808_v4, %v3335_v46 }
 0xd1d   : > { %v12101_v33 = vperm.slane %v3334_v24, %v12057_v23  ;;  %v12104_v58 = vperm.slane %v3336_v14, %v12057_v23 }
 0xd1f   : > { %v12055_v40 = vpop.trf.xlu1  ;;  %v3371_v60 = vrot.slane %v12104_v58, 4 }
 0xd20   : > { %v8816_v47 = vunpack.i.h.bf16 %v12055_v40  ;;  %v8813_v20 = vunpack.i.l.bf16 %v12055_v40  ;;  %v3191_v40 = vrot.slane %v12074_v37, 4 }
 0xd22   : > { %v3391_v51 = vrot.slane %v8816_v47, 4  ;;  %v3389_v31 = vrot.slane %v8813_v20, 4 }
 0xd24   : > { %v3392_v35 = vsel %vm3109_vm9, %v8813_v20, %v3391_v51 }
 0xd25   : > { %v12116_v11 = vperm.slane %v3392_v35, %v12057_v23 }
 0xd27   : > { %v8817_v48 = vpop.trf.xlu1 }
 0xd28   : > { %v8821_v12 = vunpack.i.h.bf16 %v8817_v48  ;;  %v8818_v61 = vunpack.i.l.bf16 %v8817_v48  ;;  %v3390_v48 = vsel %vm3109_vm9, %v3389_v31, %v8816_v47  ;;  %v3315_v47 = vrot.slane %v12098_v45, 4 }
 0xd29   : > { %v12113_v59 = vperm.slane %v3390_v48, %v12057_v23 }
 0xd2a   : > { %v3447_v28 = vrot.slane %v8821_v12, 4  ;;  %v3445_v22 = vrot.slane %v8818_v61, 4 }
 0xd2c   : > { %v3446_v3 = vsel %vm3109_vm9, %v3445_v22, %v8821_v12  ;;  %v3448_v7 = vsel %vm3109_vm9, %v8818_v61, %v3447_v28  ;;  %v12127_v61 = vunpack.c.0.s8 %v3138_v55 }
 0xd2d   : > { %v12119_v34 = vperm.slane %v3446_v3, %v12057_v23  ;;  %v12122_v1 = vperm.slane %v3448_v7, %v12057_v23 }
 0xd2f   : > { %v8822_v50 = vpop.trf.xlu1 }
 0xd30   : > { %v8826_v25 = vunpack.i.h.bf16 %v8822_v50  ;;  %v8823_v26 = vunpack.i.l.bf16 %v8822_v50  ;;  %v3359_v50 = vrot.slane %v12101_v33, 4 }
 0xd32   : > { %v3503_v54 = vrot.slane %v8826_v25, 4  ;;  %v3501_v10 = vrot.slane %v8823_v26, 4 }
 0xd34   : > { %v3502_v20 = vsel %vm3109_vm9, %v3501_v10, %v8826_v25  ;;  %v3504_v12 = vsel %vm3109_vm9, %v8823_v26, %v3503_v54 }
 0xd35   : > { %v12140_v25 = vperm.slane %v3502_v20, %v12057_v23  ;;  %v12143_v26 = vperm.slane %v3504_v12, %v12057_v23 }
 0xd37   : > { %v8829_v41 = vpop.trf.xlu1 }
 0xd38   : > { %v8833_v32 = vunpack.i.h.bf16 %v8829_v41  ;;  %v8830_v4 = vunpack.i.l.bf16 %v8829_v41 }
 0xd3a   : > { %v3123_v46 = vrot.slane %v8833_v32, 4  ;;  %v3121_v16 = vrot.slane %v8830_v4, 4 }
 0xd3c   : > { %v3122_v27 = vsel %vm3109_vm9, %v3121_v16, %v8833_v32  ;;  %v3124_v39 = vsel %vm3109_vm9, %v8830_v4, %v3123_v46 }
 0xd3d   : > { %v3128_v51 = vperm.slane %v3122_v27, %v12057_v23  ;;  %v3132_v31 = vperm.slane %v3124_v39, %v12057_v23 }
 0xd3f   : > { %v3133_v56 = vrot.slane %v3128_v51, 4  ;;  %v3136_v55 = vsel %vm3109_vm9, %v3128_v51, %v3135_v52  ;;  %v3145_v48 = vrot.slane %v3132_v31, 4  ;;  %v3148_v35 = vsel %vm3109_vm9, %v3132_v31, %v3147_v5  ;;  %v8834_v3 = vpop.trf.xlu1 }
 0xd40   : > { %v3144_v7 = vperm.slane %v3136_v55, %v12127_v61  ;;  %v3156_v54 = vperm.slane %v3148_v35, %v12127_v61  ;;  %v8838_v10 = vunpack.i.h.bf16 %v8834_v3  ;;  %v8835_v4 = vunpack.i.l.bf16 %v8834_v3 }
 0xd41   : > { %v3134_v41 = vsel %vm3109_vm9, %v3133_v56, %v12062_v42  ;;  %v3146_v32 = vsel %vm3109_vm9, %v3145_v48, %v12065_v8 }
 0xd42   : > { %v3140_v46 = vperm.slane %v3134_v41, %v12127_v61  ;;  %v3152_v52 = vperm.slane %v3146_v32, %v12127_v61  ;;  %v3159_v16 = vrot.slane %v3144_v7, 4  ;;  %v3163_v20 = vrot.slane %v3156_v54, 4 }
 0xd43   : > { %v3179_v27 = vrot.slane %v8838_v10, 4  ;;  %v3177_v39 = vrot.slane %v8835_v4, 4 }
 0xd44   : > { %v3157_v51 = vrot.slane %v3140_v46, 4  ;;  %v3160_v31 = vsel %vm3109_vm9, 0.0, %v3159_v16  ;;  %v3161_v42 = vrot.slane %v3152_v52, 4  ;;  %v12161_v56 = vsel %vm3109_vm9, 0.0, %v3163_v20 }
 0xd45   : > { %v3557_v8 = vsel %vm3109_vm9, %v3159_v16, %v3140_v46  ;;  %v3562_v55 = vrot.slane %v3160_v31, 4  ;;  %v3573_v48 = vrot.slane %v12161_v56, 4  ;;  %v3178_v35 = vsel %vm3109_vm9, %v3177_v39, %v8838_v10 }
 0xd46   : > { %v3158_v3 = vsel %vm3109_vm9, 0.0, %v3157_v51  ;;  %v3180_v7 = vsel %vm3109_vm9, %v8835_v4, %v3179_v27  ;;  %v3184_v54 = vperm.slane %v3178_v35, %v12057_v23  ;;  %v3162_v41 = vsel %vm3109_vm9, 0.0, %v3161_v42 }
 0xd47   : > { %v3188_v32 = vperm.slane %v3180_v7, %v12057_v23  ;;  %v8839_v5 = vpop.trf.xlu1  ;;  %v12172_v12 = vperm.slane %v3557_v8, %v12057_v23  ;;  %v3563_v46 = vsel %vm3109_vm9, %v3562_v55, %v3158_v3  ;;  %v3568_v16 = vsel %vm3109_vm9, %v3163_v20, %v3152_v52 }
 0xd48   : > { %v3189_v31 = vrot.slane %v3184_v54, 4  ;;  %v3192_v10 = vsel %vm3109_vm9, %v3184_v54, %v3191_v40  ;;  %v8843_v4 = vunpack.i.h.bf16 %v8839_v5  ;;  %v8840_v52 = vunpack.i.l.bf16 %v8839_v5 }
 0xd49   : > { %v3200_v27 = vperm.slane %v3192_v10, %v12127_v61  ;;  %v3201_v39 = vrot.slane %v3188_v32, 4  ;;  %v3204_v51 = vsel %vm3109_vm9, %v3188_v32, %v3203_v0  ;;  %v12190_v3 = vperm.slane %v3563_v46, %v12057_v23 }
 0xd4a   : > { %v3190_v42 = vsel %vm3109_vm9, %v3189_v31, %v12074_v37  ;;  %v3212_v8 = vperm.slane %v3204_v51, %v12127_v61  ;;  %v3235_v55 = vrot.slane %v8843_v4, 4  ;;  %v3233_v54 = vrot.slane %v8840_v52, 4 }
 0xd4b   : > { %v3196_v20 = vperm.slane %v3190_v42, %v12127_v61  ;;  %v3202_v40 = vsel %vm3109_vm9, %v3201_v39, %v12077_v38  ;;  %v3215_v35 = vrot.slane %v3200_v27, 4  ;;  %v3579_v9 = vrot.slane %v12190_v3, 4 }
 0xd4c   : > { %v12193_v7 = vperm.slane %v3202_v40, %v12127_v61  ;;  %v12195_v0 = vrot.slane %v3212_v8, 4  ;;  %v3236_v37 = vsel %vm3109_vm9, %v8840_v52, %v3235_v55  ;;  %v3234_v39 = vsel %vm3109_vm9, %v3233_v54, %v8843_v4 }
 0xd4d   : > { %v3213_v32 = vrot.slane %v3196_v20, 4  ;;  %v12199_v5 = vsel %vm3109_vm9, 0.0, %v3215_v35  ;;  %v12202_v31 = vsel %vm3109_vm9, %v3215_v35, %v3196_v20  ;;  %v3244_v38 = vperm.slane %v3236_v37, %v12057_v23 }
 0xd4e   : > { %v3217_v46 = vrot.slane %v12193_v7, 4  ;;  %v12208_v10 = vsel %vm3109_vm9, 0.0, %v12195_v0  ;;  %v3240_v8 = vperm.slane %v3234_v39, %v12057_v23 }
 0xd4f   : > { %v12213_v51 = vsel %vm3109_vm9, 0.0, %v3213_v32  ;;  %v3257_v55 = vrot.slane %v3244_v38, 4  ;;  %v8844_v52 = vpop.trf.xlu1  ;;  %v3260_v20 = vsel %vm3109_vm9, %v3244_v38, %v3259_v44 }
 0xd50   : > { %v8848_v40 = vunpack.i.h.bf16 %v8844_v52  ;;  %v3245_v35 = vrot.slane %v3240_v8, 4  ;;  %v3248_v37 = vsel %vm3109_vm9, %v3240_v8, %v3247_v30  ;;  %v3268_v54 = vperm.slane %v3260_v20, %v12127_v61 }
 0xd51   : > { %v3258_v4 = vsel %vm3109_vm9, %v3257_v55, %v12091_v13  ;;  %v3256_v32 = vperm.slane %v3248_v37, %v12127_v61  ;;  %v8845_v28 = vunpack.i.l.bf16 %v8844_v52  ;;  %v12235_v24 = vsel %vm3109_vm9, 0.0, %v3217_v46 }
 0xd52   : > { %v12228_v39 = vperm.slane %v3258_v4, %v12127_v61  ;;  %v3291_v22 = vrot.slane %v8848_v40, 4  ;;  %v3246_v44 = vsel %vm3109_vm9, %v3245_v35, %v12081_v18  ;;  %v12232_v38 = vrot.slane %v3268_v54, 4 }
 0xd53   : > { %v12238_v30 = vperm.slane %v3568_v16, %v12057_v23  ;;  %v12241_v13 = vperm.slane %v3246_v44, %v12127_v61  ;;  %v12243_v8 = vrot.slane %v3256_v32, 4  ;;  %v3289_v20 = vrot.slane %v8845_v28, 4 }
 0xd54   : > { %v3273_v55 = vrot.slane %v12228_v39, 4  ;;  %v12248_v52 = vsel %vm3109_vm9, 0.0, %v12232_v38  ;;  %v3292_v18 = vsel %vm3109_vm9, %v8845_v28, %v3291_v22  ;;  %v3574_v46 = vsel %vm3109_vm9, %v3573_v48, %v3162_v41 }
 0xd55   : > { %v3581_v16 = vrot.slane %v12172_v12, 4  ;;  %v3269_v35 = vrot.slane %v12241_v13, 4  ;;  %v12258_v37 = vsel %vm3109_vm9, 0.0, %v12243_v8  ;;  %v3290_v28 = vsel %vm3109_vm9, %v3289_v20, %v8848_v40 }
 0xd56   : > { %v12261_v4 = vsel %vm3109_vm9, 0.0, %v3273_v55  ;;  %v3300_v22 = vperm.slane %v3292_v18, %v12057_v23  ;;  %v12268_v48 = vperm.slane %v3574_v46, %v12057_v23  ;;  %v3296_v44 = vperm.slane %v3290_v28, %v12057_v23 }
 0xd57   : > { %v8849_v56 = vpop.trf.xlu1  ;;  %v12271_v41 = vsel %vm3109_vm9, 0.0, %v3269_v35  ;;  %v3582_v27 = vsel %vm3109_vm9, %v12190_v3, %v3581_v16 }
 0xd58   : > { %v8853_v14 = vunpack.i.h.bf16 %v8849_v56  ;;  %v3313_v55 = vrot.slane %v3300_v22, 4  ;;  %v3316_v54 = vsel %vm3109_vm9, %v3300_v22, %v3315_v47  ;;  %v8850_v32 = vunpack.i.l.bf16 %v8849_v56 }
 0xd59   : > { %v3301_v42 = vrot.slane %v3296_v44, 4  ;;  %v3304_v40 = vsel %vm3109_vm9, %v3296_v44, %v3303_v29  ;;  %v3324_v20 = vperm.slane %v3316_v54, %v12127_v61 }
 0xd5a   : > { %v3347_v18 = vrot.slane %v8853_v14, 4  ;;  %v3312_v46 = vperm.slane %v3304_v40, %v12127_v61  ;;  %v3314_v35 = vsel %vm3109_vm9, %v3313_v55, %v12098_v45  ;;  %v3345_v28 = vrot.slane %v8850_v32, 4 }
 0xd5b   : > { %v3302_v47 = vsel %vm3109_vm9, %v3301_v42, %v12095_v62  ;;  %v12289_v22 = vperm.slane %v3314_v35, %v12127_v61  ;;  %v12291_v56 = vrot.slane %v3324_v20, 4  ;;  %v3590_v40 = vperm.slane %v3582_v27, %v12127_v61 }
 0xd5c   : > { %v3348_v29 = vsel %vm3109_vm9, %v8850_v32, %v3347_v18  ;;  %v12295_v54 = vperm.slane %v3302_v47, %v12127_v61  ;;  %v12297_v44 = vrot.slane %v3312_v46, 4  ;;  %v3346_v45 = vsel %vm3109_vm9, %v3345_v28, %v8853_v14 }
 0xd5d   : > { %v3356_v55 = vperm.slane %v3348_v29, %v12057_v23  ;;  %v3329_v16 = vrot.slane %v12289_v22, 4  ;;  %v12304_v62 = vsel %vm3109_vm9, 0.0, %v12291_v56  ;;  %v3352_v42 = vperm.slane %v3346_v45, %v12057_v23 }
 0xd5e   : > { %v3325_v32 = vrot.slane %v12295_v54, 4  ;;  %v12311_v20 = vsel %vm3109_vm9, 0.0, %v12297_v44  ;;  %v3609_v6 = vrot.slane %v3590_v40, 4 }
 0xd5f   : > { %v3369_v18 = vrot.slane %v3356_v55, 4  ;;  %v12315_v46 = vsel %vm3109_vm9, 0.0, %v3329_v16  ;;  %v3357_v28 = vrot.slane %v3352_v42, 4  ;;  %v3360_v47 = vsel %vm3109_vm9, %v3352_v42, %v3359_v50 }
 0xd60   : > { %v12322_v27 = vsel %vm3109_vm9, 0.0, %v3325_v32  ;;  %v3368_v29 = vperm.slane %v3360_v47, %v12127_v61  ;;  %v3372_v16 = vsel %vm3109_vm9, %v3356_v55, %v3371_v60  ;;  %v3593_v42 = vrot.slane %v12238_v30, 4 }
 0xd61   : > { %v3370_v45 = vsel %vm3109_vm9, %v3369_v18, %v12104_v58  ;;  %v3358_v14 = vsel %vm3109_vm9, %v3357_v28, %v12101_v33  ;;  %v3380_v50 = vperm.slane %v3372_v16, %v12127_v61  ;;  %v3615_v18 = vperm.slane %v12202_v31, %v12057_v23  ;;  %v12340_v58 = vpop.trf.xlu1 }
 0xd62   : > { %v12333_v35 = vperm.slane %v3370_v45, %v12127_v61  ;;  %v3364_v32 = vperm.slane %v3358_v14, %v12127_v61  ;;  %v3383_v47 = vrot.slane %v3368_v29, 4  ;;  %v3594_v33 = vsel %vm3109_vm9, %v12268_v48, %v3593_v42 }
 0xd63   : > { %v12343_v55 = vrot.slane %v3380_v50, 4  ;;  %v14962_v28 = vrot.slane %v12199_v5, 4  ;;  %v3602_v16 = vperm.slane %v3594_v33, %v12127_v61  ;;  %v3622_v5 = vsel %vm3109_vm9, %v12195_v0, %v12193_v7 }
 0xd64   : > { %v3381_v14 = vrot.slane %v3364_v32, 4  ;;  %v12352_v29 = vsel %vm3109_vm9, 0.0, %v3383_v47  ;;  %v12355_v31 = vsel %vm3109_vm9, %v3383_v47, %v3364_v32  ;;  %v3626_v33 = vperm.slane %v3622_v5, %v12057_v23 }
 0xd65   : > { %v3617_v45 = vsel %vm3109_vm9, %v14962_v28, %v12213_v51  ;;  %v12360_v50 = vsel %vm3109_vm9, 0.0, %v12343_v55  ;;  %v3610_v47 = vsel %vm3109_vm9, %v3602_v16, %v3609_v6  ;;  %v14963_v28 = vrot.slane %v12208_v10, 4 }
 0xd66   : > { %v3621_v60 = vperm.slane %v3617_v45, %v12057_v23  ;;  %v12368_v51 = vsel %vm3109_vm9, 0.0, %v3381_v14  ;;  %v3635_v21 = vrot.slane %v3615_v18, 4  ;;  %v3607_v45 = vrot.slane %v3602_v16, 4 }
 0xd67   : > { %v3628_v42 = vsel %vm3109_vm9, %v14963_v28, %v12235_v24  ;;  %v3647_v0 = vrot.slane %v3626_v33, 4  ;;  %v3591_v14 = vrot.slane %v12268_v48, 4  ;;  %v3580_v5 = vsel %vm3109_vm9, %v3579_v9, %v12172_v12 }
 0xd68   : > { %v3632_v7 = vperm.slane %v3628_v42, %v12057_v23  ;;  %v3633_v36 = vrot.slane %v3621_v60, 4  ;;  %v3636_v32 = vsel %vm3109_vm9, %v3621_v60, %v3635_v21  ;;  %v3608_v6 = vsel %vm3109_vm9, %v3607_v45, %v3590_v40 }
 0xd69   : > { %v8858_v10 = vunpack.i.h.bf16 %v12340_v58  ;;  %v3644_v24 = vperm.slane %v3636_v32, %v12127_v61  ;;  %v12388_v3 = vperm.slane %v3580_v5, %v12127_v61  ;;  %v3592_v48 = vsel %vm3109_vm9, %v3591_v14, %v12238_v30  ;;  %v8859_v45 = vpop.trf.xlu1 }
 0xd6a   : > { %v3648_v16 = vsel %vm3109_vm9, %v3632_v7, %v3647_v0  ;;  %v12394_v21 = vperm.slane %v3592_v48, %v12127_v61  ;;  %v3634_v40 = vsel %vm3109_vm9, %v3633_v36, %v3615_v18  ;;  %v3645_v9 = vrot.slane %v3632_v7, 4 }
 0xd6b   : > { %v3656_v42 = vperm.slane %v3648_v16, %v12127_v61  ;;  %v3663_v12 = vrot.slane %v3644_v24, 4  ;;  %v3605_v60 = vrot.slane %v12388_v3, 4  ;;  %v12399_v32 = vperm.slane %v3634_v40, %v12127_v61 }
 0xd6c   : > { %v3403_v28 = vrot.slane %v8858_v10, 4  ;;  %v3646_v5 = vsel %vm3109_vm9, %v3645_v9, %v3626_v33  ;;  %v8855_v48 = vunpack.i.l.bf16 %v12340_v58  ;;  %v8863_v40 = vunpack.i.h.bf16 %v8859_v45 }
 0xd6d   : > { %v3661_v0 = vrot.slane %v3656_v42, 4  ;;  %v3664_v30 = vsel %vm3109_vm9, %v3656_v42, %v3663_v12  ;;  %v3606_v14 = vsel %vm3109_vm9, %v12394_v21, %v3605_v60  ;;  %v12406_v16 = vperm.slane %v3646_v5, %v12127_v61 }
 0xd6e   : > { %v3659_v36 = vrot.slane %v12399_v32, 4  ;;  %v8879_v18 = vpack.i.bf16 %v3664_v30, %v3610_v47  ;;  %v3401_v9 = vrot.slane %v8855_v48, 4  ;;  %v3404_v12 = vsel %vm3109_vm9, %v8855_v48, %v3403_v28 }
 0xd6f   : > { %v3662_v7 = vsel %vm3109_vm9, %v3661_v0, %v3644_v24  ;;  %v3459_v60 = vrot.slane %v8863_v40, 4  ;;  %v3412_v47 = vperm.slane %v3404_v12, %v12057_v23  ;;  %v8860_v24 = vunpack.i.l.bf16 %v8859_v45 }
 0xd70   : > { %v8874_v57 = vpack.i.bf16 %v3662_v7, %v3608_v6  ;;  %v3660_v33 = vsel %vm3109_vm9, %v12406_v16, %v3659_v36  ;;  %8880 = vrot.lane.b32.xlu1 %v8879_v18, %s9473_s0  ;;  %v3665_v58 = vsel %vm3109_vm9, %v12243_v8, %v12241_v13  ;;  %v14964_v6 = vrot.slane %v12258_v37, 4 }
 0xd71   : > { %v8869_v42 = vpack.i.bf16 %v3660_v33, %v3606_v14  ;;  %v3402_v28 = vsel %vm3109_vm9, %v3401_v9, %v8858_v10  ;;  %v12427_v5 = vperm.slane %v3665_v58, %v12057_v23  ;;  %v3676_v13 = vsel %vm3109_vm9, %v12232_v38, %v12228_v39 }
 0xd72   : > { %8875 = vrot.lane.b32.xlu0 %v8874_v57, %s9474_s21  ;;  %v3671_v0 = vsel %vm3109_vm9, %v14964_v6, %v12271_v41  ;;  %v3408_v8 = vperm.slane %v3402_v28, %v12057_v23  ;;  %v3425_v37 = vrot.slane %v3412_v47, 4  ;;  %v14965_v41 = vrot.slane %v12116_v11, 4 }
 0xd73   : > { %8870 = vrot.lane.b32.xlu2 %v8869_v42, %s9475_s2  ;;  %v12430_v57 = vperm.slane %v3671_v0, %v12057_v23  ;;  %v3457_v30 = vrot.slane %v8860_v24, 4  ;;  %v3460_v14 = vsel %vm3109_vm9, %v8860_v24, %v3459_v60  ;;  %v12442_v36 = vperm.slane %v3676_v13, %v12057_v23 }
 0xd74   : > { %v3428_v45 = vsel %vm3109_vm9, %v3412_v47, %v14965_v41  ;;  %v14966_v18 = vrot.slane %v12248_v52, 4  ;;  %v3413_v38 = vrot.slane %v3408_v8, 4  ;;  %v14967_v7 = vrot.slane %v12113_v59, 4 }
 0xd75   : > { %v3436_v10 = vperm.slane %v3428_v45, %v12127_v61  ;;  %v3426_v33 = vsel %vm3109_vm9, %v3425_v37, %v12116_v11  ;;  %v3458_v42 = vsel %vm3109_vm9, %v3457_v30, %v8863_v40  ;;  %v3468_v47 = vperm.slane %v3460_v14, %v12057_v23 }
 0xd76   : > { %v3682_v39 = vsel %vm3109_vm9, %v14966_v18, %v12261_v4  ;;  %v3416_v48 = vsel %vm3109_vm9, %v3408_v8, %v14967_v7  ;;  %v12456_v12 = vperm.slane %v3426_v33, %v12127_v61  ;;  %v3464_v52 = vperm.slane %v3458_v42, %v12057_v23 }
 0xd77   : > { %v3424_v9 = vperm.slane %v3416_v48, %v12127_v61  ;;  %v12458_v60 = vrot.slane %v3436_v10, 4  ;;  %v3414_v4 = vsel %vm3109_vm9, %v3413_v38, %v12113_v59  ;;  %v12465_v24 = vperm.slane %v3682_v39, %v12057_v23 }
 0xd78   : > { %v3687_v11 = vrot.slane %v12430_v57, 4  ;;  %v3420_v40 = vperm.slane %v3414_v4, %v12127_v61  ;;  %v3441_v6 = vrot.slane %v12456_v12, 4  ;;  %v3469_v13 = vrot.slane %v3464_v52, 4 }
 0xd79   : > { %v3439_v58 = vrot.slane %v3424_v9, 4  ;;  %v12472_v0 = vsel %vm3109_vm9, 0.0, %v12458_v60  ;;  %v14968_v59 = vrot.slane %v12119_v34, 4  ;;  %v3481_v37 = vrot.slane %v3468_v47, 4 }
 0xd7a   : > { %v3437_v41 = vrot.slane %v3420_v40, 4  ;;  %v3470_v18 = vsel %vm3109_vm9, %v3469_v13, %v12119_v34  ;;  %v14969_v38 = vrot.slane %v12122_v1, 4  ;;  %v3688_v34 = vsel %vm3109_vm9, %v3687_v11, %v12427_v5 }
 0xd7b   : > { %v3472_v8 = vsel %vm3109_vm9, %v3464_v52, %v14968_v59  ;;  %v12479_v45 = vsel %vm3109_vm9, 0.0, %v3439_v58  ;;  %v12482_v30 = vsel %vm3109_vm9, %v3439_v58, %v3420_v40  ;;  %v3482_v39 = vsel %vm3109_vm9, %v3481_v37, %v12122_v1  ;;  %v8864_v37 = vpop.trf.xlu1 }
 0xd7c   : > { %v3480_v10 = vperm.slane %v3472_v8, %v12127_v61  ;;  %v3832_v14 = vrot.slane %v12479_v45, 4  ;;  %v3484_v7 = vsel %vm3109_vm9, %v3468_v47, %v14969_v38  ;;  %v12494_v48 = vsel %vm3109_vm9, 0.0, %v3437_v41 }
 0xd7d   : > { %v12497_v33 = vperm.slane %v3470_v18, %v12127_v61  ;;  %v12500_v42 = vperm.slane %v3482_v39, %v12127_v61  ;;  %v3492_v9 = vperm.slane %v3484_v7, %v12127_v61  ;;  %v3699_v1 = vrot.slane %v12465_v24, 4 }
 0xd7e   : > { %v12503_v52 = vrot.slane %v3480_v10, 4  ;;  %v3719_v4 = vsel %vm3109_vm9, %v12297_v44, %v12295_v54  ;;  %v12516_v13 = vperm.slane %v3688_v34, %v12127_v61  ;;  %v14970_v54 = vrot.slane %v12311_v20, 4 }
 0xd7f   : > { %v3493_v47 = vrot.slane %v12497_v33, 4  ;;  %v3497_v40 = vrot.slane %v12500_v42, 4  ;;  %v12513_v58 = vrot.slane %v3492_v9, 4  ;;  %v3700_v11 = vsel %vm3109_vm9, %v3699_v1, %v12442_v36 }
 0xd80   : > { %v12520_v59 = vsel %vm3109_vm9, 0.0, %v12503_v52  ;;  %v3723_v8 = vperm.slane %v3719_v4, %v12057_v23  ;;  %v3725_v44 = vsel %vm3109_vm9, %v14970_v54, %v12322_v27  ;;  %v12542_v7 = vperm.slane %v3700_v11, %v12127_v61 }
 0xd81   : > { %v12530_v41 = vsel %vm3109_vm9, 0.0, %v3493_v47  ;;  %v12533_v10 = vsel %vm3109_vm9, 0.0, %v3497_v40  ;;  %v12537_v18 = vsel %vm3109_vm9, 0.0, %v12513_v58  ;;  %v3713_v20 = vrot.slane %v12516_v13, 4 }
 0xd82   : > { %v3729_v27 = vperm.slane %v3725_v44, %v12057_v23  ;;  %v3730_v9 = vsel %vm3109_vm9, %v12291_v56, %v12289_v22  ;;  %v14971_v34 = vrot.slane %v12304_v62, 4  ;;  %v8868_v4 = vunpack.i.h.bf16 %v8864_v37 }
 0xd83   : > { %v3714_v47 = vsel %vm3109_vm9, %v12542_v7, %v3713_v20  ;;  %v3734_v40 = vperm.slane %v3730_v9, %v12057_v23  ;;  %v8865_v44 = vunpack.i.l.bf16 %v8864_v37  ;;  %v3689_v39 = vrot.slane %v12427_v5, 4 }
 0xd84   : > { %v3736_v1 = vsel %vm3109_vm9, %v14971_v34, %v12315_v46  ;;  %v3741_v54 = vrot.slane %v3729_v27, 4  ;;  %v3515_v38 = vrot.slane %v8868_v4, 4  ;;  %v3701_v62 = vrot.slane %v12442_v36, 4 }
 0xd85   : > { %v3740_v11 = vperm.slane %v3736_v1, %v12057_v23  ;;  %v3743_v28 = vrot.slane %v3723_v8, 4  ;;  %v3513_v34 = vrot.slane %v8865_v44, 4  ;;  %v3690_v9 = vsel %vm3109_vm9, %v12430_v57, %v3689_v39 }
 0xd86   : > { %v3742_v22 = vsel %vm3109_vm9, %v3741_v54, %v3723_v8  ;;  %v3516_v20 = vsel %vm3109_vm9, %v8865_v44, %v3515_v38  ;;  %v12569_v5 = vperm.slane %v3690_v9, %v12127_v61  ;;  %v3702_v36 = vsel %vm3109_vm9, %v12465_v24, %v3701_v62 }
 0xd87   : > { %v3753_v56 = vrot.slane %v3740_v11, 4  ;;  %v12561_v46 = vperm.slane %v3742_v22, %v12127_v61  ;;  %v3524_v37 = vperm.slane %v3516_v20, %v12057_v23  ;;  %v3514_v38 = vsel %vm3109_vm9, %v3513_v34, %v8868_v4 }
 0xd88   : > { %v12579_v44 = vperm.slane %v3702_v36, %v12127_v61  ;;  %v3520_v57 = vperm.slane %v3514_v38, %v12057_v23  ;;  %v14972_v22 = vrot.slane %v12143_v26, 4  ;;  %v3744_v20 = vsel %vm3109_vm9, %v3729_v27, %v3743_v28 }
 0xd89   : > { %v3754_v1 = vsel %vm3109_vm9, %v3753_v56, %v3734_v40  ;;  %v3767_v54 = vrot.slane %v12561_v46, 4  ;;  %v3537_v39 = vrot.slane %v3524_v37, 4  ;;  %v12591_v4 = vperm.slane %v3744_v20, %v12127_v61 }
 0xd8a   : > { %v12574_v8 = vperm.slane %v3754_v1, %v12127_v61  ;;  %v3540_v56 = vsel %vm3109_vm9, %v3524_v37, %v14972_v22  ;;  %v3715_v9 = vrot.slane %v12579_v44, 4  ;;  %v3525_v1 = vrot.slane %v3520_v57, 4 }
 0xd8b   : > { %v3548_v62 = vperm.slane %v3540_v56, %v12127_v61  ;;  %v14973_v36 = vrot.slane %v12140_v25, 4  ;;  %v3538_v37 = vsel %vm3109_vm9, %v3537_v39, %v12143_v26  ;;  %v3755_v56 = vrot.slane %v3734_v40, 4 }
 0xd8c   : > { %v3768_v24 = vsel %vm3109_vm9, %v12574_v8, %v3767_v54  ;;  %v12600_v27 = vperm.slane %v3538_v37, %v12127_v61  ;;  %v3716_v22 = vsel %vm3109_vm9, %v3715_v9, %v12569_v5  ;;  %v3442_v39 = vsel %vm3109_vm9, 0.0, %v3441_v6 }
 0xd8d   : > { %v8884_v34 = vpack.i.bf16 %v3768_v24, %v3714_v47  ;;  %v3528_v38 = vsel %vm3109_vm9, %v3520_v57, %v14973_v36  ;;  %v12602_v54 = vrot.slane %v3548_v62, 4  ;;  %v3526_v47 = vsel %vm3109_vm9, %v3525_v1, %v12140_v25 }
 0xd8e   : > { %v3536_v28 = vperm.slane %v3528_v38, %v12127_v61  ;;  %v14974_v57 = vrot.slane %v12333_v35, 4  ;;  %v3532_v20 = vperm.slane %v3526_v47, %v12127_v61  ;;  %v3553_v62 = vrot.slane %v12600_v27, 4 }
 0xd8f   : > { %8885 = vrot.lane.b32.xlu2 %v8884_v34, %s9475_s2  ;;  %v12619_v9 = vsel %vm3109_vm9, 0.0, %v12602_v54  ;;  %v3756_v40 = vsel %vm3109_vm9, %v3740_v11, %v3755_v56  ;;  %v12625_v34 = vperm.slane %v12355_v31, %v12057_v23  ;;  %v14975_v6 = vrot.slane %v12352_v29, 4 }
 0xd90   : > { %v3386_v26 = vsel %vm3109_vm9, 0.0, %v14974_v57  ;;  %v3551_v24 = vrot.slane %v3536_v28, 4  ;;  %v3951_v25 = vrot.slane %v12619_v9, 4  ;;  %v3549_v36 = vrot.slane %v3532_v20, 4 }
 0xd91   : > { %v3779_v1 = vsel %vm3109_vm9, %v14975_v6, %v12368_v51  ;;  %v3554_v37 = vsel %vm3109_vm9, 0.0, %v3553_v62  ;;  %v3764_v28 = vperm.slane %v3756_v40, %v12127_v61  ;;  %v3784_v31 = vsel %vm3109_vm9, %v12343_v55, %v12333_v35 }
 0xd92   : > { %v3552_v38 = vsel %vm3109_vm9, 0.0, %v3551_v24  ;;  %v12635_v57 = vperm.slane %v3779_v1, %v12057_v23  ;;  %v14976_v11 = vrot.slane %v12360_v50, 4  ;;  %v3550_v51 = vsel %vm3109_vm9, 0.0, %v3549_v36 }
 0xd93   : > { %v3940_v47 = vrot.slane %v3552_v38, 4  ;;  %v3769_v56 = vrot.slane %v3764_v28, 4  ;;  %v12645_v6 = vperm.slane %v3784_v31, %v12057_v23  ;;  %v3797_v40 = vrot.slane %v12625_v34, 4 }
 0xd94   : > { %v3790_v29 = vsel %vm3109_vm9, %v14976_v11, %v3386_v26  ;;  %v12653_v1 = vperm.slane %v12482_v30, %v12057_v23  ;;  %v3833_v35 = vsel %vm3109_vm9, %v3832_v14, %v12494_v48  ;;  %v3838_v55 = vsel %vm3109_vm9, %v12458_v60, %v12456_v12  ;;  %5131 = vxpose.xlu0.b32.start [1/8] (short) (narrow) %v11740_v63, 8 }
 0xd95   : > { %v12648_v62 = vperm.slane %v3790_v29, %v12057_v23  ;;  %v3770_v50 = vsel %vm3109_vm9, %v3769_v56, %v12591_v4  ;;  %v3809_v26 = vrot.slane %v12645_v6, 4  ;;  %v12667_v36 = vperm.slane %v3833_v35, %v12057_v23 }
 0xd96   : > { %v12670_v30 = vperm.slane %v3838_v55, %v12057_v23  ;;  %v8889_v45 = vpack.i.bf16 %v3770_v50, %v3716_v22  ;;  %v3798_v14 = vsel %vm3109_vm9, %v12635_v57, %v3797_v40  ;;  %v14977_v48 = vrot.slane %v12472_v0, 4 }
 0xd97   : > { %v3851_v63 = vrot.slane %v12653_v1, 4  ;;  %v12679_v60 = vperm.slane %v3798_v14, %v12127_v61  ;;  %v3810_v38 = vsel %vm3109_vm9, %v12648_v62, %v3809_v26  ;;  %v3771_v29 = vrot.slane %v12591_v4, 4 }
 0xd98   : > { %v3844_v12 = vsel %vm3109_vm9, %v14977_v48, %v3442_v39  ;;  %v3863_v22 = vrot.slane %v12670_v30, 4  ;;  %8890 = vrot.lane.b32.xlu2 %v8889_v45, %s9474_s21  ;;  %v12689_v11 = vperm.slane %v3810_v38, %v12127_v61  ;;  %v3717_v39 = vrot.slane %v12569_v5, 4 }
 0xd99   : > { %v12684_v31 = vperm.slane %v3844_v12, %v12057_v23  ;;  %v3852_v0 = vsel %vm3109_vm9, %v12667_v36, %v3851_v63  ;;  %v3825_v56 = vrot.slane %v12679_v60, 4  ;;  %v3881_v55 = vsel %vm3109_vm9, %v12503_v52, %v12497_v33 }
 0xd9a   : > { %v12697_v40 = vperm.slane %v3852_v0, %v12127_v61  ;;  %v3718_v5 = vsel %vm3109_vm9, %v12579_v44, %v3717_v39  ;;  %v3772_v4 = vsel %vm3109_vm9, %v3764_v28, %v3771_v29  ;;  %v3885_v26 = vperm.slane %v3881_v55, %v12057_v23 }
 0xd9b   : > { %v3864_v35 = vsel %vm3109_vm9, %v12684_v31, %v3863_v22  ;;  %v3826_v45 = vsel %vm3109_vm9, %v12689_v11, %v3825_v56  ;;  %v8894_v48 = vpack.i.bf16 %v3772_v4, %v3718_v5  ;;  %v14978_v12 = vrot.slane %v12520_v59, 4 }
 0xd9c   : > { %v12705_v50 = vperm.slane %v3864_v35, %v12127_v61  ;;  %v3879_v14 = vrot.slane %v12697_v40, 4  ;;  %5132 = vxpose.xlu0.b32.cont [2/8] (short) (narrow) %v11555_v2, 8  ;;  %v3892_v44 = vsel %vm3109_vm9, %v12513_v58, %v12500_v42  ;;  %v14979_v28 = vrot.slane %v12537_v18, 4 }
 0xd9d   : > { %v3887_v33 = vsel %vm3109_vm9, %v14978_v12, %v12530_v41  ;;  %v3935_v38 = vsel %vm3109_vm9, %v3551_v24, %v3532_v20  ;;  %v3896_v41 = vperm.slane %v3892_v44, %v12057_v23  ;;  %v3941_v42 = vsel %vm3109_vm9, %v3940_v47, %v3550_v51 }
 0xd9e   : > { %v3891_v52 = vperm.slane %v3887_v33, %v12057_v23  ;;  %v3898_v63 = vsel %vm3109_vm9, %v14979_v28, %v12533_v10  ;;  %v3880_v59 = vsel %vm3109_vm9, %v12705_v50, %v3879_v14  ;;  %v3939_v22 = vperm.slane %v3935_v38, %v12057_v23 }
 0xd9f   : > { %v3902_v2 = vperm.slane %v3898_v63, %v12057_v23  ;;  %v8993_v0 = vpack.i.bf16 %v3880_v59, %v3826_v45  ;;  %v3946_v58 = vsel %vm3109_vm9, %v12602_v54, %v12600_v27  ;;  %v3945_v18 = vperm.slane %v3941_v42, %v12057_v23 }
 0xda0   : > { %v3903_v39 = vrot.slane %v3891_v52, 4  ;;  %v3950_v20 = vperm.slane %v3946_v58, %v12057_v23  ;;  %v3952_v24 = vsel %vm3109_vm9, %v3951_v25, %v3554_v37  ;;  %8895 = vrot.lane.b32.xlu2 %v8894_v48, %s9473_s0  ;;  %v3905_v51 = vrot.slane %v3885_v26, 4 }
 0xda1   : > { %v3915_v10 = vrot.slane %v3902_v2, 4  ;;  %8994 = vrot.lane.b32.xlu1 %v8993_v0, %s9473_s0  ;;  %v3956_v47 = vperm.slane %v3952_v24, %v12057_v23  ;;  %v3917_v56 = vrot.slane %v3896_v41, 4  ;;  %v3957_v35 = vrot.slane %v3945_v18, 4 }
 0xda2   : > { %v3904_v29 = vsel %vm3109_vm9, %v3903_v39, %v3885_v26  ;;  %v3959_v55 = vrot.slane %v3939_v22, 4  ;;  %v3906_v37 = vsel %vm3109_vm9, %v3891_v52, %v3905_v51  ;;  %v3971_v52 = vrot.slane %v3950_v20, 4 }
 0xda3   : > { %v12747_v27 = vperm.slane %v3904_v29, %v12127_v61  ;;  %v3916_v54 = vsel %vm3109_vm9, %v3915_v10, %v3896_v41  ;;  %v3969_v25 = vrot.slane %v3956_v47, 4  ;;  %v3918_v5 = vsel %vm3109_vm9, %v3902_v2, %v3917_v56 }
 0xda4   : > { %v12751_v9 = vperm.slane %v3916_v54, %v12127_v61  ;;  %v3958_v26 = vsel %vm3109_vm9, %v3957_v35, %v3939_v22  ;;  %v3914_v45 = vperm.slane %v3906_v37, %v12127_v61  ;;  %v3926_v14 = vperm.slane %v3918_v5, %v12127_v61  ;;  %5133 = vxpose.xlu0.b32.cont [3/8] (short) (narrow) %v11744_v15, 8 }
 0xda5   : > { %v3929_v4 = vrot.slane %v12747_v27, 4  ;;  %v12760_v48 = vperm.slane %v3958_v26, %v12127_v61  ;;  %v3970_v12 = vsel %vm3109_vm9, %v3969_v25, %v3950_v20  ;;  %v3960_v33 = vsel %vm3109_vm9, %v3945_v18, %v3959_v55  ;;  %v14980_v25 = vld [vmem:[#allocation5_spill] sm:$0xff] }
 0xda6   : > { %v3976_v28 = vperm.slane %v3970_v12, %v12127_v61  ;;  %v3931_v63 = vrot.slane %v3926_v14, 4  ;;  %v3968_v38 = vperm.slane %v3960_v33, %v12127_v61  ;;  %v3972_v41 = vsel %vm3109_vm9, %v3956_v47, %v3971_v52 }
 0xda7   : > { %v3930_v44 = vsel %vm3109_vm9, %v12751_v9, %v3929_v4  ;;  %v3983_v59 = vrot.slane %v12760_v48, 4  ;;  %v3933_v2 = vrot.slane %v3914_v45, 4  ;;  %v3603_v22 = vrot.slane %v12394_v21, 4 }
 0xda8   : > { %v3932_v15 = vsel %vm3109_vm9, %v3931_v63, %v3914_v45  ;;  %v3980_v0 = vperm.slane %v3972_v41, %v12127_v61  ;;  %v3987_v39 = vrot.slane %v3968_v38, 4  ;;  %v3657_v42 = vrot.slane %v12406_v16, 4  ;;  %v14982_v41 = vld [vmem:[#allocation11_spill] sm:$0xff] }
 0xda9   : > { %v3984_v58 = vsel %vm3109_vm9, %v3976_v28, %v3983_v59  ;;  %v3934_v10 = vsel %vm3109_vm9, %v3926_v14, %v3933_v2  ;;  %v12779_v18 = vsel %vm3109_vm9, %v3603_v22, %v12388_v3  ;;  %v3711_v20 = vrot.slane %v12542_v7, 4  ;;  %v4316_v2 = vpop.permute.xlu0 %4315  ;;  %v14985_v22 = vld [vmem:[#allocation27_spill] sm:$0xff] }
 0xdaa   : > { %v8998_v24 = vpack.i.bf16 %v3984_v58, %v3930_v44  ;;  %v3985_v29 = vrot.slane %v3980_v0, 4  ;;  %v3988_v21 = vsel %vm3109_vm9, %v3980_v0, %v3987_v39  ;;  %v12785_v47 = vsel %vm3109_vm9, %v3657_v42, %v12399_v32  ;;  %v14981_v44 = vld [vmem:[#allocation9_spill] sm:$0xff] }
 0xdab   : > { %v9008_v51 = vpack.i.bf16 %v3988_v21, %v3934_v10  ;;  %v12789_v16 = vsel %vm3109_vm9, %v3711_v20, %v12516_v13  ;;  %v3765_v56 = vrot.slane %v12574_v8, 4  ;;  %v3795_v3 = vrot.slane %v12635_v57, 4  ;;  %v14988_v21 = vld [vmem:[#allocation35_spill] sm:$0xff] }
 0xdac   : > { %8999 = vrot.lane.b32.xlu1 %v8998_v24, %s9475_s2  ;;  %v3986_v7 = vsel %vm3109_vm9, %v3985_v29, %v3968_v38  ;;  %v3807_v54 = vrot.slane %v12648_v62, 4  ;;  %v3849_v35 = vrot.slane %v12667_v36, 4  ;;  %v3861_v32 = vrot.slane %v12684_v31, 4  ;;  %5134 = vxpose.xlu0.b32.cont [4/8] (short) (narrow) %v14980_v25, 8 }
 0xdad   : > { %v9003_v55 = vpack.i.bf16 %v3986_v7, %v3932_v15  ;;  %v12801_v13 = vsel %vm3109_vm9, %v3765_v56, %v12561_v46  ;;  %v3796_v8 = vsel %vm3109_vm9, %v3795_v3, %v12625_v34  ;;  %v3823_v57 = vrot.slane %v12689_v11, 4 }
 0xdae   : > { %v3802_v37 = vperm.slane %v3796_v8, %v12127_v61  ;;  %v3808_v62 = vsel %vm3109_vm9, %v3807_v54, %v12645_v6  ;;  %v3850_v36 = vsel %vm3109_vm9, %v3849_v35, %v12653_v1  ;;  %v3862_v31 = vsel %vm3109_vm9, %v3861_v32, %v12670_v30  ;;  %v14989_v35 = vld [vmem:[#allocation38_spill] sm:$0xff] }
 0xdaf   : > { %v3814_v5 = vperm.slane %v3808_v62, %v12127_v61  ;;  %v3856_v46 = vperm.slane %v3850_v36, %v12127_v61  ;;  %v3868_v4 = vperm.slane %v3862_v31, %v12127_v61  ;;  %v12818_v34 = vsel %vm3109_vm9, %v3823_v57, %v12679_v60  ;;  %v14990_v32 = vld [vmem:[#allocation6_spill] sm:$0xff] }
 0xdb0   : > { %v3821_v11 = vrot.slane %v3802_v37, 4  ;;  %v3877_v26 = vrot.slane %v12705_v50, 4  ;;  %v3981_v38 = vrot.slane %v3976_v28, 4  ;;  %v14987_v28 = vld [vmem:[#allocation28_spill] sm:$0xff] }
 0xdb1   : > { %v3875_v6 = vrot.slane %v3856_v46, 4  ;;  %v3819_v45 = vrot.slane %v3814_v5, 4  ;;  %v3873_v14 = vrot.slane %v3868_v4, 4  ;;  %v4318_v15 = vpop.permute.xlu0 %4317 }
 0xdb2   : > { %v12822_v1 = vsel %vm3109_vm9, %v3814_v5, %v3821_v11  ;;  %v12826_v30 = vsel %vm3109_vm9, %v3877_v26, %v12697_v40  ;;  %v3927_v40 = vrot.slane %v12751_v9, 4  ;;  %v12852_v59 = vsel %vm3109_vm9, %v3981_v38, %v12760_v48  ;;  %v14983_v9 = vld [vmem:[#allocation25_spill] sm:$0xff] }
 0xdb3   : > { %v12829_v12 = vsel %vm3109_vm9, %v3868_v4, %v3875_v6  ;;  %v8988_v60 = vpack.i.bf16 %v12826_v30, %v12818_v34  ;;  %v12834_v33 = vsel %vm3109_vm9, %v3819_v45, %v3802_v37  ;;  %v12837_v50 = vsel %vm3109_vm9, %v3873_v14, %v3856_v46  ;;  %v14992_v4 = vld [vmem:[#allocation16_spill] sm:$0xff] }
 0xdb4   : > { %9004 = vrot.lane.b32.xlu1 %v9003_v55, %s9474_s21  ;;  %v8983_v52 = vpack.i.bf16 %v12829_v12, %v12822_v1  ;;  %5135 = vxpose.xlu0.b32.cont [5/8] (short) (narrow) %v14981_v44, 8  ;;  %v12846_v63 = vsel %vm3109_vm9, %v3927_v40, %v12747_v27  ;;  %v14984_v27 = vld [vmem:[#allocation31_spill] sm:$0xff]  ;;  %v14993_v45 = vld [vmem:[#allocation24_spill] sm:$0xff] }
 0xdbc   : > { %9009 = vrot.lane.b32.xlu1 %v9008_v51, %s9473_s0  ;;  %5136 = vxpose.xlu0.b32.cont [6/8] (short) (narrow) %v11852_v53, 8  ;;  %v14986_v53 = vld [vmem:[#allocation32_spill] sm:$0xff] }
 0xdc4   : > { %5137 = vxpose.xlu0.b32.cont [7/8] (short) (narrow) %v11910_v17, 8 }
 0xdc6   : > { %5067 = vxpose.xlu2.b32.start [1/8] (short) (narrow) %v14982_v41, 8 }
 0xdcc   : > { %5138 = vxpose.xlu0.b32.end [8/8] (short) (narrow) %v11965_v43, 8 }
 0xdcd   : > { %v8871_v48 = vpop.permute.xlu2 %8870 }
 0xdce   : > { %5068 = vxpose.xlu2.b32.cont [2/8] (short) (narrow) %v14983_v9, 8  ;;  %v8873_v0 = vunpack.i.h.bf16 %v8871_v48  ;;  %v8872_v39 = vunpack.i.l.bf16 %v8871_v48 }
 0xdd0   : > { %v4086_v24 = vsel %vm2050_vm7, %v12785_v47, %v8873_v0  ;;  %v4085_v29 = vsel %vm2050_vm7, %v12779_v18, %v8872_v39  ;;  %v14991_v18 = vld [vmem:[#allocation8_spill] sm:$0xff] }
 0xdd4   : > { %5163 = vxpose.xlu0.b32.start [1/8] (short) (narrow) %v14984_v27, 8 }
 0xdd6   : > { %5069 = vxpose.xlu2.b32.cont [3/8] (short) (narrow) %v14985_v22, 8 }
 0xddc   : > { %5164 = vxpose.xlu0.b32.cont [2/8] (short) (narrow) %v14986_v53, 8 }
 0xdde   : > { %5070 = vxpose.xlu2.b32.cont [4/8] (short) (narrow) %v14987_v28, 8 }
 0xde2   : > { %v8881_v17 = vpop.permute.xlu1 %8880 }
 0xde3   : > { %v8883_v42 = vunpack.i.h.bf16 %v8881_v17  ;;  %v8882_v58 = vunpack.i.l.bf16 %v8881_v17 }
 0xde4   : > { %5165 = vxpose.xlu0.b32.cont [3/8] (short) (narrow) %v11876_v19, 8  ;;  %v8876_v43 = vpop.permute.xlu0 %8875 }
 0xde5   : > { %v8878_v10 = vunpack.i.h.bf16 %v8876_v43  ;;  %v8877_v20 = vunpack.i.l.bf16 %v8876_v43 }
 0xde6   : > { %5071 = vxpose.xlu2.b32.cont [5/8] (short) (narrow) %v14988_v21, 8 }
 0xde7   : > { %v4094_v51 = vsel %vm4093_vm10, %v4085_v29, %v8877_v20  ;;  %v4095_v56 = vsel %vm4093_vm10, %v4086_v24, %v8878_v10  ;;  %v5286_v24 = vpop.f32.mrf.mxu2 }
 0xde8   : > { %v4103_v19 = vsel %vm4102_vm11, %v4094_v51, %v8882_v58  ;;  %v4104_v7 = vsel %vm4102_vm11, %v4095_v56, %v8883_v42 }
 0xde9   : > { %v8886_v3 = vpop.permute.xlu2 %8885  ;;  %v6511_v54 = vpack.c.bf16 %v4104_v7, %v4103_v19 }
 0xdea   : > { %v8888_v55 = vunpack.i.h.bf16 %v8886_v3  ;;  %v8887_v25 = vunpack.i.l.bf16 %v8886_v3 }
 0xdec   : > { %5166 = vxpose.xlu0.b32.cont [4/8] (short) (narrow) %v11891_v49, 8  ;;  %v4088_v62 = vsel %vm2050_vm7, %v12801_v13, %v8888_v55  ;;  %v4087_v36 = vsel %vm2050_vm7, %v12789_v16, %v8887_v25 }
 0xdee   : > { %5072 = vxpose.xlu2.b32.cont [6/8] (short) (narrow) %v14989_v35, 8 }
 0xdf2   : > { %v8891_v47 = vpop.permute.xlu2 %8890 }
 0xdf3   : > { %v8893_v8 = vunpack.i.h.bf16 %v8891_v47  ;;  %v8892_v57 = vunpack.i.l.bf16 %v8891_v47 }
 0xdf4   : > { %5167 = vxpose.xlu0.b32.cont [5/8] (short) (narrow) %v14990_v32, 8  ;;  %v9078_v32 = vld [vmem:[%s9644_s3] ss:$0 sm:$0xff] }
 0xdf5   : > { %v4096_v5 = vsel %vm4093_vm10, %v4087_v36, %v8892_v57  ;;  %v4097_v46 = vsel %vm4093_vm10, %v4088_v62, %v8893_v8 }
 0xdf6   : > { %5073 = vxpose.xlu2.b32.cont [7/8] (short) (narrow) %v14991_v18, 8 }
 0xdfa   : > { %v8896_v37 = vpop.permute.xlu2 %8895 }
 0xdfb   : > { %v8898_v31 = vunpack.i.h.bf16 %v8896_v37  ;;  %v8897_v49 = vunpack.i.l.bf16 %v8896_v37 }
 0xdfc   : > { %5168 = vxpose.xlu0.b32.cont [6/8] (short) (narrow) %v14992_v4, 8 }
 0xdfd   : > { %v4105_v11 = vsel %vm4102_vm11, %v4096_v5, %v8897_v49  ;;  %v4106_v26 = vsel %vm4102_vm11, %v4097_v46, %v8898_v31  ;;  %v9439_v46 = vld [vmem:[#allocation2] sm:$0xff] }
 0xdfe   : > { %v6512_v6 = vpack.c.bf16 %v4106_v26, %v4105_v11  ;;  %5074 = vxpose.xlu2.b32.end [8/8] (short) (narrow) %v14993_v45, 8  ;;  %v9440_v11 = vld [vmem:[#allocation2 + $0x8] sm:$0xff] }
 0xe04   : > { %5169 = vxpose.xlu0.b32.cont [7/8] (short) (narrow) %v4316_v2, 8 }
 0xe0c   : > { %5170 = vxpose.xlu0.b32.end [8/8] (short) (narrow) %v4318_v15, 8 }
 0xe13   : > { %v12886_v13 = vpop.permute.xlu1 %8994 }
 0xe1e   : > { %v9000_v16 = vpop.permute.xlu1 %8999 }
 0xe1f   : > { %v9002_v44 = vunpack.i.h.bf16 %v9000_v16  ;;  %v9001_v40 = vunpack.i.l.bf16 %v9000_v16 }
 0xe21   : > { %v4092_v27 = vsel %vm2050_vm7, %v12852_v59, %v9002_v44  ;;  %v4091_v22 = vsel %vm2050_vm7, %v12846_v63, %v9001_v40  ;;  %v8546_v59 = vld [vmem:[%s9638_s20 + $0x8] sm:$0xff]  ;;  %v8545_v63 = vld [vmem:[%s9638_s20] sm:$0xff] }
 0xe22   : > { %6569 = vmatpush.bf16.msra.mxu1 %v8546_v59 }
 0xe26   : > { %v9005_v14 = vpop.permute.xlu1 %9004  ;;  %6570 = vmatpush.bf16.msra.mxu1 %v8545_v63 }
 0xe27   : > { %v9007_v38 = vunpack.i.h.bf16 %v9005_v14  ;;  %v9006_v41 = vunpack.i.l.bf16 %v9005_v14 }
 0xe29   : > { %v4100_v15 = vsel %vm4093_vm10, %v4091_v22, %v9006_v41  ;;  %v4101_v28 = vsel %vm4093_vm10, %v4092_v27, %v9007_v38 }
 0xe2e   : > { %v9010_v9 = vpop.permute.xlu1 %9009 }
 0xe2f   : > { %v9012_v53 = vunpack.i.h.bf16 %v9010_v9  ;;  %v9011_v2 = vunpack.i.l.bf16 %v9010_v9 }
 0xe31   : > { %v12895_v48 = vsel %vm4102_vm11, %v4100_v15, %v9011_v2  ;;  %v12898_v0 = vsel %vm4102_vm11, %v4101_v28, %v9012_v53 }
 0xe38   : > { %v5147_v17 = vpop.trf.xlu0 }
 0xe39   : > { %8431 = vmatmul.msk.f32.vlgmr.msrb.gmra.mxu3 %vm2311_vm8, %v5147_v17 }
 0xe5f   : > { %v5083_v42 = vpop.trf.xlu2 }
 0xe60   : > { %8413 = vmatmul.msk.f32.vlgmr.msrb.gmra.mxu1 %vm2311_vm8, %v5083_v42 }
 0xe68   : > { %8449 = vmatmul.msk.bf16.vlgmr.msra.gmra.mxu1 %vm1067_vm2, %v6511_v54 }
 0xe78   : > { %8450 = vmatmul.msk.bf16.gmra.mxu1 %vm1067_vm2, %v6512_v6  ;;  %v5179_v58 = vpop.trf.xlu0  ;;  %v9441_v6 = vld [vmem:[#allocation2 + $0x18] sm:$0xff] }
 0xe79   : > { %8440 = vmatmul.msk.f32.vlgmr.msra.gmra.mxu0 %vm2311_vm8, %v5179_v58 }
 0xebc   : > { %v5333_v43 = vpop.f32.mrf.mxu3 }
 0xedd   : > { %v5239_v10 = vpop.f32.mrf.mxu1 }
 0xede   : > { %v8899_v20 = vpack.i.bf16 %v5239_v10, %v5333_v43 }
 0xee0   : > { %8900 = vxpose.xlu2.b32.start.end [1/1] (short) (narrow) %v8899_v20, 64 }
 0xee5   : > { %v6572_v51 = vpop.f32.mrf.mxu1 }
 0xee6   : > { %v6573_v57 = vadd.f32 %v9078_v32, %v6572_v51 }
 0xee8   : > { %v12918_v4 = vadd.f32 %v9439_v46, %v6573_v57 }
 0xeea   : > { %v6628_v22 = vsel %vm1067_vm2, %v12918_v4, 0.0 }
 0xeed   : > { %v6574_v3 = vpop.f32.mrf.mxu1 }
 0xeee   : > { %v6575_v37 = vadd.f32 %v9078_v32, %v6574_v3 }
 0xef0   : > { %v12920_v26 = vadd.f32 %v9440_v11, %v6575_v37 }
 0xef2   : > { %v12935_v2 = vsel %vm1067_vm2, %v12920_v26, 0.0 }
 0xef5   : > { %v12913_v7 = vpop.f32.mrf.mxu1 }
 0xef6   : > { %v5380_v29 = vpop.f32.mrf.mxu0 }
 0xef7   : > { %v8941_v21 = vpack.i.bf16 %v5286_v24, %v5380_v29 }
 0xef9   : > { %8942 = vxpose.xlu0.b32.start.end [1/1] (short) (narrow) %v8941_v21, 64 }
 0xefd   : > { %v6579_v18 = vpop.f32.mrf.mxu1 }
 0xefe   : > { %v6580_v62 = vadd.f32 %v9078_v32, %v6579_v18 }
 0xf00   : > { %v12922_v45 = vadd.f32 %v9441_v6, %v6580_v62 }
 0xf02   : > { %v12931_v53 = vsel %vm1067_vm2, %v12922_v45, 0.0 }
 0xf79   : > { %v8901_v56 = vpop.trf.xlu2 }
 0xf7a   : > { %v8905_v35 = vunpack.i.h.bf16 %v8901_v56  ;;  %v8902_v47 = vunpack.i.l.bf16 %v8901_v56 }
 0xf7c   : > { %v5513_v25 = vrot.slane %v8905_v35, 4  ;;  %v5511_v8 = vrot.slane %v8902_v47, 4 }
 0xf7e   : > { %v5512_v49 = vsel %vm3109_vm9, %v5511_v8, %v8905_v35  ;;  %v5514_v1 = vsel %vm3109_vm9, %v8902_v47, %v5513_v25 }
 0xf7f   : > { %v5518_v16 = vperm.slane %v5512_v49, %v12057_v23  ;;  %v5522_v14 = vperm.slane %v5514_v1, %v12057_v23 }
 0xf81   : > { %8984 = vrot.lane.b32.xlu2 %v8983_v52, %s9475_s2  ;;  %v8906_v19 = vpop.trf.xlu2  ;;  %v5537_v15 = vrot.slane %v5518_v16, 4  ;;  %v5549_v28 = vrot.slane %v5522_v14, 4 }
 0xf82   : > { %v8907_v55 = vunpack.i.l.bf16 %v8906_v19  ;;  %v8910_v36 = vunpack.i.h.bf16 %v8906_v19 }
 0xf84   : > { %v5567_v31 = vrot.slane %v8907_v55, 4  ;;  %v5569_v44 = vrot.slane %v8910_v36, 4 }
 0xf86   : > { %v5568_v40 = vsel %vm3109_vm9, %v5567_v31, %v8910_v36  ;;  %v5570_v17 = vsel %vm3109_vm9, %v8907_v55, %v5569_v44 }
 0xf87   : > { %v12939_v59 = vperm.slane %v5568_v40, %v12057_v23  ;;  %v12948_v56 = vperm.slane %v5570_v17, %v12057_v23 }
 0xf89   : > { %v8911_v54 = vpop.trf.xlu2  ;;  %v5593_v3 = vrot.slane %v12939_v59, 4 }
 0xf8a   : > { %v8915_v12 = vunpack.i.h.bf16 %v8911_v54  ;;  %v8912_v52 = vunpack.i.l.bf16 %v8911_v54 }
 0xf8c   : > { %v5625_v38 = vrot.slane %v8915_v12, 4  ;;  %v5623_v41 = vrot.slane %v8912_v52, 4 }
 0xf8e   : > { %v5624_v42 = vsel %vm3109_vm9, %v5623_v41, %v8915_v12  ;;  %v5626_v58 = vsel %vm3109_vm9, %v8912_v52, %v5625_v38 }
 0xf8f   : > { %v12956_v30 = vperm.slane %v5624_v42, %v12057_v23 }
 0xf91   : > { %v8916_v5 = vpop.trf.xlu2 }
 0xf92   : > { %v8920_v9 = vunpack.i.h.bf16 %v8916_v5  ;;  %v8917_v27 = vunpack.i.l.bf16 %v8916_v5 }
 0xf94   : > { %v5681_v43 = vrot.slane %v8920_v9, 4  ;;  %v5679_v10 = vrot.slane %v8917_v27, 4 }
 0xf96   : > { %v5680_v35 = vsel %vm3109_vm9, %v5679_v10, %v8920_v9  ;;  %v5682_v47 = vsel %vm3109_vm9, %v8917_v27, %v5681_v43  ;;  %v5605_v9 = vrot.slane %v12948_v56, 4 }
 0xf97   : > { %v12966_v62 = vperm.slane %v5680_v35, %v12057_v23  ;;  %v12969_v36 = vperm.slane %v5682_v47, %v12057_v23 }
 0xf99   : > { %v8921_v29 = vpop.trf.xlu2  ;;  %v5717_v43 = vrot.slane %v12969_v36, 4 }
 0xf9a   : > { %v8925_v21 = vunpack.i.h.bf16 %v8921_v29  ;;  %v8922_v51 = vunpack.i.l.bf16 %v8921_v29 }
 0xf9c   : > { %v5737_v32 = vrot.slane %v8925_v21, 4  ;;  %v5735_v18 = vrot.slane %v8922_v51, 4 }
 0xf9d   : > { %v8943_v63 = vpop.trf.xlu0 }
 0xf9e   : > { %v8947_v20 = vunpack.i.h.bf16 %v8943_v63  ;;  %v8944_v24 = vunpack.i.l.bf16 %v8943_v63  ;;  %v5736_v57 = vsel %vm3109_vm9, %v5735_v18, %v8925_v21  ;;  %v5738_v37 = vsel %vm3109_vm9, %v8922_v51, %v5737_v32 }
 0xf9f   : > { %8989 = vrot.lane.b32.xlu0 %v8988_v60, %s9474_s21  ;;  %v12959_v60 = vperm.slane %v5626_v58, %v12057_v23  ;;  %v12972_v31 = vperm.slane %v5736_v57, %v12057_v23  ;;  %v12975_v49 = vperm.slane %v5738_v37, %v12057_v23 }
 0xfa0   : > { %v5525_v19 = vrot.slane %v8947_v20, 4  ;;  %v5523_v54 = vrot.slane %v8944_v24, 4 }
 0xfa1   : > { %v5661_v63 = vrot.slane %v12959_v60, 4  ;;  %v8926_v35 = vpop.trf.xlu2 }
 0xfa2   : > { %v5524_v55 = vsel %vm3109_vm9, %v5523_v54, %v8947_v20  ;;  %v5526_v34 = vsel %vm3109_vm9, %v8944_v24, %v5525_v19  ;;  %v8930_v32 = vunpack.i.h.bf16 %v8926_v35  ;;  %v8927_v18 = vunpack.i.l.bf16 %v8926_v35 }
 0xfa3   : > { %v5530_v25 = vperm.slane %v5524_v55, %v12057_v23  ;;  %v5534_v8 = vperm.slane %v5526_v34, %v12057_v23 }
 0xfa5   : > { %v5535_v1 = vrot.slane %v5530_v25, 4  ;;  %v5538_v12 = vsel %vm3109_vm9, %v5530_v25, %v5537_v15  ;;  %v5547_v52 = vrot.slane %v5534_v8, 4  ;;  %v5550_v5 = vsel %vm3109_vm9, %v5534_v8, %v5549_v28  ;;  %v8948_v46 = vpop.trf.xlu0 }
 0xfa6   : > { %v5546_v11 = vperm.slane %v5538_v12, %v12127_v61  ;;  %v5558_v6 = vperm.slane %v5550_v5, %v12127_v61  ;;  %v8952_v44 = vunpack.i.h.bf16 %v8948_v46  ;;  %v8949_v41 = vunpack.i.l.bf16 %v8948_v46 }
 0xfa7   : > { %v5536_v40 = vsel %vm3109_vm9, %v5535_v1, %v5518_v16  ;;  %v5548_v38 = vsel %vm3109_vm9, %v5547_v52, %v5522_v14  ;;  %v5649_v28 = vrot.slane %v12956_v30, 4  ;;  %v5705_v14 = vrot.slane %v12966_v62, 4 }
 0xfa8   : > { %v12985_v27 = vperm.slane %v5536_v40, %v12127_v61  ;;  %v12987_v15 = vrot.slane %v5546_v11, 4  ;;  %v12989_v17 = vrot.slane %v5558_v6, 4  ;;  %v5581_v42 = vrot.slane %v8952_v44, 4 }
 0xfa9   : > { %v5579_v58 = vrot.slane %v8949_v41, 4  ;;  %v12994_v16 = vperm.slane %v5548_v38, %v12127_v61  ;;  %v5793_v38 = vrot.slane %v8930_v32, 4 }
 0xfaa   : > { %6629 = vadd.xlane.f32.xlu2 %v6628_v22  ;;  %v5559_v20 = vrot.slane %v12985_v27, 4  ;;  %v5582_v29 = vsel %vm3109_vm9, %v8949_v41, %v5581_v42  ;;  %v13005_v51 = vsel %vm3109_vm9, 0.0, %v12987_v15  ;;  %v13009_v22 = vsel %vm3109_vm9, 0.0, %v12989_v17 }
 0xfab   : > { %v5580_v24 = vsel %vm3109_vm9, %v5579_v58, %v8952_v44  ;;  %v5590_v54 = vperm.slane %v5582_v29, %v12057_v23  ;;  %v5975_v42 = vrot.slane %v13009_v22, 4 }
 0xfac   : > { %v5586_v19 = vperm.slane %v5580_v24, %v12057_v23  ;;  %v13033_v41 = vsel %vm3109_vm9, 0.0, %v5559_v20 }
 0xfad   : > { %v8953_v47 = vpop.trf.xlu0  ;;  %v5603_v25 = vrot.slane %v5590_v54, 4  ;;  %v5606_v8 = vsel %vm3109_vm9, %v5590_v54, %v5605_v9  ;;  %v5964_v9 = vrot.slane %v13005_v51, 4 }
 0xfae   : > { %v5591_v55 = vrot.slane %v5586_v19, 4  ;;  %v5594_v34 = vsel %vm3109_vm9, %v5586_v19, %v5593_v3  ;;  %v5614_v37 = vperm.slane %v5606_v8, %v12127_v61  ;;  %v8957_v1 = vunpack.i.h.bf16 %v8953_v47 }
 0xfaf   : > { %v5602_v57 = vperm.slane %v5594_v34, %v12127_v61  ;;  %v5604_v52 = vsel %vm3109_vm9, %v5603_v25, %v12948_v56  ;;  %v8954_v5 = vunpack.i.l.bf16 %v8953_v47  ;;  %v5563_v56 = vrot.slane %v12994_v16, 4 }
 0xfb0   : > { %v5592_v12 = vsel %vm3109_vm9, %v5591_v55, %v12939_v59  ;;  %v13025_v3 = vperm.slane %v5604_v52, %v12127_v61  ;;  %v13029_v6 = vrot.slane %v5614_v37, 4  ;;  %v5637_v44 = vrot.slane %v8957_v1, 4 }
 0xfb1   : > { %v13022_v46 = vperm.slane %v5592_v12, %v12127_v61  ;;  %v13027_v11 = vrot.slane %v5602_v57, 4  ;;  %v5635_v40 = vrot.slane %v8954_v5, 4  ;;  %v5791_v59 = vrot.slane %v8927_v18, 4 }
 0xfb2   : > { %6638 = vadd.xlane.f32.xlu2 %v12931_v53  ;;  %v5638_v29 = vsel %vm3109_vm9, %v8954_v5, %v5637_v44  ;;  %v5619_v19 = vrot.slane %v13025_v3, 4  ;;  %v13048_v20 = vsel %vm3109_vm9, 0.0, %v13029_v6  ;;  %v5794_v34 = vsel %vm3109_vm9, %v8927_v18, %v5793_v38 }
 0xfb3   : > { %v5615_v58 = vrot.slane %v13022_v46, 4  ;;  %v13041_v24 = vsel %vm3109_vm9, 0.0, %v13027_v11  ;;  %v5636_v53 = vsel %vm3109_vm9, %v5635_v40, %v8957_v1  ;;  %v5646_v35 = vperm.slane %v5638_v29, %v12057_v23 }
 0xfb4   : > { %v5642_v54 = vperm.slane %v5636_v53, %v12057_v23  ;;  %v5792_v55 = vsel %vm3109_vm9, %v5791_v59, %v8930_v32  ;;  %v13062_v44 = vperm.slane %v5794_v34, %v12057_v23  ;;  %v5564_v40 = vsel %vm3109_vm9, 0.0, %v5563_v56  ;;  %v8931_v53 = vpop.trf.xlu2 }
 0xfb5   : > { %v8958_v47 = vpop.trf.xlu0  ;;  %v5659_v37 = vrot.slane %v5646_v35, 4  ;;  %v5662_v1 = vsel %vm3109_vm9, %v5646_v35, %v5661_v63  ;;  %v13059_v5 = vperm.slane %v5792_v55, %v12057_v23  ;;  %v6018_v29 = vrot.slane %v13041_v24, 4 }
 0xfb6   : > { %v8962_v25 = vunpack.i.h.bf16 %v8958_v47  ;;  %v5647_v8 = vrot.slane %v5642_v54, 4  ;;  %v5650_v57 = vsel %vm3109_vm9, %v5642_v54, %v5649_v28  ;;  %v5670_v52 = vperm.slane %v5662_v1, %v12127_v61 }
 0xfb7   : > { %v5658_v12 = vperm.slane %v5650_v57, %v12127_v61  ;;  %v5660_v18 = vsel %vm3109_vm9, %v5659_v37, %v12959_v60  ;;  %v6029_v54 = vrot.slane %v13048_v20, 4  ;;  %v8935_v35 = vunpack.i.h.bf16 %v8931_v53 }
 0xfb8   : > { %v5648_v32 = vsel %vm3109_vm9, %v5647_v8, %v12956_v30  ;;  %v5693_v28 = vrot.slane %v8962_v25, 4  ;;  %v13073_v38 = vperm.slane %v5660_v18, %v12127_v61  ;;  %v8959_v30 = vunpack.i.l.bf16 %v8958_v47 }
 0xfb9   : > { %v13070_v63 = vperm.slane %v5648_v32, %v12127_v61  ;;  %v13075_v59 = vrot.slane %v5658_v12, 4  ;;  %v5616_v60 = vsel %vm3109_vm9, 0.0, %v5615_v58  ;;  %v5620_v55 = vsel %vm3109_vm9, 0.0, %v5619_v19 }
 0xfba   : > { %v13081_v56 = vrot.slane %v5670_v52, 4  ;;  %v5691_v37 = vrot.slane %v8959_v30, 4  ;;  %v5694_v1 = vsel %vm3109_vm9, %v8959_v30, %v5693_v28  ;;  %v5675_v20 = vrot.slane %v13073_v38, 4 }
 0xfbb   : > { %v5671_v8 = vrot.slane %v13070_v63, 4  ;;  %v13089_v24 = vsel %vm3109_vm9, 0.0, %v13075_v59  ;;  %v5702_v58 = vperm.slane %v5694_v1, %v12057_v23  ;;  %v5849_v19 = vrot.slane %v8935_v35, 4 }
 0xfbc   : > { %v5692_v47 = vsel %vm3109_vm9, %v5691_v37, %v8962_v25  ;;  %v8932_v12 = vunpack.i.l.bf16 %v8931_v53  ;;  %v13096_v52 = vsel %vm3109_vm9, 0.0, %v13081_v56  ;;  %v5959_v25 = vsel %vm3109_vm9, %v12987_v15, %v12985_v27 }
 0xfbd   : > { %v5698_v32 = vperm.slane %v5692_v47, %v12057_v23  ;;  %v5715_v18 = vrot.slane %v5702_v58, 4  ;;  %v5718_v28 = vsel %vm3109_vm9, %v5702_v58, %v5717_v43 }
 0xfbe   : > { %v5726_v30 = vperm.slane %v5718_v28, %v12127_v61  ;;  %v5847_v39 = vrot.slane %v8932_v12, 4  ;;  %v5850_v1 = vsel %vm3109_vm9, %v8932_v12, %v5849_v19 }
 0xfbf   : > { %v5703_v53 = vrot.slane %v5698_v32, 4  ;;  %v5706_v37 = vsel %vm3109_vm9, %v5698_v32, %v5705_v14  ;;  %v5716_v47 = vsel %vm3109_vm9, %v5715_v18, %v12969_v36  ;;  %v13113_v57 = vperm.slane %v5850_v1, %v12057_v23 }
 0xfc0   : > { %v5714_v43 = vperm.slane %v5706_v37, %v12127_v61  ;;  %v13117_v58 = vperm.slane %v5716_v47, %v12127_v61  ;;  %v13119_v19 = vrot.slane %v5726_v30, 4  ;;  %v5848_v27 = vsel %vm3109_vm9, %v5847_v39, %v8935_v35 }
 0xfc1   : > { %v5704_v14 = vsel %vm3109_vm9, %v5703_v53, %v12966_v62  ;;  %v5965_v36 = vsel %vm3109_vm9, %v5964_v9, %v13033_v41  ;;  %v13131_v32 = vsel %vm3109_vm9, 0.0, %v5671_v8  ;;  %v13134_v18 = vsel %vm3109_vm9, 0.0, %v5675_v20 }
 0xfc2   : > { %v13136_v28 = vrot.slane %v5714_v43, 4  ;;  %v13140_v39 = vsel %vm3109_vm9, 0.0, %v13119_v19  ;;  %v13143_v35 = vperm.slane %v5848_v27, %v12057_v23  ;;  %v5963_v62 = vperm.slane %v5959_v25, %v12057_v23 }
 0xfc3   : > { %v5969_v51 = vperm.slane %v5965_v36, %v12057_v23  ;;  %v5970_v41 = vsel %vm3109_vm9, %v12989_v17, %v12994_v16  ;;  %v13151_v9 = vperm.slane %v5704_v14, %v12127_v61  ;;  %v5731_v8 = vrot.slane %v13117_v58, 4 }
 0xfc4   : > { %v13158_v1 = vsel %vm3109_vm9, 0.0, %v13136_v28  ;;  %v5976_v25 = vsel %vm3109_vm9, %v5975_v42, %v5564_v40  ;;  %v6013_v17 = vsel %vm3109_vm9, %v13027_v11, %v13022_v46  ;;  %v5974_v16 = vperm.slane %v5970_v41, %v12057_v23  ;;  %v8963_v41 = vpop.trf.xlu0 }
 0xfc5   : > { %v5981_v53 = vrot.slane %v5969_v51, 4  ;;  %v5980_v37 = vperm.slane %v5976_v25, %v12057_v23  ;;  %v6017_v47 = vperm.slane %v6013_v17, %v12057_v23  ;;  %v6019_v43 = vsel %vm3109_vm9, %v6018_v29, %v5616_v60  ;;  %v8936_v60 = vpop.trf.xlu2 }
 0xfc6   : > { %v6023_v22 = vperm.slane %v6019_v43, %v12057_v23  ;;  %v6024_v42 = vsel %vm3109_vm9, %v13029_v6, %v13025_v3  ;;  %v6030_v46 = vsel %vm3109_vm9, %v6029_v54, %v5620_v55  ;;  %v8940_v36 = vunpack.i.h.bf16 %v8936_v60 }
 0xfc7   : > { %v5982_v27 = vsel %vm3109_vm9, %v5981_v53, %v5963_v62  ;;  %v5993_v40 = vrot.slane %v5980_v37, 4  ;;  %v6028_v14 = vperm.slane %v6024_v42, %v12057_v23  ;;  %v6034_v29 = vperm.slane %v6030_v46, %v12057_v23 }
 0xfc8   : > { %v13178_v11 = vperm.slane %v5982_v27, %v12127_v61  ;;  %v8937_v3 = vunpack.i.l.bf16 %v8936_v60  ;;  %v5905_v55 = vrot.slane %v8940_v36, 4  ;;  %v5983_v43 = vrot.slane %v5963_v62, 4 }
 0xfc9   : > { %6632 = vadd.xlane.f32.xlu0 %v12935_v2  ;;  %v6035_v2 = vrot.slane %v6023_v22, 4  ;;  %v5994_v25 = vsel %vm3109_vm9, %v5993_v40, %v5974_v16  ;;  %v6047_v17 = vrot.slane %v6034_v29, 4  ;;  %v5995_v30 = vrot.slane %v5974_v16, 4 }
 0xfca   : > { %v6007_v53 = vrot.slane %v13178_v11, 4  ;;  %v13185_v6 = vperm.slane %v5994_v25, %v12127_v61  ;;  %v5903_v46 = vrot.slane %v8937_v3, 4  ;;  %v5727_v40 = vrot.slane %v13151_v9, 4 }
 0xfcb   : > { %v6036_v54 = vsel %vm3109_vm9, %v6035_v2, %v6017_v47  ;;  %v6048_v42 = vsel %vm3109_vm9, %v6047_v17, %v6028_v14  ;;  %v13194_v20 = vsel %vm3109_vm9, 0.0, %v5731_v8  ;;  %v5984_v17 = vsel %vm3109_vm9, %v5969_v51, %v5983_v43 }
 0xfcc   : > { %v13189_v27 = vperm.slane %v6036_v54, %v12127_v61  ;;  %v6008_v2 = vsel %vm3109_vm9, %v13185_v6, %v6007_v53  ;;  %v13201_v62 = vperm.slane %v6048_v42, %v12127_v61  ;;  %v5906_v16 = vsel %vm3109_vm9, %v8937_v3, %v5905_v55 }
 0xfcd   : > { %v5996_v12 = vsel %vm3109_vm9, %v5980_v37, %v5995_v30  ;;  %v6037_v8 = vrot.slane %v6017_v47, 4  ;;  %v6049_v34 = vrot.slane %v6028_v14, 4  ;;  %v5904_v25 = vsel %vm3109_vm9, %v5903_v46, %v8940_v36  ;;  %v8968_v36 = vpop.trf.xlu0 }
 0xfce   : > { %v6061_v54 = vrot.slane %v13189_v27, 4  ;;  %v6004_v53 = vperm.slane %v5996_v12, %v12127_v61  ;;  %v8967_v15 = vunpack.i.h.bf16 %v8963_v41  ;;  %v5992_v10 = vperm.slane %v5984_v17, %v12127_v61 }
 0xfcf   : > { %v6038_v21 = vsel %vm3109_vm9, %v6023_v22, %v6037_v8  ;;  %v6050_v51 = vsel %vm3109_vm9, %v6034_v29, %v6049_v34  ;;  %v13215_v3 = vperm.slane %v5906_v16, %v12057_v23  ;;  %v8964_v12 = vunpack.i.l.bf16 %v8963_v41 }
 0xfd0   : > { %v6062_v60 = vsel %vm3109_vm9, %v13201_v62, %v6061_v54  ;;  %v6009_v30 = vrot.slane %v6004_v53, 4  ;;  %v6058_v37 = vperm.slane %v6050_v51, %v12127_v61  ;;  %v5749_v47 = vrot.slane %v8967_v15, 4 }
 0xfd1   : > { %v9013_v42 = vpack.i.bf16 %v6062_v60, %v6008_v2  ;;  %v6046_v14 = vperm.slane %v6038_v21, %v12127_v61  ;;  %v13221_v55 = vsel %vm3109_vm9, 0.0, %v5727_v40  ;;  %v13224_v22 = vperm.slane %v5904_v25, %v12057_v23 }
 0xfd2   : > { %v6063_v34 = vrot.slane %v6058_v37, 4  ;;  %v8972_v29 = vunpack.i.h.bf16 %v8968_v36  ;;  %v5747_v43 = vrot.slane %v8964_v12, 4  ;;  %v5750_v46 = vsel %vm3109_vm9, %v8964_v12, %v5749_v47 }
 0xfd3   : > { %9014 = vrot.lane.b32.xlu1 %v9013_v42, %s9475_s2  ;;  %v6011_v60 = vrot.slane %v5992_v10, 4  ;;  %v6010_v54 = vsel %vm3109_vm9, %v6009_v30, %v5992_v10  ;;  %v5758_v41 = vperm.slane %v5750_v46, %v12057_v23  ;;  %v6065_v17 = vrot.slane %v6046_v14, 4 }
 0xfd4   : > { %v6064_v21 = vsel %vm3109_vm9, %v6063_v34, %v6046_v14  ;;  %v5748_v40 = vsel %vm3109_vm9, %v5747_v43, %v8967_v15  ;;  %v5805_v16 = vrot.slane %v8972_v29, 4  ;;  %v14994_v42 = vrot.slane %v12975_v49, 4 }
 0xfd5   : > { %v5754_v25 = vperm.slane %v5748_v40, %v12057_v23  ;;  %v5771_v8 = vrot.slane %v5758_v41, 4  ;;  %v8969_v47 = vunpack.i.l.bf16 %v8968_v36  ;;  %v9018_v2 = vpack.i.bf16 %v6064_v21, %v6010_v54 }
 0xfd6   : > { %v5774_v51 = vsel %vm3109_vm9, %v5758_v41, %v14994_v42  ;;  %v6012_v30 = vsel %vm3109_vm9, %v6004_v53, %v6011_v60  ;;  %v14995_v15 = vrot.slane %v12972_v31, 4  ;;  %v6066_v53 = vsel %vm3109_vm9, %v6058_v37, %v6065_v17 }
 0xfd7   : > { %v5782_v10 = vperm.slane %v5774_v51, %v12127_v61  ;;  %v5759_v34 = vrot.slane %v5754_v25, 4  ;;  %v5772_v43 = vsel %vm3109_vm9, %v5771_v8, %v12975_v49  ;;  %v5803_v46 = vrot.slane %v8969_v47, 4 }
 0xfd8   : > { %v5762_v14 = vsel %vm3109_vm9, %v5754_v25, %v14995_v15  ;;  %v13247_v41 = vperm.slane %v5772_v43, %v12127_v61  ;;  %v5806_v40 = vsel %vm3109_vm9, %v8969_v47, %v5805_v16  ;;  %v6067_v49 = vsel %vm3109_vm9, %v13075_v59, %v13070_v63 }
 0xfd9   : > { %v5770_v36 = vperm.slane %v5762_v14, %v12127_v61  ;;  %v13249_v54 = vrot.slane %v5782_v10, 4  ;;  %v5760_v60 = vsel %vm3109_vm9, %v5759_v34, %v12972_v31  ;;  %v5804_v21 = vsel %vm3109_vm9, %v5803_v46, %v8972_v29 }
 0xfda   : > { %v5787_v8 = vrot.slane %v13247_v41, 4  ;;  %v9023_v29 = vpack.i.bf16 %v6066_v53, %v6012_v30  ;;  %v5810_v17 = vperm.slane %v5804_v21, %v12057_v23  ;;  %v5814_v16 = vperm.slane %v5806_v40, %v12057_v23 }
 0xfdb   : > { %9019 = vrot.lane.b32.xlu1 %v9018_v2, %s9474_s21  ;;  %v13260_v2 = vperm.slane %v5760_v60, %v12127_v61  ;;  %v13262_v25 = vrot.slane %v5770_v36, 4  ;;  %v13267_v37 = vsel %vm3109_vm9, 0.0, %v13249_v54  ;;  %v6071_v42 = vperm.slane %v6067_v49, %v12057_v23 }
 0xfdc   : > { %v14996_v51 = vrot.slane %v13089_v24, 4  ;;  %v13283_v10 = vsel %vm3109_vm9, 0.0, %v5787_v8  ;;  %v5815_v30 = vrot.slane %v5810_v17, 4  ;;  %v14997_v34 = vrot.slane %v13059_v5, 4 }
 0xfdd   : > { %v5783_v63 = vrot.slane %v13260_v2, 4  ;;  %v13275_v59 = vsel %vm3109_vm9, 0.0, %v13262_v25  ;;  %v5827_v14 = vrot.slane %v5814_v16, 4  ;;  %v14998_v36 = vrot.slane %v13062_v44, 4 }
 0xfde   : > { %v6073_v47 = vsel %vm3109_vm9, %v14996_v51, %v13131_v32  ;;  %v5818_v15 = vsel %vm3109_vm9, %v5810_v17, %v14997_v34  ;;  %v5816_v60 = vsel %vm3109_vm9, %v5815_v30, %v13059_v5  ;;  %v6121_v51 = vsel %vm3109_vm9, %v13136_v28, %v13151_v9  ;;  %v8973_v9 = vpop.trf.xlu0 }
 0xfdf   : > { %v5826_v46 = vperm.slane %v5818_v15, %v12127_v61  ;;  %v5830_v53 = vsel %vm3109_vm9, %v5814_v16, %v14998_v36  ;;  %v6077_v24 = vperm.slane %v6073_v47, %v12057_v23  ;;  %v13295_v32 = vsel %vm3109_vm9, 0.0, %v5783_v63 }
 0xfe0   : > { %v5828_v21 = vsel %vm3109_vm9, %v5827_v14, %v13062_v44  ;;  %v5838_v40 = vperm.slane %v5830_v53, %v12127_v61  ;;  %v13304_v49 = vperm.slane %v5816_v60, %v12127_v61  ;;  %v6078_v16 = vsel %vm3109_vm9, %v13081_v56, %v13073_v38 }
 0xfe1   : > { %v13307_v8 = vperm.slane %v5828_v21, %v12127_v61  ;;  %v13309_v17 = vrot.slane %v5826_v46, 4  ;;  %v14999_v44 = vrot.slane %v13096_v52, 4  ;;  %v6082_v34 = vperm.slane %v6078_v16, %v12057_v23 }
 0xfe2   : > { %v13314_v5 = vrot.slane %v5838_v40, 4  ;;  %v5839_v47 = vrot.slane %v13304_v49, 4  ;;  %v6125_v36 = vperm.slane %v6121_v51, %v12057_v23  ;;  %v15000_v60 = vrot.slane %v13158_v1, 4 }
 0xfe3   : > { %9024 = vrot.lane.b32.xlu1 %v9023_v29, %s9473_s0  ;;  %v6084_v63 = vsel %vm3109_vm9, %v14999_v44, %v13134_v18  ;;  %v6089_v29 = vrot.slane %v6077_v24, 4  ;;  %v13326_v30 = vsel %vm3109_vm9, 0.0, %v13309_v17  ;;  %v5843_v38 = vrot.slane %v13307_v8, 4 }
 0xfe4   : > { %v6088_v56 = vperm.slane %v6084_v63, %v12057_v23  ;;  %v13332_v52 = vsel %vm3109_vm9, 0.0, %v13314_v5  ;;  %v13338_v15 = vsel %vm3109_vm9, 0.0, %v5839_v47  ;;  %v6127_v21 = vsel %vm3109_vm9, %v15000_v60, %v13221_v55 }
 0xfe5   : > { %v6090_v28 = vsel %vm3109_vm9, %v6089_v29, %v6071_v42  ;;  %v13341_v14 = vsel %vm3109_vm9, 0.0, %v5843_v38  ;;  %v6132_v40 = vsel %vm3109_vm9, %v13119_v19, %v13117_v58  ;;  %v15001_v16 = vrot.slane %v13140_v39, 4 }
 0xfe6   : > { %v13344_v46 = vperm.slane %v6090_v28, %v12127_v61  ;;  %v6101_v53 = vrot.slane %v6088_v56, 4  ;;  %v6131_v29 = vperm.slane %v6127_v21, %v12057_v23  ;;  %v6136_v51 = vperm.slane %v6132_v40, %v12057_v23 }
 0xfe7   : > { %v6138_v44 = vsel %vm3109_vm9, %v15001_v16, %v13194_v20  ;;  %v6091_v55 = vrot.slane %v6071_v42, 4  ;;  %v6103_v38 = vrot.slane %v6082_v34, 4  ;;  %v6145_v28 = vrot.slane %v6125_v36, 4 }
 0xfe8   : > { %v6115_v63 = vrot.slane %v13344_v46, 4  ;;  %v6142_v47 = vperm.slane %v6138_v44, %v12057_v23  ;;  %v6102_v1 = vsel %vm3109_vm9, %v6101_v53, %v6082_v34  ;;  %v6143_v19 = vrot.slane %v6131_v29, 4 }
 0xfe9   : > { %v13364_v58 = vperm.slane %v6102_v1, %v12127_v61  ;;  %v6157_v60 = vrot.slane %v6136_v51, 4  ;;  %v6092_v20 = vsel %vm3109_vm9, %v6077_v24, %v6091_v55  ;;  %v6104_v16 = vsel %vm3109_vm9, %v6088_v56, %v6103_v38 }
 0xfea   : > { %v6155_v39 = vrot.slane %v6142_v47, 4  ;;  %v6146_v21 = vsel %vm3109_vm9, %v6131_v29, %v6145_v28  ;;  %v8977_v40 = vunpack.i.h.bf16 %v8973_v9  ;;  %v6144_v42 = vsel %vm3109_vm9, %v6143_v19, %v6125_v36  ;;  %v8978_v28 = vpop.trf.xlu0 }
 0xfeb   : > { %v6116_v44 = vsel %vm3109_vm9, %v13364_v58, %v6115_v63  ;;  %v6100_v53 = vperm.slane %v6092_v20, %v12127_v61  ;;  %v13375_v1 = vperm.slane %v6144_v42, %v12127_v61  ;;  %v6112_v24 = vperm.slane %v6104_v16, %v12127_v61 }
 0xfec   : > { %v6156_v34 = vsel %vm3109_vm9, %v6155_v39, %v6136_v51  ;;  %v6154_v56 = vperm.slane %v6146_v21, %v12127_v61  ;;  %v6158_v29 = vsel %vm3109_vm9, %v6142_v47, %v6157_v60  ;;  %v5861_v55 = vrot.slane %v8977_v40, 4 }
 0xfed   : > { %v13378_v18 = vperm.slane %v6156_v34, %v12127_v61  ;;  %v6169_v63 = vrot.slane %v13375_v1, 4  ;;  %v6117_v36 = vrot.slane %v6112_v24, 4  ;;  %v6166_v51 = vperm.slane %v6158_v29, %v12127_v61 }
 0xfee   : > { %v8974_v38 = vunpack.i.l.bf16 %v8973_v9  ;;  %v6119_v19 = vrot.slane %v6100_v53, 4  ;;  %v6173_v39 = vrot.slane %v6154_v56, 4  ;;  %v8982_v20 = vunpack.i.h.bf16 %v8978_v28 }
 0xfef   : > { %v6170_v42 = vsel %vm3109_vm9, %v13378_v18, %v6169_v63  ;;  %v6118_v16 = vsel %vm3109_vm9, %v6117_v36, %v6100_v53  ;;  %v6171_v34 = vrot.slane %v6166_v51, 4 }
 0xff0   : > { %v5859_v21 = vrot.slane %v8974_v38, 4  ;;  %v9028_v31 = vpack.i.bf16 %v6170_v42, %v6116_v44  ;;  %v5862_v47 = vsel %vm3109_vm9, %v8974_v38, %v5861_v55  ;;  %v13390_v60 = vsel %vm3109_vm9, %v6112_v24, %v6119_v19 }
 0xff1   : > { %v13393_v29 = vsel %vm3109_vm9, %v6166_v51, %v6173_v39  ;;  %v6172_v9 = vsel %vm3109_vm9, %v6171_v34, %v6154_v56  ;;  %v5870_v43 = vperm.slane %v5862_v47, %v12057_v23  ;;  %v5917_v63 = vrot.slane %v8982_v20, 4 }
 0xff2   : > { %v5860_v12 = vsel %vm3109_vm9, %v5859_v21, %v8977_v40  ;;  %v9038_v53 = vpack.i.bf16 %v13393_v29, %v13390_v60  ;;  %9029 = vrot.lane.b32.xlu1 %v9028_v31, %s9475_s2  ;;  %v9033_v44 = vpack.i.bf16 %v6172_v9, %v6118_v16  ;;  %v6245_v24 = vrot.slane %v13332_v52, 4 }
 0xff3   : > { %v5866_v55 = vperm.slane %v5860_v12, %v12057_v23  ;;  %v5883_v36 = vrot.slane %v5870_v43, 4  ;;  %v15002_v51 = vrot.slane %v13113_v57, 4  ;;  %v8979_v38 = vunpack.i.l.bf16 %v8978_v28 }
 0xff4   : > { %v15003_v19 = vrot.slane %v13143_v35, 4  ;;  %v6175_v12 = vsel %vm3109_vm9, %v13262_v25, %v13260_v2 }
 0xff5   : > { %v5886_v56 = vsel %vm3109_vm9, %v5870_v43, %v15002_v51  ;;  %v5871_v40 = vrot.slane %v5866_v55, 4  ;;  %v5884_v16 = vsel %vm3109_vm9, %v5883_v36, %v13113_v57  ;;  %v5915_v34 = vrot.slane %v8979_v38, 4 }
 0xff6   : > { %v5874_v39 = vsel %vm3109_vm9, %v5866_v55, %v15003_v19  ;;  %v5894_v42 = vperm.slane %v5886_v56, %v12127_v61  ;;  %v5918_v43 = vsel %vm3109_vm9, %v8979_v38, %v5917_v63  ;;  %v13420_v21 = vperm.slane %v5884_v16, %v12127_v61 }
 0xff7   : > { %v5882_v31 = vperm.slane %v5874_v39, %v12127_v61  ;;  %v5872_v28 = vsel %vm3109_vm9, %v5871_v40, %v13143_v35  ;;  %v5926_v9 = vperm.slane %v5918_v43, %v12057_v23  ;;  %v5916_v57 = vsel %vm3109_vm9, %v5915_v34, %v8982_v20 }
 0xff8   : > { %v13422_v47 = vrot.slane %v5894_v42, 4  ;;  %v13426_v2 = vperm.slane %v5872_v28, %v12127_v61  ;;  %v6179_v55 = vperm.slane %v6175_v12, %v12057_v23  ;;  %v5899_v63 = vrot.slane %v13420_v21, 4 }
 0xff9   : > { %v13428_v25 = vrot.slane %v5882_v31, 4  ;;  %v5922_v36 = vperm.slane %v5916_v57, %v12057_v23  ;;  %v5939_v51 = vrot.slane %v5926_v9, 4  ;;  %v15004_v40 = vrot.slane %v13215_v3, 4 }
 0xffa   : > { %v13435_v35 = vsel %vm3109_vm9, 0.0, %v13422_v47  ;;  %v5895_v56 = vrot.slane %v13426_v2, 4  ;;  %v15005_v19 = vrot.slane %v13275_v59, 4  ;;  %9034 = vrot.lane.b32.xlu1 %v9033_v44, %s9474_s21  ;;  %v13452_v42 = vsel %vm3109_vm9, 0.0, %v5899_v63 }
 0xffb   : > { %v13441_v38 = vsel %vm3109_vm9, 0.0, %v13428_v25  ;;  %v5942_v20 = vsel %vm3109_vm9, %v5926_v9, %v15004_v40  ;;  %v6299_v12 = vrot.slane %v13435_v35, 4  ;;  %v5927_v31 = vrot.slane %v5922_v36, 4 }
 0xffc   : > { %v6181_v39 = vsel %vm3109_vm9, %v15005_v19, %v13295_v32  ;;  %v15006_v16 = vrot.slane %v13224_v22, 4  ;;  %v6288_v43 = vrot.slane %v13441_v38, 4  ;;  %v5940_v59 = vsel %vm3109_vm9, %v5939_v51, %v13215_v3 }
 0xffd   : > { %v5950_v32 = vperm.slane %v5942_v20, %v12127_v61  ;;  %v5928_v44 = vsel %vm3109_vm9, %v5927_v31, %v13224_v22  ;;  %v13466_v9 = vperm.slane %v5940_v59, %v12127_v61  ;;  %v6185_v57 = vperm.slane %v6181_v39, %v12057_v23 }
 0xffe   : > { %v5930_v34 = vsel %vm3109_vm9, %v5922_v36, %v15006_v16  ;;  %v6186_v63 = vsel %vm3109_vm9, %v13249_v54, %v13247_v41  ;;  %v5896_v36 = vsel %vm3109_vm9, 0.0, %v5895_v56  ;;  %v13474_v40 = vperm.slane %v5928_v44, %v12127_v61 }
 0xfff   : > { %v5938_v28 = vperm.slane %v5930_v34, %v12127_v61  ;;  %v13478_v51 = vrot.slane %v5950_v32, 4  ;;  %v5955_v22 = vrot.slane %v13466_v9, 4  ;;  %v6190_v20 = vperm.slane %v6186_v63, %v12057_v23 }
0x1000   : > { %v15007_v19 = vrot.slane %v13267_v37, 4  ;;  %v6197_v31 = vrot.slane %v6185_v57, 4  ;;  %v5951_v41 = vrot.slane %v13474_v40, 4  ;;  %v6294_v38 = vsel %vm3109_vm9, %v13422_v47, %v13420_v21 }
0x1001   : > { %v13476_v3 = vrot.slane %v5938_v28, 4  ;;  %v13493_v56 = vsel %vm3109_vm9, 0.0, %v13478_v51  ;;  %v13497_v34 = vsel %vm3109_vm9, 0.0, %v5955_v22  ;;  %v6229_v28 = vsel %vm3109_vm9, %v13309_v17, %v13304_v49 }
0x1002   : > { %v6192_v39 = vsel %vm3109_vm9, %v15007_v19, %v13283_v10  ;;  %v6198_v10 = vsel %vm3109_vm9, %v6197_v31, %v6179_v55  ;;  %v5952_v59 = vsel %vm3109_vm9, 0.0, %v5951_v41  ;;  %v6353_v32 = vrot.slane %v13493_v56, 4  ;;  %9039 = vrot.lane.b32.xlu1 %v9038_v53, %s9473_s0 }
0x1003   : > { %v13489_v54 = vsel %vm3109_vm9, 0.0, %v13476_v3  ;;  %v6196_v16 = vperm.slane %v6192_v39, %v12057_v23  ;;  %v13507_v44 = vperm.slane %v6198_v10, %v12127_v61  ;;  %v15008_v22 = vrot.slane %v13326_v30, 4 }
0x1004   : > { %v6342_v37 = vrot.slane %v13489_v54, 4  ;;  %v6240_v49 = vsel %vm3109_vm9, %v13314_v5, %v13307_v8  ;;  %v6246_v17 = vsel %vm3109_vm9, %v6245_v24, %v13341_v14  ;;  %v6199_v39 = vrot.slane %v6179_v55, 4 }
0x1005   : > { %v6209_v63 = vrot.slane %v6196_v16, 4  ;;  %v6235_v19 = vsel %vm3109_vm9, %v15008_v22, %v13338_v15  ;;  %v6233_v60 = vperm.slane %v6229_v28, %v12057_v23  ;;  %v6244_v30 = vperm.slane %v6240_v49, %v12057_v23 }
0x1006   : > { %v6239_v29 = vperm.slane %v6235_v19, %v12057_v23  ;;  %v6223_v15 = vrot.slane %v13507_v44, 4  ;;  %v6250_v53 = vperm.slane %v6246_v17, %v12057_v23  ;;  %v6200_v8 = vsel %vm3109_vm9, %v6185_v57, %v6199_v39 }
0x1007   : > { %v6210_v31 = vsel %vm3109_vm9, %v6209_v63, %v6190_v20  ;;  %v6211_v5 = vrot.slane %v6190_v20, 4  ;;  %v6253_v24 = vrot.slane %v6233_v60, 4  ;;  %v6265_v55 = vrot.slane %v6244_v30, 4 }
0x1008   : > { %v13532_v52 = vperm.slane %v6210_v31, %v12127_v61  ;;  %v6251_v14 = vrot.slane %v6239_v29, 4  ;;  %v6263_v41 = vrot.slane %v6250_v53, 4  ;;  %v6208_v54 = vperm.slane %v6200_v8, %v12127_v61 }
0x1009   : > { %v6212_v10 = vsel %vm3109_vm9, %v6196_v16, %v6211_v5  ;;  %v6283_v28 = vsel %vm3109_vm9, %v13428_v25, %v13426_v2  ;;  %v6254_v20 = vsel %vm3109_vm9, %v6239_v29, %v6253_v24  ;;  %v6266_v22 = vsel %vm3109_vm9, %v6250_v53, %v6265_v55  ;;  %v8985_v24 = vpop.permute.xlu2 %8984 }
0x100a   : > { %v6252_v63 = vsel %vm3109_vm9, %v6251_v14, %v6233_v60  ;;  %v6220_v57 = vperm.slane %v6212_v10, %v12127_v61  ;;  %v6264_v49 = vsel %vm3109_vm9, %v6263_v41, %v6244_v30  ;;  %v6262_v17 = vperm.slane %v6254_v20, %v12127_v61 }
0x100b   : > { %v13544_v19 = vperm.slane %v6252_v63, %v12127_v61  ;;  %v6274_v16 = vperm.slane %v6266_v22, %v12127_v61  ;;  %v6224_v2 = vsel %vm3109_vm9, %v13532_v52, %v6223_v15  ;;  %v13552_v25 = vperm.slane %v6264_v49, %v12127_v61 }
0x100c   : > { %v6225_v39 = vrot.slane %v6220_v57, 4  ;;  %v6227_v31 = vrot.slane %v6208_v54, 4  ;;  %v6281_v53 = vrot.slane %v6262_v17, 4  ;;  %v6289_v30 = vsel %vm3109_vm9, %v6288_v43, %v5896_v36 }
0x100d   : > { %v6277_v60 = vrot.slane %v13544_v19, 4  ;;  %v6279_v29 = vrot.slane %v6274_v16, 4  ;;  %v6287_v15 = vperm.slane %v6283_v28, %v12057_v23  ;;  %v6293_v14 = vperm.slane %v6289_v30, %v12057_v23 }
0x100e   : > { %v6226_v8 = vsel %vm3109_vm9, %v6225_v39, %v6208_v54  ;;  %v13560_v5 = vsel %vm3109_vm9, %v6220_v57, %v6227_v31  ;;  %v13568_v10 = vsel %vm3109_vm9, %v6274_v16, %v6281_v53  ;;  %v6300_v28 = vsel %vm3109_vm9, %v6299_v12, %v13452_v42 }
0x100f   : > { %v6278_v55 = vsel %vm3109_vm9, %v13552_v25, %v6277_v60  ;;  %v6280_v41 = vsel %vm3109_vm9, %v6279_v29, %v6262_v17  ;;  %v9053_v54 = vpack.i.bf16 %v13568_v10, %v13560_v5  ;;  %v6304_v63 = vperm.slane %v6300_v28, %v12057_v23 }
0x1010   : > { %v9043_v43 = vpack.i.bf16 %v6278_v55, %v6224_v2  ;;  %v9048_v36 = vpack.i.bf16 %v6280_v41, %v6226_v8  ;;  %v6305_v57 = vrot.slane %v6293_v14, 4  ;;  %v6337_v20 = vsel %vm3109_vm9, %v13476_v3, %v13474_v40 }
0x1011   : > { %v6343_v22 = vsel %vm3109_vm9, %v6342_v37, %v5952_v59  ;;  %v8990_v21 = vpop.permute.xlu0 %8989  ;;  %v8987_v47 = vunpack.i.h.bf16 %v8985_v24  ;;  %v8986_v49 = vunpack.i.l.bf16 %v8985_v24  ;;  %v6354_v35 = vsel %vm3109_vm9, %v6353_v32, %v13497_v34 }
0x1012   : > { %9044 = vrot.lane.b32.xlu1 %v9043_v43, %s9475_s2  ;;  %v6347_v17 = vperm.slane %v6343_v22, %v12057_v23  ;;  %v6298_v42 = vperm.slane %v6294_v38, %v12057_v23  ;;  %v6341_v12 = vperm.slane %v6337_v20, %v12057_v23  ;;  %v6348_v40 = vsel %vm3109_vm9, %v13478_v51, %v13466_v9 }
0x1013   : > { %v6358_v3 = vperm.slane %v6354_v35, %v12057_v23  ;;  %v8997_v37 = vunpack.i.h.bf16 %v12886_v13  ;;  %v8992_v16 = vunpack.i.h.bf16 %v8990_v21  ;;  %v8991_v2 = vunpack.i.l.bf16 %v8990_v21 }
0x1014   : > { %v6359_v59 = vrot.slane %v6347_v17, 4  ;;  %v6306_v39 = vsel %vm3109_vm9, %v6305_v57, %v6287_v15  ;;  %v6317_v56 = vrot.slane %v6304_v63, 4  ;;  %v6307_v31 = vrot.slane %v6287_v15, 4 }
0x1015   : > { %v6319_v34 = vrot.slane %v6298_v42, 4  ;;  %v4090_v32 = vsel %vm2050_vm7, %v12837_v50, %v8987_v47  ;;  %v4089_v60 = vsel %vm2050_vm7, %v12834_v33, %v8986_v49  ;;  %v6352_v9 = vperm.slane %v6348_v40, %v12057_v23 }
0x1016   : > { %v6371_v51 = vrot.slane %v6358_v3, 4  ;;  %v6360_v29 = vsel %vm3109_vm9, %v6359_v59, %v6341_v12  ;;  %v4098_v53 = vsel %vm4093_vm10, %v4089_v60, %v8991_v2  ;;  %v4099_v30 = vsel %vm4093_vm10, %v4090_v32, %v8992_v16 }
0x1017   : > { %v6308_v8 = vsel %vm3109_vm9, %v6293_v14, %v6307_v31  ;;  %v8996_v15 = vunpack.i.l.bf16 %v12886_v13  ;;  %v13609_v24 = vperm.slane %v6306_v39, %v12127_v61  ;;  %v6320_v33 = vsel %vm3109_vm9, %v6304_v63, %v6319_v34  ;;  %v15009_v63 = vld [vmem:[#allocation4_spill] sm:$0xff] }
0x1018   : > { %v6316_v50 = vperm.slane %v6308_v8, %v12127_v61  ;;  %v6318_v23 = vsel %vm3109_vm9, %v6317_v56, %v6298_v42  ;;  %v6328_v55 = vperm.slane %v6320_v33, %v12127_v61  ;;  %v6361_v41 = vrot.slane %v6341_v12, 4 }
0x1019   : > { %v6373_v38 = vrot.slane %v6352_v9, 4  ;;  %v13617_v43 = vperm.slane %v6360_v29, %v12127_v61  ;;  %v4107_v13 = vsel %vm4102_vm11, %v4098_v53, %v8996_v15  ;;  %v4108_v28 = vsel %vm4102_vm11, %v4099_v30, %v8997_v37 }
0x101a   : > { %9049 = vrot.lane.b32.xlu1 %v9048_v36, %s9474_s21  ;;  %v6335_v57 = vrot.slane %v6316_v50, 4  ;;  %v6372_v20 = vsel %vm3109_vm9, %v6371_v51, %v6352_v9  ;;  %v6333_v21 = vrot.slane %v6328_v55, 4  ;;  %v6362_v47 = vsel %vm3109_vm9, %v6347_v17, %v6361_v41 }
0x101b   : > { %v6370_v49 = vperm.slane %v6362_v47, %v12127_v61  ;;  %v6374_v36 = vsel %vm3109_vm9, %v6358_v3, %v6373_v38  ;;  %v6513_v35 = vpack.c.bf16 %v4108_v28, %v4107_v13  ;;  %v13627_v42 = vperm.slane %v6318_v23, %v12127_v61 }
0x101c   : > { %v6382_v40 = vperm.slane %v6374_v36, %v12127_v61  ;;  %v6331_v37 = vrot.slane %v13609_v24, 4  ;;  %v13635_v59 = vperm.slane %v6372_v20, %v12127_v61  ;;  %v6336_v17 = vsel %vm3109_vm9, %v6328_v55, %v6335_v57  ;;  %v9443_v20 = vld [vmem:[#allocation2 + $0x10] sm:$0xff] }
0x101d   : > { %v6630_v14 = vpop.xlane.xlu2 %6629  ;;  %8451 = vmatmul.msk.bf16.gmra.mxu1 %vm1067_vm2, %v6513_v35  ;;  %v6389_v16 = vrot.slane %v6370_v49, 4  ;;  %v6385_v3 = vrot.slane %v13617_v43, 4  ;;  %v6334_v2 = vsel %vm3109_vm9, %v6333_v21, %v6316_v50  ;;  %v15010_v53 = vpack.c.bf16 %v12898_v0, %v12895_v48 }
0x101e   : > { %v6676_v22 = vmul.f32 %v6630_v14, %v15009_v63  ;;  %v6387_v39 = vrot.slane %v6382_v40, 4  ;;  %v6332_v9 = vsel %vm3109_vm9, %v13627_v42, %v6331_v37  ;;  %v6059_v30 = vrot.slane %v13201_v62, 4 }
0x101f   : > { %v6390_v31 = vsel %vm3109_vm9, %v6382_v40, %v6389_v16  ;;  %v6386_v51 = vsel %vm3109_vm9, %v13635_v59, %v6385_v3  ;;  %v6113_v36 = vrot.slane %v13364_v58, 4  ;;  %v6167_v35 = vrot.slane %v13378_v18, 4 }
0x1020   : > { %v13630_v12 = vsub.f32 %v12918_v4, %v6676_v22  ;;  %v6388_v34 = vsel %vm3109_vm9, %v6387_v39, %v6370_v49  ;;  %v9068_v32 = vpack.i.bf16 %v6390_v31, %v6336_v17  ;;  %v9058_v29 = vpack.i.bf16 %v6386_v51, %v6332_v9 }
0x1021   : > { %v9063_v60 = vpack.i.bf16 %v6388_v34, %v6334_v2  ;;  %v6060_v48 = vsel %vm3109_vm9, %v6059_v30, %v13189_v27  ;;  %v13674_v27 = vld [vmem:[%s9644_s3] ss:$0 sm:$0xff]  ;;  %v6168_v3 = vsel %vm3109_vm9, %v6167_v35, %v13375_v1  ;;  %v6221_v9 = vrot.slane %v13532_v52, 4 }
0x1022   : > { %v6708_v56 = vmul.f32 %v13630_v12, %v13630_v12  ;;  %9054 = vrot.lane.b32.xlu1 %v9053_v54, %s9473_s0  ;;  %v6005_v54 = vrot.slane %v13185_v6, 4  ;;  %v6275_v51 = vrot.slane %v13552_v25, 4  ;;  %v6383_v35 = vrot.slane %v13635_v59, 4 }
0x1024   : > { %v6724_v61 = vsel %vm1067_vm2, %v6708_v56, 0.0  ;;  %v6006_v0 = vsel %vm3109_vm9, %v6005_v54, %v13178_v11  ;;  %v6578_v11 = vadd.f32 %v13674_v27, %v12913_v7  ;;  %v6114_v7 = vsel %vm3109_vm9, %v6113_v36, %v13344_v46 }
0x1025   : > { %6725 = vadd.xlane.f32.xlu2 %v6724_v61  ;;  %v6222_v54 = vsel %vm3109_vm9, %v6221_v9, %v13507_v44  ;;  %v6276_v30 = vsel %vm3109_vm9, %v6275_v51, %v13544_v19  ;;  %v6329_v36 = vrot.slane %v13627_v42, 4  ;;  %v6384_v59 = vsel %vm3109_vm9, %v6383_v35, %v13617_v43 }
0x1026   : > { %v13679_v22 = vadd.f32 %v9443_v20, %v6578_v11 }
0x1027   : > { %v6330_v42 = vsel %vm3109_vm9, %v6329_v36, %v13609_v24 }
0x1028   : > { %v6634_v21 = vsel %vm1067_vm2, %v13679_v22, 0.0 }
0x102a   : > { %9059 = vrot.lane.b32.xlu1 %v9058_v29, %s9475_s2 }
0x102d   : > { %8452 = vmatmul.msk.bf16.gmra.mxu1 %vm1067_vm2, %v15010_v53 }
0x1032   : > { %9064 = vrot.lane.b32.xlu1 %v9063_v60, %s9474_s21 }
0x103a   : > { %9069 = vrot.lane.b32.xlu1 %v9068_v32, %s9473_s0 }
0x103c   : > { %v6633_v44 = vpop.xlane.xlu0 %6632 }
0x1045   : > { %v9015_v5 = vpop.permute.xlu1 %9014 }
0x1046   : > { %v9017_v8 = vunpack.i.h.bf16 %v9015_v5  ;;  %v9016_v15 = vunpack.i.l.bf16 %v9015_v5 }
0x1048   : > { %v6488_v55 = vsel %vm2050_vm7, %v6060_v48, %v9017_v8  ;;  %v6487_v41 = vsel %vm2050_vm7, %v6006_v0, %v9016_v15 }
0x104d   : > { %v9020_v10 = vpop.permute.xlu1 %9019 }
0x104e   : > { %v9022_v50 = vunpack.i.h.bf16 %v9020_v10  ;;  %v9021_v33 = vunpack.i.l.bf16 %v9020_v10 }
0x1050   : > { %v6495_v62 = vsel %vm4093_vm10, %v6487_v41, %v9021_v33  ;;  %v6496_v14 = vsel %vm4093_vm10, %v6488_v55, %v9022_v50  ;;  %v6677_v41 = vmul.f32 %v6633_v44, %v15009_v63 }
0x1055   : > { %v9025_v23 = vpop.permute.xlu1 %9024 }
0x1056   : > { %v9027_v38 = vunpack.i.h.bf16 %v9025_v23  ;;  %v9026_v6 = vunpack.i.l.bf16 %v9025_v23 }
0x1058   : > { %v6503_v13 = vsel %vm4102_vm11, %v6495_v62, %v9026_v6  ;;  %v6504_v28 = vsel %vm4102_vm11, %v6496_v14, %v9027_v38  ;;  %v9444_v62 = vld [vmem:[#allocation2 + $0x20] sm:$0xff] }
0x1059   : > { %v6515_v57 = vpack.c.bf16 %v6504_v28, %v6503_v13  ;;  %v13714_v13 = vsub.f32 %v12920_v26, %v6677_v41 }
0x105b   : > { %8453 = vmatmul.msk.bf16.gmra.mxu1 %vm1067_vm2, %v6515_v57 }
0x1064   : > { %6635 = vadd.xlane.f32.xlu1 %v6634_v21  ;;  %v9030_v47 = vpop.permute.xlu1 %9029  ;;  %v6709_v21 = vmul.f32 %v13714_v13, %v13714_v13 }
0x1065   : > { %v9032_v40 = vunpack.i.h.bf16 %v9030_v47  ;;  %v9031_v37 = vunpack.i.l.bf16 %v9030_v47  ;;  %v9445_v47 = vld [vmem:[#allocation2 + $0x28] sm:$0xff] }
0x1067   : > { %v6490_v39 = vsel %vm2050_vm7, %v6168_v3, %v9032_v40  ;;  %v6489_v56 = vsel %vm2050_vm7, %v6114_v7, %v9031_v37  ;;  %v6727_v37 = vsel %vm1067_vm2, %v6709_v21, 0.0  ;;  %v9450_v21 = vld [vmem:[#allocation2 + $0x50] sm:$0xff] }
0x106c   : > { %v9035_v49 = vpop.permute.xlu1 %9034 }
0x106d   : > { %v9037_v17 = vunpack.i.h.bf16 %v9035_v49  ;;  %v9036_v16 = vunpack.i.l.bf16 %v9035_v49 }
0x106f   : > { %v6497_v58 = vsel %vm4093_vm10, %v6489_v56, %v9036_v16  ;;  %v6498_v18 = vsel %vm4093_vm10, %v6490_v39, %v9037_v17  ;;  %v6639_v17 = vpop.xlane.xlu2 %6638 }
0x1070   : > { %v6679_v56 = vmul.f32 %v6639_v17, %v15009_v63 }
0x1072   : > { %v13743_v51 = vsub.f32 %v12922_v45, %v6679_v56 }
0x1074   : > { %v9040_v2 = vpop.permute.xlu1 %9039 }
0x1075   : > { %v9042_v31 = vunpack.i.h.bf16 %v9040_v2  ;;  %v9041_v34 = vunpack.i.l.bf16 %v9040_v2 }
0x1077   : > { %v6505_v61 = vsel %vm4102_vm11, %v6497_v58, %v9041_v34  ;;  %v6506_v32 = vsel %vm4102_vm11, %v6498_v18, %v9042_v31 }
0x1078   : > { %v6516_v60 = vpack.c.bf16 %v6506_v32, %v6505_v61 }
0x107a   : > { %8454 = vmatmul.msk.bf16.gmra.mxu1 %vm1067_vm2, %v6516_v60 }
0x1084   : > { %v9045_v46 = vpop.permute.xlu1 %9044 }
0x1085   : > { %v9047_v29 = vunpack.i.h.bf16 %v9045_v46  ;;  %v9046_v53 = vunpack.i.l.bf16 %v9045_v46 }
0x1087   : > { %v6492_v15 = vsel %vm2050_vm7, %v6276_v30, %v9047_v29  ;;  %v6491_v50 = vsel %vm2050_vm7, %v6222_v54, %v9046_v53  ;;  %v6711_v54 = vmul.f32 %v13743_v51, %v13743_v51  ;;  %v9447_v30 = vld [vmem:[#allocation2 + $0x38] sm:$0xff] }
0x108c   : > { %v9050_v1 = vpop.permute.xlu1 %9049 }
0x108d   : > { %v9052_v5 = vunpack.i.h.bf16 %v9050_v1  ;;  %v9051_v10 = vunpack.i.l.bf16 %v9050_v1  ;;  %v9446_v1 = vld [vmem:[#allocation2 + $0x30] sm:$0xff] }
0x108f   : > { %v6499_v52 = vsel %vm4093_vm10, %v6491_v50, %v9051_v10  ;;  %v6500_v25 = vsel %vm4093_vm10, %v6492_v15, %v9052_v5  ;;  %v6733_v50 = vsel %vm1067_vm2, %v6711_v54, 0.0  ;;  %v8548_v54 = vld [vmem:[%s9661_s6 + $0x8] sm:$0xff] }
0x1090   : > { %7078 = vmatpush.bf16.msrb.mxu2 %v8548_v54 }
0x1094   : > { %v9055_v8 = vpop.permute.xlu1 %9054 }
0x1095   : > { %v9057_v33 = vunpack.i.h.bf16 %v9055_v8  ;;  %v9056_v48 = vunpack.i.l.bf16 %v9055_v8 }
0x1097   : > { %v6507_v0 = vsel %vm4102_vm11, %v6499_v52, %v9056_v48  ;;  %v6508_v23 = vsel %vm4102_vm11, %v6500_v25, %v9057_v33 }
0x1098   : > { %v6517_v55 = vpack.c.bf16 %v6508_v23, %v6507_v0  ;;  %v9448_v23 = vld [vmem:[#allocation2 + $0x40] sm:$0xff]  ;;  %v6726_v35 = vpop.xlane.xlu2 %6725 }
0x109a   : > { %8455 = vmatmul.msk.bf16.gmra.mxu1 %vm1067_vm2, %v6517_v55  ;;  %v6582_v19 = vpop.f32.mrf.mxu1 }
0x109b   : > { %v6583_v6 = vadd.f32 %v13674_v27, %v6582_v19 }
0x109c   : > { %v9060_v38 = vpop.permute.xlu1 %9059 }
0x109d   : > { %v13711_v14 = vadd.f32 %v9444_v62, %v6583_v6  ;;  %v9062_v16 = vunpack.i.h.bf16 %v9060_v38  ;;  %v9061_v7 = vunpack.i.l.bf16 %v9060_v38  ;;  %v9449_v62 = vld [vmem:[#allocation2 + $0x48] sm:$0xff] }
0x109f   : > { %v6640_v28 = vsel %vm1067_vm2, %v13711_v14, 0.0  ;;  %v6494_v58 = vsel %vm2050_vm7, %v6384_v59, %v9062_v16  ;;  %v6493_v18 = vsel %vm2050_vm7, %v6330_v42, %v9061_v7 }
0x10a0   : > { %6641 = vadd.xlane.f32.xlu0 %v6640_v28 }
0x10a2   : > { %v6584_v57 = vpop.f32.mrf.mxu1 }
0x10a3   : > { %v6585_v20 = vadd.f32 %v13674_v27, %v6584_v57 }
0x10a4   : > { %v9065_v11 = vpop.permute.xlu1 %9064 }
0x10a5   : > { %v13721_v49 = vadd.f32 %v9445_v47, %v6585_v20  ;;  %v9067_v3 = vunpack.i.h.bf16 %v9065_v11  ;;  %v9066_v2 = vunpack.i.l.bf16 %v9065_v11 }
0x10a7   : > { %v6643_v40 = vsel %vm1067_vm2, %v13721_v49, 0.0  ;;  %v6501_v60 = vsel %vm4093_vm10, %v6493_v18, %v9066_v2  ;;  %v6502_v46 = vsel %vm4093_vm10, %v6494_v58, %v9067_v3 }
0x10a8   : > { %6644 = vadd.xlane.f32.xlu1 %v6643_v40  ;;  %6728 = vadd.xlane.f32.xlu0 %v6727_v37  ;;  %v6772_v40 = vmul.f32 %v6726_v35, %v15009_v63 }
0x10aa   : > { %v6587_v39 = vpop.f32.mrf.mxu1  ;;  %v6788_v37 = vadd.f32 1e-05, %v6772_v40 }
0x10ab   : > { %v6588_v34 = vadd.f32 %v13674_v27, %v6587_v39 }
0x10ac   : > { %v9070_v31 = vpop.permute.xlu1 %9069  ;;  %9373 = vrsqrt.f32 %v6788_v37  ;;  %vm6810_vm0 = vweird.f32 %v6788_v37 }
0x10ad   : > { %v9072_v61 = vunpack.i.h.bf16 %v9070_v31  ;;  %v9071_v32 = vunpack.i.l.bf16 %v9070_v31  ;;  %v13738_v9 = vadd.f32 %v9446_v1, %v6588_v34 }
0x10af   : > { %v6509_v24 = vsel %vm4102_vm11, %v6501_v60, %v9071_v32  ;;  %v6510_v43 = vsel %vm4102_vm11, %v6502_v46, %v9072_v61  ;;  %v6646_v53 = vsel %vm1067_vm2, %v13738_v9, 0.0  ;;  %v9451_v60 = vld [vmem:[#allocation2 + $0x58] sm:$0xff] }
0x10b0   : > { %v6518_v29 = vpack.c.bf16 %v6510_v43, %v6509_v24  ;;  %6647 = vadd.xlane.f32.xlu1 %v6646_v53 }
0x10b2   : > { %8456 = vmatmul.msk.bf16.gmra.mxu1 %vm1067_vm2, %v6518_v29  ;;  %v6589_v5 = vpop.f32.mrf.mxu1  ;;  %v9374_v16 = vpop.eup %9373 }
0x10b3   : > { %v6590_v10 = vadd.f32 %v13674_v27, %v6589_v5  ;;  %v6805_v39 = vmul.f32 %v9374_v16, %v6788_v37  ;;  %vm6811_vm12 = vweird.f32 %v9374_v16  ;;  %v13816_v37 = vld [vmem:[%s9650_s5] ss:$0 sm:$0xff] }
0x10b4   : > { %vm6812_vm13 = vmor %vm6810_vm0, %vm6811_vm12 }
0x10b5   : > { %v13751_v8 = vadd.f32 %v9447_v30, %v6590_v10  ;;  %v6806_v31 = vmul.f32 %v9374_v16, %v6805_v39 }
0x10b7   : > { %v6649_v15 = vsel %vm1067_vm2, %v13751_v8, 0.0  ;;  %v6807_v43 = vmul.f32 0.5, %v6806_v31 }
0x10b8   : > { %6650 = vadd.xlane.f32.xlu2 %v6649_v15  ;;  %6734 = vadd.xlane.f32.xlu1 %v6733_v50 }
0x10b9   : > { %v6808_v30 = vsub.f32 1.5, %v6807_v43 }
0x10d7   : > { %v6636_v33 = vpop.xlane.xlu1 %6635 }
0x10d8   : > { %v6678_v48 = vmul.f32 %v6636_v33, %v15009_v63  ;;  %v6592_v52 = vpop.f32.mrf.mxu1  ;;  %v8547_v33 = vld [vmem:[%s9661_s6] sm:$0xff] }
0x10d9   : > { %v6593_v25 = vadd.f32 %v13674_v27, %v6592_v52  ;;  %v9452_v52 = vld [vmem:[#allocation2 + $0x60] sm:$0xff]  ;;  %7079 = vmatpush.bf16.msrb.mxu2 %v8547_v33 }
0x10da   : > { %v13759_v0 = vsub.f32 %v13679_v22, %v6678_v48 }
0x10db   : > { %v13761_v55 = vadd.f32 %v9448_v23, %v6593_v25 }
0x10dc   : > { %v6710_v44 = vmul.f32 %v13759_v0, %v13759_v0 }
0x10dd   : > { %v6652_v19 = vsel %vm1067_vm2, %v13761_v55, 0.0 }
0x10de   : > { %v6730_v41 = vsel %vm1067_vm2, %v6710_v44, 0.0  ;;  %6653 = vadd.xlane.f32.xlu2 %v6652_v19  ;;  %v6809_v44 = vmul.f32 %v9374_v16, %v6808_v30 }
0x10df   : > { %6731 = vadd.xlane.f32.xlu0 %v6730_v41 }
0x10e0   : > { %v6594_v38 = vpop.f32.mrf.mxu1 }
0x10e1   : > { %v6595_v6 = vadd.f32 %v13674_v27, %v6594_v38 }
0x10e3   : > { %v13769_v28 = vadd.f32 %v9449_v62, %v6595_v6 }
0x10e5   : > { %v6655_v57 = vsel %vm1067_vm2, %v13769_v28, 0.0 }
0x10e7   : > { %6656 = vadd.xlane.f32.xlu0 %v6655_v57 }
0x10f7   : > { %v6597_v11 = vpop.f32.mrf.mxu1 }
0x10f8   : > { %v6598_v20 = vadd.f32 %v13674_v27, %v6597_v11 }
0x10fa   : > { %v13774_v47 = vadd.f32 %v9450_v21, %v6598_v20  ;;  %v6813_v20 = vsel %vm6812_vm13, %v9374_v16, %v6809_v44 }
0x10fc   : > { %v6658_v36 = vsel %vm1067_vm2, %v13774_v47, 0.0 }
0x10fd   : > { %6659 = vadd.xlane.f32.xlu0 %v6658_v36 }
0x10ff   : > { %v6599_v3 = vpop.f32.mrf.mxu1 }
0x1100   : > { %v6600_v42 = vadd.f32 %v13674_v27, %v6599_v3 }
0x1102   : > { %v13789_v46 = vadd.f32 %v9451_v60, %v6600_v42 }
0x1104   : > { %v6661_v10 = vsel %vm1067_vm2, %v13789_v46, 0.0 }
0x1113   : > { %v6642_v17 = vpop.xlane.xlu0 %6641 }
0x1114   : > { %v6680_v7 = vmul.f32 %v6642_v17, %v15009_v63  ;;  %v6964_v17 = vmul.f32 %v6813_v20, %v13630_v12 }
0x1116   : > { %v13781_v2 = vsub.f32 %v13711_v14, %v6680_v7  ;;  %v9453_v7 = vld [vmem:[#allocation2 + $0x68] sm:$0xff]  ;;  %v6984_v31 = vmul.f32 %v13816_v37, %v6964_v17 }
0x1117   : > { %v6602_v32 = vpop.f32.mrf.mxu1 }
0x1118   : > { %v6712_v56 = vmul.f32 %v13781_v2, %v13781_v2  ;;  %v6603_v53 = vadd.f32 %v13674_v27, %v6602_v32 }
0x111a   : > { %v6736_v59 = vsel %vm1067_vm2, %v6712_v56, 0.0  ;;  %v13803_v25 = vadd.f32 %v9452_v52, %v6603_v53 }
0x111b   : > { %v6645_v34 = vpop.xlane.xlu1 %6644  ;;  %v6729_v58 = vpop.xlane.xlu0 %6728  ;;  %6737 = vadd.xlane.f32.xlu1 %v6736_v59  ;;  %v13827_v59 = vld [vmem:[%s9656_s9] ss:$0 sm:$0xff] }
0x111c   : > { %v6681_v18 = vmul.f32 %v6645_v34, %v15009_v63  ;;  %v6773_v61 = vmul.f32 %v6729_v58, %v15009_v63  ;;  %v6664_v11 = vsel %vm1067_vm2, %v13803_v25, 0.0 }
0x111e   : > { %v13792_v1 = vsub.f32 %v13721_v49, %v6681_v18  ;;  %v6789_v24 = vadd.f32 1e-05, %v6773_v61  ;;  %v7004_v61 = vadd.f32 %v13827_v59, %v6984_v31 }
0x111f   : > { %v6604_v19 = vpop.f32.mrf.mxu1 }
0x1120   : > { %9375 = vrsqrt.f32 %v6789_v24  ;;  %v6713_v29 = vmul.f32 %v13792_v1, %v13792_v1  ;;  %v6605_v62 = vadd.f32 %v13674_v27, %v6604_v19  ;;  %vm6820_vm14 = vweird.f32 %v6789_v24 }
0x1122   : > { %v6739_v5 = vsel %vm1067_vm2, %v6713_v29, 0.0  ;;  %v13819_v3 = vadd.f32 %v9453_v7, %v6605_v62 }
0x1123   : > { %v6648_v15 = vpop.xlane.xlu1 %6647  ;;  %6740 = vadd.xlane.f32.xlu2 %v6739_v5  ;;  %6662 = vadd.xlane.f32.xlu1 %v6661_v10  ;;  %v9454_v5 = vld [vmem:[#allocation2 + $0x70] sm:$0xff] }
0x1124   : > { %v6682_v50 = vmul.f32 %v6648_v15, %v15009_v63  ;;  %15011 = vst [vmem:[#allocation14_spill] sm:$0xff] %v13819_v3  ;;  %v6667_v12 = vsel %vm1067_vm2, %v13819_v3, 0.0 }
0x1126   : > { %v9376_v48 = vpop.eup %9375  ;;  %v13806_v23 = vsub.f32 %v13738_v9, %v6682_v50 }
0x1127   : > { %v6815_v41 = vmul.f32 %v9376_v48, %v6789_v24  ;;  %vm6821_vm1 = vweird.f32 %v9376_v48 }
0x1128   : > { %v6714_v38 = vmul.f32 %v13806_v23, %v13806_v23  ;;  %vm6822_vm15 = vmor %vm6820_vm14, %vm6821_vm1 }
0x1129   : > { %v6816_v6 = vmul.f32 %v9376_v48, %v6815_v41 }
0x112a   : > { %v6742_v57 = vsel %vm1067_vm2, %v6714_v38, 0.0 }
0x112b   : > { %v6817_v21 = vmul.f32 0.5, %v6816_v6  ;;  %6743 = vadd.xlane.f32.xlu2 %v6742_v57  ;;  %6665 = vadd.xlane.f32.xlu1 %v6664_v11  ;;  %v6651_v36 = vpop.xlane.xlu2 %6650  ;;  %v6735_v24 = vpop.xlane.xlu1 %6734 }
0x112c   : > { %v6683_v35 = vmul.f32 %v6651_v36, %v15009_v63  ;;  %v6775_v43 = vmul.f32 %v6735_v24, %v15009_v63 }
0x112d   : > { %v6818_v40 = vsub.f32 1.5, %v6817_v21 }
0x112e   : > { %v13822_v39 = vsub.f32 %v13751_v8, %v6683_v35  ;;  %v6791_v53 = vadd.f32 1e-05, %v6775_v43  ;;  %v9455_v35 = vld [vmem:[#allocation2 + $0x78] sm:$0xff] }
0x112f   : > { %v6819_v16 = vmul.f32 %v9376_v48, %v6818_v40 }
0x1130   : > { %v6715_v56 = vmul.f32 %v13822_v39, %v13822_v39  ;;  %9377 = vrsqrt.f32 %v6791_v53  ;;  %vm6840_vm4 = vweird.f32 %v6791_v53 }
0x1131   : > { %v6823_v42 = vsel %vm6822_vm15, %v9376_v48, %v6819_v16 }
0x1132   : > { %v6965_v34 = vmul.f32 %v6823_v42, %v13714_v13  ;;  %v6745_v58 = vsel %vm1067_vm2, %v6715_v56, 0.0  ;;  %v6607_v13 = vpop.f32.mrf.mxu1 }
0x1133   : > { %6668 = vadd.xlane.f32.xlu2 %v6667_v12  ;;  %6746 = vadd.xlane.f32.xlu0 %v6745_v58  ;;  %v6608_v29 = vadd.f32 %v13674_v27, %v6607_v13 }
0x1134   : > { %v6985_v18 = vmul.f32 %v13816_v37, %v6965_v34 }
0x1135   : > { %v13840_v10 = vadd.f32 %v9454_v5, %v6608_v29 }
0x1136   : > { %v7005_v32 = vadd.f32 %v13827_v59, %v6985_v18  ;;  %v9378_v30 = vpop.eup %9377 }
0x1137   : > { %15012 = vst [vmem:[#allocation15_spill] sm:$0xff] %v13840_v10  ;;  %v6670_v54 = vsel %vm1067_vm2, %v13840_v10, 0.0  ;;  %v6835_v15 = vmul.f32 %v9378_v30, %v6791_v53  ;;  %vm6841_vm3 = vweird.f32 %v9378_v30 }
0x1138   : > { %v7020_v60 = vpack.c.bf16 %v7005_v32, %v7004_v61  ;;  %vm6842_vm5 = vmor %vm6840_vm4, %vm6841_vm3 }
0x1139   : > { %v6836_v33 = vmul.f32 %v9378_v30, %v6835_v15 }
0x113a   : > { %8465 = vmatmul.msk.bf16.vlgmr.msrb.gmra.mxu2 %vm1067_vm2, %v7020_v60  ;;  %v6609_v41 = vpop.f32.mrf.mxu1 }
0x113b   : > { %6671 = vadd.xlane.f32.xlu2 %v6670_v54  ;;  %v6837_v6 = vmul.f32 0.5, %v6836_v33  ;;  %v6610_v57 = vadd.f32 %v13674_v27, %v6609_v41 }
0x113d   : > { %v6838_v20 = vsub.f32 1.5, %v6837_v6  ;;  %v13854_v40 = vadd.f32 %v9455_v35, %v6610_v57 }
0x113f   : > { %15013 = vst [vmem:[#allocation13_spill] sm:$0xff] %v13854_v40  ;;  %v6839_v16 = vmul.f32 %v9378_v30, %v6838_v20  ;;  %v6673_v31 = vsel %vm1067_vm2, %v13854_v40, 0.0 }
0x1141   : > { %v6843_v12 = vsel %vm6842_vm5, %v9378_v30, %v6839_v16 }
0x1142   : > { %v6967_v61 = vmul.f32 %v6843_v12, %v13743_v51 }
0x1144   : > { %v6987_v43 = vmul.f32 %v13816_v37, %v6967_v61 }
0x1146   : > { %v7007_v53 = vadd.f32 %v13827_v59, %v6987_v43 }
0x1151   : > { %v6654_v50 = vpop.xlane.xlu2 %6653 }
0x1152   : > { %v6732_v48 = vpop.xlane.xlu0 %6731  ;;  %v6684_v52 = vmul.f32 %v6654_v50, %v15009_v63 }
0x1153   : > { %v6774_v44 = vmul.f32 %v6732_v48, %v15009_v63 }
0x1154   : > { %v13847_v19 = vsub.f32 %v13761_v55, %v6684_v52 }
0x1155   : > { %v6790_v38 = vadd.f32 1e-05, %v6774_v44 }
0x1156   : > { %v6716_v62 = vmul.f32 %v13847_v19, %v13847_v19 }
0x1157   : > { %9379 = vrsqrt.f32 %v6790_v38  ;;  %vm6830_vm7 = vweird.f32 %v6790_v38 }
0x1158   : > { %v6748_v11 = vsel %vm1067_vm2, %v6716_v62, 0.0 }
0x1159   : > { %6749 = vadd.xlane.f32.xlu0 %v6748_v11 }
0x115a   : > { %v6657_v21 = vpop.xlane.xlu0 %6656 }
0x115b   : > { %v6685_v36 = vmul.f32 %v6657_v21, %v15009_v63 }
0x115d   : > { %v9380_v17 = vpop.eup %9379  ;;  %v13857_v7 = vsub.f32 %v13769_v28, %v6685_v36 }
0x115e   : > { %v6825_v56 = vmul.f32 %v9380_v17, %v6790_v38  ;;  %vm6831_vm6 = vweird.f32 %v9380_v17 }
0x115f   : > { %v6717_v27 = vmul.f32 %v13857_v7, %v13857_v7  ;;  %vm6832_vm8 = vmor %vm6830_vm7, %vm6831_vm6 }
0x1160   : > { %v6826_v42 = vmul.f32 %v9380_v17, %v6825_v56 }
0x1161   : > { %v6751_v34 = vsel %vm1067_vm2, %v6717_v27, 0.0  ;;  %6674 = vadd.xlane.f32.xlu0 %v6673_v31 }
0x1162   : > { %v6827_v58 = vmul.f32 0.5, %v6826_v42  ;;  %6752 = vadd.xlane.f32.xlu1 %v6751_v34 }
0x1164   : > { %v6828_v18 = vsub.f32 1.5, %v6827_v58 }
0x1166   : > { %v6829_v32 = vmul.f32 %v9380_v17, %v6828_v18 }
0x1168   : > { %v6833_v60 = vsel %vm6832_vm8, %v9380_v17, %v6829_v32 }
0x1169   : > { %v6966_v24 = vmul.f32 %v6833_v60, %v13759_v0 }
0x116b   : > { %v6986_v13 = vmul.f32 %v13816_v37, %v6966_v24 }
0x116d   : > { %v7006_v29 = vadd.f32 %v13827_v59, %v6986_v13 }
0x116f   : > { %v7021_v5 = vpack.c.bf16 %v7007_v53, %v7006_v29 }
0x1170   : > { %v6660_v54 = vpop.xlane.xlu0 %6659 }
0x1171   : > { %8466 = vmatmul.msk.bf16.gmra.mxu2 %vm1067_vm2, %v7021_v5  ;;  %v6686_v51 = vmul.f32 %v6660_v54, %v15009_v63 }
0x1173   : > { %v13873_v30 = vsub.f32 %v13774_v47, %v6686_v51 }
0x1175   : > { %v6718_v0 = vmul.f32 %v13873_v30, %v13873_v30 }
0x1177   : > { %v6754_v15 = vsel %vm1067_vm2, %v6718_v0, 0.0 }
0x1178   : > { %6755 = vadd.xlane.f32.xlu1 %v6754_v15 }
0x118e   : > { %v6738_v50 = vpop.xlane.xlu1 %6737 }
0x118f   : > { %v6776_v33 = vmul.f32 %v6738_v50, %v15009_v63 }
0x1191   : > { %v6792_v48 = vadd.f32 1e-05, %v6776_v33 }
0x1193   : > { %9381 = vrsqrt.f32 %v6792_v48  ;;  %vm6850_vm10 = vweird.f32 %v6792_v48 }
0x1196   : > { %v6663_v52 = vpop.xlane.xlu1 %6662  ;;  %v6741_v44 = vpop.xlane.xlu2 %6740 }
0x1197   : > { %v6687_v41 = vmul.f32 %v6663_v52, %v15009_v63  ;;  %v6777_v38 = vmul.f32 %v6741_v44, %v15009_v63 }
0x1199   : > { %v9382_v6 = vpop.eup %9381  ;;  %v13882_v62 = vsub.f32 %v13789_v46, %v6687_v41  ;;  %v6793_v57 = vadd.f32 1e-05, %v6777_v38 }
0x119a   : > { %v6845_v11 = vmul.f32 %v9382_v6, %v6792_v48  ;;  %vm6851_vm9 = vweird.f32 %v9382_v6 }
0x119b   : > { %9383 = vrsqrt.f32 %v6793_v57  ;;  %v6719_v20 = vmul.f32 %v13882_v62, %v13882_v62  ;;  %vm6852_vm11 = vmor %vm6850_vm10, %vm6851_vm9  ;;  %vm6860_vm0 = vweird.f32 %v6793_v57 }
0x119c   : > { %v6846_v21 = vmul.f32 %v9382_v6, %v6845_v11 }
0x119d   : > { %v6757_v36 = vsel %vm1067_vm2, %v6719_v20, 0.0 }
0x119e   : > { %v6847_v35 = vmul.f32 0.5, %v6846_v21  ;;  %6758 = vadd.xlane.f32.xlu2 %v6757_v36  ;;  %v6666_v17 = vpop.xlane.xlu1 %6665  ;;  %v6744_v16 = vpop.xlane.xlu2 %6743  ;;  %v13917_v36 = vld [vmem:[%s9667_s7] ss:$0 sm:$0xff] }
0x119f   : > { %v6688_v56 = vmul.f32 %v6666_v17, %v15009_v63  ;;  %v6778_v41 = vmul.f32 %v6744_v16, %v15009_v63 }
0x11a0   : > { %v6848_v27 = vsub.f32 1.5, %v6847_v35 }
0x11a1   : > { %v9384_v42 = vpop.eup %9383  ;;  %v13889_v31 = vsub.f32 %v13803_v25, %v6688_v56  ;;  %v6794_v11 = vadd.f32 1e-05, %v6778_v41 }
0x11a2   : > { %v6849_v34 = vmul.f32 %v9382_v6, %v6848_v27  ;;  %v6855_v12 = vmul.f32 %v9384_v42, %v6793_v57  ;;  %vm6861_vm12 = vweird.f32 %v9384_v42 }
0x11a3   : > { %v6720_v58 = vmul.f32 %v13889_v31, %v13889_v31  ;;  %vm6862_vm13 = vmor %vm6860_vm0, %vm6861_vm12  ;;  %9385 = vrsqrt.f32 %v6794_v11  ;;  %vm6870_vm15 = vweird.f32 %v6794_v11 }
0x11a4   : > { %v6856_v18 = vmul.f32 %v9384_v42, %v6855_v12  ;;  %v6853_v32 = vsel %vm6852_vm11, %v9382_v6, %v6849_v34 }
0x11a5   : > { %v6760_v61 = vsel %vm1067_vm2, %v6720_v58, 0.0  ;;  %v6968_v29 = vmul.f32 %v6853_v32, %v13781_v2 }
0x11a6   : > { %v6857_v60 = vmul.f32 0.5, %v6856_v18  ;;  %6761 = vadd.xlane.f32.xlu0 %v6760_v61  ;;  %v6669_v24 = vpop.xlane.xlu2 %6668  ;;  %v6747_v44 = vpop.xlane.xlu0 %6746 }
0x11a7   : > { %v6689_v43 = vmul.f32 %v6669_v24, %v15009_v63  ;;  %v6988_v50 = vmul.f32 %v13816_v37, %v6968_v29 }
0x11a8   : > { %v6858_v13 = vsub.f32 1.5, %v6857_v60 }
0x11a9   : > { %v13897_v53 = vsub.f32 %v13819_v3, %v6689_v43  ;;  %v7008_v33 = vadd.f32 %v13827_v59, %v6988_v50  ;;  %v9386_v56 = vpop.eup %9385 }
0x11aa   : > { %v6859_v5 = vmul.f32 %v9384_v42, %v6858_v13  ;;  %v6865_v34 = vmul.f32 %v9386_v56, %v6794_v11  ;;  %vm6871_vm1 = vweird.f32 %v9386_v56 }
0x11ab   : > { %v6721_v54 = vmul.f32 %v13897_v53, %v13897_v53  ;;  %vm6872_vm3 = vmor %vm6870_vm15, %vm6871_vm1 }
0x11ac   : > { %v6863_v51 = vsel %vm6862_vm13, %v9384_v42, %v6859_v5  ;;  %v6866_v18 = vmul.f32 %v9386_v56, %v6865_v34 }
0x11ad   : > { %v6969_v0 = vmul.f32 %v6863_v51, %v13792_v1  ;;  %v6763_v15 = vsel %vm1067_vm2, %v6721_v54, 0.0  ;;  %v6779_v1 = vmul.f32 %v6747_v44, %v15009_v63 }
0x11ae   : > { %6764 = vadd.xlane.f32.xlu1 %v6763_v15  ;;  %v6672_v38 = vpop.xlane.xlu2 %6671  ;;  %v6867_v43 = vmul.f32 0.5, %v6866_v18 }
0x11af   : > { %v6989_v2 = vmul.f32 %v13816_v37, %v6969_v0  ;;  %v6690_v6 = vmul.f32 %v6672_v38, %v15009_v63  ;;  %v6795_v20 = vadd.f32 1e-05, %v6779_v1 }
0x11b0   : > { %v6868_v51 = vsub.f32 1.5, %v6867_v43 }
0x11b1   : > { %v7009_v48 = vadd.f32 %v13827_v59, %v6989_v2  ;;  %v13912_v57 = vsub.f32 %v13840_v10, %v6690_v6  ;;  %9387 = vrsqrt.f32 %v6795_v20  ;;  %vm6880_vm4 = vweird.f32 %v6795_v20 }
0x11b3   : > { %v7022_v52 = vpack.c.bf16 %v7009_v48, %v7008_v33  ;;  %v6722_v21 = vmul.f32 %v13912_v57, %v13912_v57  ;;  %v6869_v33 = vmul.f32 %v9386_v56, %v6868_v51 }
0x11b5   : > { %8467 = vmatmul.msk.bf16.gmra.mxu2 %vm1067_vm2, %v7022_v52  ;;  %v6766_v35 = vsel %vm1067_vm2, %v6722_v21, 0.0  ;;  %v6873_v1 = vsel %vm6872_vm3, %v9386_v56, %v6869_v33 }
0x11b6   : > { %6767 = vadd.xlane.f32.xlu2 %v6766_v35  ;;  %v6970_v35 = vmul.f32 %v6873_v1, %v13806_v23 }
0x11b7   : > { %v9388_v42 = vpop.eup %9387 }
0x11b8   : > { %v6875_v12 = vmul.f32 %v9388_v42, %v6795_v20  ;;  %vm6881_vm14 = vweird.f32 %v9388_v42  ;;  %v6990_v11 = vmul.f32 %v13816_v37, %v6970_v35 }
0x11b9   : > { %vm6882_vm5 = vmor %vm6880_vm4, %vm6881_vm14 }
0x11ba   : > { %v6876_v32 = vmul.f32 %v9388_v42, %v6875_v12 }
0x11bc   : > { %v6877_v29 = vmul.f32 0.5, %v6876_v32 }
0x11bd   : > { %v7081_v17 = vpop.f32.mrf.mxu2 }
0x11be   : > { %v13921_v16 = vadd.f32 %v13917_v36, %v7081_v17  ;;  %v6878_v15 = vsub.f32 1.5, %v6877_v29 }
0x11c0   : > { %v13924_v27 = vmul.f32 0.70710677, %v13921_v16  ;;  %v6879_v48 = vmul.f32 %v9388_v42, %v6878_v15 }
0x11c2   : > { %v7153_v58 = vmul.f32 %v13924_v27, %v13924_v27  ;;  %v6883_v6 = vsel %vm6882_vm5, %v9388_v42, %v6879_v48  ;;  %v7010_v42 = vadd.f32 %v13827_v59, %v6990_v11 }
0x11c3   : > { %v6971_v17 = vmul.f32 %v6883_v6, %v13822_v39 }
0x11c4   : > { %v13928_v60 = vmin.f32 %v7153_v58, 16.0 }
0x11c5   : > { %v7083_v61 = vpop.f32.mrf.mxu2  ;;  %v6991_v18 = vmul.f32 %v13816_v37, %v6971_v17 }
0x11c6   : > { %v13931_v24 = vadd.f32 %v13917_v36, %v7083_v61  ;;  %v7166_v5 = vmul.f32 3.8918573e-05, %v13928_v60  ;;  %v7155_v48 = vmul.f32 2.1237322e-06, %v13928_v60 }
0x11c7   : > { %v7011_v23 = vadd.f32 %v13827_v59, %v6991_v18 }
0x11c8   : > { %v13934_v13 = vmul.f32 0.70710677, %v13931_v24  ;;  %v7167_v50 = vadd.f32 0.001143296, %v7166_v5 }
0x11c9   : > { %v7023_v29 = vpack.c.bf16 %v7011_v23, %v7010_v42 }
0x11ca   : > { %v7193_v54 = vmul.f32 %v13934_v13, %v13934_v13  ;;  %v7168_v52 = vmul.f32 %v7167_v50, %v13928_v60 }
0x11cb   : > { %8468 = vmatmul.msk.bf16.gmra.mxu2 %vm1067_vm2, %v7023_v29 }
0x11cc   : > { %v13939_v0 = vmin.f32 %v7193_v54, 16.0  ;;  %v6750_v41 = vpop.xlane.xlu0 %6749  ;;  %v7169_v21 = vadd.f32 0.014752088, %v7168_v52 }
0x11cd   : > { %v6780_v56 = vmul.f32 %v6750_v41, %v15009_v63 }
0x11ce   : > { %v7206_v2 = vmul.f32 3.8918573e-05, %v13939_v0  ;;  %v7170_v12 = vmul.f32 %v7169_v21, %v13928_v60  ;;  %v7195_v41 = vmul.f32 2.1237322e-06, %v13939_v0  ;;  %v7156_v21 = vadd.f32 0.00028619796, %v7155_v48 }
0x11cf   : > { %v13960_v15 = vadd.f32 1e-05, %v6780_v56 }
0x11d0   : > { %v7207_v44 = vadd.f32 0.001143296, %v7206_v2  ;;  %v7171_v61 = vadd.f32 0.112945676, %v7170_v12  ;;  %v7157_v18 = vmul.f32 %v7156_v21, %v13928_v60 }
0x11d1   : > { %9389 = vrsqrt.f32 %v13960_v15  ;;  %vm6890_vm7 = vweird.f32 %v13960_v15 }
0x11d2   : > { %v7208_v38 = vmul.f32 %v7207_v44, %v13939_v0  ;;  %v7172_v54 = vmul.f32 %v7171_v61, %v13928_v60  ;;  %v7158_v29 = vadd.f32 0.0036580483, %v7157_v18 }
0x11d4   : > { %v7209_v34 = vadd.f32 0.014752088, %v7208_v38  ;;  %v6675_v20 = vpop.xlane.xlu0 %6674  ;;  %v7173_v52 = vadd.f32 0.4994258, %v7172_v54 }
0x11d5   : > { %v6691_v32 = vmul.f32 %v6675_v20, %v15009_v63  ;;  %v6753_v5 = vpop.xlane.xlu1 %6752 }
0x11d6   : > { %v7210_v58 = vmul.f32 %v7209_v34, %v13939_v0  ;;  %v6781_v50 = vmul.f32 %v6753_v5, %v15009_v63  ;;  %v7174_v35 = vmul.f32 %v7173_v52, %v13928_v60  ;;  %v7196_v34 = vadd.f32 0.00028619796, %v7195_v41 }
0x11d7   : > { %v13955_v39 = vsub.f32 %v13854_v40, %v6691_v32 }
0x11d8   : > { %v7211_v43 = vadd.f32 0.112945676, %v7210_v58  ;;  %v13969_v38 = vadd.f32 1e-05, %v6781_v50  ;;  %v13981_v58 = vpop.eup %9389  ;;  %v13985_v20 = vadd.f32 1.0, %v7174_v35  ;;  %v7197_v56 = vmul.f32 %v7196_v34, %v13939_v0 }
0x11d9   : > { %v6723_v51 = vmul.f32 %v13955_v39, %v13955_v39  ;;  %v6885_v32 = vmul.f32 %v13981_v58, %v13960_v15  ;;  %vm6891_vm6 = vweird.f32 %v13981_v58 }
0x11da   : > { %v7212_v2 = vmul.f32 %v7211_v43, %v13939_v0  ;;  %9391 = vrsqrt.f32 %v13969_v38  ;;  %vm14036_vm8 = vmor %vm6890_vm7, %vm6891_vm6  ;;  %vm6900_vm10 = vweird.f32 %v13969_v38  ;;  %vm7181_vm13 = vweird.f32 %v13985_v20 }
0x11db   : > { %v6769_v33 = vsel %vm1067_vm2, %v6723_v51, 0.0  ;;  %9393 = vrcp.f32 %v13985_v20  ;;  %v6886_v54 = vmul.f32 %v13981_v58, %v6885_v32  ;;  %v7198_v51 = vadd.f32 0.0036580483, %v7197_v56  ;;  %v8556_v56 = vld [vmem:[%s9673_s26 + $0x38] sm:$0xff] }
0x11dc   : > { %6770 = vadd.xlane.f32.xlu0 %v6769_v33  ;;  %v7213_v6 = vadd.f32 0.4994258, %v7212_v2  ;;  %v7159_v33 = vmul.f32 %v7158_v29, %v13928_v60  ;;  %7901 = vmatpush.bf16.msra.mxu3 %v8556_v56 }
0x11dd   : > { %v6887_v41 = vmul.f32 0.5, %v6886_v54 }
0x11de   : > { %v7214_v11 = vmul.f32 %v7213_v6, %v13939_v0  ;;  %v7199_v6 = vmul.f32 %v7198_v51, %v13939_v0 }
0x11df   : > { %v6888_v29 = vsub.f32 1.5, %v6887_v41 }
0x11e0   : > { %v13993_v23 = vadd.f32 1.0, %v7214_v11  ;;  %v13995_v43 = vpop.eup %9391 }
0x11e1   : > { %v6895_v2 = vmul.f32 %v13995_v43, %v13969_v38  ;;  %vm6901_vm9 = vweird.f32 %v13995_v43 }
0x11e2   : > { %9395 = vrcp.f32 %v13993_v23  ;;  %vm14065_vm12 = vmor %vm6900_vm10, %vm6901_vm9  ;;  %vm7221_vm14 = vweird.f32 %v13993_v23 }
0x11e3   : > { %v6896_v35 = vmul.f32 %v13995_v43, %v6895_v2 }
0x11eb   : > { %v6756_v48 = vpop.xlane.xlu1 %6755 }
0x11ec   : > { %v6782_v34 = vmul.f32 %v6756_v48, %v15009_v63 }
0x11ee   : > { %v14019_v2 = vadd.f32 1e-05, %v6782_v34 }
0x11f0   : > { %9397 = vrsqrt.f32 %v14019_v2  ;;  %vm6910_vm6 = vweird.f32 %v14019_v2 }
0x11f4   : > { %v7086_v44 = vpop.f32.mrf.mxu2 }
0x11f5   : > { %v13972_v1 = vadd.f32 %v13917_v36, %v7086_v44  ;;  %v14004_v44 = vpop.eup %9393 }
0x11f6   : > { %v14010_v18 = vpop.eup %9395  ;;  %v7177_v32 = vmul.f32 %v14004_v44, %v13985_v20  ;;  %vm7182_vm11 = vweird.f32 %v14004_v44 }
0x11f7   : > { %v13976_v17 = vmul.f32 0.70710677, %v13972_v1  ;;  %v7217_v48 = vmul.f32 %v14010_v18, %v13993_v23  ;;  %vm7222_vm0 = vweird.f32 %v14010_v18  ;;  %vm14084_vm1 = vmor %vm7181_vm13, %vm7182_vm11 }
0x11f8   : > { %v7178_v41 = vsub.f32 1.0, %v7177_v32  ;;  %vm14094_vm15 = vmor %vm7221_vm14, %vm7222_vm0 }
0x11f9   : > { %v7233_v12 = vmul.f32 %v13976_v17, %v13976_v17 }
0x11fb   : > { %v13987_v61 = vmin.f32 %v7233_v12, 16.0  ;;  %v7160_v12 = vadd.f32 0.05243302, %v7159_v33 }
0x11fd   : > { %v7246_v42 = vmul.f32 3.8918573e-05, %v13987_v61  ;;  %v7161_v33 = vmul.f32 %v7160_v12, %v13928_v60  ;;  %v7235_v34 = vmul.f32 2.1237322e-06, %v13987_v61 }
0x11ff   : > { %v7247_v5 = vadd.f32 0.001143296, %v7246_v42  ;;  %v7088_v42 = vpop.f32.mrf.mxu2  ;;  %v7162_v56 = vadd.f32 0.18741608, %v7161_v33  ;;  %v7236_v33 = vadd.f32 0.00028619796, %v7235_v34 }
0x1200   : > { %v14017_v51 = vadd.f32 %v13917_v36, %v7088_v42  ;;  %v7218_v42 = vsub.f32 1.0, %v7217_v48 }
0x1201   : > { %v7248_v50 = vmul.f32 %v7247_v5, %v13987_v61  ;;  %v7200_v5 = vadd.f32 0.05243302, %v7199_v6  ;;  %v6889_v6 = vmul.f32 %v13981_v58, %v6888_v29  ;;  %v7163_v10 = vmul.f32 %v7162_v56, %v13928_v60  ;;  %v14055_v29 = vpop.eup %9397 }
0x1202   : > { %vm6911_vm5 = vweird.f32 %v14055_v29 }
0x1203   : > { %v7249_v52 = vadd.f32 0.014752088, %v7248_v50  ;;  %v6897_v50 = vmul.f32 0.5, %v6896_v35  ;;  %vm14136_vm7 = vmor %vm6910_vm6, %vm6911_vm5 }
0x1205   : > { %v7250_v21 = vmul.f32 %v7249_v52, %v13987_v61  ;;  %v6898_v35 = vsub.f32 1.5, %v6897_v50  ;;  %v6893_v50 = vsel %vm14036_vm8, %v13981_v58, %v6889_v6  ;;  %v7187_v58 = vand.u32 2147483648, %v13985_v20 }
0x1206   : > { %v6972_v60 = vmul.f32 %v6893_v50, %v13847_v19 }
0x1207   : > { %v7251_v11 = vadd.f32 0.112945676, %v7250_v21  ;;  %v14025_v21 = vmul.f32 0.70710677, %v14017_v51  ;;  %v6899_v15 = vmul.f32 %v13995_v43, %v6898_v35 }
0x1209   : > { %v7252_v54 = vmul.f32 %v7251_v11, %v13987_v61  ;;  %v7201_v11 = vmul.f32 %v7200_v5, %v13939_v0  ;;  %v7273_v12 = vmul.f32 %v14025_v21, %v14025_v21  ;;  %v7179_v5 = vmul.f32 %v14004_v44, %v7178_v41 }
0x120a   : > { %v7219_v41 = vmul.f32 %v14010_v18, %v7218_v42  ;;  %v6903_v38 = vsel %vm14065_vm12, %v13995_v43, %v6899_v15  ;;  %v7237_v42 = vmul.f32 %v7236_v33, %v13987_v61  ;;  %v7164_v15 = vadd.f32 1.1283791, %v7163_v10  ;;  %v8554_v33 = vld [vmem:[%s9673_s26 + $0x28] sm:$0xff] }
0x120b   : > { %v7253_v52 = vadd.f32 0.4994258, %v7252_v54  ;;  %v14040_v54 = vmin.f32 %v7273_v12, 16.0  ;;  %v7202_v40 = vadd.f32 0.18741608, %v7201_v11  ;;  %v7180_v35 = vadd.f32 %v14004_v44, %v7179_v5 }
0x120c   : > { %v7185_v12 = vand.u32 2147483647, %v13985_v20  ;;  %v7220_v19 = vadd.f32 %v14010_v18, %v7219_v41  ;;  %v7188_v41 = vor.u32 1.1754944e-38, %v7187_v58 }
0x120d   : > { %v7254_v32 = vmul.f32 %v7253_v52, %v13987_v61  ;;  %v7275_v48 = vmul.f32 2.1237322e-06, %v14040_v54  ;;  %v7286_v52 = vmul.f32 3.8918573e-05, %v14040_v54  ;;  %v7203_v34 = vmul.f32 %v7202_v40, %v13939_v0 }
0x120e   : > { %v6905_v40 = vmul.f32 %v14055_v29, %v14019_v2  ;;  %v7227_v0 = vand.u32 2147483648, %v13993_v23  ;;  %v7184_v20 = vsel %vm14084_vm1, %v14004_v44, %v7180_v35  ;;  %vm7186_vm3 = vcmp.eq.f32.partialorder %v7185_v12, 8.507059e+37 }
0x120f   : > { %v14053_v3 = vadd.f32 1.0, %v7254_v32  ;;  %v7276_v6 = vadd.f32 0.00028619796, %v7275_v48  ;;  %v7287_v11 = vadd.f32 0.001143296, %v7286_v52  ;;  %v6973_v52 = vmul.f32 %v6903_v38, %v13857_v7 }
0x1210   : > { %v7225_v48 = vand.u32 2147483647, %v13993_v23  ;;  %v7204_v56 = vadd.f32 1.1283791, %v7203_v34  ;;  %v7224_v23 = vsel %vm14094_vm15, %v14010_v18, %v7220_v19  ;;  %v6906_v7 = vmul.f32 %v14055_v29, %v6905_v40  ;;  %v8555_v34 = vld [vmem:[%s9673_s26 + $0x30] sm:$0xff] }
0x1211   : > { %v7277_v32 = vmul.f32 %v7276_v6, %v14040_v54  ;;  %v7288_v5 = vmul.f32 %v7287_v11, %v14040_v54  ;;  %9399 = vrcp.f32 %v14053_v3  ;;  %v7238_v6 = vadd.f32 0.0036580483, %v7237_v42  ;;  %v6759_v18 = vpop.xlane.xlu2 %6758  ;;  %7902 = vmatpush.bf16.msra.mxu3 %v8555_v34 }
0x1212   : > { %v6992_v38 = vmul.f32 %v13816_v37, %v6972_v60  ;;  %v7228_v44 = vor.u32 1.1754944e-38, %v7227_v0  ;;  %v7165_v42 = vmul.f32 %v7164_v15, %v13924_v27  ;;  %vm7226_vm4 = vcmp.eq.f32.partialorder %v7225_v48, 8.507059e+37 }
0x1213   : > { %v7278_v43 = vadd.f32 0.0036580483, %v7277_v32  ;;  %v7289_v50 = vadd.f32 0.014752088, %v7288_v5  ;;  %v7189_v5 = vsel %vm7186_vm3, %v7188_v41, %v7184_v20  ;;  %v7239_v40 = vmul.f32 %v7238_v6, %v13987_v61 }
0x1214   : > { %v7229_v19 = vsel %vm7226_vm4, %v7228_v44, %v7224_v23  ;;  %v6783_v60 = vmul.f32 %v6759_v18, %v15009_v63  ;;  %v7205_v0 = vmul.f32 %v7204_v56, %v13934_v13  ;;  %v7012_v27 = vadd.f32 %v13827_v59, %v6992_v38 }
0x1215   : > { %v7290_v11 = vmul.f32 %v7289_v50, %v14040_v54  ;;  %v7279_v58 = vmul.f32 %v7278_v43, %v14040_v54  ;;  %v6993_v50 = vmul.f32 %v13816_v37, %v6973_v52  ;;  %v6907_v43 = vmul.f32 0.5, %v6906_v7  ;;  %7903 = vmatpush.bf16.msra.mxu3 %v8554_v33  ;;  %v8553_v7 = vld [vmem:[%s9673_s26 + $0x20] sm:$0xff] }
0x1216   : > { %v14119_v41 = vadd.f32 1e-05, %v6783_v60  ;;  %v7190_v10 = vmul.f32 %v7189_v5, %v7165_v42  ;;  %v7230_v6 = vmul.f32 %v7229_v19, %v7205_v0  ;;  %v7240_v23 = vadd.f32 0.05243302, %v7239_v40 }
0x1217   : > { %v7291_v35 = vadd.f32 0.112945676, %v7290_v11  ;;  %v14105_v32 = vpop.eup %9399  ;;  %v7013_v15 = vadd.f32 %v13827_v59, %v6993_v50  ;;  %v7280_v52 = vadd.f32 0.05243302, %v7279_v58  ;;  %v6908_v56 = vsub.f32 1.5, %v6907_v43  ;;  %v8552_v50 = vld [vmem:[%s9673_s26 + $0x18] sm:$0xff] }
0x1218   : > { %v7257_v48 = vmul.f32 %v14105_v32, %v14053_v3  ;;  %9401 = vrsqrt.f32 %v14119_v41  ;;  %v8474_v42 = vclamps-f32 %v7230_v6, 1.0  ;;  %v7241_v5 = vmul.f32 %v7240_v23, %v13987_v61 }
0x1219   : > { %v7292_v12 = vmul.f32 %v7291_v35, %v14040_v54  ;;  %v7024_v11 = vpack.c.bf16 %v7013_v15, %v7012_v27  ;;  %v7281_v44 = vmul.f32 %v7280_v52, %v14040_v54  ;;  %v8473_v35 = vclamps-f32 %v7190_v10, 1.0  ;;  %7904 = vmatpush.bf16.msra.mxu3 %v8553_v7  ;;  %v8551_v52 = vld [vmem:[%s9673_s26 + $0x10] sm:$0xff] }
0x121a   : > { %v7258_v38 = vsub.f32 1.0, %v7257_v48  ;;  %v6909_v34 = vmul.f32 %v14055_v29, %v6908_v56  ;;  %v7794_v60 = vadd.f32 1.0, %v8474_v42  ;;  %v7242_v33 = vadd.f32 0.18741608, %v7241_v5 }
0x121b   : > { %v7293_v20 = vadd.f32 0.4994258, %v7292_v12  ;;  %8469 = vmatmul.msk.bf16.gmra.mxu2 %vm1067_vm2, %v7024_v11  ;;  %v7282_v40 = vadd.f32 0.18741608, %v7281_v44  ;;  %v7793_v12 = vadd.f32 1.0, %v8473_v35  ;;  %v7121_v27 = vmul.f32 0.5, %v13921_v16 }
0x121c   : > { %v7259_v19 = vmul.f32 %v14105_v32, %v7258_v38  ;;  %v7122_v15 = vmul.f32 0.5, %v13931_v24  ;;  %v6913_v48 = vsel %vm14136_vm7, %v14055_v29, %v6909_v34  ;;  %vm7262_vm8 = vweird.f32 %v14105_v32  ;;  %v8550_v44 = vld [vmem:[%s9673_s26 + $0x8] sm:$0xff] }
0x121d   : > { %v7294_v13 = vmul.f32 %v7293_v20, %v14040_v54  ;;  %7905 = vmatpush.bf16.msra.mxu3 %v8552_v50  ;;  %v7283_v6 = vmul.f32 %v7282_v40, %v14040_v54  ;;  %v7809_v11 = vmul.f32 %v7793_v12, %v7121_v27  ;;  %v7243_v29 = vmul.f32 %v7242_v33, %v13987_v61  ;;  %v6762_v12 = vpop.xlane.xlu0 %6761 }
0x121e   : > { %v9402_v18 = vpop.eup %9401  ;;  %v7260_v2 = vadd.f32 %v14105_v32, %v7259_v19  ;;  %v7810_v23 = vmul.f32 %v7794_v60, %v7122_v15  ;;  %vm7261_vm9 = vweird.f32 %v14053_v3  ;;  %v7267_v56 = vand.u32 2147483648, %v14053_v3 }
0x121f   : > { %v14126_v58 = vadd.f32 1.0, %v7294_v13  ;;  %v6915_v0 = vmul.f32 %v9402_v18, %v14119_v41  ;;  %v6974_v13 = vmul.f32 %v6913_v48, %v13873_v30  ;;  %vm14154_vm10 = vmor %vm7261_vm9, %vm7262_vm8  ;;  %v7265_v38 = vand.u32 2147483647, %v14053_v3 }
0x1220   : > { %vm6921_vm11 = vweird.f32 %v9402_v18  ;;  %v7264_v30 = vsel %vm14154_vm10, %v14105_v32, %v7260_v2  ;;  %v7284_v61 = vadd.f32 1.1283791, %v7283_v6  ;;  %vm6920_vm12 = vweird.f32 %v14119_v41  ;;  %v8549_v32 = vld [vmem:[%s9673_s26] sm:$0xff] }
0x1221   : > { %9403 = vrcp.f32 %v14126_v58  ;;  %v6916_v20 = vmul.f32 %v9402_v18, %v6915_v0  ;;  %7906 = vmatpush.bf16.msra.mxu3 %v8551_v52  ;;  %v7307_v42 = vand.u32 2147483648, %v14126_v58  ;;  %v7305_v34 = vand.u32 2147483647, %v14126_v58  ;;  %vm6922_vm13 = vmor %vm6920_vm12, %vm6921_vm11  ;;  %v6765_v43 = vpop.xlane.xlu1 %6764 }
0x1222   : > { %v7825_v50 = vpack.c.bf16 %v7810_v23, %v7809_v11  ;;  %v7244_v19 = vadd.f32 1.1283791, %v7243_v29  ;;  %v7268_v40 = vor.u32 1.1754944e-38, %v7267_v56  ;;  %vm7266_vm1 = vcmp.eq.f32.partialorder %v7265_v38, 8.507059e+37 }
0x1223   : > { %v6917_v24 = vmul.f32 0.5, %v6916_v20  ;;  %vm7301_vm14 = vweird.f32 %v14126_v58  ;;  %v7308_v41 = vor.u32 1.1754944e-38, %v7307_v42  ;;  %v6994_v15 = vmul.f32 %v13816_v37, %v6974_v13 }
0x1224   : > { %v7269_v33 = vsel %vm7266_vm1, %v7268_v40, %v7264_v30  ;;  %v7285_v48 = vmul.f32 %v7284_v61, %v14025_v21  ;;  %vm7306_vm3 = vcmp.eq.f32.partialorder %v7305_v34, 8.507059e+37  ;;  %v6784_v20 = vmul.f32 %v6762_v12, %v15009_v63 }
0x1225   : > { %v6918_v35 = vsub.f32 1.5, %v6917_v24  ;;  %7907 = vmatpush.bf16.msra.mxu3 %v8550_v44  ;;  %v7124_v7 = vmul.f32 0.5, %v14017_v51  ;;  %v7123_v38 = vmul.f32 0.5, %v13972_v1 }
0x1226   : > { %v6800_v24 = vadd.f32 1e-05, %v6784_v20 }
0x1227   : > { %v9404_v10 = vpop.eup %9403  ;;  %v6919_v3 = vmul.f32 %v9402_v18, %v6918_v35 }
0x1228   : > { %v7297_v16 = vmul.f32 %v9404_v10, %v14126_v58  ;;  %vm7302_vm0 = vweird.f32 %v9404_v10  ;;  %v7245_v58 = vmul.f32 %v7244_v19, %v13976_v17  ;;  %9405 = vrsqrt.f32 %v6800_v24 }
0x1229   : > { %v6923_v0 = vsel %vm6922_vm13, %v9402_v18, %v6919_v3  ;;  %vm7303_vm15 = vmor %vm7301_vm14, %vm7302_vm0  ;;  %v6785_v18 = vmul.f32 %v6765_v43, %v15009_v63  ;;  %7908 = vmatpush.bf16.msra.mxu3 %v8549_v32  ;;  %vm6930_vm6 = vweird.f32 %v6800_v24 }
0x122a   : > { %v7298_v54 = vsub.f32 1.0, %v7297_v16  ;;  %v6975_v27 = vmul.f32 %v6923_v0, %v13882_v62  ;;  %v7270_v23 = vmul.f32 %v7269_v33, %v7245_v58  ;;  %v7014_v62 = vadd.f32 %v13827_v59, %v6994_v15 }
0x122c   : > { %v7299_v5 = vmul.f32 %v9404_v10, %v7298_v54  ;;  %v6995_v6 = vmul.f32 %v13816_v37, %v6975_v27  ;;  %7909 = vmatmul.bf16.vlgmr.msra.gmra.mxu3 %v7825_v50  ;;  %v8475_v29 = vclamps-f32 %v7270_v23, 1.0 }
0x122e   : > { %v7300_v60 = vadd.f32 %v9404_v10, %v7299_v5  ;;  %v7015_v16 = vadd.f32 %v13827_v59, %v6995_v6  ;;  %v7795_v56 = vadd.f32 1.0, %v8475_v29  ;;  %v9406_v44 = vpop.eup %9405 }
0x122f   : > { %v6925_v5 = vmul.f32 %v9406_v44, %v6800_v24  ;;  %vm6931_vm4 = vweird.f32 %v9406_v44 }
0x1230   : > { %v7304_v52 = vsel %vm7303_vm15, %v9404_v10, %v7300_v60  ;;  %v6801_v10 = vadd.f32 1e-05, %v6785_v18  ;;  %v7025_v13 = vpack.c.bf16 %v7015_v16, %v7014_v62  ;;  %v7811_v61 = vmul.f32 %v7795_v56, %v7123_v38  ;;  %vm6932_vm7 = vmor %vm6930_vm6, %vm6931_vm4 }
0x1231   : > { %v7309_v2 = vsel %vm7306_vm3, %v7308_v41, %v7304_v52  ;;  %v6926_v3 = vmul.f32 %v9406_v44, %v6925_v5 }
0x1232   : > { %v7310_v11 = vmul.f32 %v7309_v2, %v7285_v48  ;;  %8470 = vmatmul.msk.bf16.gmra.mxu2 %vm1067_vm2, %v7025_v13  ;;  %9407 = vrsqrt.f32 %v6801_v10  ;;  %vm6940_vm8 = vweird.f32 %v6801_v10 }
0x1233   : > { %v6927_v40 = vmul.f32 0.5, %v6926_v3 }
0x1234   : > { %v8476_v21 = vclamps-f32 %v7310_v11, 1.0 }
0x1235   : > { %v6928_v1 = vsub.f32 1.5, %v6927_v40 }
0x1236   : > { %v7796_v17 = vadd.f32 1.0, %v8476_v21 }
0x1237   : > { %v6929_v33 = vmul.f32 %v9406_v44, %v6928_v1 }
0x1238   : > { %v7812_v54 = vmul.f32 %v7796_v17, %v7124_v7  ;;  %v7091_v35 = vpop.f32.mrf.mxu2  ;;  %v9408_v30 = vpop.eup %9407 }
0x1239   : > { %v6935_v34 = vmul.f32 %v9408_v30, %v6801_v10  ;;  %v14185_v51 = vadd.f32 %v13917_v36, %v7091_v35  ;;  %vm6941_vm5 = vweird.f32 %v9408_v30  ;;  %v6933_v48 = vsel %vm6932_vm7, %v9406_v44, %v6929_v33 }
0x123a   : > { %v7826_v42 = vpack.c.bf16 %v7812_v54, %v7811_v61  ;;  %vm6942_vm9 = vmor %vm6940_vm8, %vm6941_vm5  ;;  %v6976_v2 = vmul.f32 %v6933_v48, %v13889_v31 }
0x123b   : > { %v6936_v50 = vmul.f32 %v9408_v30, %v6935_v34  ;;  %v14191_v43 = vmul.f32 0.70710677, %v14185_v51 }
0x123c   : > { %7914 = vmatmul.bf16.gmra.mxu3 %v7826_v42  ;;  %v6996_v23 = vmul.f32 %v13816_v37, %v6976_v2 }
0x123d   : > { %v6937_v12 = vmul.f32 0.5, %v6936_v50  ;;  %v7313_v15 = vmul.f32 %v14191_v43, %v14191_v43 }
0x123e   : > { %v7016_v24 = vadd.f32 %v13827_v59, %v6996_v23 }
0x123f   : > { %v6938_v32 = vsub.f32 1.5, %v6937_v12  ;;  %v14199_v58 = vmin.f32 %v7313_v15, 16.0 }
0x1240   : > { %v7093_v19 = vpop.f32.mrf.mxu2 }
0x1241   : > { %v14182_v60 = vadd.f32 %v13917_v36, %v7093_v19  ;;  %v6939_v41 = vmul.f32 %v9408_v30, %v6938_v32  ;;  %v7326_v11 = vmul.f32 3.8918573e-05, %v14199_v58  ;;  %v7315_v1 = vmul.f32 2.1237322e-06, %v14199_v58 }
0x1243   : > { %v14188_v0 = vmul.f32 0.70710677, %v14182_v60  ;;  %v6943_v52 = vsel %vm6942_vm9, %v9408_v30, %v6939_v41  ;;  %v7327_v10 = vadd.f32 0.001143296, %v7326_v11  ;;  %v7316_v2 = vadd.f32 0.00028619796, %v7315_v1 }
0x1244   : > { %v6977_v18 = vmul.f32 %v6943_v52, %v13897_v53  ;;  %v6768_v53 = vpop.xlane.xlu2 %6767 }
0x1245   : > { %v7353_v27 = vmul.f32 %v14188_v0, %v14188_v0  ;;  %v7328_v31 = vmul.f32 %v7327_v10, %v14199_v58  ;;  %v6786_v56 = vmul.f32 %v6768_v53, %v15009_v63 }
0x1246   : > { %v6997_v62 = vmul.f32 %v13816_v37, %v6977_v18 }
0x1247   : > { %v14197_v20 = vmin.f32 %v7353_v27, 16.0  ;;  %v7329_v7 = vadd.f32 0.014752088, %v7328_v31  ;;  %v14215_v44 = vadd.f32 1e-05, %v6786_v56 }
0x1248   : > { %v7017_v21 = vadd.f32 %v13827_v59, %v6997_v62 }
0x1249   : > { %v7366_v6 = vmul.f32 3.8918573e-05, %v14197_v20  ;;  %v7330_v59 = vmul.f32 %v7329_v7, %v14199_v58  ;;  %9409 = vrsqrt.f32 %v14215_v44  ;;  %v7355_v32 = vmul.f32 2.1237322e-06, %v14197_v20 }
0x124a   : > { %v7026_v13 = vpack.c.bf16 %v7017_v21, %v7016_v24  ;;  %v7317_v21 = vmul.f32 %v7316_v2, %v14199_v58  ;;  %vm6950_vm11 = vweird.f32 %v14215_v44 }
0x124b   : > { %v7367_v16 = vadd.f32 0.001143296, %v7366_v6  ;;  %v7331_v5 = vadd.f32 0.112945676, %v7330_v59  ;;  %v7356_v18 = vadd.f32 0.00028619796, %v7355_v32 }
0x124c   : > { %8471 = vmatmul.msk.bf16.gmra.mxu2 %vm1067_vm2, %v7026_v13  ;;  %v7318_v7 = vadd.f32 0.0036580483, %v7317_v21 }
0x124d   : > { %v7368_v29 = vmul.f32 %v7367_v16, %v14197_v20  ;;  %v7332_v50 = vmul.f32 %v7331_v5, %v14199_v58  ;;  %v7357_v10 = vmul.f32 %v7356_v18, %v14197_v20 }
0x124e   : > { %v7096_v30 = vpop.f32.mrf.mxu2  ;;  %v7319_v5 = vmul.f32 %v7318_v7, %v14199_v58 }
0x124f   : > { %v7369_v17 = vadd.f32 0.014752088, %v7368_v29  ;;  %v6771_v38 = vpop.xlane.xlu0 %6770  ;;  %v14221_v42 = vadd.f32 %v13917_v36, %v7096_v30  ;;  %v14234_v40 = vpop.eup %9409  ;;  %v7333_v41 = vadd.f32 0.4994258, %v7332_v50 }
0x1250   : > { %v6787_v54 = vmul.f32 %v6771_v38, %v15009_v63  ;;  %v6945_v15 = vmul.f32 %v14234_v40, %v14215_v44  ;;  %v7358_v38 = vadd.f32 0.0036580483, %v7357_v10  ;;  %vm6951_vm10 = vweird.f32 %v14234_v40 }
0x1251   : > { %v7370_v37 = vmul.f32 %v7369_v17, %v14197_v20  ;;  %v14225_v34 = vmul.f32 0.70710677, %v14221_v42  ;;  %v7334_v11 = vmul.f32 %v7333_v41, %v14199_v58  ;;  %vm14282_vm12 = vmor %vm6950_vm11, %vm6951_vm10 }
0x1252   : > { %v14218_v61 = vadd.f32 1e-05, %v6787_v54  ;;  %v6946_v62 = vmul.f32 %v14234_v40, %v6945_v15  ;;  %v7320_v15 = vadd.f32 0.05243302, %v7319_v5 }
0x1253   : > { %v7371_v35 = vadd.f32 0.112945676, %v7370_v37  ;;  %v7393_v63 = vmul.f32 %v14225_v34, %v14225_v34  ;;  %v14254_v29 = vadd.f32 1.0, %v7334_v11 }
0x1254   : > { %9411 = vrsqrt.f32 %v14218_v61  ;;  %v6947_v53 = vmul.f32 0.5, %v6946_v62  ;;  %vm6960_vm13 = vweird.f32 %v14218_v61 }
0x1255   : > { %v7372_v3 = vmul.f32 %v7371_v35, %v14197_v20  ;;  %v14232_v19 = vmin.f32 %v7393_v63, 16.0  ;;  %vm7341_vm5 = vweird.f32 %v14254_v29 }
0x1256   : > { %v7098_v56 = vpop.f32.mrf.mxu2  ;;  %v6948_v59 = vsub.f32 1.5, %v6947_v53  ;;  %v7321_v53 = vmul.f32 %v7320_v15, %v14199_v58 }
0x1257   : > { %v7373_v12 = vadd.f32 0.4994258, %v7372_v3  ;;  %v7406_v33 = vmul.f32 3.8918573e-05, %v14232_v19  ;;  %v14259_v37 = vadd.f32 %v13917_v36, %v7098_v56  ;;  %v7359_v3 = vmul.f32 %v7358_v38, %v14197_v20 }
0x1258   : > { %v7395_v32 = vmul.f32 2.1237322e-06, %v14232_v19 }
0x1259   : > { %v7407_v48 = vadd.f32 0.001143296, %v7406_v33  ;;  %v7374_v52 = vmul.f32 %v7373_v12, %v14197_v20  ;;  %v14264_v30 = vmul.f32 0.70710677, %v14259_v37  ;;  %v6949_v12 = vmul.f32 %v14234_v40, %v6948_v59 }
0x125a   : > { %v14239_v27 = vpop.eup %9411  ;;  %v7396_v62 = vadd.f32 0.00028619796, %v7395_v32 }
0x125b   : > { %v7408_v6 = vmul.f32 %v7407_v48, %v14232_v19  ;;  %v6955_v23 = vmul.f32 %v14239_v27, %v14218_v61  ;;  %v14249_v24 = vadd.f32 1.0, %v7374_v52  ;;  %v7433_v36 = vmul.f32 %v14264_v30, %v14264_v30 }
0x125c   : > { %v7360_v48 = vadd.f32 0.05243302, %v7359_v3  ;;  %vm6961_vm0 = vweird.f32 %v14239_v27  ;;  %v6953_v44 = vsel %vm14282_vm12, %v14234_v40, %v6949_v12  ;;  %v7397_v38 = vmul.f32 %v7396_v62, %v14232_v19  ;;  %v9456_v12 = vld [vmem:[%s9650_s5] ss:$0 sm:$0xff] }
0x125d   : > { %v7409_v16 = vadd.f32 0.014752088, %v7408_v6  ;;  %v6956_v31 = vmul.f32 %v14239_v27, %v6955_v23  ;;  %9413 = vrcp.f32 %v14249_v24  ;;  %v14277_v41 = vmin.f32 %v7433_v36, 16.0  ;;  %vm6962_vm1 = vmor %vm6960_vm13, %vm6961_vm0 }
0x125e   : > { %9415 = vrcp.f32 %v14254_v29  ;;  %v6978_v56 = vmul.f32 %v6953_v44, %v13912_v57  ;;  %vm7381_vm15 = vweird.f32 %v14249_v24 }
0x125f   : > { %v7410_v13 = vmul.f32 %v7409_v16, %v14232_v19  ;;  %v6957_v54 = vmul.f32 0.5, %v6956_v31  ;;  %v7435_v6 = vmul.f32 2.1237322e-06, %v14277_v41  ;;  %v7446_v11 = vmul.f32 3.8918573e-05, %v14277_v41 }
0x1260   : > { %v6998_v57 = vmul.f32 %v9456_v12, %v6978_v56 }
0x1261   : > { %v7411_v17 = vadd.f32 0.112945676, %v7410_v13  ;;  %v6958_v50 = vsub.f32 1.5, %v6957_v54  ;;  %v7436_v21 = vadd.f32 0.00028619796, %v7435_v6  ;;  %v7361_v13 = vmul.f32 %v7360_v48, %v14197_v20 }
0x1262   : > { %v7447_v10 = vadd.f32 0.001143296, %v7446_v11  ;;  %v7385_v11 = vand.u32 2147483647, %v14249_v24 }
0x1263   : > { %v7412_v35 = vmul.f32 %v7411_v17, %v14232_v19  ;;  %v14268_v63 = vpop.eup %9413  ;;  %v6959_v18 = vmul.f32 %v14239_v27, %v6958_v50  ;;  %v7437_v61 = vmul.f32 %v7436_v21, %v14277_v41  ;;  %v7322_v50 = vadd.f32 0.18741608, %v7321_v53 }
0x1264   : > { %v14274_v1 = vpop.eup %9415  ;;  %v7377_v52 = vmul.f32 %v14268_v63, %v14249_v24  ;;  %v7448_v40 = vmul.f32 %v7447_v10, %v14277_v41  ;;  %vm7382_vm14 = vweird.f32 %v14268_v63  ;;  %vm7386_vm7 = vcmp.eq.f32.partialorder %v7385_v11, 8.507059e+37 }
0x1265   : > { %v7413_v33 = vadd.f32 0.4994258, %v7412_v35  ;;  %v7337_v23 = vmul.f32 %v14274_v1, %v14254_v29  ;;  %v6963_v17 = vsel %vm6962_vm1, %v14239_v27, %v6959_v18  ;;  %v7362_v35 = vadd.f32 0.18741608, %v7361_v13  ;;  %vm14324_vm4 = vmor %vm7381_vm15, %vm7382_vm14 }
0x1266   : > { %v7378_v31 = vsub.f32 1.0, %v7377_v52  ;;  %v7449_v59 = vadd.f32 0.014752088, %v7448_v40  ;;  %v6979_v3 = vmul.f32 %v6963_v17, %v13955_v39  ;;  %v7438_v36 = vadd.f32 0.0036580483, %v7437_v61 }
0x1267   : > { %v7414_v16 = vmul.f32 %v7413_v33, %v14232_v19  ;;  %v7338_v7 = vsub.f32 1.0, %v7337_v23  ;;  %v7398_v33 = vadd.f32 0.0036580483, %v7397_v38  ;;  %v7363_v48 = vmul.f32 %v7362_v35, %v14197_v20  ;;  %v9457_v23 = vld [vmem:[%s9656_s9] ss:$0 sm:$0xff]  ;;  %s15039_s9 = sld [smem:[#allocation58_spill]] (!%p8521_p5) }
0x1268   : > { %v7379_v5 = vmul.f32 %v14268_v63, %v7378_v31  ;;  %v7450_v27 = vmul.f32 %v7449_v59, %v14277_v41  ;;  %v6999_v39 = vmul.f32 %v9456_v12, %v6979_v3  ;;  %v7323_v2 = vmul.f32 %v7322_v50, %v14199_v58 }
0x1269   : > { %v14304_v54 = vadd.f32 1.0, %v7414_v16  ;;  %v7339_v32 = vmul.f32 %v14274_v1, %v7338_v7  ;;  %v7387_v18 = vand.u32 2147483648, %v14249_v24  ;;  %v7439_v44 = vmul.f32 %v7438_v36, %v14277_v41 }
0x126a   : > { %v7451_v15 = vadd.f32 0.112945676, %v7450_v27  ;;  %v7380_v52 = vadd.f32 %v14268_v63, %v7379_v5  ;;  %v7018_v62 = vadd.f32 %v9457_v23, %v6998_v57  ;;  %v7019_v20 = vadd.f32 %v9457_v23, %v6999_v39 }
0x126b   : > { %9417 = vrcp.f32 %v14304_v54  ;;  %v7340_v16 = vadd.f32 %v14274_v1, %v7339_v32  ;;  %vm7342_vm3 = vweird.f32 %v14274_v1  ;;  %v7399_v58 = vmul.f32 %v7398_v33, %v14232_v19  ;;  %v14347_v33 = vld [vmem:[%s9667_s7] ss:$0 sm:$0xff] }
0x126c   : > { %v7452_v6 = vmul.f32 %v7451_v15, %v14277_v41  ;;  %v7347_v13 = vand.u32 2147483648, %v14254_v29  ;;  %v7364_v31 = vadd.f32 1.1283791, %v7363_v48  ;;  %v7384_v24 = vsel %vm14324_vm4, %v14268_v63, %v7380_v52  ;;  %vm7343_vm6 = vmor %vm7341_vm5, %vm7342_vm3 }
0x126d   : > { %v7027_v53 = vpack.c.bf16 %v7019_v20, %v7018_v62  ;;  %v7345_v40 = vand.u32 2147483647, %v14254_v29  ;;  %v7388_v56 = vor.u32 1.1754944e-38, %v7387_v18  ;;  %v7324_v7 = vadd.f32 1.1283791, %v7323_v2 }
0x126e   : > { %v7453_v10 = vadd.f32 0.4994258, %v7452_v6  ;;  %v7440_v38 = vadd.f32 0.05243302, %v7439_v44  ;;  %v7344_v59 = vsel %vm7343_vm6, %v14274_v1, %v7340_v16  ;;  %v7400_v35 = vadd.f32 0.05243302, %v7399_v58 }
0x126f   : > { %8472 = vmatmul.msk.bf16.gmra.mxu2 %vm1067_vm2, %v7027_v53  ;;  %v7389_v63 = vsel %vm7386_vm7, %v7388_v56, %v7384_v24  ;;  %v7348_v3 = vor.u32 1.1754944e-38, %v7347_v13  ;;  %v7365_v50 = vmul.f32 %v7364_v31, %v14188_v0  ;;  %vm7346_vm8 = vcmp.eq.f32.partialorder %v7345_v40, 8.507059e+37 }
0x1270   : > { %v7454_v61 = vmul.f32 %v7453_v10, %v14277_v41  ;;  %v7441_v12 = vmul.f32 %v7440_v38, %v14277_v41  ;;  %v7325_v32 = vmul.f32 %v7324_v7, %v14191_v43  ;;  %v7401_v1 = vmul.f32 %v7400_v35, %v14232_v19 }
0x1271   : > { %v14333_v17 = vpop.eup %9417  ;;  %v7349_v27 = vsel %vm7346_vm8, %v7348_v3, %v7344_v59  ;;  %v7390_v36 = vmul.f32 %v7389_v63, %v7365_v50  ;;  %v7125_v23 = vmul.f32 0.5, %v14185_v51  ;;  %v7126_v16 = vmul.f32 0.5, %v14182_v60 }
0x1272   : > { %v7455_v5 = vadd.f32 1.0, %v7454_v61  ;;  %v7417_v29 = vmul.f32 %v14333_v17, %v14304_v54  ;;  %v7350_v48 = vmul.f32 %v7349_v27, %v7325_v32  ;;  %v7442_v2 = vadd.f32 0.18741608, %v7441_v12 }
0x1273   : > { %v8478_v39 = vclamps-f32 %v7390_v36, 1.0  ;;  %v7402_v6 = vadd.f32 0.18741608, %v7401_v1  ;;  %vm7422_vm9 = vweird.f32 %v14333_v17  ;;  %vm7421_vm11 = vweird.f32 %v14304_v54 }
0x1274   : > { %9419 = vrcp.f32 %v7455_v5  ;;  %v7418_v0 = vsub.f32 1.0, %v7417_v29  ;;  %v8477_v62 = vclamps-f32 %v7350_v48, 1.0  ;;  %v7443_v58 = vmul.f32 %v7442_v2, %v14277_v41  ;;  %vm14369_vm12 = vmor %vm7421_vm11, %vm7422_vm9 }
0x1275   : > { %v7798_v21 = vadd.f32 1.0, %v8478_v39  ;;  %v7403_v13 = vmul.f32 %v7402_v6, %v14232_v19  ;;  %v7467_v31 = vand.u32 2147483648, %v7455_v5  ;;  %v7465_v51 = vand.u32 2147483647, %v7455_v5 }
0x1276   : > { %v7419_v43 = vmul.f32 %v14333_v17, %v7418_v0  ;;  %v7797_v56 = vadd.f32 1.0, %v8477_v62  ;;  %v7427_v60 = vand.u32 2147483648, %v14304_v54  ;;  %v7425_v19 = vand.u32 2147483647, %v14304_v54 }
0x1277   : > { %v7444_v7 = vadd.f32 1.1283791, %v7443_v58  ;;  %vm7461_vm0 = vweird.f32 %v7455_v5  ;;  %v7814_v59 = vmul.f32 %v7798_v21, %v7126_v16  ;;  %v7468_v63 = vor.u32 1.1754944e-38, %v7467_v31 }
0x1278   : > { %v7420_v53 = vadd.f32 %v14333_v17, %v7419_v43  ;;  %v7404_v50 = vadd.f32 1.1283791, %v7403_v13  ;;  %vm7466_vm1 = vcmp.eq.f32.partialorder %v7465_v51, 8.507059e+37  ;;  %v7428_v12 = vor.u32 1.1754944e-38, %v7427_v60  ;;  %v14403_v60 = vld [vmem:[%s854_s28] ss:$0 sm:$0xff] }
0x1279   : > { %v7813_v32 = vmul.f32 %v7797_v56, %v7125_v23  ;;  %vm7426_vm14 = vcmp.eq.f32.partialorder %v7425_v19, 8.507059e+37  ;;  %v7445_v1 = vmul.f32 %v7444_v7, %v14264_v30  ;;  %v7128_v41 = vmul.f32 0.5, %v14259_v37 }
0x127a   : > { %v9420_v18 = vpop.eup %9419  ;;  %v7424_v29 = vsel %vm14369_vm12, %v14333_v17, %v7420_v53  ;;  %v7405_v17 = vmul.f32 %v7404_v50, %v14225_v34 }
0x127b   : > { %v7457_v44 = vmul.f32 %v9420_v18, %v7455_v5  ;;  %vm7462_vm10 = vweird.f32 %v9420_v18  ;;  %v7429_v0 = vsel %vm7426_vm14, %v7428_v12, %v7424_v29  ;;  %v7827_v6 = vpack.c.bf16 %v7814_v59, %v7813_v32 }
0x127c   : > { %vm7463_vm13 = vmor %vm7461_vm0, %vm7462_vm10 }
0x127d   : > { %v7458_v10 = vsub.f32 1.0, %v7457_v44  ;;  %v7430_v44 = vmul.f32 %v7429_v0, %v7405_v17  ;;  %7919 = vmatmul.bf16.gmra.mxu3 %v7827_v6 }
0x127f   : > { %v7459_v40 = vmul.f32 %v9420_v18, %v7458_v10  ;;  %v8479_v34 = vclamps-f32 %v7430_v44, 1.0 }
0x1281   : > { %v7460_v38 = vadd.f32 %v9420_v18, %v7459_v40 }
0x1283   : > { %v7464_v27 = vsel %vm7463_vm13, %v9420_v18, %v7460_v38  ;;  %v7127_v38 = vmul.f32 0.5, %v14221_v42 }
0x1284   : > { %v7469_v54 = vsel %vm7466_vm1, %v7468_v63, %v7464_v27 }
0x1285   : > { %v7470_v18 = vmul.f32 %v7469_v54, %v7445_v1 }
0x1287   : > { %v8480_v16 = vclamps-f32 %v7470_v18, 1.0 }
0x1289   : > { %v7800_v53 = vadd.f32 1.0, %v8480_v16 }
0x128b   : > { %v7816_v63 = vmul.f32 %v7800_v53, %v7128_v41 }
0x129e   : > { %v7101_v57 = vpop.f32.mrf.mxu2 }
0x129f   : > { %v14350_v15 = vadd.f32 %v14347_v33, %v7101_v57 }
0x12a1   : > { %v14353_v52 = vmul.f32 0.70710677, %v14350_v15 }
0x12a3   : > { %v7473_v11 = vmul.f32 %v14353_v52, %v14353_v52 }
0x12a5   : > { %v14359_v20 = vmin.f32 %v7473_v11, 16.0 }
0x12a6   : > { %v7103_v36 = vpop.f32.mrf.mxu2 }
0x12a7   : > { %v7486_v24 = vmul.f32 3.8918573e-05, %v14359_v20  ;;  %v7475_v35 = vmul.f32 2.1237322e-06, %v14359_v20  ;;  %v14380_v5 = vadd.f32 %v14347_v33, %v7103_v36 }
0x12a9   : > { %v7487_v61 = vadd.f32 0.001143296, %v7486_v24  ;;  %v7476_v48 = vadd.f32 0.00028619796, %v7475_v35  ;;  %v14385_v2 = vmul.f32 0.70710677, %v14380_v5 }
0x12ab   : > { %v7488_v3 = vmul.f32 %v7487_v61, %v14359_v20  ;;  %v7513_v43 = vmul.f32 %v14385_v2, %v14385_v2  ;;  %v7477_v30 = vmul.f32 %v7476_v48, %v14359_v20  ;;  %v7799_v61 = vadd.f32 1.0, %v8479_v34 }
0x12ad   : > { %v7489_v57 = vadd.f32 0.014752088, %v7488_v3  ;;  %v14392_v62 = vmin.f32 %v7513_v43, 16.0  ;;  %v7478_v13 = vadd.f32 0.0036580483, %v7477_v30  ;;  %v7815_v29 = vmul.f32 %v7799_v61, %v7127_v38 }
0x12af   : > { %v7490_v39 = vmul.f32 %v7489_v57, %v14359_v20  ;;  %v7515_v58 = vmul.f32 2.1237322e-06, %v14392_v62  ;;  %v7526_v10 = vmul.f32 3.8918573e-05, %v14392_v62  ;;  %v7910_v7 = vpop.f32.mrf.mxu3  ;;  %v7479_v59 = vmul.f32 %v7478_v13, %v14359_v20 }
0x12b0   : > { %v7911_v50 = vadd.f32 %v14403_v60, %v7910_v7  ;;  %v7828_v42 = vpack.c.bf16 %v7816_v63, %v7815_v29 }
0x12b1   : > { %v7491_v11 = vadd.f32 0.112945676, %v7490_v39  ;;  %v7516_v24 = vadd.f32 0.00028619796, %v7515_v58  ;;  %v7527_v40 = vadd.f32 0.001143296, %v7526_v10 }
0x12b2   : > { %v7950_v36 = vadd.f32 %v7911_v50, %v12918_v4  ;;  %v7480_v12 = vadd.f32 0.05243302, %v7479_v59  ;;  %7924 = vmatmul.bf16.gmra.mxu3 %v7828_v42 }
0x12b3   : > { %v7492_v23 = vmul.f32 %v7491_v11, %v14359_v20  ;;  %v7517_v56 = vmul.f32 %v7516_v24, %v14392_v62  ;;  %v7528_v19 = vmul.f32 %v7527_v40, %v14392_v62 }
0x12b4   : > { %7966 = vst.msk [vmem:[#allocation2] sm:$0xff] %vm1067_vm2, %v7950_v36  ;;  %v7481_v48 = vmul.f32 %v7480_v12, %v14359_v20 }
0x12b5   : > { %v7493_v21 = vadd.f32 0.4994258, %v7492_v23  ;;  %v7518_v35 = vadd.f32 0.0036580483, %v7517_v56  ;;  %v7529_v3 = vadd.f32 0.014752088, %v7528_v19  ;;  %v7106_v11 = vpop.f32.mrf.mxu2 }
0x12b6   : > { %v14420_v44 = vadd.f32 %v14347_v33, %v7106_v11  ;;  %v7482_v30 = vadd.f32 0.18741608, %v7481_v48  ;;  %v7130_v11 = vmul.f32 0.5, %v14380_v5 }
0x12b7   : > { %v7494_v31 = vmul.f32 %v7493_v21, %v14359_v20  ;;  %v7530_v27 = vmul.f32 %v7529_v3, %v14392_v62  ;;  %v7519_v37 = vmul.f32 %v7518_v35, %v14392_v62  ;;  %v7912_v0 = vpop.f32.mrf.mxu3 }
0x12b8   : > { %v7913_v39 = vadd.f32 %v14403_v60, %v7912_v0  ;;  %v14425_v58 = vmul.f32 0.70710677, %v14420_v44 }
0x12b9   : > { %v7495_v51 = vadd.f32 1.0, %v7494_v31  ;;  %v7531_v54 = vadd.f32 0.112945676, %v7530_v27  ;;  %v7520_v18 = vadd.f32 0.05243302, %v7519_v37 }
0x12ba   : > { %v7951_v6 = vadd.f32 %v7913_v39, %v12920_v26  ;;  %v7483_v26 = vmul.f32 %v7482_v30, %v14359_v20  ;;  %v7553_v53 = vmul.f32 %v14425_v58, %v14425_v58 }
0x12bb   : > { %9421 = vrcp.f32 %v7495_v51  ;;  %v7532_v1 = vmul.f32 %v7531_v54, %v14392_v62  ;;  %v7521_v16 = vmul.f32 %v7520_v18, %v14392_v62  ;;  %v7507_v31 = vand.u32 2147483648, %v7495_v51 }
0x12bc   : > { %7967 = vst.msk [vmem:[#allocation2 + $0x8] sm:$0xff] %vm1067_vm2, %v7951_v6  ;;  %vm7501_vm3 = vweird.f32 %v7495_v51  ;;  %v7505_v40 = vand.u32 2147483647, %v7495_v51  ;;  %v7484_v61 = vadd.f32 1.1283791, %v7483_v26  ;;  %v14433_v19 = vmin.f32 %v7553_v53, 16.0 }
0x12bd   : > { %v7533_v4 = vadd.f32 0.4994258, %v7532_v1  ;;  %v7522_v24 = vadd.f32 0.18741608, %v7521_v16  ;;  %v7508_v7 = vor.u32 1.1754944e-38, %v7507_v31  ;;  %v7129_v6 = vmul.f32 0.5, %v14350_v15 }
0x12be   : > { %vm7506_vm5 = vcmp.eq.f32.partialorder %v7505_v40, 8.507059e+37  ;;  %v7485_v3 = vmul.f32 %v7484_v61, %v14353_v52  ;;  %v7566_v50 = vmul.f32 3.8918573e-05, %v14433_v19 }
0x12bf   : > { %v7534_v43 = vmul.f32 %v7533_v4, %v14392_v62  ;;  %v7915_v34 = vpop.f32.mrf.mxu3  ;;  %v7523_v38 = vmul.f32 %v7522_v24, %v14392_v62 }
0x12c0   : > { %v7916_v13 = vadd.f32 %v14403_v60, %v7915_v34  ;;  %v7567_v42 = vadd.f32 0.001143296, %v7566_v50 }
0x12c1   : > { %v9422_v57 = vpop.eup %9421  ;;  %v7535_v21 = vadd.f32 1.0, %v7534_v43  ;;  %v7524_v29 = vadd.f32 1.1283791, %v7523_v38 }
0x12c2   : > { %v7497_v32 = vmul.f32 %v9422_v57, %v7495_v51  ;;  %vm7502_vm15 = vweird.f32 %v9422_v57  ;;  %v7952_v56 = vadd.f32 %v7916_v13, %v13679_v22  ;;  %v7568_v39 = vmul.f32 %v7567_v42, %v14433_v19 }
0x12c3   : > { %9423 = vrcp.f32 %v7535_v21  ;;  %vm7503_vm4 = vmor %vm7501_vm3, %vm7502_vm15  ;;  %v7545_v27 = vand.u32 2147483647, %v7535_v21  ;;  %v7547_v36 = vand.u32 2147483648, %v7535_v21  ;;  %vm7541_vm7 = vweird.f32 %v7535_v21 }
0x12c4   : > { %v7498_v17 = vsub.f32 1.0, %v7497_v32  ;;  %7968 = vst.msk [vmem:[#allocation2 + $0x10] sm:$0xff] %vm1067_vm2, %v7952_v56  ;;  %v7525_v32 = vmul.f32 %v7524_v29, %v14385_v2  ;;  %v7569_v30 = vadd.f32 0.014752088, %v7568_v39 }
0x12c5   : > { %v7548_v52 = vor.u32 1.1754944e-38, %v7547_v36  ;;  %vm7546_vm9 = vcmp.eq.f32.partialorder %v7545_v27, 8.507059e+37 }
0x12c6   : > { %v7499_v23 = vmul.f32 %v9422_v57, %v7498_v17  ;;  %v7108_v17 = vpop.f32.mrf.mxu2  ;;  %v7570_v26 = vmul.f32 %v7569_v30, %v14433_v19 }
0x12c7   : > { %v7917_v35 = vpop.f32.mrf.mxu3  ;;  %v14444_v18 = vadd.f32 %v14347_v33, %v7108_v17 }
0x12c8   : > { %v7500_v10 = vadd.f32 %v9422_v57, %v7499_v23  ;;  %v7918_v22 = vadd.f32 %v14403_v60, %v7917_v35  ;;  %v7571_v13 = vadd.f32 0.112945676, %v7570_v26 }
0x12c9   : > { %v9424_v20 = vpop.eup %9423  ;;  %v14449_v2 = vmul.f32 0.70710677, %v14444_v18 }
0x12ca   : > { %v7504_v41 = vsel %vm7503_vm4, %v9422_v57, %v7500_v10  ;;  %v7537_v59 = vmul.f32 %v9424_v20, %v7535_v21  ;;  %vm7542_vm6 = vweird.f32 %v9424_v20  ;;  %v7953_v54 = vadd.f32 %v7918_v22, %v12922_v45 }
0x12cb   : > { %v7509_v63 = vsel %vm7506_vm5, %v7508_v7, %v7504_v41  ;;  %vm7543_vm8 = vmor %vm7541_vm7, %vm7542_vm6  ;;  %v7593_v21 = vmul.f32 %v14449_v2, %v14449_v2  ;;  %v7572_v24 = vmul.f32 %v7571_v13, %v14433_v19  ;;  %v7555_v41 = vmul.f32 2.1237322e-06, %v14433_v19 }
0x12cc   : > { %v7538_v51 = vsub.f32 1.0, %v7537_v59  ;;  %v7510_v12 = vmul.f32 %v7509_v63, %v7485_v3  ;;  %7969 = vst.msk [vmem:[#allocation2 + $0x18] sm:$0xff] %vm1067_vm2, %v7953_v54 }
0x12cd   : > { %v14454_v10 = vmin.f32 %v7593_v21, 16.0  ;;  %v7573_v56 = vadd.f32 0.4994258, %v7572_v24  ;;  %v7556_v3 = vadd.f32 0.00028619796, %v7555_v41 }
0x12ce   : > { %v7539_v37 = vmul.f32 %v9424_v20, %v7538_v51  ;;  %v8481_v57 = vclamps-f32 %v7510_v12, 1.0 }
0x12cf   : > { %v7606_v15 = vmul.f32 3.8918573e-05, %v14454_v10  ;;  %v7595_v7 = vmul.f32 2.1237322e-06, %v14454_v10  ;;  %v7574_v63 = vmul.f32 %v7573_v56, %v14433_v19  ;;  %v7557_v36 = vmul.f32 %v7556_v3, %v14433_v19 }
0x12d0   : > { %v7540_v62 = vadd.f32 %v9424_v20, %v7539_v37  ;;  %v7801_v45 = vadd.f32 1.0, %v8481_v57 }
0x12d1   : > { %v7607_v5 = vadd.f32 0.001143296, %v7606_v15  ;;  %v7596_v22 = vadd.f32 0.00028619796, %v7595_v7  ;;  %v14473_v27 = vadd.f32 1.0, %v7574_v63 }
0x12d2   : > { %v7544_v1 = vsel %vm7543_vm8, %v9424_v20, %v7540_v62  ;;  %v7817_v23 = vmul.f32 %v7801_v45, %v7129_v6  ;;  %v7111_v20 = vpop.f32.mrf.mxu2  ;;  %v7558_v42 = vadd.f32 0.0036580483, %v7557_v36 }
0x12d3   : > { %v7549_v0 = vsel %vm7546_vm9, %v7548_v52, %v7544_v1  ;;  %v7608_v31 = vmul.f32 %v7607_v5, %v14454_v10  ;;  %v14464_v59 = vadd.f32 %v14347_v33, %v7111_v20  ;;  %v7597_v54 = vmul.f32 %v7596_v22, %v14454_v10 }
0x12d4   : > { %v7550_v48 = vmul.f32 %v7549_v0, %v7525_v32  ;;  %9425 = vrcp.f32 %v14473_v27  ;;  %v7559_v1 = vmul.f32 %v7558_v42, %v14433_v19  ;;  %vm7581_vm0 = vweird.f32 %v14473_v27 }
0x12d5   : > { %v7609_v53 = vadd.f32 0.014752088, %v7608_v31  ;;  %v14468_v51 = vmul.f32 0.70710677, %v14464_v59  ;;  %v7598_v52 = vadd.f32 0.0036580483, %v7597_v54 }
0x12d6   : > { %v8482_v4 = vclamps-f32 %v7550_v48, 1.0  ;;  %v7560_v6 = vadd.f32 0.05243302, %v7559_v1 }
0x12d7   : > { %v7610_v40 = vmul.f32 %v7609_v53, %v14454_v10  ;;  %v7633_v29 = vmul.f32 %v14468_v51, %v14468_v51  ;;  %v7599_v48 = vmul.f32 %v7598_v52, %v14454_v10 }
0x12d8   : > { %v7802_v43 = vadd.f32 1.0, %v8482_v4  ;;  %v7561_v15 = vmul.f32 %v7560_v6, %v14433_v19 }
0x12d9   : > { %v7611_v61 = vadd.f32 0.112945676, %v7610_v40  ;;  %v14478_v37 = vmin.f32 %v7633_v29, 16.0 }
0x12da   : > { %v7818_v16 = vmul.f32 %v7802_v43, %v7130_v11  ;;  %v14486_v0 = vpop.eup %9425  ;;  %v7600_v43 = vadd.f32 0.05243302, %v7599_v48  ;;  %v7562_v41 = vadd.f32 0.18741608, %v7561_v15  ;;  %v7585_v48 = vand.u32 2147483647, %v14473_v27 }
0x12db   : > { %v7612_v38 = vmul.f32 %v7611_v61, %v14454_v10  ;;  %v7646_v62 = vmul.f32 3.8918573e-05, %v14478_v37  ;;  %v7635_v45 = vmul.f32 2.1237322e-06, %v14478_v37  ;;  %v7577_v11 = vmul.f32 %v14486_v0, %v14473_v27 }
0x12dc   : > { %v7829_v34 = vpack.c.bf16 %v7818_v16, %v7817_v23  ;;  %v7113_v16 = vpop.f32.mrf.mxu2  ;;  %v7601_v31 = vmul.f32 %v7600_v43, %v14454_v10  ;;  %v7563_v29 = vmul.f32 %v7562_v41, %v14433_v19  ;;  %vm7582_vm10 = vweird.f32 %v14486_v0 }
0x12dd   : > { %v7613_v35 = vadd.f32 0.4994258, %v7612_v38  ;;  %v7647_v57 = vadd.f32 0.001143296, %v7646_v62  ;;  %v7636_v21 = vadd.f32 0.00028619796, %v7635_v45  ;;  %vm7583_vm1 = vmor %vm7581_vm0, %vm7582_vm10 }
0x12de   : > { %7929 = vmatmul.bf16.gmra.mxu3 %v7829_v34  ;;  %v14498_v34 = vadd.f32 %v14347_v33, %v7113_v16  ;;  %v7578_v5 = vsub.f32 1.0, %v7577_v11  ;;  %v7602_v38 = vadd.f32 0.18741608, %v7601_v31  ;;  %v7564_v43 = vadd.f32 1.1283791, %v7563_v29 }
0x12df   : > { %v7614_v50 = vmul.f32 %v7613_v35, %v14454_v10  ;;  %v7648_v32 = vmul.f32 %v7647_v57, %v14478_v37  ;;  %v7637_v40 = vmul.f32 %v7636_v21, %v14478_v37  ;;  %vm7586_vm14 = vcmp.eq.f32.partialorder %v7585_v48, 8.507059e+37 }
0x12e0   : > { %v14503_v13 = vmul.f32 0.70710677, %v14498_v34  ;;  %v7579_v7 = vmul.f32 %v14486_v0, %v7578_v5  ;;  %v7603_v42 = vmul.f32 %v7602_v38, %v14454_v10 }
0x12e1   : > { %v14476_v12 = vadd.f32 1.0, %v7614_v50  ;;  %v7649_v39 = vadd.f32 0.014752088, %v7648_v32  ;;  %v7638_v3 = vadd.f32 0.0036580483, %v7637_v40 }
0x12e2   : > { %v7673_v56 = vmul.f32 %v14503_v13, %v14503_v13  ;;  %v7580_v62 = vadd.f32 %v14486_v0, %v7579_v7 }
0x12e3   : > { %9427 = vrcp.f32 %v14476_v12  ;;  %v7650_v4 = vmul.f32 %v7649_v39, %v14478_v37  ;;  %v7627_v57 = vand.u32 2147483648, %v14476_v12  ;;  %v7639_v32 = vmul.f32 %v7638_v3, %v14478_v37 }
0x12e4   : > { %v14510_v20 = vmin.f32 %v7673_v56, 16.0  ;;  %v7587_v39 = vand.u32 2147483648, %v14473_v27  ;;  %vm7621_vm12 = vweird.f32 %v14476_v12  ;;  %v7625_v10 = vand.u32 2147483647, %v14476_v12 }
0x12e5   : > { %v7651_v23 = vadd.f32 0.112945676, %v7650_v4  ;;  %v7628_v27 = vor.u32 1.1754944e-38, %v7627_v57  ;;  %v7640_v16 = vadd.f32 0.05243302, %v7639_v32 }
0x12e6   : > { %v7675_v22 = vmul.f32 2.1237322e-06, %v14510_v20  ;;  %v7686_v50 = vmul.f32 3.8918573e-05, %v14510_v20  ;;  %vm7626_vm15 = vcmp.eq.f32.partialorder %v7625_v10, 8.507059e+37 }
0x12e7   : > { %v7652_v26 = vmul.f32 %v7651_v23, %v14478_v37 }
0x12e8   : > { %v7676_v36 = vadd.f32 0.00028619796, %v7675_v22  ;;  %v7687_v54 = vadd.f32 0.001143296, %v7686_v50 }
0x12e9   : > { %v14489_v17 = vpop.eup %9427  ;;  %v7653_v53 = vadd.f32 0.4994258, %v7652_v26  ;;  %v7588_v26 = vor.u32 1.1754944e-38, %v7587_v39  ;;  %v7132_v39 = vmul.f32 0.5, %v14444_v18 }
0x12ea   : > { %v7617_v30 = vmul.f32 %v14489_v17, %v14476_v12  ;;  %vm7622_vm11 = vweird.f32 %v14489_v17  ;;  %v7677_v1 = vmul.f32 %v7676_v36, %v14510_v20  ;;  %v7688_v19 = vmul.f32 %v7687_v54, %v14510_v20 }
0x12eb   : > { %v7654_v61 = vmul.f32 %v7653_v53, %v14478_v37  ;;  %vm14534_vm13 = vmor %vm7621_vm12, %vm7622_vm11  ;;  %v7584_v12 = vsel %vm7583_vm1, %v14486_v0, %v7580_v62  ;;  %v7641_v0 = vmul.f32 %v7640_v16, %v14478_v37 }
0x12ec   : > { %v7618_v24 = vsub.f32 1.0, %v7617_v30  ;;  %v7678_v4 = vadd.f32 0.0036580483, %v7677_v1  ;;  %v7689_v6 = vadd.f32 0.014752088, %v7688_v19  ;;  %v7589_v53 = vsel %vm7586_vm14, %v7588_v26, %v7584_v12 }
0x12ed   : > { %v14514_v35 = vadd.f32 1.0, %v7654_v61  ;;  %v7604_v30 = vadd.f32 1.1283791, %v7603_v42  ;;  %v7642_v22 = vadd.f32 0.18741608, %v7641_v0 }
0x12ee   : > { %v7619_v63 = vmul.f32 %v14489_v17, %v7618_v24  ;;  %v7690_v21 = vmul.f32 %v7689_v6, %v14510_v20  ;;  %v7679_v31 = vmul.f32 %v7678_v4, %v14510_v20  ;;  %v7131_v4 = vmul.f32 0.5, %v14420_v44 }
0x12ef   : > { %9429 = vrcp.f32 %v14514_v35  ;;  %v7605_v40 = vmul.f32 %v7604_v30, %v14449_v2  ;;  %v7667_v10 = vand.u32 2147483648, %v14514_v35  ;;  %vm7661_vm4 = vweird.f32 %v14514_v35 }
0x12f0   : > { %v7620_v52 = vadd.f32 %v14489_v17, %v7619_v63  ;;  %v7691_v24 = vadd.f32 0.112945676, %v7690_v21  ;;  %v7680_v38 = vadd.f32 0.05243302, %v7679_v31  ;;  %v7665_v6 = vand.u32 2147483647, %v14514_v35 }
0x12f1   : > { %v7668_v26 = vor.u32 1.1754944e-38, %v7667_v10 }
0x12f2   : > { %v7624_v23 = vsel %vm14534_vm13, %v14489_v17, %v7620_v52  ;;  %v7565_v17 = vmul.f32 %v7564_v43, %v14425_v58  ;;  %v7692_v56 = vmul.f32 %v7691_v24, %v14510_v20  ;;  %v7116_v3 = vpop.f32.mrf.mxu2  ;;  %v7681_v54 = vmul.f32 %v7680_v38, %v14510_v20 }
0x12f3   : > { %v7629_v15 = vsel %vm7626_vm15, %v7628_v27, %v7624_v23  ;;  %v14556_v29 = vadd.f32 %v14347_v33, %v7116_v3  ;;  %v7643_v52 = vmul.f32 %v7642_v22, %v14478_v37  ;;  %vm7666_vm6 = vcmp.eq.f32.partialorder %v7665_v6, 8.507059e+37 }
0x12f4   : > { %v7630_v61 = vmul.f32 %v7629_v15, %v7605_v40  ;;  %v7590_v41 = vmul.f32 %v7589_v53, %v7565_v17  ;;  %v7693_v63 = vadd.f32 0.4994258, %v7692_v56  ;;  %v7682_v48 = vadd.f32 0.18741608, %v7681_v54 }
0x12f5   : > { %v14538_v11 = vpop.eup %9429  ;;  %v14561_v42 = vmul.f32 0.70710677, %v14556_v29  ;;  %v7644_v37 = vadd.f32 1.1283791, %v7643_v52 }
0x12f6   : > { %v7657_v5 = vmul.f32 %v14538_v11, %v14514_v35  ;;  %v7694_v50 = vmul.f32 %v7693_v63, %v14510_v20  ;;  %v8484_v36 = vclamps-f32 %v7630_v61, 1.0  ;;  %v8483_v2 = vclamps-f32 %v7590_v41, 1.0 }
0x12f7   : > { %v7713_v32 = vmul.f32 %v14561_v42, %v14561_v42  ;;  %vm7662_vm3 = vweird.f32 %v14538_v11  ;;  %v7683_v21 = vmul.f32 %v7682_v48, %v14510_v20  ;;  %v7645_v24 = vmul.f32 %v7644_v37, %v14468_v51 }
0x12f8   : > { %v7658_v7 = vsub.f32 1.0, %v7657_v5  ;;  %v7695_v62 = vadd.f32 1.0, %v7694_v50  ;;  %v7804_v57 = vadd.f32 1.0, %v8484_v36  ;;  %v7803_v1 = vadd.f32 1.0, %v8483_v2  ;;  %vm14575_vm5 = vmor %vm7661_vm4, %vm7662_vm3 }
0x12f9   : > { %v14570_v45 = vmin.f32 %v7713_v32, 16.0  ;;  %v7684_v56 = vadd.f32 1.1283791, %v7683_v21  ;;  %v7133_v21 = vmul.f32 0.5, %v14464_v59 }
0x12fa   : > { %v7659_v58 = vmul.f32 %v14538_v11, %v7658_v7  ;;  %9431 = vrcp.f32 %v7695_v62  ;;  %v7820_v43 = vmul.f32 %v7804_v57, %v7132_v39  ;;  %v7118_v12 = vpop.f32.mrf.mxu2  ;;  %v7819_v16 = vmul.f32 %v7803_v1, %v7131_v4 }
0x12fb   : > { %v7715_v23 = vmul.f32 2.1237322e-06, %v14570_v45  ;;  %v7726_v18 = vmul.f32 3.8918573e-05, %v14570_v45  ;;  %v14586_v35 = vadd.f32 %v14347_v33, %v7118_v12  ;;  %v7705_v20 = vand.u32 2147483647, %v7695_v62 }
0x12fc   : > { %v7660_v19 = vadd.f32 %v14538_v11, %v7659_v58  ;;  %v7707_v61 = vand.u32 2147483648, %v7695_v62  ;;  %vm7701_vm8 = vweird.f32 %v7695_v62  ;;  %v7685_v50 = vmul.f32 %v7684_v56, %v14503_v13 }
0x12fd   : > { %v7716_v5 = vadd.f32 0.00028619796, %v7715_v23  ;;  %v7727_v31 = vadd.f32 0.001143296, %v7726_v18  ;;  %v14590_v53 = vmul.f32 0.70710677, %v14586_v35 }
0x12fe   : > { %v7664_v44 = vsel %vm14575_vm5, %v14538_v11, %v7660_v19  ;;  %v7830_v11 = vpack.c.bf16 %v7820_v43, %v7819_v16  ;;  %v7708_v36 = vor.u32 1.1754944e-38, %v7707_v61  ;;  %vm7706_vm10 = vcmp.eq.f32.partialorder %v7705_v20, 8.507059e+37 }
0x12ff   : > { %v7669_v40 = vsel %vm7666_vm6, %v7668_v26, %v7664_v44  ;;  %v7728_v0 = vmul.f32 %v7727_v31, %v14570_v45  ;;  %v7753_v33 = vmul.f32 %v14590_v53, %v14590_v53  ;;  %v7717_v7 = vmul.f32 %v7716_v5, %v14570_v45 }
0x1300   : > { %v9432_v27 = vpop.eup %9431  ;;  %7934 = vmatmul.bf16.gmra.mxu3 %v7830_v11  ;;  %v7670_v38 = vmul.f32 %v7669_v40, %v7645_v24  ;;  %v7920_v43 = vpop.f32.mrf.mxu3 }
0x1301   : > { %v7697_v15 = vmul.f32 %v9432_v27, %v7695_v62  ;;  %vm7702_vm7 = vweird.f32 %v9432_v27  ;;  %v7729_v51 = vadd.f32 0.014752088, %v7728_v0  ;;  %v14596_v63 = vmin.f32 %v7753_v33, 16.0 }
0x1302   : > { %vm7703_vm9 = vmor %vm7701_vm8, %vm7702_vm7  ;;  %v7718_v52 = vadd.f32 0.0036580483, %v7717_v7  ;;  %v8485_v32 = vclamps-f32 %v7670_v38, 1.0  ;;  %v7921_v12 = vadd.f32 %v14403_v60, %v7920_v43 }
0x1303   : > { %v7698_v17 = vsub.f32 1.0, %v7697_v15  ;;  %v7730_v22 = vmul.f32 %v7729_v51, %v14570_v45  ;;  %v7755_v2 = vmul.f32 2.1237322e-06, %v14596_v63  ;;  %v7766_v58 = vmul.f32 3.8918573e-05, %v14596_v63 }
0x1304   : > { %v7719_v37 = vmul.f32 %v7718_v52, %v14570_v45  ;;  %v7805_v30 = vadd.f32 1.0, %v8485_v32  ;;  %v7954_v15 = vadd.f32 %v7921_v12, %v13711_v14 }
0x1305   : > { %v7699_v41 = vmul.f32 %v9432_v27, %v7698_v17  ;;  %v7731_v57 = vadd.f32 0.112945676, %v7730_v22  ;;  %v7756_v19 = vadd.f32 0.00028619796, %v7755_v2  ;;  %v7767_v48 = vadd.f32 0.001143296, %v7766_v58 }
0x1306   : > { %v7720_v31 = vadd.f32 0.05243302, %v7719_v37  ;;  %v7821_v40 = vmul.f32 %v7805_v30, %v7133_v21  ;;  %7970 = vst.msk [vmem:[#allocation2 + $0x20] sm:$0xff] %vm1067_vm2, %v7954_v15 }
0x1307   : > { %v7700_v3 = vadd.f32 %v9432_v27, %v7699_v41  ;;  %v7732_v62 = vmul.f32 %v7731_v57, %v14570_v45  ;;  %v7757_v10 = vmul.f32 %v7756_v19, %v14596_v63  ;;  %v7768_v13 = vmul.f32 %v7767_v48, %v14596_v63 }
0x1308   : > { %v7721_v56 = vmul.f32 %v7720_v31, %v14570_v45  ;;  %v7922_v59 = vpop.f32.mrf.mxu3 }
0x1309   : > { %v7704_v54 = vsel %vm7703_vm9, %v9432_v27, %v7700_v3  ;;  %v7733_v6 = vadd.f32 0.4994258, %v7732_v62  ;;  %v7758_v23 = vadd.f32 0.0036580483, %v7757_v10  ;;  %v7769_v18 = vadd.f32 0.014752088, %v7768_v13 }
0x130a   : > { %v7709_v1 = vsel %vm7706_vm10, %v7708_v36, %v7704_v54  ;;  %v7134_v27 = vmul.f32 0.5, %v14498_v34  ;;  %v7923_v14 = vadd.f32 %v14403_v60, %v7922_v59  ;;  %v7722_v51 = vadd.f32 0.18741608, %v7721_v56 }
0x130b   : > { %v7710_v39 = vmul.f32 %v7709_v1, %v7685_v50  ;;  %v7734_v44 = vmul.f32 %v7733_v6, %v14570_v45  ;;  %v7770_v26 = vmul.f32 %v7769_v18, %v14596_v63  ;;  %v7759_v17 = vmul.f32 %v7758_v23, %v14596_v63 }
0x130c   : > { %v7955_v41 = vadd.f32 %v7923_v14, %v13721_v49  ;;  %v7723_v36 = vmul.f32 %v7722_v51, %v14570_v45 }
0x130d   : > { %v8486_v4 = vclamps-f32 %v7710_v39, 1.0  ;;  %v7735_v24 = vadd.f32 1.0, %v7734_v44  ;;  %v7771_v0 = vadd.f32 0.112945676, %v7770_v26  ;;  %v7760_v20 = vadd.f32 0.05243302, %v7759_v17 }
0x130e   : > { %7971 = vst.msk [vmem:[#allocation2 + $0x28] sm:$0xff] %vm1067_vm2, %v7955_v41  ;;  %v7724_v19 = vadd.f32 1.1283791, %v7723_v36 }
0x130f   : > { %v7806_v16 = vadd.f32 1.0, %v8486_v4  ;;  %9433 = vrcp.f32 %v7735_v24  ;;  %v7772_v34 = vmul.f32 %v7771_v0, %v14596_v63  ;;  %v7761_v3 = vmul.f32 %v7760_v20, %v14596_v63 }
0x1310   : > { %v7747_v2 = vand.u32 2147483648, %v7735_v24  ;;  %v7745_v49 = vand.u32 2147483647, %v7735_v24  ;;  %vm7741_vm12 = vweird.f32 %v7735_v24  ;;  %v7725_v4 = vmul.f32 %v7724_v19, %v14561_v42 }
0x1311   : > { %v7822_v5 = vmul.f32 %v7806_v16, %v7134_v27  ;;  %v7773_v61 = vadd.f32 0.4994258, %v7772_v34  ;;  %v7762_v52 = vadd.f32 0.18741608, %v7761_v3 }
0x1312   : > { %v7748_v62 = vor.u32 1.1754944e-38, %v7747_v2  ;;  %vm7746_vm13 = vcmp.eq.f32.partialorder %v7745_v49, 8.507059e+37 }
0x1313   : > { %v7831_v11 = vpack.c.bf16 %v7822_v5, %v7821_v40  ;;  %v7774_v33 = vmul.f32 %v7773_v61, %v14596_v63  ;;  %v7763_v10 = vmul.f32 %v7762_v52, %v14596_v63  ;;  %v7136_v40 = vmul.f32 0.5, %v14586_v35 }
0x1315   : > { %7939 = vmatmul.bf16.gmra.mxu3 %v7831_v11  ;;  %v9434_v7 = vpop.eup %9433  ;;  %v7775_v22 = vadd.f32 1.0, %v7774_v33  ;;  %v7764_v43 = vadd.f32 1.1283791, %v7763_v10 }
0x1316   : > { %v7737_v38 = vmul.f32 %v9434_v7, %v7735_v24  ;;  %vm7742_vm11 = vweird.f32 %v9434_v7  ;;  %v7135_v24 = vmul.f32 0.5, %v14556_v29 }
0x1317   : > { %9435 = vrcp.f32 %v7775_v22  ;;  %vm7743_vm0 = vmor %vm7741_vm12, %vm7742_vm11  ;;  %v7787_v30 = vand.u32 2147483648, %v7775_v22  ;;  %v7785_v12 = vand.u32 2147483647, %v7775_v22  ;;  %vm7781_vm14 = vweird.f32 %v7775_v22 }
0x1318   : > { %v7738_v50 = vsub.f32 1.0, %v7737_v38  ;;  %v7765_v42 = vmul.f32 %v7764_v43, %v14590_v53 }
0x1319   : > { %v7788_v16 = vor.u32 1.1754944e-38, %v7787_v30  ;;  %vm7786_vm3 = vcmp.eq.f32.partialorder %v7785_v12, 8.507059e+37 }
0x131a   : > { %v7739_v54 = vmul.f32 %v9434_v7, %v7738_v50 }
0x131c   : > { %v7740_v32 = vadd.f32 %v9434_v7, %v7739_v54 }
0x131d   : > { %v9436_v48 = vpop.eup %9435 }
0x131e   : > { %v7744_v39 = vsel %vm7743_vm0, %v9434_v7, %v7740_v32  ;;  %v7777_v45 = vmul.f32 %v9436_v48, %v7775_v22  ;;  %vm7782_vm1 = vweird.f32 %v9436_v48 }
0x131f   : > { %v7749_v13 = vsel %vm7746_vm13, %v7748_v62, %v7744_v39  ;;  %vm7783_vm15 = vmor %vm7781_vm14, %vm7782_vm1 }
0x1320   : > { %v7778_v37 = vsub.f32 1.0, %v7777_v45  ;;  %v7750_v23 = vmul.f32 %v7749_v13, %v7725_v4 }
0x1322   : > { %v7779_v18 = vmul.f32 %v9436_v48, %v7778_v37  ;;  %v8487_v44 = vclamps-f32 %v7750_v23, 1.0 }
0x1324   : > { %v7780_v63 = vadd.f32 %v9436_v48, %v7779_v18  ;;  %v7807_v5 = vadd.f32 1.0, %v8487_v44 }
0x1326   : > { %v7784_v21 = vsel %vm7783_vm15, %v9436_v48, %v7780_v63  ;;  %v7823_v17 = vmul.f32 %v7807_v5, %v7135_v24 }
0x1327   : > { %v7789_v26 = vsel %vm7786_vm3, %v7788_v16, %v7784_v21 }
0x1328   : > { %v7790_v15 = vmul.f32 %v7789_v26, %v7765_v42 }
0x132a   : > { %v8488_v31 = vclamps-f32 %v7790_v15, 1.0 }
0x1335   : > { %v7925_v58 = vpop.f32.mrf.mxu3 }
0x1336   : > { %v7926_v57 = vadd.f32 %v14403_v60, %v7925_v58 }
0x1338   : > { %v7956_v1 = vadd.f32 %v7926_v57, %v13738_v9 }
0x133a   : > { %7972 = vst.msk [vmem:[#allocation2 + $0x30] sm:$0xff] %vm1067_vm2, %v7956_v1 }
0x133d   : > { %v7927_v6 = vpop.f32.mrf.mxu3 }
0x133e   : > { %v7928_v9 = vadd.f32 %v14403_v60, %v7927_v6 }
0x1340   : > { %v7957_v27 = vadd.f32 %v7928_v9, %v13751_v8  ;;  %v7808_v8 = vadd.f32 1.0, %v8488_v31 }
0x1342   : > { %7973 = vst.msk [vmem:[#allocation2 + $0x38] sm:$0xff] %vm1067_vm2, %v7957_v27  ;;  %v7824_v0 = vmul.f32 %v7808_v8, %v7136_v40 }
0x1344   : > { %v7832_v34 = vpack.c.bf16 %v7824_v0, %v7823_v17 }
0x1346   : > { %7944 = vmatmul.bf16.gmra.mxu3 %v7832_v34 }
0x1361   : > { %v7930_v11 = vpop.f32.mrf.mxu3 }
0x1362   : > { %v7931_v56 = vadd.f32 %v14403_v60, %v7930_v11 }
0x1364   : > { %v7958_v53 = vadd.f32 %v7931_v56, %v13761_v55 }
0x1366   : > { %7974 = vst.msk [vmem:[#allocation2 + $0x40] sm:$0xff] %vm1067_vm2, %v7958_v53 }
0x1369   : > { %v7932_v59 = vpop.f32.mrf.mxu3 }
0x136a   : > { %v7933_v20 = vadd.f32 %v14403_v60, %v7932_v59 }
0x136c   : > { %v7959_v61 = vadd.f32 %v7933_v20, %v13769_v28 }
0x136e   : > { %7975 = vst.msk [vmem:[#allocation2 + $0x48] sm:$0xff] %vm1067_vm2, %v7959_v61 }
0x1383   : > { %v7935_v29 = vpop.f32.mrf.mxu3 }
0x1384   : > { %v7936_v35 = vadd.f32 %v14403_v60, %v7935_v29 }
0x1386   : > { %v7960_v14 = vadd.f32 %v7936_v35, %v13774_v47  ;;  %v15036_v47 = vld [vmem:[#allocation14_spill] sm:$0xff] }
0x1388   : > { %7976 = vst.msk [vmem:[#allocation2 + $0x50] sm:$0xff] %vm1067_vm2, %v7960_v14 }
0x138b   : > { %v7937_v33 = vpop.f32.mrf.mxu3 }
0x138c   : > { %v7938_v41 = vadd.f32 %v14403_v60, %v7937_v33 }
0x138e   : > { %v7961_v55 = vadd.f32 %v7938_v41, %v13789_v46  ;;  %v15037_v46 = vld [vmem:[#allocation15_spill] sm:$0xff] }
0x1390   : > { %7977 = vst.msk [vmem:[#allocation2 + $0x58] sm:$0xff] %vm1067_vm2, %v7961_v55 }
0x1398   : > { %v7940_v7 = vpop.f32.mrf.mxu3 }
0x1399   : > { %v7941_v51 = vadd.f32 %v14403_v60, %v7940_v7 }
0x139b   : > { %v7962_v28 = vadd.f32 %v7941_v51, %v13803_v25  ;;  %v15038_v25 = vld [vmem:[#allocation13_spill] sm:$0xff] }
0x139d   : > { %7978 = vst.msk [vmem:[#allocation2 + $0x60] sm:$0xff] %vm1067_vm2, %v7962_v28 }
0x13a0   : > { %v7942_v38 = vpop.f32.mrf.mxu3 }
0x13a1   : > { %v7943_v3 = vadd.f32 %v14403_v60, %v7942_v38 }
0x13a3   : > { %v7963_v22 = vadd.f32 %v7943_v3, %v15036_v47 }
0x13a5   : > { %7979 = vst.msk [vmem:[#allocation2 + $0x68] sm:$0xff] %vm1067_vm2, %v7963_v22 }
0x13c9   : > { %v7945_v50 = vpop.f32.mrf.mxu3 }
0x13ca   : > { %v7946_v36 = vadd.f32 %v14403_v60, %v7945_v50 }
0x13cc   : > { %v7964_v2 = vadd.f32 %v7946_v36, %v15037_v46 }
0x13ce   : > { %7980 = vst.msk [vmem:[#allocation2 + $0x70] sm:$0xff] %vm1067_vm2, %v7964_v2 }
0x13d1   : > { %v7947_v58 = vpop.f32.mrf.mxu3 }
0x13d2   : > { %v7948_v54 = vadd.f32 %v14403_v60, %v7947_v58  ;;  %7985 = sbr.rel (%p8521_p5) target bundleno = 5096 (0x13e8), region = 108 }
0x13d4   : > { %v7965_v52 = vadd.f32 %v7948_v54, %v15038_v25 }
0x13d6   : > { %7981 = vst.msk [vmem:[#allocation2 + $0x78] sm:$0xff] %vm1067_vm2, %v7965_v52 }
0x13d7   : > { %v7986_v57 = vld [vmem:[#allocation2] sm:$0xff]  ;;  %v7987_v49 = vld [vmem:[#allocation2 + $0x8] sm:$0xff]  ;;  %v7988_v32 = vld [vmem:[#allocation2 + $0x10] sm:$0xff] }
0x13d8   : > { %8002 = vst.msk [vmem:[%s15039_s9] sm:$0xff] %vm1067_vm2, %v7986_v57  ;;  %v7989_v1 = vld [vmem:[#allocation2 + $0x18] sm:$0xff]  ;;  %v7990_v60 = vld [vmem:[#allocation2 + $0x20] sm:$0xff]  ;;  %v7991_v19 = vld [vmem:[#allocation2 + $0x28] sm:$0xff] }
0x13d9   : > { %8003 = vst.msk [vmem:[%s15039_s9 + $0x8] sm:$0xff] %vm1067_vm2, %v7987_v49  ;;  %v7992_v48 = vld [vmem:[#allocation2 + $0x30] sm:$0xff]  ;;  %v7993_v39 = vld [vmem:[#allocation2 + $0x38] sm:$0xff]  ;;  %v7994_v62 = vld [vmem:[#allocation2 + $0x40] sm:$0xff] }
0x13da   : > { %8004 = vst.msk [vmem:[%s15039_s9 + $0x10] sm:$0xff] %vm1067_vm2, %v7988_v32  ;;  %v7995_v10 = vld [vmem:[#allocation2 + $0x48] sm:$0xff]  ;;  %v7996_v45 = vld [vmem:[#allocation2 + $0x50] sm:$0xff]  ;;  %v7997_v13 = vld [vmem:[#allocation2 + $0x58] sm:$0xff] }
0x13db   : > { %8005 = vst.msk [vmem:[%s15039_s9 + $0x18] sm:$0xff] %vm1067_vm2, %v7989_v1  ;;  %v7998_v4 = vld [vmem:[#allocation2 + $0x60] sm:$0xff]  ;;  %v7999_v37 = vld [vmem:[#allocation2 + $0x68] sm:$0xff]  ;;  %v8000_v6 = vld [vmem:[#allocation2 + $0x70] sm:$0xff] }
0x13dc   : > { %8006 = vst.msk [vmem:[%s15039_s9 + $0x20] sm:$0xff] %vm1067_vm2, %v7990_v60 }
0x13dd   : > { %8007 = vst.msk [vmem:[%s15039_s9 + $0x28] sm:$0xff] %vm1067_vm2, %v7991_v19  ;;  %v8001_v43 = vld [vmem:[#allocation2 + $0x78] sm:$0xff] }
0x13de   : > { %8008 = vst.msk [vmem:[%s15039_s9 + $0x30] sm:$0xff] %vm1067_vm2, %v7992_v48 }
0x13df   : > { %8009 = vst.msk [vmem:[%s15039_s9 + $0x38] sm:$0xff] %vm1067_vm2, %v7993_v39 }
0x13e0   : > { %8010 = vst.msk [vmem:[%s15039_s9 + $0x40] sm:$0xff] %vm1067_vm2, %v7994_v62 }
0x13e1   : > { %8011 = vst.msk [vmem:[%s15039_s9 + $0x48] sm:$0xff] %vm1067_vm2, %v7995_v10 }
0x13e2   : > { %8012 = vst.msk [vmem:[%s15039_s9 + $0x50] sm:$0xff] %vm1067_vm2, %v7996_v45 }
0x13e3   : > { %8013 = vst.msk [vmem:[%s15039_s9 + $0x58] sm:$0xff] %vm1067_vm2, %v7997_v13 }
0x13e4   : > { %8014 = vst.msk [vmem:[%s15039_s9 + $0x60] sm:$0xff] %vm1067_vm2, %v7998_v4 }
0x13e5   : > { %8015 = vst.msk [vmem:[%s15039_s9 + $0x68] sm:$0xff] %vm1067_vm2, %v7999_v37 }
0x13e6   : > { %8016 = vst.msk [vmem:[%s15039_s9 + $0x70] sm:$0xff] %vm1067_vm2, %v8000_v6 }
0x13e7   : > { %8017 = vst.msk [vmem:[%s15039_s9 + $0x78] sm:$0xff] %vm1067_vm2, %v8001_v43 }
0x13e8 PF: > { %s15040_s25 = sld [smem:[#allocation3_spill]] }
0x13ee   : > { %s30_s1 = sadd.s32 1, %s15040_s25  }
0x13ef   : > { %p27_p6 = scmp.ge.s32.totalorder %s30_s1, 4  }
0x13f1   :  { %29 = sbr.rel (!%p27_p6) target bundleno = 19 (0x13), region = 179 }

</bundles_post_ra>
